<compile_context>
chip_gen: v7x
topology: tpu7x:2x2x1
jax: 0.10.0
libtpu: 0.0.40
codegen_flags: <defaults>
</compile_context>

<pallas_src>
import jax
import jax.numpy as jnp
from jax.experimental import pallas as pl
from jax.experimental.pallas import tpu as pltpu


# ----------------------------------------------------------------------------
# Fused DecomNet kernel: conv0(9x9) -> 5 x (3x3 conv + ReLU) -> recon(3x3)
# -> sigmoid.  One grid step == one batch element.
# ----------------------------------------------------------------------------
def _make_decomnet_kernel(H, W, C, ks0, ks, cin0, cout_out):
    HW = H * W
    K0 = ks0 * cin0          # conv0 lane width after the wrapper-side dx unfold
    p = ks // 2              # replicate pad of intermediate activations (=1)

    def _edge_pad(f):
        # Replicate ("edge") pad by `p` on H (axis 0) and W (axis 1).
        f = jnp.concatenate([f[:1]] * p + [f] + [f[-1:]] * p, axis=0)
        f = jnp.concatenate([f[:, :1]] * p + [f] + [f[:, -1:]] * p, axis=1)
        return f

    def _conv_im2col(fp, w_bf16, b_f32, cin):
        # fp: (H+ks-1, W+ks-1, cin) bf16 ; w_bf16: (ks*ks*cin, cout) bf16
        cols = [fp[dy:dy + H, dx:dx + W, :].reshape(HW, cin)
                for dy in range(ks) for dx in range(ks)]
        patches = jnp.concatenate(cols, axis=-1)            # (HW, ks*ks*cin) bf16
        acc = jnp.dot(patches, w_bf16,
                      preferred_element_type=jnp.float32)   # f32 accumulation
        return acc + b_f32                                  # (HW, cout) f32

    def kernel(xu_ref, w0_ref, b0_ref, wm_ref, bm_ref, wr_ref, br_ref, o_ref):
        # --- net1_conv0: 9x9, replicate pad 4 (pad + dx unfold done in the
        #     wrapper, shipped bf16) -> one dot with K = ks0*ks0*cin0 = 324. ---
        xu = xu_ref[0]                                      # (H+ks0-1, W, K0) bf16
        p0 = jnp.concatenate(
            [xu[dy:dy + H].reshape(HW, K0) for dy in range(ks0)], axis=-1)
        y = jnp.dot(p0, w0_ref[...],
                    preferred_element_type=jnp.float32) + b0_ref[...]
        f = y.astype(jnp.bfloat16).reshape(H, W, C)         # feats0, no activation

        # --- net1_convs: 5 x (3x3 conv, replicate pad 1, ReLU); activations
        #     stay resident in VMEM/vregs (bf16) across layers; only the
        #     current layer's weights are loaded from the stacked tensor. ---
        for i in range(5):                                  # static unroll
            y = _conv_im2col(_edge_pad(f), wm_ref[i], bm_ref[i], C)
            f = jnp.maximum(y, 0.0).astype(jnp.bfloat16).reshape(H, W, C)

        # --- net1_recon: 3x3 conv, then sigmoid over all 4 output channels
        #     (equivalent to sigmoid on the R and L slices separately). ---
        y = _conv_im2col(_edge_pad(f), wr_ref[...], br_ref[...], C)
        # TODO(synk): pack R/L lane-dense (e.g. (4, H*W)) instead of a
        # last-dim-4 NHWC store for large images.
        o_ref[0] = jax.nn.sigmoid(y).reshape(H, W, cout_out).astype(o_ref.dtype)

    return kernel


# ----------------------------------------------------------------------------
# Parameters (deterministic synthetic init, same shapes as the nn.Module,
# stored in HWIO layout, f32).
# ----------------------------------------------------------------------------
def init_params(key, channel=32, kernel_size=3):
    ks = kernel_size
    shapes = [("conv0", (ks * 3, ks * 3, 4, channel))]
    for i in range(5):
        shapes.append((f"conv{i + 1}", (ks, ks, channel, channel)))
    shapes.append(("recon", (ks, ks, channel, 4)))

    params = {}
    for name, shp in shapes:
        key, k_w, k_b = jax.random.split(key, 3)
        fan_in = shp[0] * shp[1] * shp[2]
        params[name] = {
            "w": jax.random.normal(k_w, shp, jnp.float32) / jnp.sqrt(float(fan_in)),
            "b": jax.random.normal(k_b, (shp[3],), jnp.float32) * 0.01,
        }
    return params


# ----------------------------------------------------------------------------
# DecomNet forward (fused Pallas kernel) and a precision-matched JAX reference.
# ----------------------------------------------------------------------------
def decomnet_forward(params, input_im_nchw):
    f32, bf16 = jnp.float32, jnp.bfloat16
    x = jnp.transpose(input_im_nchw, (0, 2, 3, 1)).astype(f32)   # NCHW -> NHWC
    B, H, W, _ = x.shape

    ks0, _, cin0, C = params["conv0"]["w"].shape                 # (9, 9, 4, C)
    ks = params["conv1"]["w"].shape[0]                           # 3
    cout_out = params["recon"]["w"].shape[-1]                    # 4
    pad0 = ks0 // 2                                              # 4

    # torch.max over channels + torch.cat -- cheap 4-channel glue.
    xmax = jnp.max(x, axis=-1, keepdims=True)
    ximg = jnp.concatenate([xmax, x], axis=-1)                   # (B, H, W, 4)

    # Replicate pad for conv0 and unfold the kernel-width (dx) axis into the
    # lane axis -> (B, H + 2*pad0, W, ks0*cin0): the in-kernel conv0 im2col
    # then only slices the (cheap) leading H axis.  Shipped bf16 (matches the
    # reference's bf16 conv-input quantization, halves the input DMA).
    xpad = jnp.pad(ximg, ((0, 0), (pad0, pad0), (pad0, pad0), (0, 0)),
                   mode="edge")
    x_unf = jnp.concatenate([xpad[:, :, dx:dx + W, :] for dx in range(ks0)],
                            axis=-1).astype(bf16)

    # Pack weights to (kh*kw*cin, cout) in the same (dy, dx, cin) order the
    # kernel builds its im2col patches; bf16 for the MXU, biases stay f32.
    w0 = params["conv0"]["w"].reshape(ks0 * ks0 * cin0, C).astype(bf16)
    b0 = params["conv0"]["b"].reshape(1, C).astype(f32)
    wm = jnp.stack([params[f"conv{i + 1}"]["w"].reshape(ks * ks * C, C)
                    for i in range(5)]).astype(bf16)             # (5, 9C, C)
    bm = jnp.stack([params[f"conv{i + 1}"]["b"].reshape(1, C)
                    for i in range(5)]).astype(f32)              # (5, 1, C)
    wr = params["recon"]["w"].reshape(ks * ks * C, cout_out).astype(bf16)
    br = params["recon"]["b"].reshape(1, cout_out).astype(f32)

    kernel = _make_decomnet_kernel(H, W, C, ks0, ks, cin0, cout_out)
    Hp0 = H + 2 * pad0
    K0 = ks0 * cin0

    # TODO(synk): for large H,W, row-tile the fused kernel with a
    # (pad0 + 5 + 1)-row halo so activation tiles fit v7x's 64 MiB VMEM;
    # whole-image-per-batch blocks are fine at the test size.
    out = pl.pallas_call(
        kernel,
        out_shape=jax.ShapeDtypeStruct((B, H, W, cout_out), f32),
        grid_spec=pltpu.PrefetchScalarGridSpec(
            num_scalar_prefetch=0,
            grid=(B,),
            in_specs=[
                pl.BlockSpec((1, Hp0, W, K0), lambda b: (b, 0, 0, 0)),
                pl.BlockSpec((ks0 * ks0 * cin0, C), lambda b: (0, 0)),
                pl.BlockSpec((1, C), lambda b: (0, 0)),
                pl.BlockSpec((5, ks * ks * C, C), lambda b: (0, 0, 0)),
                pl.BlockSpec((5, 1, C), lambda b: (0, 0, 0)),
                pl.BlockSpec((ks * ks * C, cout_out), lambda b: (0, 0)),
                pl.BlockSpec((1, cout_out), lambda b: (0, 0)),
            ],
            out_specs=pl.BlockSpec((1, H, W, cout_out), lambda b: (b, 0, 0, 0)),
        ),
        compiler_params=pltpu.CompilerParams(
            dimension_semantics=("parallel",),        # megacore sharding on v7x
            vmem_limit_bytes=48 * 1024 * 1024,
        ),
    )(x_unf, w0, b0, wm, bm, wr, br)

    out = jnp.transpose(out, (0, 3, 1, 2))                        # NHWC -> NCHW
    R = out[:, 0:3, :, :]
    L = out[:, 3:4, :, :]
    return R, L


def decomnet_reference(params, input_im_nchw):
    """Pure-JAX reference with the same bf16 quantization points as the kernel."""
    f32, bf16 = jnp.float32, jnp.bfloat16
    x = jnp.transpose(input_im_nchw, (0, 2, 3, 1)).astype(f32)
    xmax = jnp.max(x, axis=-1, keepdims=True)
    x = jnp.concatenate([xmax, x], axis=-1)

    def conv(x, w, b, pad, act):
        xp = jnp.pad(x, ((0, 0), (pad, pad), (pad, pad), (0, 0)), mode="edge")
        y = jax.lax.conv_general_dilated(
            xp.astype(bf16), w.astype(bf16), (1, 1), "VALID",
            dimension_numbers=("NHWC", "HWIO", "NHWC"),
            preferred_element_type=f32)
        y = y + b.astype(f32)
        if act == "relu":
            y = jnp.maximum(y, 0.0)
        elif act == "sigmoid":
            y = jax.nn.sigmoid(y)
        return y

    f = conv(x, params["conv0"]["w"], params["conv0"]["b"], 4, None)
    for i in range(5):
        p = params[f"conv{i + 1}"]
        f = conv(f, p["w"], p["b"], 1, "relu")
    o = conv(f, params["recon"]["w"], params["recon"]["b"], 1, "sigmoid")
    o = jnp.transpose(o, (0, 3, 1, 2))
    return o[:, 0:3, :, :], o[:, 3:4, :, :]


if __name__ == "__main__":
    key = jax.random.PRNGKey(0)
    k_in, k_par = jax.random.split(key)

    B, Cin, H, W = 2, 3, 16, 16                  # input_im: (B, 3, H, W) NCHW
    input_im = jax.random.uniform(k_in, (B, Cin, H, W), jnp.float32)
    params = init_params(k_par, channel=32, kernel_size=3)

    R, L = jax.jit(decomnet_forward)(params, input_im)
    jax.block_until_ready((R, L))

    R_ref, L_ref = decomnet_reference(params, input_im)
    assert R.shape == (B, 3, H, W) and L.shape == (B, 1, H, W)
    assert jnp.allclose(R, R_ref, atol=2e-3, rtol=2e-3), \
        float(jnp.max(jnp.abs(R - R_ref)))
    assert jnp.allclose(L, L_ref, atol=2e-3, rtol=2e-3), \
        float(jnp.max(jnp.abs(L - L_ref)))

    print("KERNEL_OK")
</pallas_src>

<mosaic_0001>
module attributes {stable_mosaic.version = 11 : i64} {
  func.func @kernel(%arg0: i32, %arg1: memref<1x24x16x36xbf16, #tpu.memory_space<vmem>>, %arg2: memref<324x32xbf16, #tpu.memory_space<vmem>>, %arg3: memref<1x32xf32, #tpu.memory_space<vmem>>, %arg4: memref<5x288x32xbf16, #tpu.memory_space<vmem>>, %arg5: memref<5x1x32xf32, #tpu.memory_space<vmem>>, %arg6: memref<288x4xbf16, #tpu.memory_space<vmem>>, %arg7: memref<1x4xf32, #tpu.memory_space<vmem>>, %arg8: memref<1x16x16x4xf32, #tpu.memory_space<vmem>>) attributes {dimension_semantics = [#tpu.dimension_semantics<parallel>], iteration_bounds = array<i64: 2>, scalar_prefetch = 0 : i64, scratch_operands = 0 : i64, tpu.core_type = #tpu.core_type<tc>, window_params = [{transform_indices = @transform_0, window_bounds = array<i64: 1, 24, 16, 36>}, {pipeline_mode = #tpu.pipeline_mode<synchronous>, transform_indices = @transform_1, window_bounds = array<i64: 324, 32>}, {pipeline_mode = #tpu.pipeline_mode<synchronous>, transform_indices = @transform_2, window_bounds = array<i64: 1, 32>}, {pipeline_mode = #tpu.pipeline_mode<synchronous>, transform_indices = @transform_3, window_bounds = array<i64: 5, 288, 32>}, {pipeline_mode = #tpu.pipeline_mode<synchronous>, transform_indices = @transform_4, window_bounds = array<i64: 5, 1, 32>}, {pipeline_mode = #tpu.pipeline_mode<synchronous>, transform_indices = @transform_5, window_bounds = array<i64: 288, 4>}, {pipeline_mode = #tpu.pipeline_mode<synchronous>, transform_indices = @transform_6, window_bounds = array<i64: 1, 4>}, {transform_indices = @transform_7, window_bounds = array<i64: 1, 16, 16, 4>}]} {
    %c0 = arith.constant 0 : index
    %c0_0 = arith.constant 0 : index
    %c0_1 = arith.constant 0 : index
    %c0_2 = arith.constant 0 : index
    %0 = vector.load %arg1[%c0, %c0_0, %c0_1, %c0_2] : memref<1x24x16x36xbf16, #tpu.memory_space<vmem>>, vector<1x24x16x36xbf16>
    %1 = vector.shape_cast %0 : vector<1x24x16x36xbf16> to vector<24x16x36xbf16>
    %2 = vector.extract_strided_slice %1 {offsets = [0, 0, 0], sizes = [16, 16, 36], strides = [1, 1, 1]} : vector<24x16x36xbf16> to vector<16x16x36xbf16>
    %3 = vector.shape_cast %2 : vector<16x16x36xbf16> to vector<256x36xbf16>
    %4 = vector.extract_strided_slice %1 {offsets = [1, 0, 0], sizes = [16, 16, 36], strides = [1, 1, 1]} : vector<24x16x36xbf16> to vector<16x16x36xbf16>
    %5 = vector.shape_cast %4 : vector<16x16x36xbf16> to vector<256x36xbf16>
    %6 = vector.extract_strided_slice %1 {offsets = [2, 0, 0], sizes = [16, 16, 36], strides = [1, 1, 1]} : vector<24x16x36xbf16> to vector<16x16x36xbf16>
    %7 = vector.shape_cast %6 : vector<16x16x36xbf16> to vector<256x36xbf16>
    %8 = vector.extract_strided_slice %1 {offsets = [3, 0, 0], sizes = [16, 16, 36], strides = [1, 1, 1]} : vector<24x16x36xbf16> to vector<16x16x36xbf16>
    %9 = vector.shape_cast %8 : vector<16x16x36xbf16> to vector<256x36xbf16>
    %10 = vector.extract_strided_slice %1 {offsets = [4, 0, 0], sizes = [16, 16, 36], strides = [1, 1, 1]} : vector<24x16x36xbf16> to vector<16x16x36xbf16>
    %11 = vector.shape_cast %10 : vector<16x16x36xbf16> to vector<256x36xbf16>
    %12 = vector.extract_strided_slice %1 {offsets = [5, 0, 0], sizes = [16, 16, 36], strides = [1, 1, 1]} : vector<24x16x36xbf16> to vector<16x16x36xbf16>
    %13 = vector.shape_cast %12 : vector<16x16x36xbf16> to vector<256x36xbf16>
    %14 = vector.extract_strided_slice %1 {offsets = [6, 0, 0], sizes = [16, 16, 36], strides = [1, 1, 1]} : vector<24x16x36xbf16> to vector<16x16x36xbf16>
    %15 = vector.shape_cast %14 : vector<16x16x36xbf16> to vector<256x36xbf16>
    %16 = vector.extract_strided_slice %1 {offsets = [7, 0, 0], sizes = [16, 16, 36], strides = [1, 1, 1]} : vector<24x16x36xbf16> to vector<16x16x36xbf16>
    %17 = vector.shape_cast %16 : vector<16x16x36xbf16> to vector<256x36xbf16>
    %18 = vector.extract_strided_slice %1 {offsets = [8, 0, 0], sizes = [16, 16, 36], strides = [1, 1, 1]} : vector<24x16x36xbf16> to vector<16x16x36xbf16>
    %19 = vector.shape_cast %18 : vector<16x16x36xbf16> to vector<256x36xbf16>
    %20 = tpu.concatenate %3, %5, %7, %9, %11, %13, %15, %17, %19 in 1 : vector<256x36xbf16>, vector<256x36xbf16>, vector<256x36xbf16>, vector<256x36xbf16>, vector<256x36xbf16>, vector<256x36xbf16>, vector<256x36xbf16>, vector<256x36xbf16>, vector<256x36xbf16> -> vector<256x324xbf16>
    %c0_3 = arith.constant 0 : index
    %c0_4 = arith.constant 0 : index
    %21 = vector.load %arg2[%c0_3, %c0_4] : memref<324x32xbf16, #tpu.memory_space<vmem>>, vector<324x32xbf16>
    %cst = arith.constant dense<0.000000e+00> : vector<256x32xf32>
    %22 = tpu.matmul %20, %21, %cst {dimension_numbers = #tpu.dot_dimension_numbers<[1], [0], [0], [1], [0, 0, 1, 1], [], []>} : vector<256x324xbf16>, vector<324x32xbf16>, vector<256x32xf32> -> vector<256x32xf32>
    %c0_5 = arith.constant 0 : index
    %c0_6 = arith.constant 0 : index
    %23 = vector.load %arg3[%c0_5, %c0_6] : memref<1x32xf32, #tpu.memory_space<vmem>>, vector<1x32xf32>
    %24 = vector.broadcast %23 : vector<1x32xf32> to vector<256x32xf32>
    %25 = arith.addf %22, %24 : vector<256x32xf32>
    %26 = arith.truncf %25 : vector<256x32xf32> to vector<256x32xbf16>
    %27 = vector.shape_cast %26 : vector<256x32xbf16> to vector<16x16x32xbf16>
    %28 = vector.extract_strided_slice %27 {offsets = [0, 0, 0], sizes = [1, 16, 32], strides = [1, 1, 1]} : vector<16x16x32xbf16> to vector<1x16x32xbf16>
    %29 = vector.extract_strided_slice %27 {offsets = [15, 0, 0], sizes = [1, 16, 32], strides = [1, 1, 1]} : vector<16x16x32xbf16> to vector<1x16x32xbf16>
    %30 = tpu.concatenate %28, %27, %29 in 0 : vector<1x16x32xbf16>, vector<16x16x32xbf16>, vector<1x16x32xbf16> -> vector<18x16x32xbf16>
    %31 = vector.extract_strided_slice %30 {offsets = [0, 0, 0], sizes = [18, 1, 32], strides = [1, 1, 1]} : vector<18x16x32xbf16> to vector<18x1x32xbf16>
    %32 = vector.extract_strided_slice %30 {offsets = [0, 15, 0], sizes = [18, 1, 32], strides = [1, 1, 1]} : vector<18x16x32xbf16> to vector<18x1x32xbf16>
    %33 = tpu.concatenate %31, %30, %32 in 1 : vector<18x1x32xbf16>, vector<18x16x32xbf16>, vector<18x1x32xbf16> -> vector<18x18x32xbf16>
    %c0_7 = arith.constant 0 : index
    %c0_8 = arith.constant 0 : index
    %c0_9 = arith.constant 0 : index
    %34 = vector.load %arg4[%c0_7, %c0_8, %c0_9] : memref<5x288x32xbf16, #tpu.memory_space<vmem>>, vector<1x288x32xbf16>
    %35 = vector.shape_cast %34 : vector<1x288x32xbf16> to vector<288x32xbf16>
    %c0_10 = arith.constant 0 : index
    %c0_11 = arith.constant 0 : index
    %c0_12 = arith.constant 0 : index
    %36 = vector.load %arg5[%c0_10, %c0_11, %c0_12] : memref<5x1x32xf32, #tpu.memory_space<vmem>>, vector<1x1x32xf32>
    %37 = vector.shape_cast %36 : vector<1x1x32xf32> to vector<1x32xf32>
    %38 = vector.extract_strided_slice %33 {offsets = [0, 0, 0], sizes = [16, 16, 32], strides = [1, 1, 1]} : vector<18x18x32xbf16> to vector<16x16x32xbf16>
    %39 = vector.shape_cast %38 : vector<16x16x32xbf16> to vector<256x32xbf16>
    %40 = vector.extract_strided_slice %33 {offsets = [0, 1, 0], sizes = [16, 16, 32], strides = [1, 1, 1]} : vector<18x18x32xbf16> to vector<16x16x32xbf16>
    %41 = vector.shape_cast %40 : vector<16x16x32xbf16> to vector<256x32xbf16>
    %42 = vector.extract_strided_slice %33 {offsets = [0, 2, 0], sizes = [16, 16, 32], strides = [1, 1, 1]} : vector<18x18x32xbf16> to vector<16x16x32xbf16>
    %43 = vector.shape_cast %42 : vector<16x16x32xbf16> to vector<256x32xbf16>
    %44 = vector.extract_strided_slice %33 {offsets = [1, 0, 0], sizes = [16, 16, 32], strides = [1, 1, 1]} : vector<18x18x32xbf16> to vector<16x16x32xbf16>
    %45 = vector.shape_cast %44 : vector<16x16x32xbf16> to vector<256x32xbf16>
    %46 = vector.extract_strided_slice %33 {offsets = [1, 1, 0], sizes = [16, 16, 32], strides = [1, 1, 1]} : vector<18x18x32xbf16> to vector<16x16x32xbf16>
    %47 = vector.shape_cast %46 : vector<16x16x32xbf16> to vector<256x32xbf16>
    %48 = vector.extract_strided_slice %33 {offsets = [1, 2, 0], sizes = [16, 16, 32], strides = [1, 1, 1]} : vector<18x18x32xbf16> to vector<16x16x32xbf16>
    %49 = vector.shape_cast %48 : vector<16x16x32xbf16> to vector<256x32xbf16>
    %50 = vector.extract_strided_slice %33 {offsets = [2, 0, 0], sizes = [16, 16, 32], strides = [1, 1, 1]} : vector<18x18x32xbf16> to vector<16x16x32xbf16>
    %51 = vector.shape_cast %50 : vector<16x16x32xbf16> to vector<256x32xbf16>
    %52 = vector.extract_strided_slice %33 {offsets = [2, 1, 0], sizes = [16, 16, 32], strides = [1, 1, 1]} : vector<18x18x32xbf16> to vector<16x16x32xbf16>
    %53 = vector.shape_cast %52 : vector<16x16x32xbf16> to vector<256x32xbf16>
    %54 = vector.extract_strided_slice %33 {offsets = [2, 2, 0], sizes = [16, 16, 32], strides = [1, 1, 1]} : vector<18x18x32xbf16> to vector<16x16x32xbf16>
    %55 = vector.shape_cast %54 : vector<16x16x32xbf16> to vector<256x32xbf16>
    %56 = tpu.concatenate %39, %41, %43, %45, %47, %49, %51, %53, %55 in 1 : vector<256x32xbf16>, vector<256x32xbf16>, vector<256x32xbf16>, vector<256x32xbf16>, vector<256x32xbf16>, vector<256x32xbf16>, vector<256x32xbf16>, vector<256x32xbf16>, vector<256x32xbf16> -> vector<256x288xbf16>
    %cst_13 = arith.constant dense<0.000000e+00> : vector<256x32xf32>
    %57 = tpu.matmul %56, %35, %cst_13 {dimension_numbers = #tpu.dot_dimension_numbers<[1], [0], [0], [1], [0, 0, 1, 1], [], []>} : vector<256x288xbf16>, vector<288x32xbf16>, vector<256x32xf32> -> vector<256x32xf32>
    %58 = vector.broadcast %37 : vector<1x32xf32> to vector<256x32xf32>
    %59 = arith.addf %57, %58 : vector<256x32xf32>
    %cst_14 = arith.constant 0.000000e+00 : f32
    %60 = vector.broadcast %cst_14 : f32 to vector<256x32xf32>
    %61 = arith.maximumf %59, %60 : vector<256x32xf32>
    %62 = arith.truncf %61 : vector<256x32xf32> to vector<256x32xbf16>
    %63 = vector.shape_cast %62 : vector<256x32xbf16> to vector<16x16x32xbf16>
    %64 = vector.extract_strided_slice %63 {offsets = [0, 0, 0], sizes = [1, 16, 32], strides = [1, 1, 1]} : vector<16x16x32xbf16> to vector<1x16x32xbf16>
    %65 = vector.extract_strided_slice %63 {offsets = [15, 0, 0], sizes = [1, 16, 32], strides = [1, 1, 1]} : vector<16x16x32xbf16> to vector<1x16x32xbf16>
    %66 = tpu.concatenate %64, %63, %65 in 0 : vector<1x16x32xbf16>, vector<16x16x32xbf16>, vector<1x16x32xbf16> -> vector<18x16x32xbf16>
    %67 = vector.extract_strided_slice %66 {offsets = [0, 0, 0], sizes = [18, 1, 32], strides = [1, 1, 1]} : vector<18x16x32xbf16> to vector<18x1x32xbf16>
    %68 = vector.extract_strided_slice %66 {offsets = [0, 15, 0], sizes = [18, 1, 32], strides = [1, 1, 1]} : vector<18x16x32xbf16> to vector<18x1x32xbf16>
    %69 = tpu.concatenate %67, %66, %68 in 1 : vector<18x1x32xbf16>, vector<18x16x32xbf16>, vector<18x1x32xbf16> -> vector<18x18x32xbf16>
    %c1 = arith.constant 1 : index
    %c0_15 = arith.constant 0 : index
    %c0_16 = arith.constant 0 : index
    %70 = vector.load %arg4[%c1, %c0_15, %c0_16] : memref<5x288x32xbf16, #tpu.memory_space<vmem>>, vector<1x288x32xbf16>
    %71 = vector.shape_cast %70 : vector<1x288x32xbf16> to vector<288x32xbf16>
    %c1_17 = arith.constant 1 : index
    %c0_18 = arith.constant 0 : index
    %c0_19 = arith.constant 0 : index
    %72 = vector.load %arg5[%c1_17, %c0_18, %c0_19] : memref<5x1x32xf32, #tpu.memory_space<vmem>>, vector<1x1x32xf32>
    %73 = vector.shape_cast %72 : vector<1x1x32xf32> to vector<1x32xf32>
    %74 = vector.extract_strided_slice %69 {offsets = [0, 0, 0], sizes = [16, 16, 32], strides = [1, 1, 1]} : vector<18x18x32xbf16> to vector<16x16x32xbf16>
    %75 = vector.shape_cast %74 : vector<16x16x32xbf16> to vector<256x32xbf16>
    %76 = vector.extract_strided_slice %69 {offsets = [0, 1, 0], sizes = [16, 16, 32], strides = [1, 1, 1]} : vector<18x18x32xbf16> to vector<16x16x32xbf16>
    %77 = vector.shape_cast %76 : vector<16x16x32xbf16> to vector<256x32xbf16>
    %78 = vector.extract_strided_slice %69 {offsets = [0, 2, 0], sizes = [16, 16, 32], strides = [1, 1, 1]} : vector<18x18x32xbf16> to vector<16x16x32xbf16>
    %79 = vector.shape_cast %78 : vector<16x16x32xbf16> to vector<256x32xbf16>
    %80 = vector.extract_strided_slice %69 {offsets = [1, 0, 0], sizes = [16, 16, 32], strides = [1, 1, 1]} : vector<18x18x32xbf16> to vector<16x16x32xbf16>
    %81 = vector.shape_cast %80 : vector<16x16x32xbf16> to vector<256x32xbf16>
    %82 = vector.extract_strided_slice %69 {offsets = [1, 1, 0], sizes = [16, 16, 32], strides = [1, 1, 1]} : vector<18x18x32xbf16> to vector<16x16x32xbf16>
    %83 = vector.shape_cast %82 : vector<16x16x32xbf16> to vector<256x32xbf16>
    %84 = vector.extract_strided_slice %69 {offsets = [1, 2, 0], sizes = [16, 16, 32], strides = [1, 1, 1]} : vector<18x18x32xbf16> to vector<16x16x32xbf16>
    %85 = vector.shape_cast %84 : vector<16x16x32xbf16> to vector<256x32xbf16>
    %86 = vector.extract_strided_slice %69 {offsets = [2, 0, 0], sizes = [16, 16, 32], strides = [1, 1, 1]} : vector<18x18x32xbf16> to vector<16x16x32xbf16>
    %87 = vector.shape_cast %86 : vector<16x16x32xbf16> to vector<256x32xbf16>
    %88 = vector.extract_strided_slice %69 {offsets = [2, 1, 0], sizes = [16, 16, 32], strides = [1, 1, 1]} : vector<18x18x32xbf16> to vector<16x16x32xbf16>
    %89 = vector.shape_cast %88 : vector<16x16x32xbf16> to vector<256x32xbf16>
    %90 = vector.extract_strided_slice %69 {offsets = [2, 2, 0], sizes = [16, 16, 32], strides = [1, 1, 1]} : vector<18x18x32xbf16> to vector<16x16x32xbf16>
    %91 = vector.shape_cast %90 : vector<16x16x32xbf16> to vector<256x32xbf16>
    %92 = tpu.concatenate %75, %77, %79, %81, %83, %85, %87, %89, %91 in 1 : vector<256x32xbf16>, vector<256x32xbf16>, vector<256x32xbf16>, vector<256x32xbf16>, vector<256x32xbf16>, vector<256x32xbf16>, vector<256x32xbf16>, vector<256x32xbf16>, vector<256x32xbf16> -> vector<256x288xbf16>
    %cst_20 = arith.constant dense<0.000000e+00> : vector<256x32xf32>
    %93 = tpu.matmul %92, %71, %cst_20 {dimension_numbers = #tpu.dot_dimension_numbers<[1], [0], [0], [1], [0, 0, 1, 1], [], []>} : vector<256x288xbf16>, vector<288x32xbf16>, vector<256x32xf32> -> vector<256x32xf32>
    %94 = vector.broadcast %73 : vector<1x32xf32> to vector<256x32xf32>
    %95 = arith.addf %93, %94 : vector<256x32xf32>
    %cst_21 = arith.constant 0.000000e+00 : f32
    %96 = vector.broadcast %cst_21 : f32 to vector<256x32xf32>
    %97 = arith.maximumf %95, %96 : vector<256x32xf32>
    %98 = arith.truncf %97 : vector<256x32xf32> to vector<256x32xbf16>
    %99 = vector.shape_cast %98 : vector<256x32xbf16> to vector<16x16x32xbf16>
    %100 = vector.extract_strided_slice %99 {offsets = [0, 0, 0], sizes = [1, 16, 32], strides = [1, 1, 1]} : vector<16x16x32xbf16> to vector<1x16x32xbf16>
    %101 = vector.extract_strided_slice %99 {offsets = [15, 0, 0], sizes = [1, 16, 32], strides = [1, 1, 1]} : vector<16x16x32xbf16> to vector<1x16x32xbf16>
    %102 = tpu.concatenate %100, %99, %101 in 0 : vector<1x16x32xbf16>, vector<16x16x32xbf16>, vector<1x16x32xbf16> -> vector<18x16x32xbf16>
    %103 = vector.extract_strided_slice %102 {offsets = [0, 0, 0], sizes = [18, 1, 32], strides = [1, 1, 1]} : vector<18x16x32xbf16> to vector<18x1x32xbf16>
    %104 = vector.extract_strided_slice %102 {offsets = [0, 15, 0], sizes = [18, 1, 32], strides = [1, 1, 1]} : vector<18x16x32xbf16> to vector<18x1x32xbf16>
    %105 = tpu.concatenate %103, %102, %104 in 1 : vector<18x1x32xbf16>, vector<18x16x32xbf16>, vector<18x1x32xbf16> -> vector<18x18x32xbf16>
    %c2 = arith.constant 2 : index
    %c0_22 = arith.constant 0 : index
    %c0_23 = arith.constant 0 : index
    %106 = vector.load %arg4[%c2, %c0_22, %c0_23] : memref<5x288x32xbf16, #tpu.memory_space<vmem>>, vector<1x288x32xbf16>
    %107 = vector.shape_cast %106 : vector<1x288x32xbf16> to vector<288x32xbf16>
    %c2_24 = arith.constant 2 : index
    %c0_25 = arith.constant 0 : index
    %c0_26 = arith.constant 0 : index
    %108 = vector.load %arg5[%c2_24, %c0_25, %c0_26] : memref<5x1x32xf32, #tpu.memory_space<vmem>>, vector<1x1x32xf32>
    %109 = vector.shape_cast %108 : vector<1x1x32xf32> to vector<1x32xf32>
    %110 = vector.extract_strided_slice %105 {offsets = [0, 0, 0], sizes = [16, 16, 32], strides = [1, 1, 1]} : vector<18x18x32xbf16> to vector<16x16x32xbf16>
    %111 = vector.shape_cast %110 : vector<16x16x32xbf16> to vector<256x32xbf16>
    %112 = vector.extract_strided_slice %105 {offsets = [0, 1, 0], sizes = [16, 16, 32], strides = [1, 1, 1]} : vector<18x18x32xbf16> to vector<16x16x32xbf16>
    %113 = vector.shape_cast %112 : vector<16x16x32xbf16> to vector<256x32xbf16>
    %114 = vector.extract_strided_slice %105 {offsets = [0, 2, 0], sizes = [16, 16, 32], strides = [1, 1, 1]} : vector<18x18x32xbf16> to vector<16x16x32xbf16>
    %115 = vector.shape_cast %114 : vector<16x16x32xbf16> to vector<256x32xbf16>
    %116 = vector.extract_strided_slice %105 {offsets = [1, 0, 0], sizes = [16, 16, 32], strides = [1, 1, 1]} : vector<18x18x32xbf16> to vector<16x16x32xbf16>
    %117 = vector.shape_cast %116 : vector<16x16x32xbf16> to vector<256x32xbf16>
    %118 = vector.extract_strided_slice %105 {offsets = [1, 1, 0], sizes = [16, 16, 32], strides = [1, 1, 1]} : vector<18x18x32xbf16> to vector<16x16x32xbf16>
    %119 = vector.shape_cast %118 : vector<16x16x32xbf16> to vector<256x32xbf16>
    %120 = vector.extract_strided_slice %105 {offsets = [1, 2, 0], sizes = [16, 16, 32], strides = [1, 1, 1]} : vector<18x18x32xbf16> to vector<16x16x32xbf16>
    %121 = vector.shape_cast %120 : vector<16x16x32xbf16> to vector<256x32xbf16>
    %122 = vector.extract_strided_slice %105 {offsets = [2, 0, 0], sizes = [16, 16, 32], strides = [1, 1, 1]} : vector<18x18x32xbf16> to vector<16x16x32xbf16>
    %123 = vector.shape_cast %122 : vector<16x16x32xbf16> to vector<256x32xbf16>
    %124 = vector.extract_strided_slice %105 {offsets = [2, 1, 0], sizes = [16, 16, 32], strides = [1, 1, 1]} : vector<18x18x32xbf16> to vector<16x16x32xbf16>
    %125 = vector.shape_cast %124 : vector<16x16x32xbf16> to vector<256x32xbf16>
    %126 = vector.extract_strided_slice %105 {offsets = [2, 2, 0], sizes = [16, 16, 32], strides = [1, 1, 1]} : vector<18x18x32xbf16> to vector<16x16x32xbf16>
    %127 = vector.shape_cast %126 : vector<16x16x32xbf16> to vector<256x32xbf16>
    %128 = tpu.concatenate %111, %113, %115, %117, %119, %121, %123, %125, %127 in 1 : vector<256x32xbf16>, vector<256x32xbf16>, vector<256x32xbf16>, vector<256x32xbf16>, vector<256x32xbf16>, vector<256x32xbf16>, vector<256x32xbf16>, vector<256x32xbf16>, vector<256x32xbf16> -> vector<256x288xbf16>
    %cst_27 = arith.constant dense<0.000000e+00> : vector<256x32xf32>
    %129 = tpu.matmul %128, %107, %cst_27 {dimension_numbers = #tpu.dot_dimension_numbers<[1], [0], [0], [1], [0, 0, 1, 1], [], []>} : vector<256x288xbf16>, vector<288x32xbf16>, vector<256x32xf32> -> vector<256x32xf32>
    %130 = vector.broadcast %109 : vector<1x32xf32> to vector<256x32xf32>
    %131 = arith.addf %129, %130 : vector<256x32xf32>
    %cst_28 = arith.constant 0.000000e+00 : f32
    %132 = vector.broadcast %cst_28 : f32 to vector<256x32xf32>
    %133 = arith.maximumf %131, %132 : vector<256x32xf32>
    %134 = arith.truncf %133 : vector<256x32xf32> to vector<256x32xbf16>
    %135 = vector.shape_cast %134 : vector<256x32xbf16> to vector<16x16x32xbf16>
    %136 = vector.extract_strided_slice %135 {offsets = [0, 0, 0], sizes = [1, 16, 32], strides = [1, 1, 1]} : vector<16x16x32xbf16> to vector<1x16x32xbf16>
    %137 = vector.extract_strided_slice %135 {offsets = [15, 0, 0], sizes = [1, 16, 32], strides = [1, 1, 1]} : vector<16x16x32xbf16> to vector<1x16x32xbf16>
    %138 = tpu.concatenate %136, %135, %137 in 0 : vector<1x16x32xbf16>, vector<16x16x32xbf16>, vector<1x16x32xbf16> -> vector<18x16x32xbf16>
    %139 = vector.extract_strided_slice %138 {offsets = [0, 0, 0], sizes = [18, 1, 32], strides = [1, 1, 1]} : vector<18x16x32xbf16> to vector<18x1x32xbf16>
    %140 = vector.extract_strided_slice %138 {offsets = [0, 15, 0], sizes = [18, 1, 32], strides = [1, 1, 1]} : vector<18x16x32xbf16> to vector<18x1x32xbf16>
    %141 = tpu.concatenate %139, %138, %140 in 1 : vector<18x1x32xbf16>, vector<18x16x32xbf16>, vector<18x1x32xbf16> -> vector<18x18x32xbf16>
    %c3 = arith.constant 3 : index
    %c0_29 = arith.constant 0 : index
    %c0_30 = arith.constant 0 : index
    %142 = vector.load %arg4[%c3, %c0_29, %c0_30] : memref<5x288x32xbf16, #tpu.memory_space<vmem>>, vector<1x288x32xbf16>
    %143 = vector.shape_cast %142 : vector<1x288x32xbf16> to vector<288x32xbf16>
    %c3_31 = arith.constant 3 : index
    %c0_32 = arith.constant 0 : index
    %c0_33 = arith.constant 0 : index
    %144 = vector.load %arg5[%c3_31, %c0_32, %c0_33] : memref<5x1x32xf32, #tpu.memory_space<vmem>>, vector<1x1x32xf32>
    %145 = vector.shape_cast %144 : vector<1x1x32xf32> to vector<1x32xf32>
    %146 = vector.extract_strided_slice %141 {offsets = [0, 0, 0], sizes = [16, 16, 32], strides = [1, 1, 1]} : vector<18x18x32xbf16> to vector<16x16x32xbf16>
    %147 = vector.shape_cast %146 : vector<16x16x32xbf16> to vector<256x32xbf16>
    %148 = vector.extract_strided_slice %141 {offsets = [0, 1, 0], sizes = [16, 16, 32], strides = [1, 1, 1]} : vector<18x18x32xbf16> to vector<16x16x32xbf16>
    %149 = vector.shape_cast %148 : vector<16x16x32xbf16> to vector<256x32xbf16>
    %150 = vector.extract_strided_slice %141 {offsets = [0, 2, 0], sizes = [16, 16, 32], strides = [1, 1, 1]} : vector<18x18x32xbf16> to vector<16x16x32xbf16>
    %151 = vector.shape_cast %150 : vector<16x16x32xbf16> to vector<256x32xbf16>
    %152 = vector.extract_strided_slice %141 {offsets = [1, 0, 0], sizes = [16, 16, 32], strides = [1, 1, 1]} : vector<18x18x32xbf16> to vector<16x16x32xbf16>
    %153 = vector.shape_cast %152 : vector<16x16x32xbf16> to vector<256x32xbf16>
    %154 = vector.extract_strided_slice %141 {offsets = [1, 1, 0], sizes = [16, 16, 32], strides = [1, 1, 1]} : vector<18x18x32xbf16> to vector<16x16x32xbf16>
    %155 = vector.shape_cast %154 : vector<16x16x32xbf16> to vector<256x32xbf16>
    %156 = vector.extract_strided_slice %141 {offsets = [1, 2, 0], sizes = [16, 16, 32], strides = [1, 1, 1]} : vector<18x18x32xbf16> to vector<16x16x32xbf16>
    %157 = vector.shape_cast %156 : vector<16x16x32xbf16> to vector<256x32xbf16>
    %158 = vector.extract_strided_slice %141 {offsets = [2, 0, 0], sizes = [16, 16, 32], strides = [1, 1, 1]} : vector<18x18x32xbf16> to vector<16x16x32xbf16>
    %159 = vector.shape_cast %158 : vector<16x16x32xbf16> to vector<256x32xbf16>
    %160 = vector.extract_strided_slice %141 {offsets = [2, 1, 0], sizes = [16, 16, 32], strides = [1, 1, 1]} : vector<18x18x32xbf16> to vector<16x16x32xbf16>
    %161 = vector.shape_cast %160 : vector<16x16x32xbf16> to vector<256x32xbf16>
    %162 = vector.extract_strided_slice %141 {offsets = [2, 2, 0], sizes = [16, 16, 32], strides = [1, 1, 1]} : vector<18x18x32xbf16> to vector<16x16x32xbf16>
    %163 = vector.shape_cast %162 : vector<16x16x32xbf16> to vector<256x32xbf16>
    %164 = tpu.concatenate %147, %149, %151, %153, %155, %157, %159, %161, %163 in 1 : vector<256x32xbf16>, vector<256x32xbf16>, vector<256x32xbf16>, vector<256x32xbf16>, vector<256x32xbf16>, vector<256x32xbf16>, vector<256x32xbf16>, vector<256x32xbf16>, vector<256x32xbf16> -> vector<256x288xbf16>
    %cst_34 = arith.constant dense<0.000000e+00> : vector<256x32xf32>
    %165 = tpu.matmul %164, %143, %cst_34 {dimension_numbers = #tpu.dot_dimension_numbers<[1], [0], [0], [1], [0, 0, 1, 1], [], []>} : vector<256x288xbf16>, vector<288x32xbf16>, vector<256x32xf32> -> vector<256x32xf32>
    %166 = vector.broadcast %145 : vector<1x32xf32> to vector<256x32xf32>
    %167 = arith.addf %165, %166 : vector<256x32xf32>
    %cst_35 = arith.constant 0.000000e+00 : f32
    %168 = vector.broadcast %cst_35 : f32 to vector<256x32xf32>
    %169 = arith.maximumf %167, %168 : vector<256x32xf32>
    %170 = arith.truncf %169 : vector<256x32xf32> to vector<256x32xbf16>
    %171 = vector.shape_cast %170 : vector<256x32xbf16> to vector<16x16x32xbf16>
    %172 = vector.extract_strided_slice %171 {offsets = [0, 0, 0], sizes = [1, 16, 32], strides = [1, 1, 1]} : vector<16x16x32xbf16> to vector<1x16x32xbf16>
    %173 = vector.extract_strided_slice %171 {offsets = [15, 0, 0], sizes = [1, 16, 32], strides = [1, 1, 1]} : vector<16x16x32xbf16> to vector<1x16x32xbf16>
    %174 = tpu.concatenate %172, %171, %173 in 0 : vector<1x16x32xbf16>, vector<16x16x32xbf16>, vector<1x16x32xbf16> -> vector<18x16x32xbf16>
    %175 = vector.extract_strided_slice %174 {offsets = [0, 0, 0], sizes = [18, 1, 32], strides = [1, 1, 1]} : vector<18x16x32xbf16> to vector<18x1x32xbf16>
    %176 = vector.extract_strided_slice %174 {offsets = [0, 15, 0], sizes = [18, 1, 32], strides = [1, 1, 1]} : vector<18x16x32xbf16> to vector<18x1x32xbf16>
    %177 = tpu.concatenate %175, %174, %176 in 1 : vector<18x1x32xbf16>, vector<18x16x32xbf16>, vector<18x1x32xbf16> -> vector<18x18x32xbf16>
    %c4 = arith.constant 4 : index
    %c0_36 = arith.constant 0 : index
    %c0_37 = arith.constant 0 : index
    %178 = vector.load %arg4[%c4, %c0_36, %c0_37] : memref<5x288x32xbf16, #tpu.memory_space<vmem>>, vector<1x288x32xbf16>
    %179 = vector.shape_cast %178 : vector<1x288x32xbf16> to vector<288x32xbf16>
    %c4_38 = arith.constant 4 : index
    %c0_39 = arith.constant 0 : index
    %c0_40 = arith.constant 0 : index
    %180 = vector.load %arg5[%c4_38, %c0_39, %c0_40] : memref<5x1x32xf32, #tpu.memory_space<vmem>>, vector<1x1x32xf32>
    %181 = vector.shape_cast %180 : vector<1x1x32xf32> to vector<1x32xf32>
    %182 = vector.extract_strided_slice %177 {offsets = [0, 0, 0], sizes = [16, 16, 32], strides = [1, 1, 1]} : vector<18x18x32xbf16> to vector<16x16x32xbf16>
    %183 = vector.shape_cast %182 : vector<16x16x32xbf16> to vector<256x32xbf16>
    %184 = vector.extract_strided_slice %177 {offsets = [0, 1, 0], sizes = [16, 16, 32], strides = [1, 1, 1]} : vector<18x18x32xbf16> to vector<16x16x32xbf16>
    %185 = vector.shape_cast %184 : vector<16x16x32xbf16> to vector<256x32xbf16>
    %186 = vector.extract_strided_slice %177 {offsets = [0, 2, 0], sizes = [16, 16, 32], strides = [1, 1, 1]} : vector<18x18x32xbf16> to vector<16x16x32xbf16>
    %187 = vector.shape_cast %186 : vector<16x16x32xbf16> to vector<256x32xbf16>
    %188 = vector.extract_strided_slice %177 {offsets = [1, 0, 0], sizes = [16, 16, 32], strides = [1, 1, 1]} : vector<18x18x32xbf16> to vector<16x16x32xbf16>
    %189 = vector.shape_cast %188 : vector<16x16x32xbf16> to vector<256x32xbf16>
    %190 = vector.extract_strided_slice %177 {offsets = [1, 1, 0], sizes = [16, 16, 32], strides = [1, 1, 1]} : vector<18x18x32xbf16> to vector<16x16x32xbf16>
    %191 = vector.shape_cast %190 : vector<16x16x32xbf16> to vector<256x32xbf16>
    %192 = vector.extract_strided_slice %177 {offsets = [1, 2, 0], sizes = [16, 16, 32], strides = [1, 1, 1]} : vector<18x18x32xbf16> to vector<16x16x32xbf16>
    %193 = vector.shape_cast %192 : vector<16x16x32xbf16> to vector<256x32xbf16>
    %194 = vector.extract_strided_slice %177 {offsets = [2, 0, 0], sizes = [16, 16, 32], strides = [1, 1, 1]} : vector<18x18x32xbf16> to vector<16x16x32xbf16>
    %195 = vector.shape_cast %194 : vector<16x16x32xbf16> to vector<256x32xbf16>
    %196 = vector.extract_strided_slice %177 {offsets = [2, 1, 0], sizes = [16, 16, 32], strides = [1, 1, 1]} : vector<18x18x32xbf16> to vector<16x16x32xbf16>
    %197 = vector.shape_cast %196 : vector<16x16x32xbf16> to vector<256x32xbf16>
    %198 = vector.extract_strided_slice %177 {offsets = [2, 2, 0], sizes = [16, 16, 32], strides = [1, 1, 1]} : vector<18x18x32xbf16> to vector<16x16x32xbf16>
    %199 = vector.shape_cast %198 : vector<16x16x32xbf16> to vector<256x32xbf16>
    %200 = tpu.concatenate %183, %185, %187, %189, %191, %193, %195, %197, %199 in 1 : vector<256x32xbf16>, vector<256x32xbf16>, vector<256x32xbf16>, vector<256x32xbf16>, vector<256x32xbf16>, vector<256x32xbf16>, vector<256x32xbf16>, vector<256x32xbf16>, vector<256x32xbf16> -> vector<256x288xbf16>
    %cst_41 = arith.constant dense<0.000000e+00> : vector<256x32xf32>
    %201 = tpu.matmul %200, %179, %cst_41 {dimension_numbers = #tpu.dot_dimension_numbers<[1], [0], [0], [1], [0, 0, 1, 1], [], []>} : vector<256x288xbf16>, vector<288x32xbf16>, vector<256x32xf32> -> vector<256x32xf32>
    %202 = vector.broadcast %181 : vector<1x32xf32> to vector<256x32xf32>
    %203 = arith.addf %201, %202 : vector<256x32xf32>
    %cst_42 = arith.constant 0.000000e+00 : f32
    %204 = vector.broadcast %cst_42 : f32 to vector<256x32xf32>
    %205 = arith.maximumf %203, %204 : vector<256x32xf32>
    %206 = arith.truncf %205 : vector<256x32xf32> to vector<256x32xbf16>
    %207 = vector.shape_cast %206 : vector<256x32xbf16> to vector<16x16x32xbf16>
    %208 = vector.extract_strided_slice %207 {offsets = [0, 0, 0], sizes = [1, 16, 32], strides = [1, 1, 1]} : vector<16x16x32xbf16> to vector<1x16x32xbf16>
    %209 = vector.extract_strided_slice %207 {offsets = [15, 0, 0], sizes = [1, 16, 32], strides = [1, 1, 1]} : vector<16x16x32xbf16> to vector<1x16x32xbf16>
    %210 = tpu.concatenate %208, %207, %209 in 0 : vector<1x16x32xbf16>, vector<16x16x32xbf16>, vector<1x16x32xbf16> -> vector<18x16x32xbf16>
    %211 = vector.extract_strided_slice %210 {offsets = [0, 0, 0], sizes = [18, 1, 32], strides = [1, 1, 1]} : vector<18x16x32xbf16> to vector<18x1x32xbf16>
    %212 = vector.extract_strided_slice %210 {offsets = [0, 15, 0], sizes = [18, 1, 32], strides = [1, 1, 1]} : vector<18x16x32xbf16> to vector<18x1x32xbf16>
    %213 = tpu.concatenate %211, %210, %212 in 1 : vector<18x1x32xbf16>, vector<18x16x32xbf16>, vector<18x1x32xbf16> -> vector<18x18x32xbf16>
    %c0_43 = arith.constant 0 : index
    %c0_44 = arith.constant 0 : index
    %214 = vector.load %arg6[%c0_43, %c0_44] : memref<288x4xbf16, #tpu.memory_space<vmem>>, vector<288x4xbf16>
    %c0_45 = arith.constant 0 : index
    %c0_46 = arith.constant 0 : index
    %215 = vector.load %arg7[%c0_45, %c0_46] : memref<1x4xf32, #tpu.memory_space<vmem>>, vector<1x4xf32>
    %216 = vector.extract_strided_slice %213 {offsets = [0, 0, 0], sizes = [16, 16, 32], strides = [1, 1, 1]} : vector<18x18x32xbf16> to vector<16x16x32xbf16>
    %217 = vector.shape_cast %216 : vector<16x16x32xbf16> to vector<256x32xbf16>
    %218 = vector.extract_strided_slice %213 {offsets = [0, 1, 0], sizes = [16, 16, 32], strides = [1, 1, 1]} : vector<18x18x32xbf16> to vector<16x16x32xbf16>
    %219 = vector.shape_cast %218 : vector<16x16x32xbf16> to vector<256x32xbf16>
    %220 = vector.extract_strided_slice %213 {offsets = [0, 2, 0], sizes = [16, 16, 32], strides = [1, 1, 1]} : vector<18x18x32xbf16> to vector<16x16x32xbf16>
    %221 = vector.shape_cast %220 : vector<16x16x32xbf16> to vector<256x32xbf16>
    %222 = vector.extract_strided_slice %213 {offsets = [1, 0, 0], sizes = [16, 16, 32], strides = [1, 1, 1]} : vector<18x18x32xbf16> to vector<16x16x32xbf16>
    %223 = vector.shape_cast %222 : vector<16x16x32xbf16> to vector<256x32xbf16>
    %224 = vector.extract_strided_slice %213 {offsets = [1, 1, 0], sizes = [16, 16, 32], strides = [1, 1, 1]} : vector<18x18x32xbf16> to vector<16x16x32xbf16>
    %225 = vector.shape_cast %224 : vector<16x16x32xbf16> to vector<256x32xbf16>
    %226 = vector.extract_strided_slice %213 {offsets = [1, 2, 0], sizes = [16, 16, 32], strides = [1, 1, 1]} : vector<18x18x32xbf16> to vector<16x16x32xbf16>
    %227 = vector.shape_cast %226 : vector<16x16x32xbf16> to vector<256x32xbf16>
    %228 = vector.extract_strided_slice %213 {offsets = [2, 0, 0], sizes = [16, 16, 32], strides = [1, 1, 1]} : vector<18x18x32xbf16> to vector<16x16x32xbf16>
    %229 = vector.shape_cast %228 : vector<16x16x32xbf16> to vector<256x32xbf16>
    %230 = vector.extract_strided_slice %213 {offsets = [2, 1, 0], sizes = [16, 16, 32], strides = [1, 1, 1]} : vector<18x18x32xbf16> to vector<16x16x32xbf16>
    %231 = vector.shape_cast %230 : vector<16x16x32xbf16> to vector<256x32xbf16>
    %232 = vector.extract_strided_slice %213 {offsets = [2, 2, 0], sizes = [16, 16, 32], strides = [1, 1, 1]} : vector<18x18x32xbf16> to vector<16x16x32xbf16>
    %233 = vector.shape_cast %232 : vector<16x16x32xbf16> to vector<256x32xbf16>
    %234 = tpu.concatenate %217, %219, %221, %223, %225, %227, %229, %231, %233 in 1 : vector<256x32xbf16>, vector<256x32xbf16>, vector<256x32xbf16>, vector<256x32xbf16>, vector<256x32xbf16>, vector<256x32xbf16>, vector<256x32xbf16>, vector<256x32xbf16>, vector<256x32xbf16> -> vector<256x288xbf16>
    %cst_47 = arith.constant dense<0.000000e+00> : vector<256x4xf32>
    %235 = tpu.matmul %234, %214, %cst_47 {dimension_numbers = #tpu.dot_dimension_numbers<[1], [0], [0], [1], [0, 0, 1, 1], [], []>} : vector<256x288xbf16>, vector<288x4xbf16>, vector<256x4xf32> -> vector<256x4xf32>
    %236 = vector.broadcast %215 : vector<1x4xf32> to vector<256x4xf32>
    %237 = arith.addf %235, %236 : vector<256x4xf32>
    %238 = arith.negf %237 : vector<256x4xf32>
    %239 = math.exp %238 : vector<256x4xf32>
    %cst_48 = arith.constant 1.000000e+00 : f32
    %240 = vector.broadcast %cst_48 : f32 to vector<256x4xf32>
    %241 = arith.addf %240, %239 : vector<256x4xf32>
    %242 = arith.divf %240, %241 : vector<256x4xf32>
    %243 = vector.shape_cast %242 : vector<256x4xf32> to vector<16x16x4xf32>
    %c0_49 = arith.constant 0 : index
    %c0_50 = arith.constant 0 : index
    %c0_51 = arith.constant 0 : index
    %c0_52 = arith.constant 0 : index
    %244 = vector.load %arg8[%c0_49, %c0_50, %c0_51, %c0_52] : memref<1x16x16x4xf32, #tpu.memory_space<vmem>>, vector<1x16x16x4xf32>
    %245 = vector.shape_cast %244 : vector<1x16x16x4xf32> to vector<16x16x4xf32>
    %246 = vector.shape_cast %243 : vector<16x16x4xf32> to vector<1x16x16x4xf32>
    tpu.vector_store %arg8[%c0_49, %c0_50, %c0_51, %c0_52], %246 {strides = array<i32>} : memref<1x16x16x4xf32, #tpu.memory_space<vmem>>, vector<1x16x16x4xf32>,
    return
  }
  func.func @transform_0(%arg0: i32) -> (i32, i32, i32, i32) {
    %c0_i32 = arith.constant 0 : i32
    %c0_i32_0 = arith.constant 0 : i32
    %c0_i32_1 = arith.constant 0 : i32
    %c0_i32_2 = arith.constant 0 : i32
    return %arg0, %c0_i32, %c0_i32_0, %c0_i32_1 : i32, i32, i32, i32
  }
  func.func @transform_1(%arg0: i32) -> (i32, i32) {
    %c0_i32 = arith.constant 0 : i32
    %c0_i32_0 = arith.constant 0 : i32
    %c0_i32_1 = arith.constant 0 : i32
    return %c0_i32, %c0_i32_0 : i32, i32
  }
  func.func @transform_2(%arg0: i32) -> (i32, i32) {
    %c0_i32 = arith.constant 0 : i32
    %c0_i32_0 = arith.constant 0 : i32
    %c0_i32_1 = arith.constant 0 : i32
    return %c0_i32, %c0_i32_0 : i32, i32
  }
  func.func @transform_3(%arg0: i32) -> (i32, i32, i32) {
    %c0_i32 = arith.constant 0 : i32
    %c0_i32_0 = arith.constant 0 : i32
    %c0_i32_1 = arith.constant 0 : i32
    %c0_i32_2 = arith.constant 0 : i32
    return %c0_i32, %c0_i32_0, %c0_i32_1 : i32, i32, i32
  }
  func.func @transform_4(%arg0: i32) -> (i32, i32, i32) {
    %c0_i32 = arith.constant 0 : i32
    %c0_i32_0 = arith.constant 0 : i32
    %c0_i32_1 = arith.constant 0 : i32
    %c0_i32_2 = arith.constant 0 : i32
    return %c0_i32, %c0_i32_0, %c0_i32_1 : i32, i32, i32
  }
  func.func @transform_5(%arg0: i32) -> (i32, i32) {
    %c0_i32 = arith.constant 0 : i32
    %c0_i32_0 = arith.constant 0 : i32
    %c0_i32_1 = arith.constant 0 : i32
    return %c0_i32, %c0_i32_0 : i32, i32
  }
  func.func @transform_6(%arg0: i32) -> (i32, i32) {
    %c0_i32 = arith.constant 0 : i32
    %c0_i32_0 = arith.constant 0 : i32
    %c0_i32_1 = arith.constant 0 : i32
    return %c0_i32, %c0_i32_0 : i32, i32
  }
  func.func @transform_7(%arg0: i32) -> (i32, i32, i32, i32) {
    %c0_i32 = arith.constant 0 : i32
    %c0_i32_0 = arith.constant 0 : i32
    %c0_i32_1 = arith.constant 0 : i32
    %c0_i32_2 = arith.constant 0 : i32
    return %arg0, %c0_i32, %c0_i32_0, %c0_i32_1 : i32, i32, i32, i32
  }
}

</mosaic_0001>

<bundles_post_ra>
// kernel: decomnet_forward.1
= control target key start
LH: loop header
LB: loop body
LE: loop exit
PB: predicated region body
PF: predicated region fallthrough
CT: control target
= control target key end

     0   :  { %s12703_s24 = smov 0   ;;  %s18218_s0 = inlined_call_operand.vmem [shape: bf16[2,24,16,36], index: 0, kind: input, shape index: {}]   ;;  %s18219_s1 = inlined_call_operand.vmem [shape: bf16[324,32], index: 1, kind: input, shape index: {}]   ;;  %s18220_s2 = inlined_call_operand.vmem [shape: f32[1,32], index: 2, kind: input, shape index: {}]   ;;  %s18221_s3 = inlined_call_operand.vmem [shape: bf16[5,288,32], index: 3, kind: input, shape index: {}]   ;;  %s18222_s4 = inlined_call_operand.vmem [shape: f32[5,1,32], index: 4, kind: input, shape index: {}]   ;;  %s18223_s5 = inlined_call_operand.vmem [shape: bf16[288,4], index: 5, kind: input, shape index: {}]   ;;  %s18224_s6 = inlined_call_operand.vmem [shape: f32[1,4], index: 6, kind: input, shape index: {}]   ;;  %s18225_s7 = inlined_call_operand.vmem [shape: f32[2,16,16,4], index: 7, kind: output, shape index: {}]  }
   0x1 LB: > { %s10689_s25 = sadd.s32 4294967295, %s12651_s24   ;;  %p10693_p0 = scmp.ge.s32.totalorder %s12651_s24, 1  ;;  %s12651_s24 = sphi %s12703_s24, %s17_s24  }
   0x2   : > { %p237_p1 = scmp.lt.s32.totalorder %s12651_s24, 3 }
   0x4   : > { %p238_p2 = pnand %p10693_p0, %p237_p1 }
   0x6   : > { %241 = sbr.rel (%p238_p2) target bundleno = 3041 (0xbe1), region = 48 }
   0xd   : > { %p269_p3 = scmp.lt.s32.totalorder %s10689_s25, 1  ;;  %v12367_v0 = vld [vmem:[%s18219_s1 + $0x40] sm:$0xff]   ;;  %v12369_v2 = vld [vmem:[%s18219_s1 + $0x48] sm:$0xff]   ;;  %v12371_v4 = vld [vmem:[%s18219_s1 + $0x50] sm:$0xff]   ;;  %s12653_s19 = smov 52   ;;  %vm835_vm0 = vcmask 130048  }
   0xe   : > { %v12368_v1 = vld [vmem:[%s18219_s1] sm:$0xff]   ;;  %11152 = vmatprep.subr.bf16.mxu0 %v12367_v0  ;;  %v12370_v3 = vld [vmem:[%s18219_s1 + $0x8] sm:$0xff]   ;;  %v12372_v5 = vld [vmem:[%s18219_s1 + $0x10] sm:$0xff]   ;;  %s12654_s20 = smov 108   ;;  %s12655_s21 = smov 36   ;;  %vm704_vm1 = vcmask 293888  }
   0xf   : > { %s18236_s25 = smov (!%p269_p3, %s10689_s25), 1  ;;  %11153 = vmatpush3.bf16.msra.mxu0 %v12368_v1  ;;  %s12656_s22 = smov 16   ;;  %v12374_v13 = vld [vmem:[%s18219_s1 + $0x58] sm:$0xff]   ;;  %v12376_v15 = vld [vmem:[%s18219_s1 + $0x60] sm:$0xff]   ;;  %v12378_v17 = vld [vmem:[%s18219_s1 + $0x68] sm:$0xff]   ;;  %vm868_vm2 = vcmask 424960  }
  0x10   : > { %s12335_s9 = smul.u32 192, %s18236_s25  ;;  %11154 = vmatprep.subr.bf16.mxu0 %v12369_v2  ;;  %s12657_s23 = smov 72   ;;  %v12375_v14 = vld [vmem:[%s18219_s1 + $0x18] sm:$0xff]   ;;  %v12377_v16 = vld [vmem:[%s18219_s1 + $0x20] sm:$0xff]   ;;  %v12379_v19 = vld [vmem:[%s18219_s1 + $0x28] sm:$0xff]   ;;  %vm753_vm3 = vcmask 588800  }
  0x11   : > { %s12658_s26 = smov 88   ;;  %s12659_s29 = smov 124   ;;  %v12381_v20 = vld [vmem:[%s18219_s1 + $0x70] sm:$0xff]   ;;  %v12384_v22 = vld [vmem:[%s18219_s1 + $0x78] sm:$0xff]   ;;  %v12393_v34 = vld [vmem:[%s18219_s1 + $0x80] sm:$0xff]   ;;  %vm901_vm4 = vcmask 719872  }
  0x12   : > { %s12732_s16 = scalar_lea.vmem %s18218_s0, %s12335_s9  ;;  %v12382_v21 = vld [vmem:[%s18219_s1 + $0x30] sm:$0xff]   ;;  %v12385_v23 = vld [vmem:[%s18219_s1 + $0x38] sm:$0xff]   ;;  %12323 = vmatprep.subr.bf16.mxu1 %v12393_v34  ;;  %vm934_vm5 = vcmask 1014784   ;;  %vm786_vm6 = vcmask 883712   ;;  %v12395_v2 = vld [vmem:[%s18219_s1 + $0x88] sm:$0xff]   ;;  %vm1220_vm7 = vcmask 1041408  }
  0x13   : > { %v12738_v6 = vld [vmem:[%s12732_s16 + $0x28] sm:$0xff]   ;;  %v12741_v7 = vld [vmem:[%s12732_s16 + $0x18] sm:$0xff]   ;;  %11155 = vmatpush3.bf16.msra.mxu0 %v12370_v3  ;;  %v12356_v8 = vld [vmem:[%s12732_s16 + $0x20] sm:$0xff]   ;;  %12328 = vmatpush3.bf16.msra.mxu1 %v12393_v34  ;;  %vm983_vm8 = vcmask 261120   ;;  %vm1187_vm9 = vcmask 556032   ;;  %vm1754_vm10 = vcmask 1040384  }
  0x14   : > { %561 = vrot.lane.b32.xlu1 %v12738_v6, %s12653_s19  ;;  %11156 = vmatprep.subr.bf16.mxu0 %v12371_v4  ;;  %v12749_v9 = vld [vmem:[%s12732_s16 + $0x8] sm:$0xff]   ;;  %v12754_v10 = vld [vmem:[%s12732_s16 + $0x10] sm:$0xff]   ;;  %v12765_v12 = vld [vmem:[%s12732_s16 + $0x38] sm:$0xff]   ;;  %vm1755_vm11 = vsmask.f32 256  ;;  %vm2037_vm13 = vcmask 1046528  }
  0x15   : > { %487 = vrot.lane.b32.xlu0 %v12741_v7, %s12654_s20  ;;  %v12758_v11 = vld [vmem:[%s12732_s16 + $0x30] sm:$0xff]   ;;  %v12361_v18 = vld [vmem:[%s12732_s16 + $0x40] sm:$0xff]   ;;  %v12821_v24 = vld [vmem:[%s12732_s16 + $0x48] sm:$0xff]   ;;  %12324 = vmatprep.subr.bf16.mxu1 %v12395_v2  ;;  %s12661_s8 = smov 96   ;;  %s12662_s9 = smov 64   ;;  %vm2314_vm15 = vcmask 523264  }
  0x16   : > { %v12833_v25 = vld [vmem:[%s12732_s16 + $0x50] sm:$0xff]   ;;  %v12850_v26 = vld [vmem:[%s12732_s16 + $0x58] sm:$0xff]   ;;  %v12864_v27 = vld [vmem:[%s12732_s16 + $0x60] sm:$0xff]   ;;  %vm1826_vm14 = vsmask.f32 7424 }
  0x17   : > { %11157 = vmatpush3.bf16.msra.mxu0 %v12372_v5  ;;  %v12883_v28 = vld [vmem:[%s12732_s16 + $0x68] sm:$0xff]   ;;  %v12897_v29 = vld [vmem:[%s12732_s16 + $0x70] sm:$0xff]   ;;  %v12380_v35 = vld [vmem:[%s12732_s16] sm:$0xff]   ;;  %12329 = vmatpush3.bf16.msra.mxu1 %v12395_v2 }
  0x18   : > { %413 = vrot.lane.b32.xlu1 %v12749_v9, %s12655_s21  ;;  %11158 = vmatprep.subr.bf16.mxu0 %v12374_v13  ;;  %v12923_v36 = vld [vmem:[%s12732_s16 + $0x78] sm:$0xff]   ;;  %v12946_v50 = vld [vmem:[%s12732_s16 + $0x80] sm:$0xff]   ;;  %v12981_v3 = vld [vmem:[%s12732_s16 + $0x88] sm:$0xff]  }
  0x19   : > { %524 = vrot.lane.b32.xlu0 %v12356_v8, %s12656_s22  ;;  %vm13425_vm12 = vmand %vm1754_vm10, %vm1755_vm11 }
  0x1b   : > { %11159 = vmatpush3.bf16.msra.mxu0 %v12375_v14 }
  0x1c   : > { %450 = vrot.lane.b32.xlu1 %v12754_v10, %s12657_s23  ;;  %11160 = vmatprep.subr.bf16.mxu0 %v12376_v15 }
  0x1d   : > { %598 = vrot.lane.b32.xlu0 %v12758_v11, %s12658_s26 }
  0x1f   : > { %11161 = vmatpush3.bf16.msra.mxu0 %v12377_v16 }
  0x20   : > { %489 = vrot.lane.b32.xlu1 %v12356_v8, %s12654_s20  ;;  %11162 = vmatprep.subr.bf16.mxu0 %v12378_v17 }
  0x21   : > { %635 = vrot.lane.b32.xlu0 %v12765_v12, %s12659_s29 }
  0x23   : > { %11163 = vmatpush3.bf16.msra.mxu0 %v12379_v19 }
  0x24   : > { %563 = vrot.lane.b32.xlu1 %v12758_v11, %s12653_s19  ;;  %11164 = vmatprep.subr.bf16.mxu0 %v12381_v20 }
  0x25   : > { %526 = vrot.lane.b32.xlu0 %v12738_v6, %s12656_s22 }
  0x27   : > { %11165 = vmatpush3.bf16.msra.mxu0 %v12382_v21 }
  0x28   : > { %600 = vrot.lane.b32.xlu1 %v12765_v12, %s12658_s26  ;;  %11166 = vmatprep.subr.bf16.mxu0 %v12384_v22 }
  0x29   : > { %415 = vrot.lane.b32.xlu0 %v12754_v10, %s12655_s21 }
  0x2b   : > { %11167 = vmatpush3.bf16.msra.mxu0 %v12385_v23 }
  0x2c   : > { %637 = vrot.lane.b32.xlu1 %v12361_v18, %s12659_s29  ;;  %12065 = vmatprep.subr.bf16.mxu0 %v12393_v34 }
  0x2d   : > { %452 = vrot.lane.b32.xlu0 %v12741_v7, %s12657_s23 }
  0x30   : > { %528 = vrot.lane.b32.xlu1 %v12758_v11, %s12656_s22 }
  0x31   : > { %491 = vrot.lane.b32.xlu0 %v12738_v6, %s12654_s20 }
  0x34   : > { %417 = vrot.lane.b32.xlu1 %v12741_v7, %s12655_s21 }
  0x35   : > { %565 = vrot.lane.b32.xlu0 %v12765_v12, %s12653_s19 }
  0x38   : > { %454 = vrot.lane.b32.xlu1 %v12356_v8, %s12657_s23 }
  0x39   : > { %602 = vrot.lane.b32.xlu0 %v12361_v18, %s12658_s26 }
  0x3c   : > { %493 = vrot.lane.b32.xlu1 %v12758_v11, %s12654_s20 }
  0x3d   : > { %639 = vrot.lane.b32.xlu0 %v12821_v24, %s12659_s29 }
  0x40   : > { %567 = vrot.lane.b32.xlu1 %v12361_v18, %s12653_s19 }
  0x41   : > { %530 = vrot.lane.b32.xlu0 %v12765_v12, %s12656_s22 }
  0x44   : > { %604 = vrot.lane.b32.xlu1 %v12821_v24, %s12658_s26 }
  0x45   : > { %419 = vrot.lane.b32.xlu0 %v12356_v8, %s12655_s21 }
  0x48   : > { %641 = vrot.lane.b32.xlu1 %v12833_v25, %s12659_s29 }
  0x49   : > { %456 = vrot.lane.b32.xlu0 %v12738_v6, %s12657_s23 }
  0x4c   : > { %532 = vrot.lane.b32.xlu1 %v12361_v18, %s12656_s22 }
  0x4d   : > { %495 = vrot.lane.b32.xlu0 %v12765_v12, %s12654_s20 }
  0x50   : > { %421 = vrot.lane.b32.xlu1 %v12738_v6, %s12655_s21 }
  0x51   : > { %569 = vrot.lane.b32.xlu0 %v12821_v24, %s12653_s19 }
  0x54   : > { %458 = vrot.lane.b32.xlu1 %v12758_v11, %s12657_s23 }
  0x55   : > { %606 = vrot.lane.b32.xlu0 %v12833_v25, %s12658_s26 }
  0x58   : > { %497 = vrot.lane.b32.xlu1 %v12361_v18, %s12654_s20 }
  0x59   : > { %643 = vrot.lane.b32.xlu0 %v12850_v26, %s12659_s29 }
  0x5c   : > { %571 = vrot.lane.b32.xlu1 %v12833_v25, %s12653_s19 }
  0x5d   : > { %534 = vrot.lane.b32.xlu0 %v12821_v24, %s12656_s22 }
  0x60   : > { %608 = vrot.lane.b32.xlu1 %v12850_v26, %s12658_s26 }
  0x61   : > { %423 = vrot.lane.b32.xlu0 %v12758_v11, %s12655_s21 }
  0x64   : > { %645 = vrot.lane.b32.xlu1 %v12864_v27, %s12659_s29 }
  0x65   : > { %460 = vrot.lane.b32.xlu0 %v12765_v12, %s12657_s23 }
  0x68   : > { %536 = vrot.lane.b32.xlu1 %v12833_v25, %s12656_s22 }
  0x69   : > { %499 = vrot.lane.b32.xlu0 %v12821_v24, %s12654_s20 }
  0x6c   : > { %425 = vrot.lane.b32.xlu1 %v12765_v12, %s12655_s21 }
  0x6d   : > { %573 = vrot.lane.b32.xlu0 %v12850_v26, %s12653_s19 }
  0x70   : > { %462 = vrot.lane.b32.xlu1 %v12361_v18, %s12657_s23 }
  0x71   : > { %610 = vrot.lane.b32.xlu0 %v12864_v27, %s12658_s26 }
  0x74   : > { %501 = vrot.lane.b32.xlu1 %v12833_v25, %s12654_s20 }
  0x75   : > { %647 = vrot.lane.b32.xlu0 %v12883_v28, %s12659_s29 }
  0x78   : > { %575 = vrot.lane.b32.xlu1 %v12864_v27, %s12653_s19 }
  0x79   : > { %538 = vrot.lane.b32.xlu0 %v12850_v26, %s12656_s22 }
  0x7c   : > { %612 = vrot.lane.b32.xlu1 %v12883_v28, %s12658_s26 }
  0x7d   : > { %427 = vrot.lane.b32.xlu0 %v12361_v18, %s12655_s21  ;;  %v13005_v18 = vld [vmem:[%s12732_s16 + $0x90] sm:$0xff]  }
  0x80   : > { %649 = vrot.lane.b32.xlu1 %v12897_v29, %s12659_s29 }
  0x81   : > { %464 = vrot.lane.b32.xlu0 %v12821_v24, %s12657_s23 }
  0x84   : > { %540 = vrot.lane.b32.xlu1 %v12864_v27, %s12656_s22 }
  0x85   : > { %503 = vrot.lane.b32.xlu0 %v12850_v26, %s12654_s20 }
  0x86   : > { %v562_v30 = vpop.permute.xlu1 %561 }
  0x87   : > { %v488_v31 = vpop.permute.xlu0 %487 }
  0x88   : > { %429 = vrot.lane.b32.xlu1 %v12821_v24, %s12655_s21 }
  0x89   : > { %577 = vrot.lane.b32.xlu0 %v12883_v28, %s12653_s19 }
  0x8a   : > { %v414_v32 = vpop.permute.xlu1 %413 }
  0x8b   : > { %v525_v33 = vpop.permute.xlu0 %524  ;;  %v707_v40 = vsel %vm704_vm1, %v12380_v35, %v414_v32 }
  0x8c   : > { %466 = vrot.lane.b32.xlu1 %v12833_v25, %s12657_s23  ;;  %v837_v38 = vsel %vm835_vm0, %v488_v31, %v525_v33 }
  0x8d   : > { %614 = vrot.lane.b32.xlu0 %v12897_v29, %s12658_s26  ;;  %v870_v41 = vsel %vm868_vm2, %v837_v38, %v562_v30 }
  0x8e   : > { %v451_v37 = vpop.permute.xlu1 %450 }
  0x8f   : > { %v599_v39 = vpop.permute.xlu0 %598  ;;  %v755_v42 = vsel %vm753_vm3, %v707_v40, %v451_v37 }
  0x90   : > { %505 = vrot.lane.b32.xlu1 %v12864_v27, %s12654_s20  ;;  %v903_v44 = vsel %vm901_vm4, %v870_v41, %v599_v39  ;;  %v788_v47 = vsel %vm786_vm6, %v755_v42, %v488_v31  ;;  %v13040_v41 = vld [vmem:[%s12732_s16 + $0x98] sm:$0xff]  }
  0x91   : > { %651 = vrot.lane.b32.xlu0 %v12923_v36, %s12659_s29 }
  0x92   : > { %v490_v43 = vpop.permute.xlu1 %489 }
  0x93   : > { %v12934_v45 = vpop.permute.xlu0 %635 }
  0x94   : > { %v936_v46 = vsel %vm934_vm5, %v903_v44, %v12934_v45  ;;  %579 = vrot.lane.b32.xlu1 %v12897_v29, %s12653_s19 }
  0x95   : > { %1256 = vmatprep.mubr.bf16.mxu0 %v936_v46  ;;  %542 = vrot.lane.b32.xlu0 %v12883_v28, %s12656_s22  ;;  %v12635_v46 = vld [vmem:[%s12732_s16 + $0x20] sm:$0xff]  }
  0x96   : > { %1257 = vmatmul.mubr.bf16.vlgmr.msra.gmra.mrb[0].mxu0 %v788_v47  ;;  %v564_v48 = vpop.permute.xlu1 %563 }
  0x97   : > { %v527_v49 = vpop.permute.xlu0 %526  ;;  %12066 = vmatpush3.bf16.msra.mxu0 %v12393_v34 }
  0x98   : > { %616 = vrot.lane.b32.xlu1 %v12923_v36, %s12658_s26  ;;  %v839_v51 = vsel %vm835_vm0, %v490_v43, %v527_v49  ;;  %12067 = vmatprep.subr.bf16.mxu0 %v12395_v2 }
  0x99   : > { %431 = vrot.lane.b32.xlu0 %v12833_v25, %s12655_s21  ;;  %v872_v54 = vsel %vm868_vm2, %v839_v51, %v564_v48 }
  0x9a   : > { %v601_v52 = vpop.permute.xlu1 %600 }
  0x9b   : > { %v416_v53 = vpop.permute.xlu0 %415  ;;  %v905_v55 = vsel %vm901_vm4, %v872_v54, %v601_v52  ;;  %12068 = vmatpush3.bf16.msra.mxu0 %v12395_v2  ;;  %v12636_v2 = vld [vmem:[%s12732_s16 + $0x28] sm:$0xff]  }
  0x9c   : > { %653 = vrot.lane.b32.xlu1 %v12946_v50, %s12659_s29  ;;  %v710_v57 = vsel %vm704_vm1, %v12749_v9, %v416_v53 }
  0x9d   : > { %468 = vrot.lane.b32.xlu0 %v12850_v26, %s12657_s23 }
  0x9e   : > { %v12957_v56 = vpop.permute.xlu1 %637 }
  0x9f   : > { %v453_v58 = vpop.permute.xlu0 %452  ;;  %v939_v59 = vsel %vm934_vm5, %v905_v55, %v12957_v56 }
  0xa0   : > { %v757_v60 = vsel %vm753_vm3, %v710_v57, %v453_v58  ;;  %544 = vrot.lane.b32.xlu1 %v12897_v29, %s12656_s22  ;;  %1264 = vmatprep.mubr.bf16.mxu0 %v939_v59  ;;  %v13064_v59 = vld [vmem:[%s12732_s16 + $0xa0] sm:$0xff]  }
  0xa1   : > { %507 = vrot.lane.b32.xlu0 %v12883_v28, %s12654_s20  ;;  %v791_v61 = vsel %vm786_vm6, %v757_v60, %v490_v43 }
  0xa2   : > { %1265 = vmatmul.mubr.bf16.gmra.mrb[4].mxu0 %v791_v61  ;;  %v529_v62 = vpop.permute.xlu1 %528 }
  0xa3   : > { %v492_v63 = vpop.permute.xlu0 %491 }
  0xa4   : > { %433 = vrot.lane.b32.xlu1 %v12850_v26, %s12655_s21  ;;  %v841_v6 = vsel %vm835_vm0, %v492_v63, %v529_v62 }
  0xa5   : > { %581 = vrot.lane.b32.xlu0 %v12923_v36, %s12653_s19 }
  0xa6   : > { %v418_v0 = vpop.permute.xlu1 %417 }
  0xa7   : > { %v566_v1 = vpop.permute.xlu0 %565  ;;  %v713_v8 = vsel %vm704_vm1, %v12754_v10, %v418_v0 }
  0xa8   : > { %470 = vrot.lane.b32.xlu1 %v12864_v27, %s12657_s23  ;;  %v874_v9 = vsel %vm868_vm2, %v841_v6, %v566_v1 }
  0xa9   : > { %618 = vrot.lane.b32.xlu0 %v12946_v50, %s12658_s26 }
  0xaa   : > { %v455_v4 = vpop.permute.xlu1 %454 }
  0xab   : > { %v603_v5 = vpop.permute.xlu0 %602  ;;  %v759_v11 = vsel %vm753_vm3, %v713_v8, %v455_v4 }
  0xac   : > { %509 = vrot.lane.b32.xlu1 %v12897_v29, %s12654_s20  ;;  %v907_v13 = vsel %vm901_vm4, %v874_v9, %v603_v5  ;;  %v794_v10 = vsel %vm786_vm6, %v759_v11, %v492_v63 }
  0xad   : > { %655 = vrot.lane.b32.xlu0 %v12981_v3, %s12659_s29 }
  0xae   : > { %v494_v12 = vpop.permute.xlu1 %493 }
  0xaf   : > { %v12993_v14 = vpop.permute.xlu0 %639 }
  0xb0   : > { %583 = vrot.lane.b32.xlu1 %v12946_v50, %s12653_s19  ;;  %v942_v15 = vsel %vm934_vm5, %v907_v13, %v12993_v14 }
  0xb1   : > { %546 = vrot.lane.b32.xlu0 %v12923_v36, %s12656_s22  ;;  %1272 = vmatprep.mubr.bf16.mxu0 %v942_v15 }
  0xb2   : > { %1273 = vmatmul.mubr.bf16.gmra.mrb[8].mxu0 %v794_v10  ;;  %v568_v16 = vpop.permute.xlu1 %567 }
  0xb3   : > { %v531_v17 = vpop.permute.xlu0 %530 }
  0xb4   : > { %620 = vrot.lane.b32.xlu1 %v12981_v3, %s12658_s26  ;;  %v843_v19 = vsel %vm835_vm0, %v494_v12, %v531_v17 }
  0xb5   : > { %435 = vrot.lane.b32.xlu0 %v12864_v27, %s12655_s21  ;;  %v876_v22 = vsel %vm868_vm2, %v843_v19, %v568_v16  ;;  %v13099_v16 = vld [vmem:[%s12732_s16 + $0xa8] sm:$0xff]  }
  0xb6   : > { %v605_v20 = vpop.permute.xlu1 %604 }
  0xb7   : > { %v420_v21 = vpop.permute.xlu0 %419  ;;  %v909_v23 = vsel %vm901_vm4, %v876_v22, %v605_v20 }
  0xb8   : > { %657 = vrot.lane.b32.xlu1 %v13005_v18, %s12659_s29  ;;  %v716_v31 = vsel %vm704_vm1, %v12741_v7, %v420_v21  ;;  %v12396_v7 = vld [vmem:[%s18219_s1 + $0x90] sm:$0xff]  }
  0xb9   : > { %472 = vrot.lane.b32.xlu0 %v12883_v28, %s12657_s23  ;;  %12069 = vmatprep.subr.bf16.mxu0 %v12396_v7  ;;  %v12637_v21 = vld [vmem:[%s12732_s16 + $0x30] sm:$0xff]  }
  0xba   : > { %v13016_v30 = vpop.permute.xlu1 %641  ;;  %12325 = vmatprep.subr.bf16.mxu1 %v12396_v7  ;;  %12070 = vmatpush3.bf16.msra.mxu0 %v12396_v7 }
  0xbb   : > { %v457_v32 = vpop.permute.xlu0 %456  ;;  %v945_v33 = vsel %vm934_vm5, %v909_v23, %v13016_v30  ;;  %12330 = vmatpush3.bf16.msra.mxu1 %v12396_v7 }
  0xbc   : > { %v761_v34 = vsel %vm753_vm3, %v716_v31, %v457_v32  ;;  %548 = vrot.lane.b32.xlu1 %v12946_v50, %s12656_s22  ;;  %1280 = vmatprep.mubr.bf16.mxu0 %v945_v33 }
  0xbd   : > { %511 = vrot.lane.b32.xlu0 %v12923_v36, %s12654_s20  ;;  %v797_v35 = vsel %vm786_vm6, %v761_v34, %v494_v12  ;;  %v12397_v12 = vld [vmem:[%s18219_s1 + $0x98] sm:$0xff]  }
  0xbe   : > { %1281 = vmatmul.mubr.bf16.gmra.mrb[12].mxu0 %v797_v35  ;;  %v533_v37 = vpop.permute.xlu1 %532  ;;  %12071 = vmatprep.subr.bf16.mxu0 %v12397_v12 }
  0xbf   : > { %v496_v38 = vpop.permute.xlu0 %495  ;;  %12072 = vmatpush3.bf16.msra.mxu0 %v12397_v12  ;;  %12326 = vmatprep.subr.bf16.mxu1 %v12397_v12 }
  0xc0   : > { %437 = vrot.lane.b32.xlu1 %v12883_v28, %s12655_s21  ;;  %v845_v44 = vsel %vm835_vm0, %v496_v38, %v533_v37  ;;  %12331 = vmatpush3.bf16.msra.mxu1 %v12397_v12  ;;  %v12398_v37 = vld [vmem:[%s18219_s1 + $0xa0] ss:$0 sps:$4 sm:$0x33]  }
  0xc1   : > { %585 = vrot.lane.b32.xlu0 %v12981_v3, %s12653_s19  ;;  %12333 = vmatprep.subr.msk.bf16.mxu0 %vm1220_vm7, %v12398_v37 }
  0xc2   : > { %v422_v39 = vpop.permute.xlu1 %421  ;;  %12334 = vmatprep.subr.msk.bf16.mxu1 %vm1220_vm7, %v12398_v37 }
  0xc3   : > { %v570_v40 = vpop.permute.xlu0 %569  ;;  %v719_v47 = vsel %vm704_vm1, %v12635_v46, %v422_v39  ;;  %v1222_v39 = vsel %vm1220_vm7, %v12398_v37, 0 }
  0xc4   : > { %474 = vrot.lane.b32.xlu1 %v12897_v29, %s12657_s23  ;;  %v878_v48 = vsel %vm868_vm2, %v845_v44, %v570_v40  ;;  %12074 = vmatpush3.bf16.msra.mxu0 %v1222_v39 }
  0xc5   : > { %622 = vrot.lane.b32.xlu0 %v13005_v18, %s12658_s26  ;;  %12332 = vmatpush3.bf16.msra.mxu1 %v1222_v39 }
  0xc6   : > { %v459_v42 = vpop.permute.xlu1 %458 }
  0xc7   : > { %v607_v43 = vpop.permute.xlu0 %606  ;;  %v763_v49 = vsel %vm753_vm3, %v719_v47, %v459_v42  ;;  %v13126_v42 = vld [vmem:[%s12732_s16 + $0xb0] sm:$0xff]  }
  0xc8   : > { %513 = vrot.lane.b32.xlu1 %v12946_v50, %s12654_s20  ;;  %v911_v52 = vsel %vm901_vm4, %v878_v48, %v607_v43  ;;  %v800_v55 = vsel %vm786_vm6, %v763_v49, %v496_v38 }
  0xc9   : > { %659 = vrot.lane.b32.xlu0 %v13040_v41, %s12659_s29 }
  0xca   : > { %v498_v51 = vpop.permute.xlu1 %497 }
  0xcb   : > { %v13052_v53 = vpop.permute.xlu0 %643 }
  0xcc   : > { %587 = vrot.lane.b32.xlu1 %v13005_v18, %s12653_s19  ;;  %v948_v54 = vsel %vm934_vm5, %v911_v52, %v13052_v53 }
  0xcd   : > { %550 = vrot.lane.b32.xlu0 %v12981_v3, %s12656_s22  ;;  %1288 = vmatprep.mubr.bf16.mxu0 %v948_v54 }
  0xce   : > { %1289 = vmatmul.mubr.bf16.gmra.mrb[16].mxu0 %v800_v55  ;;  %v572_v57 = vpop.permute.xlu1 %571 }
  0xcf   : > { %v535_v58 = vpop.permute.xlu0 %534 }
  0xd0   : > { %624 = vrot.lane.b32.xlu1 %v13040_v41, %s12658_s26  ;;  %v847_v60 = vsel %vm835_vm0, %v498_v51, %v535_v58  ;;  %v12639_v58 = vld [vmem:[%s12732_s16 + $0x40] sm:$0xff]  }
  0xd1   : > { %439 = vrot.lane.b32.xlu0 %v12897_v29, %s12655_s21  ;;  %v880_v63 = vsel %vm868_vm2, %v847_v60, %v572_v57 }
  0xd2   : > { %v609_v61 = vpop.permute.xlu1 %608 }
  0xd3   : > { %v424_v62 = vpop.permute.xlu0 %423  ;;  %v913_v0 = vsel %vm901_vm4, %v880_v63, %v609_v61 }
  0xd4   : > { %661 = vrot.lane.b32.xlu1 %v13064_v59, %s12659_s29  ;;  %v722_v4 = vsel %vm704_vm1, %v12636_v2, %v424_v62 }
  0xd5   : > { %476 = vrot.lane.b32.xlu0 %v12923_v36, %s12657_s23 }
  0xd6   : > { %v13075_v1 = vpop.permute.xlu1 %645 }
  0xd7   : > { %v461_v5 = vpop.permute.xlu0 %460  ;;  %v951_v6 = vsel %vm934_vm5, %v913_v0, %v13075_v1 }
  0xd8   : > { %v765_v8 = vsel %vm753_vm3, %v722_v4, %v461_v5  ;;  %552 = vrot.lane.b32.xlu1 %v13005_v18, %s12656_s22  ;;  %1296 = vmatprep.mubr.bf16.mxu0 %v951_v6 }
  0xd9   : > { %515 = vrot.lane.b32.xlu0 %v12981_v3, %s12654_s20  ;;  %v803_v9 = vsel %vm786_vm6, %v765_v8, %v498_v51  ;;  %v12638_v51 = vld [vmem:[%s12732_s16 + $0x38] sm:$0xff]  }
  0xda   : > { %1297 = vmatmul.mubr.bf16.gmra.mrb[20].mxu0 %v803_v9  ;;  %v537_v11 = vpop.permute.xlu1 %536 }
  0xdb   : > { %v500_v13 = vpop.permute.xlu0 %499 }
  0xdc   : > { %441 = vrot.lane.b32.xlu1 %v12923_v36, %s12655_s21  ;;  %v849_v20 = vsel %vm835_vm0, %v500_v13, %v537_v11 }
  0xdd   : > { %589 = vrot.lane.b32.xlu0 %v13040_v41, %s12653_s19 }
  0xde   : > { %v426_v15 = vpop.permute.xlu1 %425 }
  0xdf   : > { %v574_v10 = vpop.permute.xlu0 %573  ;;  %v725_v22 = vsel %vm704_vm1, %v12637_v21, %v426_v15 }
  0xe0   : > { %478 = vrot.lane.b32.xlu1 %v12946_v50, %s12657_s23  ;;  %v882_v23 = vsel %vm868_vm2, %v849_v20, %v574_v10 }
  0xe1   : > { %626 = vrot.lane.b32.xlu0 %v13064_v59, %s12658_s26 }
  0xe2   : > { %v463_v17 = vpop.permute.xlu1 %462 }
  0xe3   : > { %v611_v19 = vpop.permute.xlu0 %610  ;;  %v767_v31 = vsel %vm753_vm3, %v725_v22, %v463_v17 }
  0xe4   : > { %517 = vrot.lane.b32.xlu1 %v13005_v18, %s12654_s20  ;;  %v915_v33 = vsel %vm901_vm4, %v882_v23, %v611_v19  ;;  %v806_v38 = vsel %vm786_vm6, %v767_v31, %v500_v13 }
  0xe5   : > { %663 = vrot.lane.b32.xlu0 %v13099_v16, %s12659_s29 }
  0xe6   : > { %v502_v32 = vpop.permute.xlu1 %501 }
  0xe7   : > { %v13111_v34 = vpop.permute.xlu0 %647 }
  0xe8   : > { %591 = vrot.lane.b32.xlu1 %v13064_v59, %s12653_s19  ;;  %v954_v35 = vsel %vm934_vm5, %v915_v33, %v13111_v34  ;;  %s12660_s19 = smov 32  }
  0xe9   : > { %554 = vrot.lane.b32.xlu0 %v13040_v41, %s12656_s22  ;;  %1304 = vmatprep.mubr.bf16.mxu0 %v954_v35 }
  0xea   : > { %1305 = vmatmul.mubr.bf16.gmra.mrb[24].mxu0 %v806_v38  ;;  %v576_v7 = vpop.permute.xlu1 %575 }
  0xeb   : > { %v539_v40 = vpop.permute.xlu0 %538 }
  0xec   : > { %628 = vrot.lane.b32.xlu1 %v13099_v16, %s12658_s26  ;;  %v851_v43 = vsel %vm835_vm0, %v502_v32, %v539_v40 }
  0xed   : > { %443 = vrot.lane.b32.xlu0 %v12946_v50, %s12655_s21  ;;  %v884_v47 = vsel %vm868_vm2, %v851_v43, %v576_v7 }
  0xee   : > { %v613_v44 = vpop.permute.xlu1 %612 }
  0xef   : > { %v428_v46 = vpop.permute.xlu0 %427  ;;  %v917_v48 = vsel %vm901_vm4, %v884_v47, %v613_v44 }
  0xf0   : > { %665 = vrot.lane.b32.xlu1 %v13126_v42, %s12659_s29  ;;  %v728_v52 = vsel %vm704_vm1, %v12638_v51, %v428_v46 }
  0xf1   : > { %480 = vrot.lane.b32.xlu0 %v12981_v3, %s12657_s23 }
  0xf2   : > { %v13137_v49 = vpop.permute.xlu1 %649 }
  0xf3   : > { %v465_v54 = vpop.permute.xlu0 %464  ;;  %v957_v55 = vsel %vm934_vm5, %v917_v48, %v13137_v49 }
  0xf4   : > { %v769_v57 = vsel %vm753_vm3, %v728_v52, %v465_v54  ;;  %674 = vrot.lane.b32.xlu1 %v12821_v24, %s12660_s19  ;;  %1312 = vmatprep.mubr.bf16.mxu0 %v957_v55 }
  0xf5   : > { %672 = vrot.lane.b32.xlu0 %v12639_v58, %s12660_s19  ;;  %v809_v60 = vsel %vm786_vm6, %v769_v57, %v502_v32 }
  0xf6   : > { %1313 = vmatmul.mubr.bf16.gmra.mrb[28].mxu0 %v809_v60  ;;  %v541_v61 = vpop.permute.xlu1 %540 }
  0xf7   : > { %v504_v62 = vpop.permute.xlu0 %503 }
  0xf8   : > { %678 = vrot.lane.b32.xlu1 %v12850_v26, %s12660_s19  ;;  %v853_v4 = vsel %vm835_vm0, %v504_v62, %v541_v61 }
  0xf9   : > { %676 = vrot.lane.b32.xlu0 %v12833_v25, %s12660_s19 }
  0xfa   : > { %v430_v63 = vpop.permute.xlu1 %429 }
  0xfb   : > { %v578_v0 = vpop.permute.xlu0 %577  ;;  %v731_v5 = vsel %vm704_vm1, %v12639_v58, %v430_v63 }
  0xfc   : > { %682 = vrot.lane.b32.xlu1 %v12883_v28, %s12660_s19  ;;  %v886_v6 = vsel %vm868_vm2, %v853_v4, %v578_v0 }
  0xfd   : > { %680 = vrot.lane.b32.xlu0 %v12864_v27, %s12660_s19 }
  0xfe   : > { %v467_v24 = vpop.permute.xlu1 %466 }
  0xff   : > { %v615_v2 = vpop.permute.xlu0 %614  ;;  %v771_v8 = vsel %vm753_vm3, %v731_v5, %v467_v24 }
 0x100   : > { %686 = vrot.lane.b32.xlu1 %v12923_v36, %s12660_s19  ;;  %v919_v11 = vsel %vm901_vm4, %v886_v6, %v615_v2  ;;  %v812_v15 = vsel %vm786_vm6, %v771_v8, %v504_v62 }
 0x101   : > { %684 = vrot.lane.b32.xlu0 %v12897_v29, %s12660_s19 }
 0x102   : > { %v506_v9 = vpop.permute.xlu1 %505 }
 0x103   : > { %v13166_v12 = vpop.permute.xlu0 %651 }
 0x104   : > { %690 = vrot.lane.b32.xlu1 %v12981_v3, %s12660_s19  ;;  %v960_v13 = vsel %vm934_vm5, %v919_v11, %v13166_v12 }
 0x105   : > { %688 = vrot.lane.b32.xlu0 %v12946_v50, %s12660_s19  ;;  %1320 = vmatprep.mubr.bf16.mxu0 %v960_v13  ;;  %v12394_v50 = vld [vmem:[%s12732_s16 + $0xb8] sm:$0xff]  }
 0x106   : > { %1321 = vmatmul.mubr.bf16.gmra.mrb[32].mxu0 %v812_v15  ;;  %v580_v10 = vpop.permute.xlu1 %579 }
 0x107   : > { %v543_v17 = vpop.permute.xlu0 %542 }
 0x108   : > { %694 = vrot.lane.b32.xlu1 %v13040_v41, %s12660_s19  ;;  %v855_v3 = vsel %vm835_vm0, %v506_v9, %v543_v17  ;;  %v12640_v41 = vld [vmem:[%s12732_s16 + $0x48] sm:$0xff]  }
 0x109   : > { %692 = vrot.lane.b32.xlu0 %v13005_v18, %s12660_s19  ;;  %v888_v21 = vsel %vm868_vm2, %v855_v3, %v580_v10 }
 0x10a   : > { %v617_v19 = vpop.permute.xlu1 %616 }
 0x10b   : > { %v432_v20 = vpop.permute.xlu0 %431  ;;  %v921_v22 = vsel %vm901_vm4, %v888_v21, %v617_v19 }
 0x10c   : > { %698 = vrot.lane.b32.xlu1 %v13099_v16, %s12660_s19  ;;  %v734_v18 = vsel %vm704_vm1, %v12640_v41, %v432_v20 }
 0x10d   : > { %696 = vrot.lane.b32.xlu0 %v13064_v59, %s12660_s19 }
 0x10e   : > { %v13187_v23 = vpop.permute.xlu1 %653 }
 0x10f   : > { %v469_v31 = vpop.permute.xlu0 %468  ;;  %v963_v32 = vsel %vm934_vm5, %v921_v22, %v13187_v23 }
 0x110   : > { %v773_v33 = vsel %vm753_vm3, %v734_v18, %v469_v31  ;;  %702 = vrot.lane.b32.xlu1 %v12394_v50, %s12660_s19  ;;  %1328 = vmatprep.mubr.bf16.mxu0 %v963_v32 }
 0x111   : > { %700 = vrot.lane.b32.xlu0 %v13126_v42, %s12660_s19  ;;  %v815_v59 = vsel %vm786_vm6, %v773_v33, %v506_v9 }
 0x112   : > { %1329 = vmatmul.mubr.bf16.gmra.mrb[36].mxu0 %v815_v59  ;;  %v545_v16 = vpop.permute.xlu1 %544 }
 0x113   : > { %v508_v35 = vpop.permute.xlu0 %507 }
 0x114   : > { %v857_v40 = vsel %vm835_vm0, %v508_v35, %v545_v16 }
 0x116   : > { %v434_v37 = vpop.permute.xlu1 %433 }
 0x117   : > { %v582_v38 = vpop.permute.xlu0 %581  ;;  %v737_v43 = vsel %vm704_vm1, %v12833_v25, %v434_v37 }
 0x118   : > { %v890_v44 = vsel %vm868_vm2, %v857_v40, %v582_v38 }
 0x11a   : > { %v471_v7 = vpop.permute.xlu1 %470 }
 0x11b   : > { %v619_v39 = vpop.permute.xlu0 %618  ;;  %v775_v46 = vsel %vm753_vm3, %v737_v43, %v471_v7 }
 0x11c   : > { %v923_v42 = vsel %vm901_vm4, %v890_v44, %v619_v39  ;;  %v818_v52 = vsel %vm786_vm6, %v775_v46, %v508_v35 }
 0x11e   : > { %v510_v47 = vpop.permute.xlu1 %509 }
 0x11f   : > { %v13204_v48 = vpop.permute.xlu0 %655 }
 0x120   : > { %v966_v51 = vsel %vm934_vm5, %v923_v42, %v13204_v48 }
 0x121   : > { %1336 = vmatprep.mubr.bf16.mxu0 %v966_v51 }
 0x122   : > { %1337 = vmatmul.mubr.bf16.gmra.mrb[40].mxu0 %v818_v52  ;;  %v584_v54 = vpop.permute.xlu1 %583 }
 0x123   : > { %v547_v55 = vpop.permute.xlu0 %546 }
 0x124   : > { %v859_v25 = vsel %vm835_vm0, %v510_v47, %v547_v55 }
 0x125   : > { %v892_v60 = vsel %vm868_vm2, %v859_v25, %v584_v54 }
 0x126   : > { %v621_v57 = vpop.permute.xlu1 %620 }
 0x127   : > { %v436_v58 = vpop.permute.xlu0 %435  ;;  %v925_v61 = vsel %vm901_vm4, %v892_v60, %v621_v57 }
 0x128   : > { %v740_v63 = vsel %vm704_vm1, %v12850_v26, %v436_v58 }
 0x12a   : > { %v13212_v62 = vpop.permute.xlu1 %657 }
 0x12b   : > { %v473_v0 = vpop.permute.xlu0 %472  ;;  %v969_v24 = vsel %vm934_vm5, %v925_v61, %v13212_v62 }
 0x12c   : > { %v777_v2 = vsel %vm753_vm3, %v740_v63, %v473_v0  ;;  %1344 = vmatprep.mubr.bf16.mxu0 %v969_v24 }
 0x12d   : > { %v821_v4 = vsel %vm786_vm6, %v777_v2, %v510_v47 }
 0x12e   : > { %1345 = vmatmul.mubr.bf16.gmra.mrb[44].mxu0 %v821_v4  ;;  %v549_v5 = vpop.permute.xlu1 %548 }
 0x12f   : > { %v512_v6 = vpop.permute.xlu0 %511 }
 0x130   : > { %v861_v15 = vsel %vm835_vm0, %v512_v6, %v549_v5 }
 0x132   : > { %v438_v8 = vpop.permute.xlu1 %437 }
 0x133   : > { %v586_v9 = vpop.permute.xlu0 %585  ;;  %v743_v26 = vsel %vm704_vm1, %v12864_v27, %v438_v8 }
 0x134   : > { %v894_v10 = vsel %vm868_vm2, %v861_v15, %v586_v9 }
 0x136   : > { %v475_v11 = vpop.permute.xlu1 %474 }
 0x137   : > { %v623_v13 = vpop.permute.xlu0 %622  ;;  %v779_v17 = vsel %vm753_vm3, %v743_v26, %v475_v11 }
 0x138   : > { %v927_v19 = vsel %vm901_vm4, %v894_v10, %v623_v13  ;;  %v824_v21 = vsel %vm786_vm6, %v779_v17, %v512_v6 }
 0x13a   : > { %v514_v3 = vpop.permute.xlu1 %513 }
 0x13b   : > { %v13226_v20 = vpop.permute.xlu0 %659 }
 0x13c   : > { %v972_v50 = vsel %vm934_vm5, %v927_v19, %v13226_v20 }
 0x13d   : > { %1352 = vmatprep.mubr.bf16.mxu0 %v972_v50 }
 0x13e   : > { %1353 = vmatmul.mubr.bf16.gmra.mrb[48].mxu0 %v824_v21  ;;  %v588_v22 = vpop.permute.xlu1 %587 }
 0x13f   : > { %v551_v41 = vpop.permute.xlu0 %550 }
 0x140   : > { %v863_v27 = vsel %vm835_vm0, %v514_v3, %v551_v41 }
 0x141   : > { %v896_v32 = vsel %vm868_vm2, %v863_v27, %v588_v22 }
 0x142   : > { %v625_v18 = vpop.permute.xlu1 %624 }
 0x143   : > { %v440_v31 = vpop.permute.xlu0 %439  ;;  %v929_v33 = vsel %vm901_vm4, %v896_v32, %v625_v18 }
 0x144   : > { %v746_v16 = vsel %vm704_vm1, %v12883_v28, %v440_v31 }
 0x146   : > { %v13234_v59 = vpop.permute.xlu1 %661 }
 0x147   : > { %v477_v35 = vpop.permute.xlu0 %476  ;;  %v975_v37 = vsel %vm934_vm5, %v929_v33, %v13234_v59 }
 0x148   : > { %v781_v38 = vsel %vm753_vm3, %v746_v16, %v477_v35  ;;  %1360 = vmatprep.mubr.bf16.mxu0 %v975_v37 }
 0x149   : > { %v827_v7 = vsel %vm786_vm6, %v781_v38, %v514_v3 }
 0x14a   : > { %1361 = vmatmul.mubr.bf16.gmra.mrb[52].mxu0 %v827_v7  ;;  %v553_v39 = vpop.permute.xlu1 %552 }
 0x14b   : > { %v516_v40 = vpop.permute.xlu0 %515 }
 0x14c   : > { %v865_v42 = vsel %vm835_vm0, %v516_v40, %v553_v39 }
 0x14e   : > { %v442_v43 = vpop.permute.xlu1 %441 }
 0x14f   : > { %v590_v44 = vpop.permute.xlu0 %589  ;;  %v749_v28 = vsel %vm704_vm1, %v12897_v29, %v442_v43 }
 0x150   : > { %v898_v51 = vsel %vm868_vm2, %v865_v42, %v590_v44 }
 0x152   : > { %v479_v46 = vpop.permute.xlu1 %478 }
 0x153   : > { %v627_v47 = vpop.permute.xlu0 %626  ;;  %v783_v52 = vsel %vm753_vm3, %v749_v28, %v479_v46 }
 0x154   : > { %v931_v55 = vsel %vm901_vm4, %v898_v51, %v627_v47  ;;  %v830_v58 = vsel %vm786_vm6, %v783_v52, %v516_v40 }
 0x156   : > { %v518_v54 = vpop.permute.xlu1 %517 }
 0x157   : > { %v13248_v25 = vpop.permute.xlu0 %663 }
 0x158   : > { %v978_v57 = vsel %vm934_vm5, %v931_v55, %v13248_v25 }
 0x159   : > { %1368 = vmatprep.mubr.bf16.mxu0 %v978_v57 }
 0x15a   : > { %1369 = vmatmul.mubr.bf16.gmra.mrb[56].mxu0 %v830_v58  ;;  %v592_v60 = vpop.permute.xlu1 %591 }
 0x15b   : > { %v555_v61 = vpop.permute.xlu0 %554 }
 0x15c   : > { %v867_v29 = vsel %vm835_vm0, %v518_v54, %v555_v61  ;;  %vm2345_vm0 = vcmask 785408  }
 0x15d   : > { %v900_v24 = vsel %vm868_vm2, %v867_v29, %v592_v60 }
 0x15e   : > { %v629_v63 = vpop.permute.xlu1 %628 }
 0x15f   : > { %v444_v0 = vpop.permute.xlu0 %443  ;;  %v933_v2 = vsel %vm901_vm4, %v900_v24, %v629_v63 }
 0x160   : > { %v752_v5 = vsel %vm704_vm1, %v12923_v36, %v444_v0  ;;  %vm10601_vm1 = vcmask 31744  }
 0x162   : > { %v13256_v4 = vpop.permute.xlu1 %665 }
 0x163   : > { %v481_v6 = vpop.permute.xlu0 %480  ;;  %v981_v8 = vsel %vm934_vm5, %v933_v2, %v13256_v4 }
 0x164   : > { %v785_v9 = vsel %vm753_vm3, %v752_v5, %v481_v6  ;;  %1376 = vmatprep.mubr.bf16.mxu0 %v981_v8 }
 0x165   : > { %v833_v11 = vsel %vm786_vm6, %v785_v9, %v518_v54 }
 0x166   : > { %1377 = vmatmul.mubr.bf16.gmra.mrb[60].mxu0 %v833_v11  ;;  %v675_v13 = vpop.permute.xlu1 %674 }
 0x167   : > { %v673_v15 = vpop.permute.xlu0 %672  ;;  %v987_v22 = vsel %vm983_vm8, %v12957_v56, %v675_v13 }
 0x168   : > { %v985_v26 = vsel %vm983_vm8, %v12934_v45, %v673_v15 }
 0x169   : > { %v11168_v10 = vpop.f32.mrb[0].mxu0  ;;  %12075 = vmatprep.mubr.msk.bf16.mxu0 %vm1187_vm9, %v985_v26 }
 0x16a   : > { %v11169_v36 = vpop.f32.mrb[1].mxu0  ;;  %v679_v17 = vpop.permute.xlu1 %678 }
 0x16b   : > { %v13267_v3 = vadd.f32 %v11169_v36, %v11168_v10  ;;  %v677_v19 = vpop.permute.xlu0 %676  ;;  %v11171_v50 = vpop.f32.mrb[2].mxu0  ;;  %v991_v56 = vsel %vm983_vm8, %v13016_v30, %v679_v17 }
 0x16c   : > { %v11172_v21 = vpop.f32.mrb[3].mxu0  ;;  %v989_v27 = vsel %vm983_vm8, %v12993_v14, %v677_v19 }
 0x16d   : > { %v13271_v41 = vadd.f32 %v11172_v21, %v11171_v50 }
 0x16e   : > { %12076 = vmatmul.mubr.msk.bf16.vlgmr.msra.gmra.mrb[64].mxu0 %vm1187_vm9, %v987_v22  ;;  %v683_v45 = vpop.permute.xlu1 %682 }
 0x16f   : > { %v681_v18 = vpop.permute.xlu0 %680  ;;  %12079 = vmatprep.mubr.msk.bf16.mxu0 %vm1187_vm9, %v989_v27  ;;  %v995_v43 = vsel %vm983_vm8, %v13075_v1, %v683_v45 }
 0x170   : > { %v993_v14 = vsel %vm983_vm8, %v13052_v53, %v681_v18 }
 0x172   : > { %v687_v31 = vpop.permute.xlu1 %686 }
 0x173   : > { %v685_v32 = vpop.permute.xlu0 %684  ;;  %v999_v33 = vsel %vm983_vm8, %v13137_v49, %v687_v31 }
 0x174   : > { %v997_v16 = vsel %vm983_vm8, %v13111_v34, %v685_v32 }
 0x175   : > { %v11174_v35 = vpop.f32.mrb[4].mxu0  ;;  %12087 = vmatprep.mubr.msk.bf16.mxu1 %vm1187_vm9, %v997_v16  ;;  %v12399_v16 = vld [vmem:[%s18221_s3 + $0x80] sm:$0xff]  }
 0x176   : > { %v11175_v37 = vpop.f32.mrb[5].mxu0  ;;  %12080 = vmatmul.mubr.msk.bf16.gmra.mrb[68].mxu0 %vm1187_vm9, %v991_v56  ;;  %12088 = vmatmul.mubr.msk.bf16.vlgmr.msra.gmra.mrb[0].mxu1 %vm1187_vm9, %v999_v33  ;;  %v691_v53 = vpop.permute.xlu1 %690  ;;  %v12400_v56 = vld [vmem:[%s18221_s3 + $0x88] sm:$0xff]  }
 0x177   : > { %v13288_v38 = vadd.f32 %v11175_v37, %v11174_v35  ;;  %v689_v49 = vpop.permute.xlu0 %688  ;;  %v11177_v7 = vpop.f32.mrb[6].mxu0  ;;  %12083 = vmatprep.mubr.msk.bf16.mxu0 %vm1187_vm9, %v993_v14  ;;  %v1003_v44 = vsel %vm983_vm8, %v13187_v23, %v691_v53  ;;  %12107 = vmatprep.subr.bf16.mxu0 %v12399_v16 }
 0x178   : > { %v1001_v30 = vsel %vm983_vm8, %v13166_v12, %v689_v49  ;;  %v11178_v34 = vpop.f32.mrb[7].mxu0  ;;  %12108 = vmatpush3.bf16.msra.mxu0 %v12399_v16 }
 0x179   : > { %v13293_v39 = vadd.f32 %v11178_v34, %v11177_v7  ;;  %12091 = vmatprep.mubr.msk.bf16.mxu1 %vm1187_vm9, %v1001_v30  ;;  %12109 = vmatprep.subr.bf16.mxu0 %v12400_v56 }
 0x17a   : > { %v695_v12 = vpop.permute.xlu1 %694 }
 0x17b   : > { %v693_v40 = vpop.permute.xlu0 %692  ;;  %v1007_v42 = vsel %vm983_vm8, %v13212_v62, %v695_v12 }
 0x17c   : > { %v1005_v46 = vsel %vm983_vm8, %v13204_v48, %v693_v40  ;;  %12110 = vmatpush3.bf16.msra.mxu0 %v12400_v56 }
 0x17e   : > { %12084 = vmatmul.mubr.msk.bf16.gmra.mrb[72].mxu0 %vm1187_vm9, %v995_v43  ;;  %12092 = vmatmul.mubr.msk.bf16.gmra.mrb[4].mxu1 %vm1187_vm9, %v1003_v44  ;;  %v699_v55 = vpop.permute.xlu1 %698 }
 0x17f   : > { %12095 = vmatprep.mubr.msk.bf16.mxu1 %vm1187_vm9, %v1005_v46  ;;  %v697_v47 = vpop.permute.xlu0 %696  ;;  %v1011_v62 = vsel %vm983_vm8, %v13234_v59, %v699_v55 }
 0x180   : > { %v1009_v1 = vsel %vm983_vm8, %v13226_v20, %v697_v47 }
 0x182   : > { %v703_v60 = vpop.permute.xlu1 %702 }
 0x183   : > { %v701_v57 = vpop.permute.xlu0 %700  ;;  %v1015_v24 = vsel %vm983_vm8, %v13256_v4, %v703_v60 }
 0x184   : > { %v1013_v58 = vsel %vm983_vm8, %v13248_v25, %v701_v57 }
 0x185   : > { %v11180_v28 = vpop.f32.mrb[8].mxu0 }
 0x186   : > { %v11181_v51 = vpop.f32.mrb[9].mxu0  ;;  %12096 = vmatmul.mubr.msk.bf16.gmra.mrb[8].mxu1 %vm1187_vm9, %v1007_v42 }
 0x187   : > { %v13310_v23 = vadd.f32 %v11181_v51, %v11180_v28  ;;  %v11183_v48 = vpop.f32.mrb[10].mxu0  ;;  %12099 = vmatprep.mubr.msk.bf16.mxu1 %vm1187_vm9, %v1009_v1 }
 0x188   : > { %v11184_v52 = vpop.f32.mrb[11].mxu0 }
 0x189   : > { %v13313_v54 = vadd.f32 %v11184_v52, %v11183_v48 }
 0x18e   : > { %12100 = vmatmul.mubr.msk.bf16.gmra.mrb[12].mxu1 %vm1187_vm9, %v1011_v62 }
 0x18f   : > { %12103 = vmatprep.mubr.msk.bf16.mxu1 %vm1187_vm9, %v1013_v58 }
 0x191   : > { %v11186_v20 = vpop.f32.mrb[12].mxu0 }
 0x192   : > { %v11187_v61 = vpop.f32.mrb[13].mxu0 }
 0x193   : > { %v13321_v29 = vadd.f32 %v11187_v61, %v11186_v20  ;;  %v11189_v63 = vpop.f32.mrb[14].mxu0 }
 0x194   : > { %v11190_v0 = vpop.f32.mrb[15].mxu0 }
 0x195   : > { %v13325_v2 = vadd.f32 %v11190_v0, %v11189_v63 }
 0x196   : > { %12104 = vmatmul.mubr.msk.bf16.gmra.mrb[16].mxu1 %vm1187_vm9, %v1015_v24 }
 0x1a1   : > { %v11192_v59 = vpop.f32.mrb[16].mxu0 }
 0x1a2   : > { %v11193_v25 = vpop.f32.mrb[17].mxu0 }
 0x1a3   : > { %v13328_v5 = vadd.f32 %v11193_v25, %v11192_v59  ;;  %v11195_v6 = vpop.f32.mrb[18].mxu0 }
 0x1a4   : > { %v11196_v8 = vpop.f32.mrb[19].mxu0 }
 0x1a5   : > { %v13330_v9 = vadd.f32 %v11196_v8, %v11195_v6 }
 0x1ad   : > { %v11198_v11 = vpop.f32.mrb[20].mxu0 }
 0x1ae   : > { %v11199_v13 = vpop.f32.mrb[21].mxu0 }
 0x1af   : > { %v13332_v15 = vadd.f32 %v11199_v13, %v11198_v11  ;;  %v11201_v26 = vpop.f32.mrb[22].mxu0 }
 0x1b0   : > { %v11202_v10 = vpop.f32.mrb[23].mxu0 }
 0x1b1   : > { %v13334_v36 = vadd.f32 %v11202_v10, %v11201_v26 }
 0x1bd   : > { %v11204_v4 = vpop.f32.mrb[24].mxu0 }
 0x1be   : > { %v11205_v17 = vpop.f32.mrb[25].mxu0 }
 0x1bf   : > { %v13336_v19 = vadd.f32 %v11205_v17, %v11204_v4  ;;  %v11207_v50 = vpop.f32.mrb[26].mxu0 }
 0x1c0   : > { %v11208_v21 = vpop.f32.mrb[27].mxu0 }
 0x1c1   : > { %v13338_v22 = vadd.f32 %v11208_v21, %v11207_v50 }
 0x1c9   : > { %v11210_v27 = vpop.f32.mrb[28].mxu0 }
 0x1ca   : > { %v11211_v45 = vpop.f32.mrb[29].mxu0 }
 0x1cb   : > { %v13340_v18 = vadd.f32 %v11211_v45, %v11210_v27  ;;  %v11213_v31 = vpop.f32.mrb[30].mxu0 }
 0x1cc   : > { %v11214_v32 = vpop.f32.mrb[31].mxu0 }
 0x1cd   : > { %v13342_v33 = vadd.f32 %v11214_v32, %v11213_v31 }
 0x1d9   : > { %v11216_v35 = vpop.f32.mrb[32].mxu0 }
 0x1da   : > { %v11217_v14 = vpop.f32.mrb[33].mxu0 }
 0x1db   : > { %v13350_v37 = vadd.f32 %v11217_v14, %v11216_v35  ;;  %v11219_v49 = vpop.f32.mrb[34].mxu0  ;;  %v13385_v35 = vld [vmem:[%s18220_s2] ss:$0 sm:$0xff] }
 0x1dc   : > { %v11220_v7 = vpop.f32.mrb[35].mxu0  ;;  %v1267_v14 = vadd.f32 %v13288_v38, %v13385_v35  ;;  %v1275_v38 = vadd.f32 %v13310_v23, %v13385_v35  ;;  %v1299_v23 = vadd.f32 %v13332_v15, %v13385_v35 }
 0x1dd   : > { %v13352_v30 = vadd.f32 %v11220_v7, %v11219_v49  ;;  %v1259_v7 = vadd.f32 %v13267_v3, %v13385_v35  ;;  %v1278_v3 = vadd.f32 %v13313_v54, %v13385_v35  ;;  %v13413_v54 = vadd.f32 %v13330_v9, %v13385_v35 }
 0x1e5   : > { %v11222_v34 = vpop.f32.mrb[36].mxu0 }
 0x1e6   : > { %v11223_v53 = vpop.f32.mrb[37].mxu0 }
 0x1e7   : > { %v13354_v40 = vadd.f32 %v11223_v53, %v11222_v34  ;;  %v11225_v43 = vpop.f32.mrb[38].mxu0 }
 0x1e8   : > { %v11226_v44 = vpop.f32.mrb[39].mxu0 }
 0x1e9   : > { %v13356_v46 = vadd.f32 %v11226_v44, %v11225_v43  ;;  %v1270_v43 = vadd.f32 %v13293_v39, %v13385_v35  ;;  %v1283_v39 = vadd.f32 %v13321_v29, %v13385_v35 }
 0x1f5   : > { %v11228_v12 = vpop.f32.mrb[40].mxu0 }
 0x1f6   : > { %v11229_v47 = vpop.f32.mrb[41].mxu0 }
 0x1f7   : > { %v13358_v42 = vadd.f32 %v11229_v47, %v11228_v12  ;;  %v11231_v28 = vpop.f32.mrb[42].mxu0  ;;  %v1262_v47 = vadd.f32 %v13271_v41, %v13385_v35  ;;  %v1291_v41 = vadd.f32 %v13328_v5, %v13385_v35  ;;  %v1318_v5 = vadd.f32 %v13342_v33, %v13385_v35 }
 0x1f8   : > { %v11232_v1 = vpop.f32.mrb[43].mxu0  ;;  %v18229_v33 = vmov 0 }
 0x1f9   : > { %v13360_v51 = vadd.f32 %v11232_v1, %v11231_v28  ;;  %v18230_v33 = vsel %vm13425_vm12, 4294967295, %v18229_v33 }
 0x1fa   : > { %18231 = vst [vmem:[#allocation2_spill] sm:$0xff] %v18230_v33 }
 0x201   : > { %v11234_v48 = vpop.f32.mrb[44].mxu0 }
 0x202   : > { %v11235_v52 = vpop.f32.mrb[45].mxu0 }
 0x203   : > { %v13362_v55 = vadd.f32 %v11235_v52, %v11234_v48  ;;  %v11237_v57 = vpop.f32.mrb[46].mxu0 }
 0x204   : > { %v11238_v62 = vpop.f32.mrb[47].mxu0 }
 0x205   : > { %v13364_v58 = vadd.f32 %v11238_v62, %v11237_v57  ;;  %v1286_v62 = vadd.f32 %v13325_v2, %v13385_v35  ;;  %v1307_v2 = vadd.f32 %v13336_v19, %v13385_v35 }
 0x211   : > { %v11240_v20 = vpop.f32.mrb[48].mxu0 }
 0x212   : > { %v11241_v60 = vpop.f32.mrb[49].mxu0 }
 0x213   : > { %v13366_v61 = vadd.f32 %v11241_v60, %v11240_v20  ;;  %v11243_v63 = vpop.f32.mrb[50].mxu0  ;;  %v1315_v60 = vadd.f32 %v13340_v18, %v13385_v35 }
 0x214   : > { %v11244_v0 = vpop.f32.mrb[51].mxu0 }
 0x215   : > { %v13368_v24 = vadd.f32 %v11244_v0, %v11243_v63 }
 0x21d   : > { %v11246_v59 = vpop.f32.mrb[52].mxu0 }
 0x21e   : > { %v11247_v25 = vpop.f32.mrb[53].mxu0 }
 0x21f   : > { %v13370_v6 = vadd.f32 %v11247_v25, %v11246_v59  ;;  %v11249_v8 = vpop.f32.mrb[54].mxu0 }
 0x220   : > { %v11250_v11 = vpop.f32.mrb[55].mxu0 }
 0x221   : > { %v13372_v13 = vadd.f32 %v11250_v11, %v11249_v8 }
 0x22d   : > { %v11252_v26 = vpop.f32.mrb[56].mxu0 }
 0x22e   : > { %v11253_v10 = vpop.f32.mrb[57].mxu0 }
 0x22f   : > { %v13374_v4 = vadd.f32 %v11253_v10, %v11252_v26  ;;  %v11255_v17 = vpop.f32.mrb[58].mxu0 }
 0x230   : > { %v11256_v50 = vpop.f32.mrb[59].mxu0 }
 0x231   : > { %v13376_v21 = vadd.f32 %v11256_v50, %v11255_v17  ;;  %v1310_v17 = vadd.f32 %v13338_v22, %v13385_v35  ;;  %v1302_v50 = vadd.f32 %v13334_v36, %v13385_v35  ;;  %v1323_v22 = vadd.f32 %v13350_v37, %v13385_v35 }
 0x239   : > { %v11258_v27 = vpop.f32.mrb[60].mxu0 }
 0x23a   : > { %v11259_v45 = vpop.f32.mrb[61].mxu0 }
 0x23b   : > { %v13378_v31 = vadd.f32 %v11259_v45, %v11258_v27  ;;  %v11261_v32 = vpop.f32.mrb[62].mxu0 }
 0x23c   : > { %v11262_v16 = vpop.f32.mrb[63].mxu0 }
 0x23d   : > { %v13380_v56 = vadd.f32 %v11262_v16, %v11261_v32 }
 0x241   : > { %v12077_v49 = vpop.f32.mrb[64].mxu0 }
 0x242   : > { %v1428_v34 = vadd.f32 %v12077_v49, %v1267_v14  ;;  %v1419_v53 = vpop.f32.mrb[65].mxu0 }
 0x243   : > { %v1420_v44 = vadd.f32 %v1419_v53, %v1259_v7  ;;  %v12078_v12 = vpop.f32.mrb[66].mxu0 }
 0x244   : > { %v1431_v28 = vadd.f32 %v12078_v12, %v1270_v43  ;;  %v1422_v1 = vpop.f32.mrb[67].mxu0  ;;  %v1326_v43 = vadd.f32 %v13352_v30, %v13385_v35  ;;  %v13456_v30 = vadd.f32 %v13360_v51, %v13385_v35 }
 0x245   : > { %v1423_v48 = vadd.f32 %v1422_v1, %v1262_v47  ;;  %v1331_v47 = vadd.f32 %v13354_v40, %v13385_v35  ;;  %v1334_v1 = vadd.f32 %v13356_v46, %v13385_v35 }
 0x246   : > { %v1547_v52 = vpack.c.bf16 %v1431_v28, %v1428_v34 }
 0x247   : > { %v13399_v57 = vpack.c.bf16 %v1423_v48, %v1420_v44  ;;  %v1339_v48 = vadd.f32 %v13358_v42, %v13385_v35 }
 0x248   : > { %v1570_v20 = vshrl.u32 %v1547_v52, 16  ;;  %v1573_v59 = vshll.u32 %v1547_v52, 16  ;;  %v1723_v7 = vrot.slane %v1547_v52, 7 }
 0x249   : > { %v12081_v29 = vpop.f32.mrb[68].mxu0  ;;  %v12089_v63 = vpop.f32.mrb[0].mxu1 }
 0x24a   : > { %v1572_v0 = vrot.slane %v1570_v20, 7  ;;  %v1444_v18 = vadd.f32 %v12081_v29, %v1283_v39  ;;  %v1476_v25 = vadd.f32 %v12089_v63, %v1315_v60  ;;  %v1435_v8 = vpop.f32.mrb[69].mxu0  ;;  %v1467_v15 = vpop.f32.mrb[1].mxu1  ;;  %v1347_v39 = vadd.f32 %v13362_v55, %v13385_v35 }
 0x24b   : > { %v1436_v11 = vadd.f32 %v1435_v8, %v1275_v38  ;;  %v1468_v26 = vadd.f32 %v1467_v15, %v1307_v2  ;;  %v12082_v9 = vpop.f32.mrb[70].mxu0  ;;  %v12090_v10 = vpop.f32.mrb[2].mxu1 }
 0x24c   : > { %v1575_v19 = vor.u32 %v1573_v59, %v1572_v0  ;;  %v1447_v27 = vadd.f32 %v12082_v9, %v1286_v62  ;;  %v1479_v45 = vadd.f32 %v12090_v10, %v1318_v5  ;;  %v1438_v32 = vpop.f32.mrb[71].mxu0  ;;  %v1470_v16 = vpop.f32.mrb[3].mxu1  ;;  %v13447_v37 = vsel %vm13425_vm12, %v1572_v0, %v1723_v7 }
 0x24d   : > { %v1439_v14 = vadd.f32 %v1438_v32, %v1278_v3  ;;  %v1471_v49 = vadd.f32 %v1470_v16, %v1310_v17  ;;  %v1350_v62 = vadd.f32 %v13364_v58, %v13385_v35  ;;  %v2042_v51 = vrot.slane %v13447_v37, 1 }
 0x24e   : > { %v13433_v36 = vsel %vm13425_vm12, %v1547_v52, %v1575_v19  ;;  %v13435_v34 = vpack.c.bf16 %v1447_v27, %v1444_v18  ;;  %v13437_v53 = vpack.c.bf16 %v1479_v45, %v1476_v25 }
 0x24f   : > { %v1548_v44 = vpack.c.bf16 %v1439_v14, %v1436_v11  ;;  %v13441_v12 = vpack.c.bf16 %v1471_v49, %v1468_v26  ;;  %v2041_v28 = vrot.slane %v13433_v36, 1 }
 0x250   : > { %v1584_v46 = vshrl.u32 %v13435_v34, 16  ;;  %v1587_v14 = vshll.u32 %v13435_v34, 16 }
 0x251   : > { %v1577_v52 = vshrl.u32 %v1548_v44, 16  ;;  %v1605_v38 = vshrl.u32 %v13441_v12, 16  ;;  %v12085_v40 = vpop.f32.mrb[72].mxu0  ;;  %v12093_v3 = vpop.f32.mrb[4].mxu1  ;;  %v1580_v20 = vshll.u32 %v1548_v44, 16  ;;  %v1608_v25 = vshll.u32 %v13441_v12, 16 }
 0x252   : > { %v1460_v60 = vadd.f32 %v12085_v40, %v1299_v23  ;;  %v1451_v42 = vpop.f32.mrb[73].mxu0  ;;  %v1483_v29 = vpop.f32.mrb[5].mxu1  ;;  %v1492_v5 = vadd.f32 %v12093_v3, %v1331_v47  ;;  %v13467_v8 = vsel %vm2037_vm13, %v2041_v28, %v2042_v51  ;;  %v1724_v17 = vrot.slane %v1548_v44, 7 }
 0x253   : > { %v1579_v63 = vrot.slane %v1577_v52, 7  ;;  %v1607_v2 = vrot.slane %v1605_v38, 7  ;;  %v1452_v0 = vadd.f32 %v1451_v42, %v1291_v41  ;;  %v12086_v59 = vpop.f32.mrb[74].mxu0  ;;  %v12094_v18 = vpop.f32.mrb[6].mxu1  ;;  %v1484_v55 = vadd.f32 %v1483_v29, %v1323_v22  ;;  %12111 = vmatprep.mubr.msk.bf16.mxu0 %vm983_vm8, %v13467_v8 }
 0x254   : > { %v1463_v58 = vadd.f32 %v12086_v59, %v1302_v50  ;;  %v1454_v15 = vpop.f32.mrb[75].mxu0  ;;  %v1486_v11 = vpop.f32.mrb[7].mxu1  ;;  %v1495_v26 = vadd.f32 %v12094_v18, %v1334_v1  ;;  %v13472_v41 = vrot.slane %v1584_v46, 7  ;;  %v13498_v22 = vadd.f32 %v13366_v61, %v13385_v35 }
 0x255   : > { %v1582_v23 = vor.u32 %v1580_v20, %v1579_v63  ;;  %v1455_v9 = vadd.f32 %v1454_v15, %v13413_v54  ;;  %v1487_v10 = vadd.f32 %v1486_v11, %v1326_v43  ;;  %v1610_v27 = vor.u32 %v1608_v25, %v1607_v2 }
 0x256   : > { %v13474_v19 = vpack.c.bf16 %v1463_v58, %v1460_v60  ;;  %v13480_v50 = vpack.c.bf16 %v1495_v26, %v1492_v5  ;;  %v13494_v49 = vsel %vm13425_vm12, %v1579_v63, %v1724_v17  ;;  %v13509_v28 = vadd.f32 %v13368_v24, %v13385_v35 }
 0x257   : > { %v13478_v45 = vsel %vm13425_vm12, %v1548_v44, %v1582_v23  ;;  %v13482_v32 = vpack.c.bf16 %v1455_v9, %v1452_v0  ;;  %v13484_v16 = vpack.c.bf16 %v1487_v10, %v1484_v55  ;;  %v13490_v54 = vsel %vm13425_vm12, %v13441_v12, %v1610_v27 }
 0x258   : > { %v1598_v7 = vshrl.u32 %v13474_v19, 16  ;;  %2172 = vrot.lane.b32.xlu1 %v13490_v54, %s12661_s8  ;;  %2234 = vrot.lane.b32.xlu0 %v13490_v54, %s12662_s9  ;;  %v2044_v47 = vrot.slane %v13478_v45, 1  ;;  %v1589_v61 = vor.u32 %v1587_v14, %v13472_v41  ;;  %v1363_v38 = vadd.f32 %v13370_v6, %v13385_v35 }
 0x259   : > { %v1591_v43 = vshrl.u32 %v13482_v32, 16  ;;  %v12097_v44 = vpop.f32.mrb[8].mxu1  ;;  %v1366_v40 = vadd.f32 %v13372_v13, %v13385_v35  ;;  %v2045_v60 = vrot.slane %v13494_v49, 1  ;;  %v13521_v24 = vadd.f32 %v13374_v4, %v13385_v35  ;;  %v12401_v4 = vld [vmem:[%s18221_s3 + $0x40] sm:$0xff]  }
 0x25a   : > { %v1508_v1 = vadd.f32 %v12097_v44, %v1347_v39  ;;  %v1499_v52 = vpop.f32.mrb[9].mxu1  ;;  %v1612_v42 = vshrl.u32 %v13437_v53, 16  ;;  %v1728_v51 = vrot.slane %v13441_v12, 7  ;;  %v1563_v6 = vshrl.u32 %v13399_v57, 16  ;;  %11285 = vmatprep.subr.bf16.mxu1 %v12401_v4 }
 0x25b   : > { %v13516_v3 = vrot.slane %v1591_v43, 7  ;;  %v1500_v46 = vadd.f32 %v1499_v52, %v1339_v48  ;;  %v12098_v20 = vpop.f32.mrb[10].mxu1  ;;  %v13526_v63 = vrot.slane %v1598_v7, 7  ;;  %v1594_v13 = vshll.u32 %v13482_v32, 16 }
 0x25c   : > { %v1511_v39 = vadd.f32 %v12098_v20, %v1350_v62  ;;  %v1502_v29 = vpop.f32.mrb[11].mxu1  ;;  %v13530_v48 = vsel %vm2037_vm13, %v2044_v47, %v2045_v60  ;;  %v12402_v62 = vld [vmem:[%s18221_s3] sm:$0xff]   ;;  %v13542_v12 = vsel %vm13425_vm12, %v13435_v34, %v1589_v61  ;;  %v2056_v59 = vrot.slane %v13490_v54, 1 }
 0x25d   : > { %v1503_v5 = vadd.f32 %v1502_v29, %v13456_v30  ;;  %12112 = vmatmul.mubr.msk.bf16.vlgmr.msra.gmra.mrb[76].mxu0 %vm983_vm8, %v13530_v48  ;;  %v1779_v30 = vsel %vm13425_vm12, %v1607_v2, %v1728_v51  ;;  %v1601_v18 = vshll.u32 %v13474_v19, 16  ;;  %v1596_v25 = vor.u32 %v1594_v13, %v13516_v3  ;;  %11286 = vmatpush3.bf16.msra.mxu1 %v12402_v62 }
 0x25e   : > { %v13544_v0 = vpack.c.bf16 %v1511_v39, %v1508_v1  ;;  %v2057_v58 = vrot.slane %v1779_v30, 1  ;;  %v1725_v15 = vrot.slane %v13435_v34, 7  ;;  %v13556_v11 = vrot.slane %v1563_v6, 7  ;;  %v12405_v6 = vld [vmem:[%s18221_s3 + $0x50] sm:$0xff]  }
 0x25f   : > { %v13553_v55 = vpack.c.bf16 %v1503_v5, %v1500_v46  ;;  %v13560_v23 = vadd.f32 %v13378_v31, %v13385_v35  ;;  %v13564_v2 = vadd.f32 %v13376_v21, %v13385_v35  ;;  %v1615_v26 = vshll.u32 %v13437_v53, 16  ;;  %v12403_v31 = vld [vmem:[%s18221_s3 + $0x48] sm:$0xff]  }
 0x260   : > { %v1603_v9 = vor.u32 %v1601_v18, %v13526_v63  ;;  %v13569_v10 = vsel %vm2037_vm13, %v2056_v59, %v2057_v58  ;;  %v2047_v34 = vrot.slane %v13542_v12, 1  ;;  %v12404_v21 = vld [vmem:[%s18221_s3 + $0x8] sm:$0xff]   ;;  %v13578_v27 = vrot.slane %v1612_v42, 7  ;;  %11287 = vmatprep.subr.bf16.mxu1 %v12403_v31 }
 0x261   : > { %v12101_v17 = vpop.f32.mrb[12].mxu1  ;;  %2142 = vrot.lane.b32.xlu1 %v13569_v10, %s12662_s9  ;;  %2204 = vrot.lane.b32.xlu0 %v13569_v10, %s12660_s19  ;;  %v13587_v14 = vsel %vm13425_vm12, %v13472_v41, %v1725_v15  ;;  %v1902_v7 = vshll.u32 %v13490_v54, 16  ;;  %v1907_v43 = vshll.u32 %v1779_v30, 16  ;;  %v13593_v47 = vsel %vm13425_vm12, %v13482_v32, %v1596_v25 }
 0x262   : > { %v1515_v44 = vpop.f32.mrb[13].mxu1  ;;  %v2048_v61 = vrot.slane %v13587_v14, 1  ;;  %v1524_v1 = vadd.f32 %v12101_v17, %v1363_v38  ;;  %v1626_v20 = vshrl.u32 %v13480_v50, 16  ;;  %v1900_v41 = vshrl.u32 %v13490_v54, 16  ;;  %11288 = vmatpush3.bf16.msra.mxu1 %v12404_v21 }
 0x263   : > { %v1516_v52 = vadd.f32 %v1515_v44, %v13498_v22  ;;  %v12102_v46 = vpop.f32.mrb[14].mxu1  ;;  %v1904_v60 = vrot.slane %v1902_v7, 1  ;;  %v13602_v29 = vsel %vm13425_vm12, %v13474_v19, %v1603_v9  ;;  %v1909_v38 = vrot.slane %v1907_v43, 1  ;;  %11289 = vmatprep.subr.bf16.mxu1 %v12405_v6  ;;  %v12407_v9 = vld [vmem:[%s18221_s3 + $0x58] sm:$0xff]  }
 0x264   : > { %v1527_v42 = vadd.f32 %v12102_v46, %v1366_v40  ;;  %v1518_v39 = vpop.f32.mrb[15].mxu1  ;;  %v13605_v51 = vsel %vm2037_vm13, %v2047_v34, %v2048_v61  ;;  %v1726_v22 = vrot.slane %v13482_v32, 7  ;;  %v12406_v40 = vld [vmem:[%s18221_s3 + $0x10] sm:$0xff]   ;;  %v2050_v4 = vrot.slane %v13593_v47, 1  ;;  %v12408_v34 = vld [vmem:[%s18221_s3 + $0x18] sm:$0xff]  }
 0x265   : > { %12115 = vmatprep.mubr.msk.bf16.mxu0 %vm983_vm8, %v13605_v51  ;;  %v1905_v13 = vor.u32 %v1904_v60, %v1900_v41  ;;  %v1519_v62 = vadd.f32 %v1518_v39, %v13509_v28  ;;  %v1619_v32 = vshrl.u32 %v13484_v16, 16  ;;  %v1617_v59 = vor.u32 %v1615_v26, %v13578_v27 }
 0x266   : > { %v13616_v5 = vpack.c.bf16 %v1527_v42, %v1524_v1  ;;  %v13624_v30 = vsel %vm13425_vm12, %v13516_v3, %v1726_v22  ;;  %v1727_v18 = vrot.slane %v13474_v19, 7  ;;  %v1566_v15 = vshll.u32 %v13399_v57, 16  ;;  %11290 = vmatpush3.bf16.msra.mxu1 %v12406_v40 }
 0x267   : > { %v13629_v25 = vsel %vm1826_vm14, %v1905_v13, %v1909_v38  ;;  %v2051_v58 = vrot.slane %v13624_v30, 1  ;;  %v1382_v28 = vadd.f32 %v13380_v56, %v13385_v35  ;;  %v13639_v3 = vpack.c.bf16 %v1519_v62, %v1516_v52  ;;  %11291 = vmatprep.subr.bf16.mxu1 %v12407_v9  ;;  %v12410_v38 = vld [vmem:[%s18221_s3 + $0x20] sm:$0xff]   ;;  %v12411_v9 = vld [vmem:[%s18221_s3 + $0x68] sm:$0xff]  }
 0x268   : > { %2112 = vrot.lane.b32.xlu1 %v13629_v25, %s12660_s19  ;;  %2264 = vrot.lane.b32.xlu0 %v13629_v25, %s12661_s8  ;;  %v13644_v19 = vsel %vm13425_vm12, %v13437_v53, %v1617_v59  ;;  %v13649_v26 = vsel %vm13425_vm12, %v13526_v63, %v1727_v18  ;;  %v2053_v56 = vrot.slane %v13602_v29, 1  ;;  %v1629_v17 = vshll.u32 %v13480_v50, 16 }
 0x269   : > { %v12105_v35 = vpop.f32.mrb[16].mxu1  ;;  %v13660_v31 = vsel %vm2037_vm13, %v2050_v4, %v2051_v58  ;;  %v1729_v21 = vrot.slane %v13437_v53, 7  ;;  %v1568_v63 = vor.u32 %v1566_v15, %v13556_v11  ;;  %v13664_v43 = vrot.slane %v1626_v20, 7 }
 0x26a   : > { %v1531_v7 = vpop.f32.mrb[17].mxu1  ;;  %v1621_v44 = vrot.slane %v1619_v32, 7  ;;  %12116 = vmatmul.mubr.msk.bf16.gmra.mrb[80].mxu0 %vm983_vm8, %v13660_v31  ;;  %v2054_v61 = vrot.slane %v13649_v26, 1  ;;  %v1540_v1 = vadd.f32 %v12105_v35, %v13560_v23  ;;  %v1640_v46 = vshrl.u32 %v13544_v0, 16  ;;  %11292 = vmatpush3.bf16.msra.mxu1 %v12408_v34  ;;  %v12412_v34 = vld [vmem:[%s18221_s3 + $0x28] sm:$0xff]  }
 0x26b   : > { %v12106_v52 = vpop.f32.mrb[18].mxu1  ;;  %v1780_v53 = vsel %vm13425_vm12, %v13578_v27, %v1729_v21  ;;  %v2059_v41 = vrot.slane %v13644_v19, 1  ;;  %v1532_v20 = vadd.f32 %v1531_v7, %v13521_v24  ;;  %v1633_v42 = vshrl.u32 %v13553_v55, 16  ;;  %v12409_v24 = vld [vmem:[%s18221_s3 + $0x60] sm:$0xff]  }
 0x26c   : > { %v1534_v60 = vpop.f32.mrb[19].mxu1  ;;  %2236 = vrot.lane.b32.xlu0 %v13644_v19, %s12662_s9  ;;  %2162 = vrot.lane.b32.xlu1 %v13433_v36, %s12661_s8  ;;  %v13682_v23 = vsel %vm2037_vm13, %v2053_v56, %v2054_v61  ;;  %v1543_v39 = vadd.f32 %v12106_v52, %v1382_v28  ;;  %v1622_v22 = vshll.u32 %v13484_v16, 16  ;;  %v2060_v6 = vrot.slane %v1780_v53, 1 }
 0x26d   : > { %v1535_v27 = vadd.f32 %v1534_v60, %v13564_v2  ;;  %12119 = vmatprep.mubr.msk.bf16.mxu0 %vm983_vm8, %v13682_v23  ;;  %v1914_v40 = vshll.u32 %v13644_v19, 16  ;;  %v1919_v13 = vshll.u32 %v1780_v53, 16  ;;  %v1631_v4 = vor.u32 %v1629_v17, %v13664_v43  ;;  %11293 = vmatprep.subr.bf16.mxu1 %v12409_v24  ;;  %v12414_v60 = vld [vmem:[%s18221_s3 + $0x30] sm:$0xff]  }
 0x26e   : > { %v13699_v2 = vsel %vm13425_vm12, %v13399_v57, %v1568_v63  ;;  %v13701_v62 = vpack.c.bf16 %v1543_v39, %v1540_v1  ;;  %v13706_v59 = vsel %vm2037_vm13, %v2059_v41, %v2060_v6  ;;  %v1912_v18 = vshrl.u32 %v13644_v19, 16  ;;  %11294 = vmatpush3.bf16.msra.mxu1 %v12410_v38 }
 0x26f   : > { %v13703_v32 = vpack.c.bf16 %v1535_v27, %v1532_v20  ;;  %v1916_v58 = vrot.slane %v1914_v40, 1  ;;  %v1624_v15 = vor.u32 %v1622_v22, %v1621_v44  ;;  %v13709_v28 = vrot.slane %v1640_v46, 7  ;;  %11295 = vmatprep.subr.bf16.mxu1 %v12411_v9  ;;  %v12416_v9 = vld [vmem:[%s18221_s3 + $0x38] sm:$0xff]  }
 0x270   : > { %v13711_v56 = vrot.slane %v1633_v42, 7  ;;  %2206 = vrot.lane.b32.xlu0 %v13706_v59, %s12660_s19  ;;  %2160 = vrot.lane.b32.xlu1 %v13699_v2, %s12661_s8  ;;  %v1722_v35 = vrot.slane %v13399_v57, 7  ;;  %v1921_v21 = vrot.slane %v1919_v13, 1  ;;  %v1643_v7 = vshll.u32 %v13544_v0, 16 }
 0x271   : > { %v1917_v17 = vor.u32 %v1916_v58, %v1912_v18  ;;  %v13727_v63 = vsel %vm13425_vm12, %v13484_v16, %v1624_v15  ;;  %v1636_v61 = vshll.u32 %v13553_v55, 16  ;;  %v1730_v1 = vrot.slane %v13484_v16, 7 }
 0x272   : > { %12120 = vmatmul.mubr.msk.bf16.gmra.mrb[84].mxu0 %vm983_vm8, %v13569_v10  ;;  %v1773_v57 = vsel %vm13425_vm12, %v13556_v11, %v1722_v35  ;;  %v13740_v52 = vsel %vm13425_vm12, %v13480_v50, %v1631_v4  ;;  %v2038_v10 = vrot.slane %v13699_v2, 1  ;;  %v1731_v53 = vrot.slane %v13480_v50, 7  ;;  %11296 = vmatpush3.bf16.msra.mxu1 %v12412_v34  ;;  %v12413_v50 = vld [vmem:[%s18221_s3 + $0x70] sm:$0xff]   ;;  %v12415_v35 = vld [vmem:[%s18221_s3 + $0x78] sm:$0xff]  }
 0x273   : > { %v13743_v46 = vsel %vm1826_vm14, %v1917_v17, %v1921_v21  ;;  %12123 = vmatprep.mubr.msk.bf16.mxu0 %vm983_vm8, %v13706_v59  ;;  %v1645_v11 = vor.u32 %v1643_v7, %v13709_v28  ;;  %v1638_v16 = vor.u32 %v1636_v61, %v13711_v56  ;;  %v13757_v41 = vsel %vm13425_vm12, %v1621_v44, %v1730_v1 }
 0x274   : > { %2266 = vrot.lane.b32.xlu0 %v13743_v46, %s12661_s8  ;;  %2132 = vrot.lane.b32.xlu1 %v13467_v8, %s12662_s9  ;;  %v2062_v20 = vrot.slane %v13727_v63, 1  ;;  %v2039_v42 = vrot.slane %v1773_v57, 1  ;;  %v13769_v39 = vsel %vm13425_vm12, %v13664_v43, %v1731_v53  ;;  %v1842_v27 = vshll.u32 %v13433_v36, 16 }
 0x275   : > { %v1847_v44 = vshll.u32 %v13447_v37, 16  ;;  %v1654_v24 = vshrl.u32 %v13616_v5, 16  ;;  %v1647_v38 = vshrl.u32 %v13639_v3, 16  ;;  %v2063_v22 = vrot.slane %v13757_v41, 1  ;;  %11297 = vmatprep.subr.bf16.mxu1 %v12413_v50 }
 0x276   : > { %v2065_v6 = vrot.slane %v13740_v52, 1  ;;  %v2040_v40 = vsel %vm2037_vm13, %v2038_v10, %v2039_v42  ;;  %v1840_v13 = vshrl.u32 %v13433_v36, 16  ;;  %v1844_v4 = vrot.slane %v1842_v27, 1  ;;  %11298 = vmatpush3.bf16.msra.mxu1 %v12414_v60 }
 0x277   : > { %v1830_v43 = vshll.u32 %v13699_v2, 16  ;;  %v13783_v37 = vsel %vm13425_vm12, %v13544_v0, %v1645_v11  ;;  %v13789_v18 = vsel %vm2037_vm13, %v2062_v20, %v2063_v22  ;;  %v2066_v58 = vrot.slane %v13769_v39, 1  ;;  %11299 = vmatprep.subr.bf16.mxu1 %v12415_v35 }
 0x278   : > { %2238 = vrot.lane.b32.xlu0 %v13727_v63, %s12662_s9  ;;  %2130 = vrot.lane.b32.xlu1 %v2040_v40, %s12662_s9  ;;  %v1828_v15 = vshrl.u32 %v13699_v2, 16  ;;  %v1845_v34 = vor.u32 %v1844_v4, %v1840_v13  ;;  %v1849_v17 = vrot.slane %v1847_v44, 1  ;;  %v1835_v7 = vshll.u32 %v1773_v57, 16 }
 0x279   : > { %v1832_v21 = vrot.slane %v1830_v43, 1  ;;  %v13802_v61 = vsel %vm13425_vm12, %v13553_v55, %v1638_v16  ;;  %v1649_v1 = vrot.slane %v1647_v38, 7  ;;  %v13807_v10 = vsel %vm2037_vm13, %v2065_v6, %v2066_v58 }
 0x27a   : > { %12124 = vmatmul.mubr.msk.bf16.gmra.mrb[88].mxu0 %vm983_vm8, %v13789_v18  ;;  %v1732_v53 = vrot.slane %v13553_v55, 7  ;;  %v1656_v11 = vrot.slane %v1654_v24, 7  ;;  %v13813_v57 = vsel %vm1826_vm14, %v1845_v34, %v1849_v17  ;;  %v1733_v16 = vrot.slane %v13544_v0, 7  ;;  %11300 = vmatpush3.bf16.msra.mxu1 %v12416_v9 }
 0x27b   : > { %12127 = vmatprep.mubr.msk.bf16.mxu0 %vm983_vm8, %v13807_v10  ;;  %v1833_v20 = vor.u32 %v1832_v21, %v1828_v15  ;;  %v1650_v50 = vshll.u32 %v13639_v3, 16  ;;  %v1657_v60 = vshll.u32 %v13616_v5, 16  ;;  %v1837_v42 = vrot.slane %v1835_v7, 1 }
 0x27c   : > { %2224 = vrot.lane.b32.xlu0 %v13433_v36, %s12662_s9  ;;  %2102 = vrot.lane.b32.xlu1 %v13813_v57, %s12660_s19  ;;  %v13824_v55 = vsel %vm13425_vm12, %v13711_v56, %v1732_v53  ;;  %v2068_v27 = vrot.slane %v13802_v61, 1  ;;  %v13831_v0 = vsel %vm13425_vm12, %v13709_v28, %v1733_v16  ;;  %v1661_v24 = vshrl.u32 %v13703_v32, 16 }
 0x27d   : > { %v1652_v44 = vor.u32 %v1650_v50, %v1649_v1  ;;  %v2071_v38 = vrot.slane %v13783_v37, 1  ;;  %v1659_v22 = vor.u32 %v1657_v60, %v1656_v11  ;;  %v1668_v6 = vshrl.u32 %v13701_v62, 16 }
 0x27e   : > { %v13837_v56 = vsel %vm1826_vm14, %v1833_v20, %v1837_v42  ;;  %v2069_v13 = vrot.slane %v13824_v55, 1  ;;  %v2072_v28 = vrot.slane %v13831_v0, 1  ;;  %v1663_v58 = vrot.slane %v1661_v24, 7 }
 0x27f   : > { %v13851_v43 = vsel %vm13425_vm12, %v13639_v3, %v1652_v44  ;;  %v13862_v35 = vsel %vm13425_vm12, %v13616_v5, %v1659_v22  ;;  %v1670_v9 = vrot.slane %v1668_v6, 7  ;;  %v1735_v34 = vrot.slane %v13616_v5, 7 }
 0x280   : > { %2194 = vrot.lane.b32.xlu0 %v13467_v8, %s12660_s19  ;;  %2100 = vrot.lane.b32.xlu1 %v13837_v56, %s12660_s19  ;;  %v13846_v4 = vsel %vm2037_vm13, %v2068_v27, %v2069_v13  ;;  %18232 = vst [vmem:[#allocation3_spill] sm:$0xff] %v13851_v43  ;;  %v13856_v15 = vsel %vm2037_vm13, %v2071_v38, %v2072_v28  ;;  %v1734_v8 = vrot.slane %v13639_v3, 7  ;;  %v1664_v17 = vshll.u32 %v13703_v32, 16 }
 0x281   : > { %v1671_v21 = vshll.u32 %v13701_v62, 16  ;;  %v2074_v7 = vrot.slane %v13851_v43, 1  ;;  %v13879_v53 = vsel %vm13425_vm12, %v1656_v11, %v1735_v34  ;;  %v2077_v20 = vrot.slane %v13862_v35, 1 }
 0x282   : > { %12128 = vmatmul.mubr.msk.bf16.gmra.mrb[92].mxu0 %vm983_vm8, %v13846_v4  ;;  %v13873_v3 = vsel %vm13425_vm12, %v1649_v1, %v1734_v8  ;;  %v1666_v5 = vor.u32 %v1664_v17, %v1663_v58  ;;  %v2078_v1 = vrot.slane %v13879_v53, 1  ;;  %v1736_v42 = vrot.slane %v13703_v32, 7 }
 0x283   : > { %12131 = vmatprep.mubr.msk.bf16.mxu0 %vm983_vm8, %v13856_v15  ;;  %v1673_v16 = vor.u32 %v1671_v21, %v1670_v9  ;;  %v1737_v44 = vrot.slane %v13701_v62, 7  ;;  %v1866_v24 = vshll.u32 %v13542_v12, 16  ;;  %v1854_v28 = vshll.u32 %v13478_v45, 16 }
 0x284   : > { %2192 = vrot.lane.b32.xlu0 %v2040_v40, %s12660_s19  ;;  %2166 = vrot.lane.b32.xlu1 %v13542_v12, %s12661_s8  ;;  %v2075_v40 = vrot.slane %v13873_v3, 1  ;;  %v13894_v11 = vsel %vm13425_vm12, %v13703_v32, %v1666_v5  ;;  %v13899_v60 = vsel %vm2037_vm13, %v2077_v20, %v2078_v1  ;;  %v13917_v32 = vsel %vm13425_vm12, %v1663_v58, %v1736_v42 }
 0x285   : > { %v13905_v27 = vsel %vm13425_vm12, %v13701_v62, %v1673_v16  ;;  %v2080_v38 = vrot.slane %v13894_v11, 1  ;;  %v13922_v22 = vsel %vm13425_vm12, %v1670_v9, %v1737_v44  ;;  %v2081_v6 = vrot.slane %v13917_v32, 1 }
 0x286   : > { %v13889_v50 = vsel %vm2037_vm13, %v2074_v7, %v2075_v40  ;;  %v2097_v62 = vrot.slane %v13905_v27, 1  ;;  %v1868_v13 = vrot.slane %v1866_v24, 1  ;;  %v2098_v58 = vrot.slane %v13922_v22, 1 }
 0x287   : > { %v13933_v8 = vsel %vm2037_vm13, %v2080_v38, %v2081_v6  ;;  %v1864_v9 = vshrl.u32 %v13542_v12, 16  ;;  %v1871_v34 = vshll.u32 %v13587_v14, 16  ;;  %v1852_v14 = vshrl.u32 %v13478_v45, 16 }
 0x288   : > { %2254 = vrot.lane.b32.xlu0 %v13813_v57, %s12661_s8  ;;  %2226 = vrot.lane.b32.xlu1 %v13478_v45, %s12662_s9  ;;  %v13940_v17 = vsel %vm2037_vm13, %v2097_v62, %v2098_v58  ;;  %v1859_v5 = vshll.u32 %v13494_v49, 16  ;;  %v1890_v49 = vshll.u32 %v13602_v29, 16  ;;  %v1878_v42 = vshll.u32 %v13593_v47, 16 }
 0x289   : > { %v1869_v21 = vor.u32 %v1868_v13, %v1864_v9  ;;  %v1873_v7 = vrot.slane %v1871_v34, 1  ;;  %v1888_v44 = vshrl.u32 %v13602_v29, 16  ;;  %v1895_v24 = vshll.u32 %v13649_v26, 16 }
 0x28a   : > { %12132 = vmatmul.mubr.msk.bf16.gmra.mrb[96].mxu0 %vm983_vm8, %v13889_v50  ;;  %v1861_v40 = vrot.slane %v1859_v5, 1  ;;  %v1892_v1 = vrot.slane %v1890_v49, 1  ;;  %v1880_v62 = vrot.slane %v1878_v42, 1  ;;  %v1926_v6 = vshll.u32 %v13727_v63, 16 }
 0x28b   : > { %12135 = vmatprep.mubr.msk.bf16.mxu0 %vm983_vm8, %v13899_v60  ;;  %v13951_v20 = vsel %vm1826_vm14, %v1869_v21, %v1873_v7  ;;  %v1897_v13 = vrot.slane %v1895_v24, 1  ;;  %v1883_v58 = vshll.u32 %v13624_v30, 16  ;;  %v1924_v21 = vshrl.u32 %v13727_v63, 16 }
 0x28c   : > { %2228 = vrot.lane.b32.xlu0 %v13542_v12, %s12662_s9  ;;  %2164 = vrot.lane.b32.xlu1 %v13478_v45, %s12661_s8  ;;  %v1893_v38 = vor.u32 %v1892_v1, %v1888_v44  ;;  %v1928_v26 = vrot.slane %v1926_v6, 1  ;;  %v1938_v5 = vshll.u32 %v13740_v52, 16  ;;  %v1950_v44 = vshll.u32 %v13802_v61, 16 }
 0x28d   : > { %v1885_v34 = vrot.slane %v1883_v58, 1  ;;  %v1955_v24 = vshll.u32 %v13824_v55, 16  ;;  %v1962_v58 = vshll.u32 %v13783_v37, 16 }
 0x28e   : > { %v1929_v30 = vor.u32 %v1928_v26, %v1924_v21  ;;  %v1960_v26 = vshrl.u32 %v13783_v37, 16 }
 0x28f   : > { %v1964_v55 = vrot.slane %v1962_v58, 1 }
 0x290   : > { %2198 = vrot.lane.b32.xlu0 %v13605_v51, %s12660_s19  ;;  %2136 = vrot.lane.b32.xlu1 %v13605_v51, %s12662_s9  ;;  %v1856_v51 = vrot.slane %v1854_v28, 1  ;;  %v1876_v28 = vshrl.u32 %v13593_v47, 16 }
 0x291   : > { %v1965_v21 = vor.u32 %v1964_v55, %v1960_v26  ;;  %v1984_v26 = vshrl.u32 %v13862_v35, 16 }
 0x292   : > { %12136 = vmatmul.mubr.msk.bf16.gmra.mrb[100].mxu0 %vm983_vm8, %v13933_v8  ;;  %v1857_v16 = vor.u32 %v1856_v51, %v1852_v14  ;;  %v1881_v9 = vor.u32 %v1880_v62, %v1876_v28  ;;  %v1957_v62 = vrot.slane %v1955_v24, 1 }
 0x293   : > { %12139 = vmatprep.mubr.msk.bf16.mxu0 %vm983_vm8, %v13940_v17 }
 0x294   : > { %2196 = vrot.lane.b32.xlu0 %v13530_v48, %s12660_s19  ;;  %2134 = vrot.lane.b32.xlu1 %v13530_v48, %s12662_s9  ;;  %v13960_v48 = vsel %vm1826_vm14, %v1857_v16, %v1861_v40  ;;  %v13999_v51 = vsel %vm1826_vm14, %v1881_v9, %v1885_v34  ;;  %v1936_v16 = vshrl.u32 %v13740_v52, 16  ;;  %v1943_v40 = vshll.u32 %v13769_v39, 16 }
 0x295   : > { %v1948_v39 = vshrl.u32 %v13802_v61, 16  ;;  %v1967_v34 = vshll.u32 %v13831_v0, 16 }
 0x296   : > { %v1945_v1 = vrot.slane %v1943_v40, 1  ;;  %v1972_v40 = vshrl.u32 %v13851_v43, 16 }
 0x298   : > { %2258 = vrot.lane.b32.xlu0 %v13951_v20, %s12661_s8  ;;  %2106 = vrot.lane.b32.xlu1 %v13951_v20, %s12660_s19 }
 0x29a   : > { %12140 = vmatmul.mubr.msk.bf16.gmra.mrb[104].mxu0 %vm983_vm8, %v13940_v17 }
 0x29c   : > { %2256 = vrot.lane.b32.xlu0 %v13960_v48, %s12661_s8  ;;  %2104 = vrot.lane.b32.xlu1 %v13960_v48, %s12660_s19 }
 0x2a0   : > { %2232 = vrot.lane.b32.xlu0 %v13602_v29, %s12662_s9  ;;  %2170 = vrot.lane.b32.xlu1 %v13602_v29, %s12661_s8 }
 0x2a4   : > { %2230 = vrot.lane.b32.xlu0 %v13593_v47, %s12662_s9  ;;  %2168 = vrot.lane.b32.xlu1 %v13593_v47, %s12661_s8 }
 0x2a8   : > { %2202 = vrot.lane.b32.xlu0 %v13682_v23, %s12660_s19  ;;  %2140 = vrot.lane.b32.xlu1 %v13682_v23, %s12662_s9  ;;  %v13990_v23 = vsel %vm1826_vm14, %v1893_v38, %v1897_v13 }
 0x2ac   : > { %2200 = vrot.lane.b32.xlu0 %v13660_v31, %s12660_s19  ;;  %2138 = vrot.lane.b32.xlu1 %v13660_v31, %s12662_s9  ;;  %v1931_v31 = vshll.u32 %v13757_v41, 16  ;;  %v1940_v41 = vrot.slane %v1938_v5, 1 }
 0x2ae   : > { %v1933_v7 = vrot.slane %v1931_v31, 1  ;;  %v1941_v49 = vor.u32 %v1940_v41, %v1936_v16  ;;  %v1969_v31 = vrot.slane %v1967_v34, 1  ;;  %v1974_v41 = vshll.u32 %v13851_v43, 16 }
 0x2af   : > { %v1991_v34 = vshll.u32 %v13879_v53, 16 }
 0x2b0   : > { %2262 = vrot.lane.b32.xlu0 %v13990_v23, %s12661_s8  ;;  %2110 = vrot.lane.b32.xlu1 %v13990_v23, %s12660_s19  ;;  %v14006_v14 = vsel %vm1826_vm14, %v1929_v30, %v1933_v7  ;;  %v14024_v42 = vsel %vm1826_vm14, %v1941_v49, %v1945_v1  ;;  %v14072_v5 = vsel %vm1826_vm14, %v1965_v21, %v1969_v31  ;;  %v1979_v49 = vshll.u32 %v13873_v3, 16 }
 0x2b1   : > { %v1986_v3 = vshll.u32 %v13862_v35, 16 }
 0x2b4   : > { %2260 = vrot.lane.b32.xlu0 %v13999_v51, %s12661_s8  ;;  %2174 = vrot.lane.b32.xlu1 %v13644_v19, %s12661_s8 }
 0x2b8   : > { %2268 = vrot.lane.b32.xlu0 %v14006_v14, %s12661_s8  ;;  %2114 = vrot.lane.b32.xlu1 %v13743_v46, %s12660_s19 }
 0x2bc   : > { %2208 = vrot.lane.b32.xlu0 %v13789_v18, %s12660_s19  ;;  %2144 = vrot.lane.b32.xlu1 %v13706_v59, %s12662_s9  ;;  %v1952_v59 = vrot.slane %v1950_v44, 1 }
 0x2be   : > { %v1953_v38 = vor.u32 %v1952_v59, %v1948_v39  ;;  %v1981_v39 = vrot.slane %v1979_v49, 1 }
 0x2c0   : > { %2240 = vrot.lane.b32.xlu0 %v13740_v52, %s12662_s9  ;;  %2108 = vrot.lane.b32.xlu1 %v13999_v51, %s12660_s19  ;;  %v14046_v28 = vsel %vm1826_vm14, %v1953_v38, %v1957_v62 }
 0x2c4   : > { %2270 = vrot.lane.b32.xlu0 %v14024_v42, %s12661_s8  ;;  %2176 = vrot.lane.b32.xlu1 %v13727_v63, %s12661_s8 }
 0x2c8   : > { %2210 = vrot.lane.b32.xlu0 %v13807_v10, %s12660_s19  ;;  %2116 = vrot.lane.b32.xlu1 %v14006_v14, %s12660_s19 }
 0x2ca   : > { %v14041_v6 = vpop.permute.xlu1 %2172  ;;  %v14043_v13 = vpop.permute.xlu0 %2234 }
 0x2cc   : > { %2242 = vrot.lane.b32.xlu0 %v13802_v61, %s12662_s9  ;;  %2146 = vrot.lane.b32.xlu1 %v13789_v18, %s12662_s9 }
 0x2d0   : > { %2272 = vrot.lane.b32.xlu0 %v14046_v28, %s12661_s8  ;;  %2178 = vrot.lane.b32.xlu1 %v13740_v52, %s12661_s8 }
 0x2d3   : > { %v14057_v18 = vpop.permute.xlu1 %2142  ;;  %v14059_v9 = vpop.permute.xlu0 %2204 }
 0x2d4   : > { %2212 = vrot.lane.b32.xlu0 %v13846_v4, %s12660_s19  ;;  %2118 = vrot.lane.b32.xlu1 %v14024_v42, %s12660_s19 }
 0x2d8   : > { %2244 = vrot.lane.b32.xlu0 %v13783_v37, %s12662_s9  ;;  %2148 = vrot.lane.b32.xlu1 %v13807_v10, %s12662_s9  ;;  %v1976_v10 = vrot.slane %v1974_v41, 1 }
 0x2da   : > { %v14067_v30 = vpop.permute.xlu1 %2112  ;;  %v14069_v7 = vpop.permute.xlu0 %2264  ;;  %v1977_v59 = vor.u32 %v1976_v10, %v1972_v40  ;;  %v1993_v10 = vrot.slane %v1991_v34, 1  ;;  %v1996_v34 = vshrl.u32 %v13894_v11, 16 }
 0x2dc   : > { %2274 = vrot.lane.b32.xlu0 %v14072_v5, %s12661_s8  ;;  %2180 = vrot.lane.b32.xlu1 %v13802_v61, %s12661_s8  ;;  %v14100_v62 = vsel %vm1826_vm14, %v1977_v59, %v1981_v39  ;;  %v1998_v39 = vshll.u32 %v13894_v11, 16 }
 0x2de   : > { %v14079_v0 = vpop.permute.xlu0 %2236  ;;  %v14081_v16 = vpop.permute.xlu1 %2162 }
 0x2e0   : > { %2214 = vrot.lane.b32.xlu0 %v13856_v15, %s12660_s19  ;;  %2120 = vrot.lane.b32.xlu1 %v14046_v28, %s12660_s19 }
 0x2e2   : > { %v14089_v1 = vpop.permute.xlu0 %2206  ;;  %v2161_v44 = vpop.permute.xlu1 %2160 }
 0x2e4   : > { %2246 = vrot.lane.b32.xlu0 %v13851_v43, %s12662_s9  ;;  %2150 = vrot.lane.b32.xlu1 %v13846_v4, %s12662_s9  ;;  %v1988_v4 = vrot.slane %v1986_v3, 1 }
 0x2e6   : > { %v14095_v24 = vpop.permute.xlu0 %2266  ;;  %v14097_v38 = vpop.permute.xlu1 %2132  ;;  %v1989_v41 = vor.u32 %v1988_v4, %v1984_v26  ;;  %v2000_v26 = vrot.slane %v1998_v39, 1 }
 0x2e8   : > { %2276 = vrot.lane.b32.xlu0 %v14100_v62, %s12661_s8  ;;  %2182 = vrot.lane.b32.xlu1 %v13783_v37, %s12661_s8  ;;  %v14122_v59 = vsel %vm1826_vm14, %v1989_v41, %v1993_v10  ;;  %v2003_v41 = vshll.u32 %v13917_v32, 16 }
 0x2ea   : > { %v14107_v58 = vpop.permute.xlu0 %2238  ;;  %v2131_v55 = vpop.permute.xlu1 %2130  ;;  %v2005_v32 = vrot.slane %v2003_v41, 1 }
 0x2ec   : > { %2216 = vrot.lane.b32.xlu0 %v13889_v50, %s12660_s19  ;;  %2122 = vrot.lane.b32.xlu1 %v14072_v5, %s12660_s19 }
 0x2ee   : > { %v2225_v21 = vpop.permute.xlu0 %2224  ;;  %v14115_v31 = vpop.permute.xlu1 %2102 }
 0x2f0   : > { %2248 = vrot.lane.b32.xlu0 %v13862_v35, %s12662_s9  ;;  %2152 = vrot.lane.b32.xlu1 %v13856_v15, %s12662_s9 }
 0x2f2   : > { %v2195_v40 = vpop.permute.xlu0 %2194  ;;  %v2101_v49 = vpop.permute.xlu1 %2100 }
 0x2f3   : > { %v2285_v15 = vsel %vm983_vm8, %v13699_v2, %v2101_v49  ;;  %v2001_v49 = vor.u32 %v2000_v26, %v1996_v34  ;;  %v2091_v26 = vshll.u32 %v13922_v22, 16  ;;  %v2399_v22 = vsel %vm983_vm8, %v13813_v57, %v2195_v40 }
 0x2f4   : > { %2278 = vrot.lane.b32.xlu0 %v14122_v59, %s12661_s8  ;;  %2184 = vrot.lane.b32.xlu1 %v13851_v43, %s12661_s8  ;;  %v2316_v10 = vsel %vm2314_vm15, %v2285_v15, %v2131_v55 }
 0x2f5   : > { %v2347_v39 = vsel %vm2345_vm0, %v2316_v10, %v2161_v44  ;;  %v14150_v15 = vsel %vm1826_vm14, %v2001_v49, %v2005_v32  ;;  %v2084_v44 = vshrl.u32 %v13905_v27, 16 }
 0x2f6   : > { %v2193_v53 = vpop.permute.xlu0 %2192  ;;  %v14129_v3 = vpop.permute.xlu1 %2166 }
 0x2f7   : > { %v2396_v4 = vsel %vm983_vm8, %v13837_v56, %v2193_v53 }
 0x2f8   : > { %2218 = vrot.lane.b32.xlu0 %v13899_v60, %s12660_s19  ;;  %2124 = vrot.lane.b32.xlu1 %v14100_v62, %s12660_s19  ;;  %v2443_v2 = vsel %vm2314_vm15, %v2396_v4, %v2225_v21  ;;  %v2086_v21 = vshll.u32 %v13905_v27, 16 }
 0x2fa   : > { %v2255_v33 = vpop.permute.xlu0 %2254  ;;  %v2227_v43 = vpop.permute.xlu1 %2226  ;;  %v2088_v4 = vrot.slane %v2086_v21, 1 }
 0x2fb   : > { %v2474_v56 = vsel %vm2345_vm0, %v2443_v2, %v2255_v33  ;;  %v2445_v21 = vsel %vm2314_vm15, %v2399_v22, %v2227_v43 }
 0x2fc   : > { %2250 = vrot.lane.b32.xlu0 %v13894_v11, %s12662_s9  ;;  %2154 = vrot.lane.b32.xlu1 %v13889_v50, %s12662_s9  ;;  %v2089_v2 = vor.u32 %v2088_v4, %v2084_v44 }
 0x2fd   : > { %2711 = vmatprep.mubr.bf16.mxu1 %v2474_v56  ;;  %v2093_v56 = vrot.slane %v2091_v26, 1 }
 0x2fe   : > { %2712 = vmatmul.mubr.bf16.vlgmr.msra.gmra.mrb[20].mxu1 %v2347_v39  ;;  %v2229_v55 = vpop.permute.xlu0 %2228  ;;  %v2165_v53 = vpop.permute.xlu1 %2164 }
 0x2ff   : > { %v14170_v32 = vsel %vm1826_vm14, %v2089_v2, %v2093_v56  ;;  %v2350_v2 = vsel %vm2345_vm0, %v2316_v10, %v14081_v16 }
 0x300   : > { %2280 = vrot.lane.b32.xlu0 %v14150_v15, %s12661_s8  ;;  %2186 = vrot.lane.b32.xlu1 %v13862_v35, %s12661_s8 }
 0x302   : > { %v2199_v33 = vpop.permute.xlu0 %2198  ;;  %v14157_v50 = vpop.permute.xlu1 %2136 }
 0x304   : > { %2220 = vrot.lane.b32.xlu0 %v13933_v8, %s12660_s19  ;;  %2126 = vrot.lane.b32.xlu1 %v14122_v59, %s12660_s19 }
 0x306   : > { %v2197_v34 = vpop.permute.xlu0 %2196  ;;  %v2135_v41 = vpop.permute.xlu1 %2134 }
 0x308   : > { %2252 = vrot.lane.b32.xlu0 %v13905_v27, %s12662_s9  ;;  %2156 = vrot.lane.b32.xlu1 %v13899_v60, %s12662_s9  ;;  %v2402_v60 = vsel %vm983_vm8, %v13960_v48, %v2197_v34 }
 0x309   : > { %v2447_v57 = vsel %vm2314_vm15, %v2402_v60, %v2229_v55 }
 0x30a   : > { %v2259_v49 = vpop.permute.xlu0 %2258  ;;  %v2107_v39 = vpop.permute.xlu1 %2106 }
 0x30b   : > { %v2480_v48 = vsel %vm2345_vm0, %v2447_v57, %v2259_v49  ;;  %v2291_v57 = vsel %vm983_vm8, %v13542_v12, %v2107_v39 }
 0x30c   : > { %2282 = vrot.lane.b32.xlu0 %v14170_v32, %s12661_s8  ;;  %2188 = vrot.lane.b32.xlu1 %v13894_v11, %s12661_s8 }
 0x30e   : > { %v2257_v4 = vpop.permute.xlu0 %2256  ;;  %v2105_v44 = vpop.permute.xlu1 %2104 }
 0x30f   : > { %v2477_v26 = vsel %vm2345_vm0, %v2445_v21, %v2257_v4 }
 0x310   : > { %2222 = vrot.lane.b32.xlu0 %v13940_v17, %s12660_s19  ;;  %2128 = vrot.lane.b32.xlu1 %v14150_v15, %s12660_s19  ;;  %v2287_v17 = vsel %vm983_vm8, %v13433_v36, %v14115_v31  ;;  %v2405_v36 = vsel %vm983_vm8, %v13951_v20, %v2199_v33 }
 0x311   : > { %2719 = vmatprep.mubr.bf16.mxu1 %v2477_v26  ;;  %v2318_v10 = vsel %vm2314_vm15, %v2287_v17, %v14097_v38 }
 0x312   : > { %2720 = vmatmul.mubr.bf16.gmra.mrb[24].mxu1 %v2350_v2  ;;  %v2233_v43 = vpop.permute.xlu0 %2232  ;;  %v2171_v40 = vpop.permute.xlu1 %2170  ;;  %v2353_v55 = vsel %vm2345_vm0, %v2318_v10, %v2165_v53 }
 0x313   : > { %2727 = vmatprep.mubr.bf16.mxu1 %v2480_v48 }
 0x314   : > { %2158 = vrot.lane.b32.xlu0 %v13933_v8, %s12662_s9  ;;  %2190 = vrot.lane.b32.xlu1 %v13905_v27, %s12661_s8  ;;  %v2289_v8 = vsel %vm983_vm8, %v13478_v45, %v2105_v44 }
 0x315   : > { %v2320_v38 = vsel %vm2314_vm15, %v2289_v8, %v2135_v41 }
 0x316   : > { %v2231_v34 = vpop.permute.xlu0 %2230  ;;  %v2169_v16 = vpop.permute.xlu1 %2168  ;;  %v2356_v45 = vsel %vm2345_vm0, %v2320_v38, %v14129_v3 }
 0x317   : > { %v2449_v53 = vsel %vm2314_vm15, %v2405_v36, %v2231_v34 }
 0x31a   : > { %2728 = vmatmul.mubr.bf16.gmra.mrb[28].mxu1 %v2353_v55  ;;  %v2203_v56 = vpop.permute.xlu0 %2202  ;;  %v2141_v49 = vpop.permute.xlu1 %2140 }
 0x31b   : > { %v2411_v41 = vsel %vm983_vm8, %v13990_v23, %v2203_v56 }
 0x31c   : > { %v2453_v3 = vsel %vm2314_vm15, %v2411_v41, %v14043_v13 }
 0x31d   : > { %v2489_v55 = vsel %vm2345_vm0, %v2453_v3, %v14069_v7  ;;  %v2414_v7 = vsel %vm983_vm8, %v13629_v25, %v14059_v9 }
 0x31e   : > { %v2201_v22 = vpop.permute.xlu0 %2200  ;;  %v2139_v21 = vpop.permute.xlu1 %2138 }
 0x31f   : > { %v2408_v31 = vsel %vm983_vm8, %v13999_v51, %v2201_v22 }
 0x320   : > { %v2451_v44 = vsel %vm2314_vm15, %v2408_v31, %v2233_v43  ;;  %v2322_v43 = vsel %vm2314_vm15, %v2291_v57, %v14157_v50 }
 0x321   : > { %v2359_v34 = vsel %vm2345_vm0, %v2322_v43, %v2169_v16 }
 0x322   : > { %v2263_v27 = vpop.permute.xlu0 %2262  ;;  %v2111_v60 = vpop.permute.xlu1 %2110 }
 0x323   : > { %v2486_v20 = vsel %vm2345_vm0, %v2451_v44, %v2263_v27  ;;  %v2455_v27 = vsel %vm2314_vm15, %v2414_v7, %v14079_v0  ;;  %v2295_v31 = vsel %vm983_vm8, %v13602_v29, %v2111_v60  ;;  %v2417_v0 = vsel %vm983_vm8, %v13743_v46, %v14089_v1 }
 0x324   : > { %v2297_v46 = vsel %vm983_vm8, %v13490_v54, %v14067_v30 }
 0x325   : > { %v2328_v57 = vsel %vm2314_vm15, %v2297_v46, %v14057_v18 }
 0x326   : > { %v2261_v4 = vpop.permute.xlu0 %2260  ;;  %v14208_v26 = vpop.permute.xlu1 %2174 }
 0x327   : > { %v2483_v2 = vsel %vm2345_vm0, %v2449_v53, %v2261_v4  ;;  %v2326_v4 = vsel %vm2314_vm15, %v2295_v31, %v2141_v49  ;;  %v2368_v43 = vsel %vm2345_vm0, %v2328_v57, %v14208_v26 }
 0x328   : > { %2735 = vmatprep.mubr.bf16.mxu1 %v2483_v2  ;;  %v2365_v29 = vsel %vm2345_vm0, %v2326_v4, %v14041_v6 }
 0x329   : > { %2736 = vmatmul.mubr.bf16.gmra.mrb[32].mxu1 %v2356_v45 }
 0x32a   : > { %v2269_v33 = vpop.permute.xlu0 %2268  ;;  %v14215_v51 = vpop.permute.xlu1 %2114  ;;  %2743 = vmatprep.mubr.bf16.mxu1 %v2486_v20 }
 0x32b   : > { %v2299_v18 = vsel %vm983_vm8, %v13644_v19, %v14215_v51 }
 0x32e   : > { %v2209_v48 = vpop.permute.xlu0 %2208  ;;  %v2145_v17 = vpop.permute.xlu1 %2144 }
 0x32f   : > { %v2420_v41 = vsel %vm983_vm8, %v14006_v14, %v2209_v48 }
 0x330   : > { %v14226_v10 = vpop.f32.mrb[76].mxu0 }
 0x331   : > { %2744 = vmatmul.mubr.bf16.gmra.mrb[36].mxu1 %v2359_v34  ;;  %v14230_v23 = vpop.f32.mrb[77].mxu0 }
 0x332   : > { %v2241_v56 = vpop.permute.xlu0 %2240  ;;  %v2109_v12 = vpop.permute.xlu1 %2108  ;;  %2751 = vmatprep.mubr.bf16.mxu1 %v2489_v55 }
 0x333   : > { %v2293_v39 = vsel %vm983_vm8, %v13593_v47, %v2109_v12  ;;  %v14234_v13 = vpop.f32.mrb[78].mxu0  ;;  %v2492_v47 = vsel %vm2345_vm0, %v2455_v27, %v14095_v24  ;;  %v2457_v24 = vsel %vm2314_vm15, %v2417_v0, %v14107_v58  ;;  %v2330_v12 = vsel %vm2314_vm15, %v2299_v18, %v2145_v17 }
 0x334   : > { %v14236_v22 = vpop.f32.mrb[79].mxu0  ;;  %v2324_v50 = vsel %vm2314_vm15, %v2293_v39, %v2139_v21  ;;  %v2495_v49 = vsel %vm2345_vm0, %v2457_v24, %v2269_v33  ;;  %v2459_v33 = vsel %vm2314_vm15, %v2420_v41, %v2241_v56 }
 0x335   : > { %v2362_v36 = vsel %vm2345_vm0, %v2324_v50, %v2171_v40 }
 0x336   : > { %v2271_v16 = vpop.permute.xlu0 %2270  ;;  %v2177_v8 = vpop.permute.xlu1 %2176 }
 0x337   : > { %v2498_v30 = vsel %vm2345_vm0, %v2459_v33, %v2271_v16  ;;  %v2371_v7 = vsel %vm2345_vm0, %v2330_v12, %v2177_v8 }
 0x339   : > { %2752 = vmatmul.mubr.bf16.gmra.mrb[40].mxu1 %v2362_v36 }
 0x33a   : > { %v2211_v38 = vpop.permute.xlu0 %2210  ;;  %v2117_v21 = vpop.permute.xlu1 %2116  ;;  %2759 = vmatprep.mubr.bf16.mxu1 %v2492_v47 }
 0x33b   : > { %v2423_v26 = vsel %vm983_vm8, %v14024_v42, %v2211_v38  ;;  %v2301_v42 = vsel %vm983_vm8, %v13727_v63, %v2117_v21 }
 0x33d   : > { %v14249_v53 = vpop.f32.mrb[80].mxu0 }
 0x33e   : > { %v2243_v25 = vpop.permute.xlu0 %2242  ;;  %v2147_v9 = vpop.permute.xlu1 %2146 }
 0x33f   : > { %v14255_v40 = vpop.f32.mrb[81].mxu0  ;;  %v2461_v50 = vsel %vm2314_vm15, %v2423_v26, %v2243_v25  ;;  %v2332_v38 = vsel %vm2314_vm15, %v2301_v42, %v2147_v9 }
 0x340   : > { %v14259_v2 = vpop.f32.mrb[82].mxu0 }
 0x341   : > { %2760 = vmatmul.mubr.bf16.gmra.mrb[44].mxu1 %v2365_v29  ;;  %v14263_v60 = vpop.f32.mrb[83].mxu0 }
 0x342   : > { %v2273_v45 = vpop.permute.xlu0 %2272  ;;  %v2179_v44 = vpop.permute.xlu1 %2178  ;;  %2767 = vmatprep.mubr.bf16.mxu1 %v2495_v49 }
 0x343   : > { %v2501_v19 = vsel %vm2345_vm0, %v2461_v50, %v2273_v45  ;;  %v2374_v24 = vsel %vm2345_vm0, %v2332_v38, %v2179_v44 }
 0x345   : > { %v14269_v1 = vpop.f32.mrb[84].mxu0 }
 0x346   : > { %v2213_v58 = vpop.permute.xlu0 %2212  ;;  %v2119_v20 = vpop.permute.xlu1 %2118 }
 0x347   : > { %v14273_v6 = vpop.f32.mrb[85].mxu0  ;;  %v2426_v8 = vsel %vm983_vm8, %v14046_v28, %v2213_v58  ;;  %v2303_v28 = vsel %vm983_vm8, %v13740_v52, %v2119_v20 }
 0x348   : > { %v14278_v3 = vpop.f32.mrb[86].mxu0 }
 0x349   : > { %2768 = vmatmul.mubr.bf16.gmra.mrb[48].mxu1 %v2368_v43  ;;  %v14282_v54 = vpop.f32.mrb[87].mxu0 }
 0x34a   : > { %v2245_v34 = vpop.permute.xlu0 %2244  ;;  %v2149_v55 = vpop.permute.xlu1 %2148  ;;  %2775 = vmatprep.mubr.bf16.mxu1 %v2498_v30 }
 0x34b   : > { %v2463_v25 = vsel %vm2314_vm15, %v2426_v8, %v2245_v34  ;;  %v2334_v58 = vsel %vm2314_vm15, %v2303_v28, %v2149_v55 }
 0x34d   : > { %v14285_v14 = vpop.f32.mrb[88].mxu0 }
 0x34e   : > { %v2275_v48 = vpop.permute.xlu0 %2274  ;;  %v2181_v56 = vpop.permute.xlu1 %2180 }
 0x34f   : > { %v14293_v39 = vpop.f32.mrb[89].mxu0  ;;  %v2504_v63 = vsel %vm2345_vm0, %v2463_v25, %v2275_v48  ;;  %v2377_v43 = vsel %vm2345_vm0, %v2334_v58, %v2181_v56  ;;  %v18233_v58 = vld [vmem:[#allocation3_spill] sm:$0xff] }
 0x350   : > { %v14296_v16 = vpop.f32.mrb[90].mxu0 }
 0x351   : > { %2776 = vmatmul.mubr.bf16.gmra.mrb[52].mxu1 %v2371_v7  ;;  %v14299_v27 = vpop.f32.mrb[91].mxu0 }
 0x352   : > { %v2215_v51 = vpop.permute.xlu0 %2214  ;;  %v2121_v36 = vpop.permute.xlu1 %2120  ;;  %2783 = vmatprep.mubr.bf16.mxu1 %v2501_v19 }
 0x353   : > { %v2429_v44 = vsel %vm983_vm8, %v14072_v5, %v2215_v51  ;;  %v2305_v5 = vsel %vm983_vm8, %v13802_v61, %v2121_v36 }
 0x355   : > { %v14302_v17 = vpop.f32.mrb[92].mxu0 }
 0x356   : > { %v2247_v47 = vpop.permute.xlu0 %2246  ;;  %v2151_v31 = vpop.permute.xlu1 %2150 }
 0x357   : > { %v14309_v4 = vpop.f32.mrb[93].mxu0  ;;  %v2465_v57 = vsel %vm2314_vm15, %v2429_v44, %v2247_v47  ;;  %v2336_v12 = vsel %vm2314_vm15, %v2305_v5, %v2151_v31 }
 0x358   : > { %v14312_v0 = vpop.f32.mrb[94].mxu0 }
 0x359   : > { %2784 = vmatmul.mubr.bf16.gmra.mrb[56].mxu1 %v2374_v24  ;;  %v14315_v29 = vpop.f32.mrb[95].mxu0 }
 0x35a   : > { %v2277_v21 = vpop.permute.xlu0 %2276  ;;  %v2183_v49 = vpop.permute.xlu1 %2182  ;;  %2791 = vmatprep.mubr.bf16.mxu1 %v2504_v63 }
 0x35b   : > { %v2507_v52 = vsel %vm2345_vm0, %v2465_v57, %v2277_v21  ;;  %v2380_v19 = vsel %vm2345_vm0, %v2336_v12, %v2183_v49 }
 0x35d   : > { %v14318_v9 = vpop.f32.mrb[96].mxu0 }
 0x35e   : > { %v2217_v45 = vpop.permute.xlu0 %2216  ;;  %v2123_v46 = vpop.permute.xlu1 %2122 }
 0x35f   : > { %v14325_v41 = vpop.f32.mrb[97].mxu0  ;;  %v2432_v56 = vsel %vm983_vm8, %v14100_v62, %v2217_v45  ;;  %v2307_v62 = vsel %vm983_vm8, %v13783_v37, %v2123_v46 }
 0x360   : > { %v14328_v33 = vpop.f32.mrb[98].mxu0 }
 0x361   : > { %2792 = vmatmul.mubr.bf16.gmra.mrb[60].mxu1 %v2377_v43  ;;  %v14331_v30 = vpop.f32.mrb[99].mxu0 }
 0x362   : > { %v2249_v20 = vpop.permute.xlu0 %2248  ;;  %v2153_v34 = vpop.permute.xlu1 %2152  ;;  %2799 = vmatprep.mubr.bf16.mxu1 %v2507_v52 }
 0x363   : > { %v2467_v50 = vsel %vm2314_vm15, %v2432_v56, %v2249_v20  ;;  %v2338_v8 = vsel %vm2314_vm15, %v2307_v62, %v2153_v34 }
 0x365   : > { %v14334_v55 = vpop.f32.mrb[100].mxu0 }
 0x366   : > { %v2279_v18 = vpop.permute.xlu0 %2278  ;;  %v2185_v48 = vpop.permute.xlu1 %2184 }
 0x367   : > { %v14341_v26 = vpop.f32.mrb[101].mxu0  ;;  %v2510_v61 = vsel %vm2345_vm0, %v2467_v50, %v2279_v18  ;;  %v2383_v63 = vsel %vm2345_vm0, %v2338_v8, %v2185_v48 }
 0x368   : > { %v14344_v7 = vpop.f32.mrb[102].mxu0 }
 0x369   : > { %2800 = vmatmul.mubr.bf16.gmra.mrb[64].mxu1 %v2380_v19  ;;  %v14347_v51 = vpop.f32.mrb[103].mxu0 }
 0x36a   : > { %v2219_v36 = vpop.permute.xlu0 %2218  ;;  %v2125_v42 = vpop.permute.xlu1 %2124  ;;  %2807 = vmatprep.mubr.bf16.mxu1 %v2510_v61 }
 0x36b   : > { %v2435_v21 = vsel %vm983_vm8, %v14122_v59, %v2219_v36  ;;  %v2309_v44 = vsel %vm983_vm8, %v18233_v58, %v2125_v42  ;;  %v12417_v36 = vld [vmem:[%s18221_s3 + $0x110] sm:$0xff]   ;;  %v12423_v58 = vld [vmem:[%s18221_s3 + $0xe0] sm:$0xff]  }
 0x36c   : > { %12143 = vmatprep.subr.bf16.mxu0 %v12417_v36 }
 0x36d   : > { %v14350_v47 = vpop.f32.mrb[104].mxu0  ;;  %12144 = vmatpush3.bf16.msra.mxu0 %v12417_v36 }
 0x36e   : > { %v2251_v31 = vpop.permute.xlu0 %2250  ;;  %v2155_v38 = vpop.permute.xlu1 %2154 }
 0x36f   : > { %v14355_v25 = vpop.f32.mrb[105].mxu0  ;;  %v2469_v28 = vsel %vm2314_vm15, %v2435_v21, %v2251_v31  ;;  %v2340_v52 = vsel %vm2314_vm15, %v2309_v44, %v2155_v38  ;;  %v12418_v31 = vld [vmem:[%s18221_s3 + $0xd0] sm:$0xff]   ;;  %v12424_v44 = vld [vmem:[%s18221_s3 + $0xa0] sm:$0xff]  }
 0x370   : > { %v14357_v24 = vpop.f32.mrb[106].mxu0  ;;  %v12419_v38 = vld [vmem:[%s18221_s3 + $0x90] sm:$0xff]   ;;  %11415 = vmatprep.subr.bf16.mxu1 %v12418_v31 }
 0x371   : > { %2808 = vmatmul.mubr.bf16.gmra.mrb[68].mxu1 %v2383_v63  ;;  %v14362_v49 = vpop.f32.mrb[107].mxu0 }
 0x372   : > { %v2281_v45 = vpop.permute.xlu0 %2280  ;;  %v2187_v37 = vpop.permute.xlu1 %2186  ;;  %11416 = vmatpush3.bf16.msra.mxu1 %v12419_v38 }
 0x373   : > { %v2513_v46 = vsel %vm2345_vm0, %v2469_v28, %v2281_v45  ;;  %v2386_v20 = vsel %vm2345_vm0, %v2340_v52, %v2187_v37  ;;  %v12420_v37 = vld [vmem:[%s18221_s3 + $0x118] sm:$0xff]   ;;  %v12427_v52 = vld [vmem:[%s18221_s3 + $0xf0] sm:$0xff]  }
 0x374   : > { %2815 = vmatprep.mubr.bf16.mxu1 %v2513_v46  ;;  %12145 = vmatprep.subr.bf16.mxu0 %v12420_v37  ;;  %v12422_v46 = vld [vmem:[%s18221_s3 + $0x98] sm:$0xff]  }
 0x375   : > { %12146 = vmatpush3.bf16.msra.mxu0 %v12420_v37  ;;  %v12432_v37 = vld [vmem:[%s18221_s3 + $0xc0] sm:$0xff]  }
 0x376   : > { %v2221_v57 = vpop.permute.xlu0 %2220  ;;  %v2127_v43 = vpop.permute.xlu1 %2126 }
 0x377   : > { %v2438_v5 = vsel %vm983_vm8, %v14150_v15, %v2221_v57  ;;  %v2311_v18 = vsel %vm983_vm8, %v13862_v35, %v2127_v43  ;;  %v12425_v57 = vld [vmem:[%s18221_s3 + $0xe8] sm:$0xff]  }
 0x378   : > { %v12426_v43 = vld [vmem:[%s18221_s3 + $0xa8] sm:$0xff]  }
 0x379   : > { %2816 = vmatmul.mubr.bf16.gmra.mrb[72].mxu1 %v2386_v20  ;;  %v12428_v20 = vld [vmem:[%s18221_s3 + $0xb0] sm:$0xff]  }
 0x37a   : > { %v2253_v59 = vpop.permute.xlu0 %2252  ;;  %v2157_v34 = vpop.permute.xlu1 %2156 }
 0x37b   : > { %v2471_v48 = vsel %vm2314_vm15, %v2438_v5, %v2253_v59  ;;  %v2342_v12 = vsel %vm2314_vm15, %v2311_v18, %v2157_v34  ;;  %v14425_v34 = vld [vmem:[%s18222_s4] ss:$0 sm:$0xff] }
 0x37e   : > { %v2283_v56 = vpop.permute.xlu0 %2282  ;;  %v2189_v50 = vpop.permute.xlu1 %2188 }
 0x37f   : > { %v2516_v19 = vsel %vm2345_vm0, %v2471_v48, %v2283_v56  ;;  %v2389_v61 = vsel %vm2345_vm0, %v2342_v12, %v2189_v50  ;;  %v12430_v50 = vld [vmem:[%s18221_s3 + $0xb8] sm:$0xff]  }
 0x380   : > { %2823 = vmatprep.mubr.bf16.mxu1 %v2516_v19 }
 0x381   : > { %2824 = vmatmul.mubr.bf16.gmra.mrb[76].mxu1 %v2389_v61 }
 0x382   : > { %v2223_v15 = vpop.permute.xlu0 %2222  ;;  %v2129_v42 = vpop.permute.xlu1 %2128 }
 0x383   : > { %v2441_v35 = vsel %vm983_vm8, %v14170_v32, %v2223_v15  ;;  %v2313_v63 = vsel %vm983_vm8, %v13894_v11, %v2129_v42  ;;  %v12421_v11 = vld [vmem:[%s18221_s3 + $0xd8] sm:$0xff]  }
 0x384   : > { %v2472_v62 = vsel %vm2314_vm15, %v2441_v35, %v2253_v59  ;;  %11417 = vmatprep.subr.bf16.mxu1 %v12421_v11 }
 0x385   : > { %v2518_v8 = vsel %vm2345_vm0, %v2472_v62, %v2283_v56  ;;  %11418 = vmatpush3.bf16.msra.mxu1 %v12422_v46  ;;  %v12429_v56 = vld [vmem:[%s18221_s3 + $0xf8] sm:$0xff]  }
 0x386   : > { %v2159_v21 = vpop.permute.xlu0 %2158  ;;  %v2191_v28 = vpop.permute.xlu1 %2190  ;;  %2831 = vmatprep.mubr.bf16.mxu1 %v2518_v8  ;;  %11419 = vmatprep.subr.bf16.mxu1 %v12423_v58 }
 0x387   : > { %v2344_v32 = vsel %vm2314_vm15, %v2313_v63, %v2159_v21 }
 0x388   : > { %v2392_v45 = vsel %vm2345_vm0, %v2344_v32, %v2191_v28 }
 0x389   : > { %2832 = vmatmul.mubr.bf16.gmra.mrb[80].mxu1 %v2392_v45 }
 0x38a   : > { %11420 = vmatpush3.bf16.msra.mxu1 %v12424_v44 }
 0x38b   : > { %11421 = vmatprep.subr.bf16.mxu1 %v12425_v57 }
 0x38e   : > { %11422 = vmatpush3.bf16.msra.mxu1 %v12426_v43 }
 0x38f   : > { %11423 = vmatprep.subr.bf16.mxu1 %v12427_v52 }
 0x392   : > { %11424 = vmatpush3.bf16.msra.mxu1 %v12428_v20 }
 0x393   : > { %11425 = vmatprep.subr.bf16.mxu1 %v12429_v56 }
 0x396   : > { %11426 = vmatpush3.bf16.msra.mxu1 %v12430_v50 }
 0x3d1   : > { %v11301_v59 = vpop.f32.mrb[20].mxu1 }
 0x3d2   : > { %v11302_v5 = vpop.f32.mrb[21].mxu1 }
 0x3d3   : > { %v11303_v18 = vadd.f32 %v11302_v5, %v11301_v59  ;;  %v11304_v48 = vpop.f32.mrb[22].mxu1 }
 0x3d4   : > { %v11305_v12 = vpop.f32.mrb[23].mxu1 }
 0x3d5   : > { %v2714_v19 = vadd.f32 %v11303_v18, %v14425_v34  ;;  %v11306_v61 = vadd.f32 %v11305_v12, %v11304_v48 }
 0x3d7   : > { %v2875_v36 = vadd.f32 %v14230_v23, %v2714_v19  ;;  %v2717_v15 = vadd.f32 %v11306_v61, %v14425_v34  ;;  %v12431_v23 = vld [vmem:[%s18221_s3 + $0x100] sm:$0xff]  }
 0x3d8   : > { %11427 = vmatprep.subr.bf16.mxu1 %v12431_v23 }
 0x3d9   : > { %v2878_v42 = vadd.f32 %v14236_v22, %v2717_v15  ;;  %v3001_v35 = vmax.f32 %v2875_v36, 0.0  ;;  %11428 = vmatpush3.bf16.msra.mxu1 %v12432_v37 }
 0x3db   : > { %v3002_v62 = vmax.f32 %v2878_v42, 0.0 }
 0x3dd   : > { %v3033_v31 = vpack.c.bf16 %v3002_v62, %v3001_v35  ;;  %v12433_v62 = vld [vmem:[%s18221_s3 + $0x108] sm:$0xff]  }
 0x3de   : > { %11429 = vmatprep.subr.bf16.mxu1 %v12433_v62 }
 0x3df   : > { %v3050_v38 = vshrl.u32 %v3033_v31, 16  ;;  %v3053_v63 = vshll.u32 %v3033_v31, 16  ;;  %v3209_v21 = vrot.slane %v3033_v31, 7 }
 0x3e1   : > { %v3052_v8 = vrot.slane %v3050_v38, 7 }
 0x3e3   : > { %v3055_v28 = vor.u32 %v3053_v63, %v3052_v8  ;;  %v3257_v45 = vsel %vm13425_vm12, %v3052_v8, %v3209_v21 }
 0x3e4   : > { %v3523_v44 = vrot.slane %v3257_v45, 1  ;;  %v3320_v43 = vshll.u32 %v3257_v45, 16 }
 0x3e5   : > { %v11307_v22 = vpop.f32.mrb[24].mxu1  ;;  %v14447_v11 = vsel %vm13425_vm12, %v3033_v31, %v3055_v28 }
 0x3e6   : > { %v11308_v46 = vpop.f32.mrb[25].mxu1  ;;  %3644 = vrot.lane.b32.xlu1 %v14447_v11, %s12661_s8  ;;  %v3522_v58 = vrot.slane %v14447_v11, 1  ;;  %v3315_v57 = vshll.u32 %v14447_v11, 16  ;;  %v3313_v18 = vshrl.u32 %v14447_v11, 16  ;;  %v3322_v19 = vrot.slane %v3320_v43, 1 }
 0x3e7   : > { %v11309_v52 = vadd.f32 %v11308_v46, %v11307_v22  ;;  %v11310_v20 = vpop.f32.mrb[26].mxu1 }
 0x3e8   : > { %v11311_v59 = vpop.f32.mrb[27].mxu1  ;;  %v3524_v5 = vsel %vm2037_vm13, %v3522_v58, %v3523_v44  ;;  %v3317_v48 = vrot.slane %v3315_v57, 1 }
 0x3e9   : > { %v2722_v12 = vadd.f32 %v11309_v52, %v14425_v34  ;;  %v11312_v56 = vadd.f32 %v11311_v59, %v11310_v20  ;;  %3676 = vrot.lane.b32.xlu0 %v3524_v5, %s12660_s19 }
 0x3ea   : > { %3614 = vrot.lane.b32.xlu1 %v3524_v5, %s12662_s9  ;;  %v3318_v50 = vor.u32 %v3317_v48, %v3313_v18 }
 0x3eb   : > { %v2883_v61 = vadd.f32 %v14226_v10, %v2722_v12  ;;  %v2725_v36 = vadd.f32 %v11312_v56, %v14425_v34  ;;  %v12434_v10 = vld [vmem:[%s18221_s3 + $0xc8] sm:$0xff]  }
 0x3ec   : > { %v14461_v15 = vsel %vm1826_vm14, %v3318_v50, %v3322_v19  ;;  %11430 = vmatpush3.bf16.msra.mxu1 %v12434_v10 }
 0x3ed   : > { %v2886_v42 = vadd.f32 %v14234_v13, %v2725_v36  ;;  %v11313_v35 = vpop.f32.mrb[28].mxu1  ;;  %v3003_v38 = vmax.f32 %v2883_v61, 0.0 }
 0x3ee   : > { %v11314_v31 = vpop.f32.mrb[29].mxu1  ;;  %3584 = vrot.lane.b32.xlu1 %v14461_v15, %s12660_s19 }
 0x3ef   : > { %v3004_v8 = vmax.f32 %v2886_v42, 0.0  ;;  %v11315_v63 = vadd.f32 %v11314_v31, %v11313_v35  ;;  %v11316_v21 = vpop.f32.mrb[30].mxu1 }
 0x3f0   : > { %v11317_v28 = vpop.f32.mrb[31].mxu1 }
 0x3f1   : > { %v3034_v13 = vpack.c.bf16 %v3004_v8, %v3003_v38  ;;  %v2730_v45 = vadd.f32 %v11315_v63, %v14425_v34  ;;  %v11318_v23 = vadd.f32 %v11317_v28, %v11316_v21 }
 0x3f3   : > { %v2891_v37 = vadd.f32 %v14255_v40, %v2730_v45  ;;  %v2733_v22 = vadd.f32 %v11318_v23, %v14425_v34  ;;  %v3057_v46 = vshrl.u32 %v3034_v13, 16  ;;  %v3060_v57 = vshll.u32 %v3034_v13, 16 }
 0x3f4   : > { %v3210_v43 = vrot.slane %v3034_v13, 7 }
 0x3f5   : > { %v2894_v58 = vadd.f32 %v14263_v60, %v2733_v22  ;;  %v3059_v44 = vrot.slane %v3057_v46, 7  ;;  %v3005_v52 = vmax.f32 %v2891_v37, 0.0 }
 0x3f7   : > { %v3006_v20 = vmax.f32 %v2894_v58, 0.0  ;;  %v3062_v59 = vor.u32 %v3060_v57, %v3059_v44  ;;  %v3258_v5 = vsel %vm13425_vm12, %v3059_v44, %v3210_v43 }
 0x3f8   : > { %v3526_v60 = vrot.slane %v3258_v5, 1  ;;  %v3332_v56 = vshll.u32 %v3258_v5, 16 }
 0x3f9   : > { %v3035_v18 = vpack.c.bf16 %v3006_v20, %v3005_v52  ;;  %v14480_v48 = vsel %vm13425_vm12, %v3034_v13, %v3062_v59 }
 0x3fa   : > { %3708 = vrot.lane.b32.xlu0 %v14480_v48, %s12662_s9  ;;  %3646 = vrot.lane.b32.xlu1 %v14480_v48, %s12661_s8  ;;  %v3525_v40 = vrot.slane %v14480_v48, 1  ;;  %v3327_v12 = vshll.u32 %v14480_v48, 16  ;;  %v3325_v36 = vshrl.u32 %v14480_v48, 16  ;;  %v3334_v21 = vrot.slane %v3332_v56, 1 }
 0x3fb   : > { %v3064_v50 = vshrl.u32 %v3035_v18, 16  ;;  %v3067_v62 = vshll.u32 %v3035_v18, 16  ;;  %v3211_v31 = vrot.slane %v3035_v18, 7 }
 0x3fc   : > { %v11319_v19 = vpop.f32.mrb[32].mxu1  ;;  %v3527_v61 = vsel %vm2037_vm13, %v3525_v40, %v3526_v60  ;;  %v3329_v42 = vrot.slane %v3327_v12, 1 }
 0x3fd   : > { %v3066_v35 = vrot.slane %v3064_v50, 7  ;;  %12147 = vmatprep.mubr.msk.bf16.mxu0 %vm983_vm8, %v3527_v61  ;;  %v11320_v10 = vpop.f32.mrb[33].mxu1 }
 0x3fe   : > { %v11321_v38 = vadd.f32 %v11320_v10, %v11319_v19  ;;  %3678 = vrot.lane.b32.xlu0 %v3527_v61, %s12660_s19  ;;  %3616 = vrot.lane.b32.xlu1 %v3527_v61, %s12662_s9  ;;  %v11322_v8 = vpop.f32.mrb[34].mxu1  ;;  %v3330_v63 = vor.u32 %v3329_v42, %v3325_v36 }
 0x3ff   : > { %v3069_v28 = vor.u32 %v3067_v62, %v3066_v35  ;;  %v11323_v13 = vpop.f32.mrb[35].mxu1  ;;  %v3259_v45 = vsel %vm13425_vm12, %v3066_v35, %v3211_v31 }
 0x400   : > { %v2738_v23 = vadd.f32 %v11321_v38, %v14425_v34  ;;  %v11324_v37 = vadd.f32 %v11323_v13, %v11322_v8  ;;  %v14497_v22 = vsel %vm1826_vm14, %v3330_v63, %v3334_v21  ;;  %v3529_v43 = vrot.slane %v3259_v45, 1 }
 0x401   : > { %v14501_v46 = vsel %vm13425_vm12, %v3035_v18, %v3069_v28  ;;  %v3344_v20 = vshll.u32 %v3259_v45, 16 }
 0x402   : > { %v2899_v58 = vadd.f32 %v14249_v53, %v2738_v23  ;;  %v2741_v44 = vadd.f32 %v11324_v37, %v14425_v34  ;;  %3738 = vrot.lane.b32.xlu0 %v14497_v22, %s12661_s8  ;;  %3586 = vrot.lane.b32.xlu1 %v14497_v22, %s12660_s19  ;;  %v3528_v57 = vrot.slane %v14501_v46, 1  ;;  %v3339_v52 = vshll.u32 %v14501_v46, 16 }
 0x403   : > { %v3337_v40 = vshrl.u32 %v14501_v46, 16  ;;  %v3346_v36 = vrot.slane %v3344_v20, 1 }
 0x404   : > { %v2902_v59 = vadd.f32 %v14259_v2, %v2741_v44  ;;  %v11325_v5 = vpop.f32.mrb[36].mxu1  ;;  %v3530_v18 = vsel %vm2037_vm13, %v3528_v57, %v3529_v43  ;;  %v3341_v60 = vrot.slane %v3339_v52, 1  ;;  %v3007_v12 = vmax.f32 %v2899_v58, 0.0 }
 0x405   : > { %12148 = vmatmul.mubr.msk.bf16.vlgmr.msra.gmra.mrb[108].mxu0 %vm983_vm8, %v3530_v18  ;;  %v11326_v53 = vpop.f32.mrb[37].mxu1 }
 0x406   : > { %v3008_v56 = vmax.f32 %v2902_v59, 0.0  ;;  %v11327_v50 = vadd.f32 %v11326_v53, %v11325_v5  ;;  %3680 = vrot.lane.b32.xlu0 %v3530_v18, %s12660_s19  ;;  %3710 = vrot.lane.b32.xlu1 %v14501_v46, %s12662_s9  ;;  %v11328_v19 = vpop.f32.mrb[38].mxu1  ;;  %v3342_v2 = vor.u32 %v3341_v60, %v3337_v40 }
 0x407   : > { %v11329_v61 = vpop.f32.mrb[39].mxu1 }
 0x408   : > { %v3036_v42 = vpack.c.bf16 %v3008_v56, %v3007_v12  ;;  %v2746_v35 = vadd.f32 %v11327_v50, %v14425_v34  ;;  %v11330_v62 = vadd.f32 %v11329_v61, %v11328_v19  ;;  %v14520_v31 = vsel %vm1826_vm14, %v3342_v2, %v3346_v36 }
 0x40a   : > { %v2907_v10 = vadd.f32 %v14273_v6, %v2746_v35  ;;  %v2749_v38 = vadd.f32 %v11330_v62, %v14425_v34  ;;  %3740 = vrot.lane.b32.xlu0 %v14520_v31, %s12661_s8  ;;  %3648 = vrot.lane.b32.xlu1 %v14501_v46, %s12661_s8  ;;  %v3071_v8 = vshrl.u32 %v3036_v42, 16  ;;  %v3074_v13 = vshll.u32 %v3036_v42, 16 }
 0x40b   : > { %v3212_v45 = vrot.slane %v3036_v42, 7 }
 0x40c   : > { %v2910_v63 = vadd.f32 %v14282_v54, %v2749_v38  ;;  %v11331_v21 = vpop.f32.mrb[40].mxu1  ;;  %v3073_v28 = vrot.slane %v3071_v8, 7  ;;  %v3009_v23 = vmax.f32 %v2907_v10, 0.0 }
 0x40d   : > { %v11332_v37 = vpop.f32.mrb[41].mxu1 }
 0x40e   : > { %v3010_v58 = vmax.f32 %v2910_v63, 0.0  ;;  %v11333_v44 = vadd.f32 %v11332_v37, %v11331_v21  ;;  %3618 = vrot.lane.b32.xlu1 %v3530_v18, %s12662_s9  ;;  %v11334_v6 = vpop.f32.mrb[42].mxu1  ;;  %v3076_v57 = vor.u32 %v3074_v13, %v3073_v28  ;;  %v3260_v43 = vsel %vm13425_vm12, %v3073_v28, %v3212_v45 }
 0x40f   : > { %v11335_v52 = vpop.f32.mrb[43].mxu1  ;;  %v3532_v18 = vrot.slane %v3260_v43, 1  ;;  %v3356_v60 = vshll.u32 %v3260_v43, 16 }
 0x410   : > { %v3037_v20 = vpack.c.bf16 %v3010_v58, %v3009_v23  ;;  %v2754_v59 = vadd.f32 %v11333_v44, %v14425_v34  ;;  %v11336_v54 = vadd.f32 %v11335_v52, %v11334_v6  ;;  %v14535_v5 = vsel %vm13425_vm12, %v3036_v42, %v3076_v57 }
 0x411   : > { %3712 = vrot.lane.b32.xlu0 %v14535_v5, %s12662_s9  ;;  %v3531_v53 = vrot.slane %v14535_v5, 1  ;;  %v3351_v40 = vshll.u32 %v14535_v5, 16  ;;  %v3349_v61 = vshrl.u32 %v14535_v5, 16  ;;  %v3358_v63 = vrot.slane %v3356_v60, 1 }
 0x412   : > { %v2915_v12 = vadd.f32 %v14269_v1, %v2754_v59  ;;  %v2757_v56 = vadd.f32 %v11336_v54, %v14425_v34  ;;  %3588 = vrot.lane.b32.xlu1 %v14520_v31, %s12660_s19  ;;  %v3078_v50 = vshrl.u32 %v3037_v20, 16  ;;  %v3081_v62 = vshll.u32 %v3037_v20, 16 }
 0x413   : > { %v3533_v19 = vsel %vm2037_vm13, %v3531_v53, %v3532_v18  ;;  %v3353_v2 = vrot.slane %v3351_v40, 1  ;;  %v3213_v10 = vrot.slane %v3037_v20, 7 }
 0x414   : > { %v2918_v36 = vadd.f32 %v14278_v3, %v2757_v56  ;;  %v11337_v42 = vpop.f32.mrb[44].mxu1  ;;  %12151 = vmatprep.mubr.msk.bf16.mxu0 %vm983_vm8, %v3533_v19  ;;  %v3080_v35 = vrot.slane %v3078_v50, 7  ;;  %v3011_v1 = vmax.f32 %v2915_v12, 0.0 }
 0x415   : > { %v11338_v38 = vpop.f32.mrb[45].mxu1  ;;  %3682 = vrot.lane.b32.xlu0 %v3533_v19, %s12660_s19  ;;  %v3354_v8 = vor.u32 %v3353_v2, %v3349_v61 }
 0x416   : > { %v3012_v21 = vmax.f32 %v2918_v36, 0.0  ;;  %v11339_v28 = vadd.f32 %v11338_v38, %v11337_v42  ;;  %3650 = vrot.lane.b32.xlu1 %v14535_v5, %s12661_s8  ;;  %v11340_v13 = vpop.f32.mrb[46].mxu1  ;;  %v3083_v45 = vor.u32 %v3081_v62, %v3080_v35  ;;  %v3261_v3 = vsel %vm13425_vm12, %v3080_v35, %v3213_v10 }
 0x417   : > { %v11341_v23 = vpop.f32.mrb[47].mxu1  ;;  %v14555_v37 = vsel %vm1826_vm14, %v3354_v8, %v3358_v63  ;;  %v3535_v52 = vrot.slane %v3261_v3, 1 }
 0x418   : > { %v3038_v58 = vpack.c.bf16 %v3012_v21, %v3011_v1  ;;  %v2762_v44 = vadd.f32 %v11339_v28, %v14425_v34  ;;  %v11342_v6 = vadd.f32 %v11341_v23, %v11340_v13  ;;  %v14560_v57 = vsel %vm13425_vm12, %v3037_v20, %v3083_v45 }
 0x419   : > { %3742 = vrot.lane.b32.xlu0 %v14555_v37, %s12661_s8  ;;  %v3534_v43 = vrot.slane %v14560_v57, 1  ;;  %v3363_v59 = vshll.u32 %v14560_v57, 16 }
 0x41a   : > { %v2923_v54 = vadd.f32 %v14293_v39, %v2762_v44  ;;  %v2765_v53 = vadd.f32 %v11342_v6, %v14425_v34  ;;  %3620 = vrot.lane.b32.xlu1 %v3533_v19, %s12662_s9  ;;  %v3085_v18 = vshrl.u32 %v3038_v58, 16  ;;  %v3088_v50 = vshll.u32 %v3038_v58, 16 }
 0x41b   : > { %v3536_v40 = vsel %vm2037_vm13, %v3534_v43, %v3535_v52  ;;  %v3365_v60 = vrot.slane %v3363_v59, 1  ;;  %v3214_v61 = vrot.slane %v3038_v58, 7  ;;  %v3361_v39 = vshrl.u32 %v14560_v57, 16 }
 0x41c   : > { %v2926_v20 = vadd.f32 %v14299_v27, %v2765_v53  ;;  %v11343_v12 = vpop.f32.mrb[48].mxu1  ;;  %12152 = vmatmul.mubr.msk.bf16.gmra.mrb[112].mxu0 %vm983_vm8, %v3536_v40  ;;  %v3087_v56 = vrot.slane %v3085_v18, 7  ;;  %v3013_v2 = vmax.f32 %v2923_v54, 0.0  ;;  %v3368_v19 = vshll.u32 %v3261_v3, 16 }
 0x41d   : > { %v11344_v36 = vpop.f32.mrb[49].mxu1  ;;  %3714 = vrot.lane.b32.xlu0 %v14560_v57, %s12662_s9  ;;  %v3366_v38 = vor.u32 %v3365_v60, %v3361_v39 }
 0x41e   : > { %v3014_v42 = vmax.f32 %v2926_v20, 0.0  ;;  %v11345_v35 = vadd.f32 %v11344_v36, %v11343_v12  ;;  %3590 = vrot.lane.b32.xlu1 %v14555_v37, %s12660_s19  ;;  %v11346_v27 = vpop.f32.mrb[50].mxu1  ;;  %v3090_v62 = vor.u32 %v3088_v50, %v3087_v56  ;;  %v3262_v10 = vsel %vm13425_vm12, %v3087_v56, %v3214_v61 }
 0x41f   : > { %v11347_v1 = vpop.f32.mrb[51].mxu1  ;;  %v3538_v45 = vrot.slane %v3262_v10, 1  ;;  %v3370_v3 = vrot.slane %v3368_v19, 1 }
 0x420   : > { %v3039_v8 = vpack.c.bf16 %v3014_v42, %v3013_v2  ;;  %v2770_v63 = vadd.f32 %v11345_v35, %v14425_v34  ;;  %v11348_v21 = vadd.f32 %v11347_v1, %v11346_v27  ;;  %v14582_v28 = vsel %vm13425_vm12, %v3038_v58, %v3090_v62 }
 0x421   : > { %3684 = vrot.lane.b32.xlu0 %v3536_v40, %s12660_s19  ;;  %v3537_v13 = vrot.slane %v14582_v28, 1  ;;  %v14594_v58 = vsel %vm1826_vm14, %v3366_v38, %v3370_v3  ;;  %v3375_v52 = vshll.u32 %v14582_v28, 16  ;;  %v3373_v62 = vshrl.u32 %v14582_v28, 16 }
 0x422   : > { %v2931_v23 = vadd.f32 %v14285_v14, %v2770_v63  ;;  %v2773_v44 = vadd.f32 %v11348_v21, %v14425_v34  ;;  %3652 = vrot.lane.b32.xlu1 %v14560_v57, %s12661_s8  ;;  %v3092_v6 = vshrl.u32 %v3039_v8, 16  ;;  %v3095_v53 = vshll.u32 %v3039_v8, 16 }
 0x423   : > { %v14591_v43 = vsel %vm2037_vm13, %v3537_v13, %v3538_v45  ;;  %v3215_v18 = vrot.slane %v3039_v8, 7  ;;  %v3377_v36 = vrot.slane %v3375_v52, 1  ;;  %v3380_v1 = vshll.u32 %v3262_v10, 16 }
 0x424   : > { %v2934_v59 = vadd.f32 %v14296_v16, %v2773_v44  ;;  %v11349_v54 = vpop.f32.mrb[52].mxu1  ;;  %12155 = vmatprep.mubr.msk.bf16.mxu0 %vm983_vm8, %v14591_v43  ;;  %v3094_v14 = vrot.slane %v3092_v6, 7  ;;  %v3015_v60 = vmax.f32 %v2931_v23, 0.0 }
 0x425   : > { %v11350_v20 = vpop.f32.mrb[53].mxu1  ;;  %3744 = vrot.lane.b32.xlu0 %v14594_v58, %s12661_s8  ;;  %v3378_v13 = vor.u32 %v3377_v36, %v3373_v62  ;;  %v3382_v52 = vrot.slane %v3380_v1, 1 }
 0x426   : > { %v3016_v12 = vmax.f32 %v2934_v59, 0.0  ;;  %v11351_v56 = vadd.f32 %v11350_v20, %v11349_v54  ;;  %3622 = vrot.lane.b32.xlu1 %v3536_v40, %s12662_s9  ;;  %v11352_v50 = vpop.f32.mrb[54].mxu1  ;;  %v3097_v61 = vor.u32 %v3095_v53, %v3094_v14  ;;  %v14605_v16 = vsel %vm13425_vm12, %v3094_v14, %v3215_v18 }
 0x427   : > { %v11353_v2 = vpop.f32.mrb[55].mxu1  ;;  %v3541_v27 = vrot.slane %v14605_v16, 1 }
 0x428   : > { %v3040_v39 = vpack.c.bf16 %v3016_v12, %v3015_v60  ;;  %v2778_v19 = vadd.f32 %v11351_v56, %v14425_v34  ;;  %v11354_v42 = vadd.f32 %v11353_v2, %v11352_v50  ;;  %v14610_v35 = vsel %vm13425_vm12, %v3039_v8, %v3097_v61 }
 0x429   : > { %3716 = vrot.lane.b32.xlu0 %v14582_v28, %s12662_s9  ;;  %v3540_v40 = vrot.slane %v14610_v35, 1  ;;  %v14636_v60 = vsel %vm1826_vm14, %v3378_v13, %v3382_v52  ;;  %v3387_v20 = vshll.u32 %v14610_v35, 16 }
 0x42a   : > { %v2939_v38 = vadd.f32 %v14309_v4, %v2778_v19  ;;  %v2781_v63 = vadd.f32 %v11354_v42, %v14425_v34  ;;  %3592 = vrot.lane.b32.xlu1 %v14594_v58, %s12660_s19  ;;  %v3099_v21 = vshrl.u32 %v3040_v39, 16  ;;  %v3102_v10 = vshll.u32 %v3040_v39, 16 }
 0x42b   : > { %v14622_v8 = vsel %vm2037_vm13, %v3540_v40, %v3541_v27  ;;  %v3216_v44 = vrot.slane %v3040_v39, 7 }
 0x42c   : > { %v2942_v45 = vadd.f32 %v14315_v29, %v2781_v63  ;;  %v11355_v3 = vpop.f32.mrb[56].mxu1  ;;  %12156 = vmatmul.mubr.msk.bf16.gmra.mrb[116].mxu0 %vm983_vm8, %v14622_v8  ;;  %v3101_v23 = vrot.slane %v3099_v21, 7  ;;  %v3017_v4 = vmax.f32 %v2939_v38, 0.0 }
 0x42d   : > { %v11356_v6 = vpop.f32.mrb[57].mxu1  ;;  %3686 = vrot.lane.b32.xlu0 %v14591_v43, %s12660_s19 }
 0x42e   : > { %v3018_v59 = vmax.f32 %v2942_v45, 0.0  ;;  %v11357_v54 = vadd.f32 %v11356_v6, %v11355_v3  ;;  %3654 = vrot.lane.b32.xlu1 %v14582_v28, %s12661_s8  ;;  %v11358_v14 = vpop.f32.mrb[58].mxu1  ;;  %v3104_v29 = vor.u32 %v3102_v10, %v3101_v23  ;;  %v14633_v53 = vsel %vm13425_vm12, %v3101_v23, %v3216_v44 }
 0x42f   : > { %v11359_v18 = vpop.f32.mrb[59].mxu1  ;;  %v3544_v36 = vrot.slane %v14633_v53, 1  ;;  %v3392_v45 = vshll.u32 %v14605_v16, 16 }
 0x430   : > { %v3041_v12 = vpack.c.bf16 %v3018_v59, %v3017_v4  ;;  %v2786_v56 = vadd.f32 %v11357_v54, %v14425_v34  ;;  %v11360_v50 = vadd.f32 %v11359_v18, %v11358_v14  ;;  %v14642_v61 = vsel %vm13425_vm12, %v3040_v39, %v3104_v29 }
 0x431   : > { %3746 = vrot.lane.b32.xlu0 %v14636_v60, %s12661_s8  ;;  %v3543_v2 = vrot.slane %v14642_v61, 1  ;;  %v3389_v39 = vrot.slane %v3387_v20, 1  ;;  %v3394_v18 = vrot.slane %v3392_v45, 1 }
 0x432   : > { %v2947_v19 = vadd.f32 %v14302_v17, %v2786_v56  ;;  %v2789_v42 = vadd.f32 %v11360_v50, %v14425_v34  ;;  %3624 = vrot.lane.b32.xlu1 %v14591_v43, %s12662_s9  ;;  %v3106_v40 = vshrl.u32 %v3041_v12, 16  ;;  %v3109_v63 = vshll.u32 %v3041_v12, 16 }
 0x433   : > { %v14653_v27 = vsel %vm2037_vm13, %v3543_v2, %v3544_v36  ;;  %v3217_v21 = vrot.slane %v3041_v12, 7  ;;  %v3385_v43 = vshrl.u32 %v14610_v35, 16  ;;  %v3399_v36 = vshll.u32 %v14642_v61, 16 }
 0x434   : > { %v2950_v62 = vadd.f32 %v14312_v0, %v2789_v42  ;;  %v11361_v1 = vpop.f32.mrb[60].mxu1  ;;  %12159 = vmatprep.mubr.msk.bf16.mxu0 %vm983_vm8, %v14653_v27  ;;  %v3108_v38 = vrot.slane %v3106_v40, 7  ;;  %v3019_v17 = vmax.f32 %v2947_v19, 0.0 }
 0x435   : > { %v11362_v13 = vpop.f32.mrb[61].mxu1  ;;  %3718 = vrot.lane.b32.xlu0 %v14610_v35, %s12662_s9  ;;  %v3390_v6 = vor.u32 %v3389_v39, %v3385_v43  ;;  %v3401_v43 = vrot.slane %v3399_v36, 1 }
 0x436   : > { %v3020_v3 = vmax.f32 %v2950_v62, 0.0  ;;  %v11363_v23 = vadd.f32 %v11362_v13, %v11361_v1  ;;  %3594 = vrot.lane.b32.xlu1 %v14636_v60, %s12660_s19  ;;  %v11364_v0 = vpop.f32.mrb[62].mxu1  ;;  %v3111_v10 = vor.u32 %v3109_v63, %v3108_v38  ;;  %v14666_v44 = vsel %vm13425_vm12, %v3108_v38, %v3217_v21 }
 0x437   : > { %v11365_v4 = vpop.f32.mrb[63].mxu1  ;;  %v3547_v29 = vrot.slane %v14666_v44, 1 }
 0x438   : > { %v3042_v52 = vpack.c.bf16 %v3020_v3, %v3019_v17  ;;  %v2794_v59 = vadd.f32 %v11363_v23, %v14425_v34  ;;  %v11366_v54 = vadd.f32 %v11365_v4, %v11364_v0  ;;  %v14671_v16 = vsel %vm13425_vm12, %v3041_v12, %v3111_v10 }
 0x439   : > { %3688 = vrot.lane.b32.xlu0 %v14622_v8, %s12660_s19  ;;  %v3546_v14 = vrot.slane %v14671_v16, 1  ;;  %v14685_v12 = vsel %vm1826_vm14, %v3390_v6, %v3394_v18  ;;  %v3397_v4 = vshrl.u32 %v14642_v61, 16  ;;  %v3404_v6 = vshll.u32 %v14633_v53, 16 }
 0x43a   : > { %v2955_v20 = vadd.f32 %v14325_v41, %v2794_v59  ;;  %v2797_v56 = vadd.f32 %v11366_v54, %v14425_v34  ;;  %3656 = vrot.lane.b32.xlu1 %v14610_v35, %s12661_s8  ;;  %v3113_v50 = vshrl.u32 %v3042_v52, 16  ;;  %v3116_v40 = vshll.u32 %v3042_v52, 16 }
 0x43b   : > { %v14682_v2 = vsel %vm2037_vm13, %v3546_v14, %v3547_v29  ;;  %v3218_v39 = vrot.slane %v3042_v52, 7  ;;  %v3402_v29 = vor.u32 %v3401_v43, %v3397_v4 }
 0x43c   : > { %v2958_v19 = vadd.f32 %v14331_v30, %v2797_v56  ;;  %v11367_v42 = vpop.f32.mrb[64].mxu1  ;;  %12160 = vmatmul.mubr.msk.bf16.gmra.mrb[120].mxu0 %vm983_vm8, %v14682_v2  ;;  %v3115_v41 = vrot.slane %v3113_v50, 7  ;;  %v3021_v62 = vmax.f32 %v2955_v20, 0.0 }
 0x43d   : > { %v11368_v1 = vpop.f32.mrb[65].mxu1  ;;  %3748 = vrot.lane.b32.xlu0 %v14685_v12, %s12661_s8 }
 0x43e   : > { %v3022_v38 = vmax.f32 %v2958_v19, 0.0  ;;  %v11369_v63 = vadd.f32 %v11368_v1, %v11367_v42  ;;  %3626 = vrot.lane.b32.xlu1 %v14622_v8, %s12662_s9  ;;  %v11370_v21 = vpop.f32.mrb[66].mxu1  ;;  %v3118_v17 = vor.u32 %v3116_v40, %v3115_v41  ;;  %v14697_v30 = vsel %vm13425_vm12, %v3115_v41, %v3218_v39 }
 0x43f   : > { %v11371_v13 = vpop.f32.mrb[67].mxu1  ;;  %v3550_v10 = vrot.slane %v14697_v30, 1  ;;  %v3406_v19 = vrot.slane %v3404_v6, 1 }
 0x440   : > { %v3043_v45 = vpack.c.bf16 %v3022_v38, %v3021_v62  ;;  %v2802_v3 = vadd.f32 %v11369_v63, %v14425_v34  ;;  %v11372_v23 = vadd.f32 %v11371_v13, %v11370_v21  ;;  %v14702_v0 = vsel %vm13425_vm12, %v3042_v52, %v3118_v17 }
 0x441   : > { %3720 = vrot.lane.b32.xlu0 %v14642_v61, %s12662_s9  ;;  %v3549_v8 = vrot.slane %v14702_v0, 1  ;;  %v14729_v1 = vsel %vm1826_vm14, %v3402_v29, %v3406_v19  ;;  %v3411_v38 = vshll.u32 %v14671_v16, 16 }
 0x442   : > { %v2963_v59 = vadd.f32 %v14318_v9, %v2802_v3  ;;  %v2805_v54 = vadd.f32 %v11372_v23, %v14425_v34  ;;  %3596 = vrot.lane.b32.xlu1 %v14685_v12, %s12660_s19  ;;  %v3120_v52 = vshrl.u32 %v3043_v45, 16  ;;  %v3123_v53 = vshll.u32 %v3043_v45, 16 }
 0x443   : > { %v14715_v14 = vsel %vm2037_vm13, %v3549_v8, %v3550_v10  ;;  %v3219_v50 = vrot.slane %v3043_v45, 7 }
 0x444   : > { %v2966_v18 = vadd.f32 %v14328_v33, %v2805_v54  ;;  %v11373_v20 = vpop.f32.mrb[68].mxu1  ;;  %12163 = vmatprep.mubr.msk.bf16.mxu0 %vm983_vm8, %v14715_v14  ;;  %v3122_v56 = vrot.slane %v3120_v52, 7  ;;  %v3023_v9 = vmax.f32 %v2963_v59, 0.0 }
 0x445   : > { %v11374_v36 = vpop.f32.mrb[69].mxu1  ;;  %3690 = vrot.lane.b32.xlu0 %v14653_v27, %s12660_s19 }
 0x446   : > { %v3024_v42 = vmax.f32 %v2966_v18, 0.0  ;;  %v11375_v41 = vadd.f32 %v11374_v36, %v11373_v20  ;;  %3658 = vrot.lane.b32.xlu1 %v14642_v61, %s12661_s8  ;;  %v11376_v40 = vpop.f32.mrb[70].mxu1  ;;  %v3125_v33 = vor.u32 %v3123_v53, %v3122_v56  ;;  %v14726_v39 = vsel %vm13425_vm12, %v3122_v56, %v3219_v50 }
 0x447   : > { %v11377_v62 = vpop.f32.mrb[71].mxu1  ;;  %v3553_v3 = vrot.slane %v14726_v39, 1  ;;  %v3416_v20 = vshll.u32 %v14666_v44, 16 }
 0x448   : > { %v3044_v63 = vpack.c.bf16 %v3024_v42, %v3023_v9  ;;  %v2810_v21 = vadd.f32 %v11375_v41, %v14425_v34  ;;  %v11378_v17 = vadd.f32 %v11377_v62, %v11376_v40  ;;  %v14735_v13 = vsel %vm13425_vm12, %v3043_v45, %v3125_v33 }
 0x449   : > { %3750 = vrot.lane.b32.xlu0 %v14729_v1, %s12661_s8  ;;  %v3552_v43 = vrot.slane %v14735_v13, 1  ;;  %v3413_v45 = vrot.slane %v3411_v38, 1  ;;  %v3418_v38 = vrot.slane %v3416_v20, 1 }
 0x44a   : > { %v2971_v23 = vadd.f32 %v14341_v26, %v2810_v21  ;;  %v2813_v8 = vadd.f32 %v11378_v17, %v14425_v34  ;;  %3628 = vrot.lane.b32.xlu1 %v14653_v27, %s12662_s9  ;;  %v3127_v10 = vshrl.u32 %v3044_v63, 16  ;;  %v3130_v52 = vshll.u32 %v3044_v63, 16 }
 0x44b   : > { %v14746_v4 = vsel %vm2037_vm13, %v3552_v43, %v3553_v3  ;;  %v3220_v29 = vrot.slane %v3044_v63, 7  ;;  %v3409_v27 = vshrl.u32 %v14671_v16, 16 }
 0x44c   : > { %v2974_v6 = vadd.f32 %v14347_v51, %v2813_v8  ;;  %v11379_v59 = vpop.f32.mrb[72].mxu1  ;;  %12164 = vmatmul.mubr.msk.bf16.gmra.mrb[124].mxu0 %vm983_vm8, %v14746_v4  ;;  %v3129_v54 = vrot.slane %v3127_v10, 7  ;;  %v3025_v26 = vmax.f32 %v2971_v23, 0.0  ;;  %v3423_v23 = vshll.u32 %v14702_v0, 16 }
 0x44d   : > { %v11380_v18 = vpop.f32.mrb[73].mxu1  ;;  %3722 = vrot.lane.b32.xlu0 %v14671_v16, %s12662_s9  ;;  %v3414_v19 = vor.u32 %v3413_v45, %v3409_v27 }
 0x44e   : > { %v3026_v56 = vmax.f32 %v2974_v6, 0.0  ;;  %v11381_v53 = vadd.f32 %v11380_v18, %v11379_v59  ;;  %3598 = vrot.lane.b32.xlu1 %v14729_v1, %s12660_s19  ;;  %v11382_v51 = vpop.f32.mrb[74].mxu1  ;;  %v3132_v50 = vor.u32 %v3130_v52, %v3129_v54  ;;  %v14759_v9 = vsel %vm13425_vm12, %v3129_v54, %v3220_v29 }
 0x44f   : > { %v11383_v36 = vpop.f32.mrb[75].mxu1  ;;  %v3556_v62 = vrot.slane %v14759_v9, 1  ;;  %v3425_v20 = vrot.slane %v3423_v23, 1 }
 0x450   : > { %v3045_v42 = vpack.c.bf16 %v3026_v56, %v3025_v26  ;;  %v2818_v41 = vadd.f32 %v11381_v53, %v14425_v34  ;;  %v11384_v40 = vadd.f32 %v11383_v36, %v11382_v51  ;;  %v14764_v44 = vsel %vm13425_vm12, %v3044_v63, %v3132_v50 }
 0x451   : > { %3692 = vrot.lane.b32.xlu0 %v14682_v2, %s12660_s19  ;;  %v3555_v33 = vrot.slane %v14764_v44, 1  ;;  %v14778_v63 = vsel %vm1826_vm14, %v3414_v19, %v3418_v38  ;;  %v3421_v19 = vshrl.u32 %v14702_v0, 16 }
 0x452   : > { %v2979_v21 = vadd.f32 %v14334_v55, %v2818_v41  ;;  %v2821_v17 = vadd.f32 %v11384_v40, %v14425_v34  ;;  %3660 = vrot.lane.b32.xlu1 %v14671_v16, %s12661_s8  ;;  %v3134_v43 = vshrl.u32 %v3045_v42, 16  ;;  %v3137_v45 = vshll.u32 %v3045_v42, 16 }
 0x453   : > { %v14775_v3 = vsel %vm2037_vm13, %v3555_v33, %v3556_v62  ;;  %v3221_v6 = vrot.slane %v3045_v42, 7  ;;  %v3428_v41 = vshll.u32 %v14697_v30, 16  ;;  %v3426_v38 = vor.u32 %v3425_v20, %v3421_v19 }
 0x454   : > { %v2982_v8 = vadd.f32 %v14344_v7, %v2821_v17  ;;  %v11385_v10 = vpop.f32.mrb[76].mxu1  ;;  %12167 = vmatprep.mubr.msk.bf16.mxu0 %vm983_vm8, %v14775_v3  ;;  %v3136_v55 = vrot.slane %v3134_v43, 7  ;;  %v3027_v59 = vmax.f32 %v2979_v21, 0.0 }
 0x455   : > { %v11386_v54 = vpop.f32.mrb[77].mxu1  ;;  %3752 = vrot.lane.b32.xlu0 %v14778_v63, %s12661_s8 }
 0x456   : > { %v3028_v52 = vmax.f32 %v2982_v8, 0.0  ;;  %v11387_v29 = vadd.f32 %v11386_v54, %v11385_v10  ;;  %3630 = vrot.lane.b32.xlu1 %v14682_v2, %s12662_s9  ;;  %v11388_v26 = vpop.f32.mrb[78].mxu1  ;;  %v3139_v18 = vor.u32 %v3137_v45, %v3136_v55  ;;  %v14790_v7 = vsel %vm13425_vm12, %v3136_v55, %v3221_v6 }
 0x457   : > { %v11389_v27 = vpop.f32.mrb[79].mxu1  ;;  %v3559_v36 = vrot.slane %v14790_v7, 1  ;;  %v3430_v55 = vrot.slane %v3428_v41, 1 }
 0x458   : > { %v3046_v56 = vpack.c.bf16 %v3028_v52, %v3027_v59  ;;  %v2826_v53 = vadd.f32 %v11387_v29, %v14425_v34  ;;  %v11390_v51 = vadd.f32 %v11389_v27, %v11388_v26  ;;  %v14795_v50 = vsel %vm13425_vm12, %v3045_v42, %v3139_v18  ;;  %v14811_v17 = vpop.permute.xlu1 %3644 }
 0x459   : > { %3724 = vrot.lane.b32.xlu0 %v14702_v0, %s12662_s9  ;;  %v3558_v2 = vrot.slane %v14795_v50, 1  ;;  %v14824_v29 = vsel %vm1826_vm14, %v3426_v38, %v3430_v55  ;;  %v3435_v26 = vshll.u32 %v14735_v13, 16 }
 0x45a   : > { %v2987_v40 = vadd.f32 %v14355_v25, %v2826_v53  ;;  %v2829_v33 = vadd.f32 %v11390_v51, %v14425_v34  ;;  %3600 = vrot.lane.b32.xlu1 %v14778_v63, %s12660_s19  ;;  %v3141_v42 = vshrl.u32 %v3046_v56, 16  ;;  %v3144_v25 = vshll.u32 %v3046_v56, 16 }
 0x45b   : > { %v14808_v62 = vsel %vm2037_vm13, %v3558_v2, %v3559_v36  ;;  %v3222_v23 = vrot.slane %v3046_v56, 7 }
 0x45c   : > { %v2990_v21 = vadd.f32 %v14362_v49, %v2829_v33  ;;  %v11391_v43 = vpop.f32.mrb[80].mxu1  ;;  %12168 = vmatmul.mubr.msk.bf16.gmra.mrb[128].mxu0 %vm983_vm8, %v14808_v62  ;;  %v3143_v30 = vrot.slane %v3141_v42, 7  ;;  %v3029_v8 = vmax.f32 %v2987_v40, 0.0  ;;  %v3615_v36 = vpop.permute.xlu1 %3614 }
 0x45d   : > { %v11392_v10 = vpop.f32.mrb[81].mxu1  ;;  %3694 = vrot.lane.b32.xlu0 %v14715_v14, %s12660_s19 }
 0x45e   : > { %v3030_v45 = vmax.f32 %v2990_v21, 0.0  ;;  %v11393_v6 = vadd.f32 %v11392_v10, %v11391_v43  ;;  %3662 = vrot.lane.b32.xlu1 %v14702_v0, %s12661_s8  ;;  %v11394_v49 = vpop.f32.mrb[82].mxu1  ;;  %v3146_v59 = vor.u32 %v3144_v25, %v3143_v30  ;;  %v14821_v54 = vsel %vm13425_vm12, %v3143_v30, %v3222_v23 }
 0x45f   : > { %v11395_v52 = vpop.f32.mrb[83].mxu1  ;;  %v3562_v2 = vrot.slane %v14821_v54, 1 }
 0x460   : > { %v3047_v18 = vpack.c.bf16 %v3030_v45, %v3029_v8  ;;  %v2834_v27 = vadd.f32 %v11393_v6, %v14425_v34  ;;  %v11396_v20 = vadd.f32 %v11395_v52, %v11394_v49  ;;  %v14830_v53 = vsel %vm13425_vm12, %v3046_v56, %v3146_v59  ;;  %v3677_v8 = vpop.permute.xlu0 %3676  ;;  %v3585_v55 = vpop.permute.xlu1 %3584 }
 0x461   : > { %3754 = vrot.lane.b32.xlu0 %v14824_v29, %s12661_s8  ;;  %v3561_v51 = vrot.slane %v14830_v53, 1  ;;  %v3437_v56 = vrot.slane %v3435_v26, 1 }
 0x462   : > { %v2995_v19 = vadd.f32 %v14350_v47, %v2834_v27  ;;  %v2837_v41 = vadd.f32 %v11396_v20, %v14425_v34  ;;  %3632 = vrot.lane.b32.xlu1 %v14715_v14, %s12662_s9  ;;  %v3148_v40 = vshrl.u32 %v3047_v18, 16  ;;  %v3151_v21 = vshll.u32 %v3047_v18, 16 }
 0x463   : > { %v14841_v33 = vsel %vm2037_vm13, %v3561_v51, %v3562_v2  ;;  %v3223_v43 = vrot.slane %v3047_v18, 7  ;;  %v3433_v47 = vshrl.u32 %v14735_v13, 16  ;;  %v3440_v34 = vshll.u32 %v14726_v39, 16 }
 0x464   : > { %v2998_v42 = vadd.f32 %v14357_v24, %v2837_v41  ;;  %12171 = vmatprep.mubr.msk.bf16.mxu0 %vm983_vm8, %v14841_v33  ;;  %v3150_v38 = vrot.slane %v3148_v40, 7  ;;  %v3031_v14 = vmax.f32 %v2995_v19, 0.0  ;;  %v3447_v19 = vshll.u32 %v14764_v44, 16 }
 0x465   : > { %3726 = vrot.lane.b32.xlu0 %v14735_v13, %s12662_s9  ;;  %v3438_v23 = vor.u32 %v3437_v56, %v3433_v47  ;;  %v3442_v49 = vrot.slane %v3440_v34, 1  ;;  %v3769_v56 = vsel %vm983_vm8, %v14447_v11, %v3585_v55  ;;  %v3445_v11 = vshrl.u32 %v14764_v44, 16 }
 0x466   : > { %v3032_v30 = vmax.f32 %v2998_v42, 0.0  ;;  %3602 = vrot.lane.b32.xlu1 %v14824_v29, %s12660_s19  ;;  %v3153_v25 = vor.u32 %v3151_v21, %v3150_v38  ;;  %v14854_v24 = vsel %vm13425_vm12, %v3150_v38, %v3223_v43  ;;  %v3449_v43 = vrot.slane %v3447_v19, 1 }
 0x467   : > { %v3565_v6 = vrot.slane %v14854_v24, 1  ;;  %v14870_v26 = vsel %vm1826_vm14, %v3438_v23, %v3442_v49  ;;  %v3452_v34 = vshll.u32 %v14759_v9, 16 }
 0x468   : > { %v3048_v10 = vpack.c.bf16 %v3032_v30, %v3031_v14  ;;  %v14858_v45 = vsel %vm13425_vm12, %v3047_v18, %v3153_v25  ;;  %v3878_v14 = vsel %vm983_vm8, %v14461_v15, %v3677_v8  ;;  %v3799_v30 = vsel %vm2314_vm15, %v3769_v56, %v3615_v36 }
 0x469   : > { %3696 = vrot.lane.b32.xlu0 %v14746_v4, %s12660_s19  ;;  %v3564_v39 = vrot.slane %v14858_v45, 1  ;;  %v3829_v9 = vsel %vm2345_vm0, %v3799_v30, %v14811_v17  ;;  %v3454_v36 = vrot.slane %v3452_v34, 1 }
 0x46a   : > { %3664 = vrot.lane.b32.xlu1 %v14735_v13, %s12661_s8  ;;  %v3155_v59 = vshrl.u32 %v3048_v10, 16  ;;  %v3158_v51 = vshll.u32 %v3048_v10, 16  ;;  %v3224_v2 = vrot.slane %v3048_v10, 7 }
 0x46b   : > { %v14867_v52 = vsel %vm2037_vm13, %v3564_v39, %v3565_v6  ;;  %v3450_v39 = vor.u32 %v3449_v43, %v3445_v11 }
 0x46c   : > { %v3709_v18 = vpop.permute.xlu0 %3708  ;;  %v3647_v27 = vpop.permute.xlu1 %3646  ;;  %12172 = vmatmul.mubr.msk.bf16.gmra.mrb[132].mxu0 %vm983_vm8, %v14867_v52  ;;  %v3157_v20 = vrot.slane %v3155_v59, 7  ;;  %v3459_v59 = vshll.u32 %v14795_v50, 16 }
 0x46d   : > { %3756 = vrot.lane.b32.xlu0 %v14870_v26, %s12661_s8  ;;  %v3925_v23 = vsel %vm2314_vm15, %v3878_v14, %v3709_v18  ;;  %v14918_v49 = vsel %vm1826_vm14, %v3450_v39, %v3454_v36  ;;  %v3476_v39 = vshll.u32 %v14821_v54, 16 }
 0x46e   : > { %3634 = vrot.lane.b32.xlu1 %v14746_v4, %s12662_s9  ;;  %v3160_v41 = vor.u32 %v3158_v51, %v3157_v20  ;;  %v14881_v40 = vsel %vm13425_vm12, %v3157_v20, %v3224_v2  ;;  %v3461_v2 = vrot.slane %v3459_v59, 1 }
 0x46f   : > { %v3582_v47 = vrot.slane %v14881_v40, 1  ;;  %v3478_v54 = vrot.slane %v3476_v39, 1 }
 0x470   : > { %v3679_v42 = vpop.permute.xlu0 %3678  ;;  %v14885_v38 = vpop.permute.xlu1 %3616  ;;  %v14889_v21 = vsel %vm13425_vm12, %v3048_v10, %v3160_v41  ;;  %v3832_v41 = vsel %vm2345_vm0, %v3799_v30, %v3647_v27  ;;  %v3471_v27 = vshll.u32 %v14830_v53, 16 }
 0x471   : > { %3728 = vrot.lane.b32.xlu0 %v14764_v44, %s12662_s9  ;;  %v3581_v4 = vrot.slane %v14889_v21, 1  ;;  %v3881_v18 = vsel %vm983_vm8, %v14497_v22, %v3679_v42  ;;  %v3464_v22 = vshll.u32 %v14790_v7, 16 }
 0x472   : > { %3604 = vrot.lane.b32.xlu1 %v14870_v26, %s12660_s19  ;;  %v3473_v14 = vrot.slane %v3471_v27, 1 }
 0x473   : > { %v14903_v25 = vsel %vm2037_vm13, %v3581_v4, %v3582_v47  ;;  %v3466_v43 = vrot.slane %v3464_v22, 1 }
 0x474   : > { %v3739_v10 = vpop.permute.xlu0 %3738  ;;  %v3587_v55 = vpop.permute.xlu1 %3586  ;;  %12175 = vmatprep.mubr.msk.bf16.mxu0 %vm983_vm8, %v14903_v25 }
 0x475   : > { %12176 = vmatmul.mubr.msk.bf16.gmra.mrb[136].mxu0 %vm983_vm8, %v14903_v25  ;;  %3698 = vrot.lane.b32.xlu0 %v14775_v3, %s12660_s19  ;;  %v3956_v15 = vsel %vm2345_vm0, %v3925_v23, %v3739_v10  ;;  %v3771_v30 = vsel %vm983_vm8, %v14480_v48, %v3587_v55  ;;  %v3469_v10 = vshrl.u32 %v14830_v53, 16 }
 0x476   : > { %3666 = vrot.lane.b32.xlu1 %v14764_v44, %s12661_s8  ;;  %4193 = vmatprep.mubr.bf16.mxu1 %v3956_v15  ;;  %v3801_v48 = vsel %vm2314_vm15, %v3771_v30, %v14885_v38 }
 0x477   : > { %4194 = vmatmul.mubr.bf16.vlgmr.msra.gmra.mrb[84].mxu1 %v3829_v9  ;;  %v3474_v55 = vor.u32 %v3473_v14, %v3469_v10  ;;  %v3568_v14 = vshrl.u32 %v14889_v21, 16 }
 0x478   : > { %v3681_v8 = vpop.permute.xlu0 %3680  ;;  %v3711_v6 = vpop.permute.xlu1 %3710 }
 0x479   : > { %3758 = vrot.lane.b32.xlu0 %v14918_v49, %s12661_s8  ;;  %v3927_v17 = vsel %vm2314_vm15, %v3881_v18, %v3711_v6  ;;  %v3884_v23 = vsel %vm983_vm8, %v14520_v31, %v3681_v8  ;;  %v14968_v59 = vsel %vm1826_vm14, %v3474_v55, %v3478_v54  ;;  %v3483_v18 = vshll.u32 %v14858_v45, 16 }
 0x47a   : > { %3636 = vrot.lane.b32.xlu1 %v14775_v3, %s12662_s9  ;;  %v3457_v3 = vshrl.u32 %v14795_v50, 16 }
 0x47c   : > { %v3741_v20 = vpop.permute.xlu0 %3740  ;;  %v3649_v51 = vpop.permute.xlu1 %3648  ;;  %v3462_v42 = vor.u32 %v3461_v2, %v3457_v3 }
 0x47d   : > { %3730 = vrot.lane.b32.xlu0 %v14795_v50, %s12662_s9  ;;  %v3959_v19 = vsel %vm2345_vm0, %v3927_v17, %v3741_v20  ;;  %v3835_v31 = vsel %vm2345_vm0, %v3801_v48, %v3649_v51  ;;  %v3485_v20 = vrot.slane %v3483_v18, 1 }
 0x47e   : > { %3606 = vrot.lane.b32.xlu1 %v14918_v49, %s12660_s19  ;;  %4201 = vmatprep.mubr.bf16.mxu1 %v3959_v19  ;;  %v14941_v11 = vsel %vm1826_vm14, %v3462_v42, %v3466_v43  ;;  %v3481_v19 = vshrl.u32 %v14858_v45, 16 }
 0x47f   : > { %4202 = vmatmul.mubr.bf16.gmra.mrb[88].mxu1 %v3832_v41  ;;  %v3488_v41 = vshll.u32 %v14854_v24, 16 }
 0x480   : > { %v3619_v56 = vpop.permute.xlu1 %3618  ;;  %v3486_v43 = vor.u32 %v3485_v20, %v3481_v19 }
 0x481   : > { %3700 = vrot.lane.b32.xlu0 %v14808_v62, %s12660_s19  ;;  %v3490_v24 = vrot.slane %v3488_v41, 1 }
 0x482   : > { %3668 = vrot.lane.b32.xlu1 %v14795_v50, %s12661_s8 }
 0x483   : > { %v3713_v4 = vpop.permute.xlu0 %3712 }
 0x484   : > { %v3589_v47 = vpop.permute.xlu1 %3588 }
 0x485   : > { %3760 = vrot.lane.b32.xlu0 %v14941_v11, %s12661_s8  ;;  %v3773_v51 = vsel %vm983_vm8, %v14501_v46, %v3589_v47 }
 0x486   : > { %3638 = vrot.lane.b32.xlu1 %v14808_v62, %s12662_s9  ;;  %v3929_v62 = vsel %vm2314_vm15, %v3884_v23, %v3713_v4  ;;  %v3803_v46 = vsel %vm2314_vm15, %v3773_v51, %v3619_v56  ;;  %v3570_v4 = vshll.u32 %v14889_v21, 16 }
 0x487   : > { %v3683_v7 = vpop.permute.xlu0 %3682 }
 0x488   : > { %v3651_v34 = vpop.permute.xlu1 %3650  ;;  %v3887_v2 = vsel %vm983_vm8, %v14555_v37, %v3683_v7  ;;  %v14995_v7 = vsel %vm1826_vm14, %v3486_v43, %v3490_v24  ;;  %v3572_v56 = vrot.slane %v3570_v4, 1 }
 0x489   : > { %3732 = vrot.lane.b32.xlu0 %v14830_v53, %s12662_s9  ;;  %v3838_v37 = vsel %vm2345_vm0, %v3803_v46, %v3651_v34  ;;  %v3575_v34 = vshll.u32 %v14881_v40, 16 }
 0x48a   : > { %3608 = vrot.lane.b32.xlu1 %v14941_v11, %s12660_s19  ;;  %v3573_v10 = vor.u32 %v3572_v56, %v3568_v14 }
 0x48b   : > { %v3743_v15 = vpop.permute.xlu0 %3742 }
 0x48c   : > { %v3621_v9 = vpop.permute.xlu1 %3620  ;;  %v3962_v36 = vsel %vm2345_vm0, %v3929_v62, %v3743_v15  ;;  %v3577_v15 = vrot.slane %v3575_v34, 1 }
 0x48d   : > { %3702 = vrot.lane.b32.xlu0 %v14841_v33, %s12660_s19  ;;  %4209 = vmatprep.mubr.bf16.mxu1 %v3962_v36 }
 0x48e   : > { %3670 = vrot.lane.b32.xlu1 %v14830_v53, %s12661_s8  ;;  %4210 = vmatmul.mubr.bf16.gmra.mrb[92].mxu1 %v3835_v31  ;;  %v15013_v55 = vsel %vm1826_vm14, %v3573_v10, %v3577_v15 }
 0x48f   : > { %v3715_v8 = vpop.permute.xlu0 %3714 }
 0x490   : > { %v3591_v6 = vpop.permute.xlu1 %3590 }
 0x491   : > { %3762 = vrot.lane.b32.xlu0 %v14968_v59, %s12661_s8  ;;  %v3775_v39 = vsel %vm983_vm8, %v14535_v5, %v3591_v6 }
 0x492   : > { %3640 = vrot.lane.b32.xlu1 %v14841_v33, %s12662_s9  ;;  %v3931_v33 = vsel %vm2314_vm15, %v3887_v2, %v3715_v8  ;;  %v3805_v5 = vsel %vm2314_vm15, %v3775_v39, %v3621_v9 }
 0x493   : > { %v3685_v38 = vpop.permute.xlu0 %3684 }
 0x494   : > { %v3653_v17 = vpop.permute.xlu1 %3652  ;;  %v3890_v62 = vsel %vm983_vm8, %v14594_v58, %v3685_v38 }
 0x495   : > { %3734 = vrot.lane.b32.xlu0 %v14858_v45, %s12662_s9  ;;  %v3841_v58 = vsel %vm2345_vm0, %v3805_v5, %v3653_v17 }
 0x496   : > { %3610 = vrot.lane.b32.xlu1 %v14968_v59, %s12660_s19 }
 0x497   : > { %v3745_v3 = vpop.permute.xlu0 %3744 }
 0x498   : > { %v3623_v22 = vpop.permute.xlu1 %3622  ;;  %v3965_v42 = vsel %vm2345_vm0, %v3931_v33, %v3745_v3 }
 0x499   : > { %3704 = vrot.lane.b32.xlu0 %v14867_v52, %s12660_s19  ;;  %4217 = vmatprep.mubr.bf16.mxu1 %v3965_v42 }
 0x49a   : > { %3672 = vrot.lane.b32.xlu1 %v14858_v45, %s12661_s8  ;;  %4218 = vmatmul.mubr.bf16.gmra.mrb[96].mxu1 %v3838_v37 }
 0x49b   : > { %v3717_v47 = vpop.permute.xlu0 %3716 }
 0x49c   : > { %v3593_v27 = vpop.permute.xlu1 %3592  ;;  %v3933_v36 = vsel %vm2314_vm15, %v3890_v62, %v3717_v47 }
 0x49d   : > { %3764 = vrot.lane.b32.xlu0 %v14995_v7, %s12661_s8  ;;  %v3777_v18 = vsel %vm983_vm8, %v14560_v57, %v3593_v27 }
 0x49e   : > { %3612 = vrot.lane.b32.xlu1 %v14995_v7, %s12660_s19  ;;  %v3807_v2 = vsel %vm2314_vm15, %v3777_v18, %v3623_v22 }
 0x49f   : > { %v3687_v30 = vpop.permute.xlu0 %3686 }
 0x4a0   : > { %v3655_v23 = vpop.permute.xlu1 %3654  ;;  %v3893_v9 = vsel %vm983_vm8, %v14636_v60, %v3687_v30 }
 0x4a1   : > { %3736 = vrot.lane.b32.xlu0 %v14889_v21, %s12662_s9 }
 0x4a2   : > { %3674 = vrot.lane.b32.xlu1 %v14889_v21, %s12661_s8 }
 0x4a3   : > { %v3747_v48 = vpop.permute.xlu0 %3746 }
 0x4a4   : > { %v3625_v40 = vpop.permute.xlu1 %3624  ;;  %v3968_v31 = vsel %vm2345_vm0, %v3933_v36, %v3747_v48 }
 0x4a5   : > { %3766 = vrot.lane.b32.xlu0 %v15013_v55, %s12661_s8  ;;  %4225 = vmatprep.mubr.bf16.mxu1 %v3968_v31 }
 0x4a6   : > { %4226 = vmatmul.mubr.bf16.gmra.mrb[100].mxu1 %v3841_v58 }
 0x4a7   : > { %v3719_v21 = vpop.permute.xlu0 %3718 }
 0x4a8   : > { %v3595_v54 = vpop.permute.xlu1 %3594  ;;  %v3935_v38 = vsel %vm2314_vm15, %v3893_v9, %v3719_v21 }
 0x4a9   : > { %3706 = vrot.lane.b32.xlu0 %v14903_v25, %s12660_s19  ;;  %v3844_v25 = vsel %vm2345_vm0, %v3807_v2, %v3655_v23 }
 0x4ab   : > { %v3689_v8 = vpop.permute.xlu0 %3688 }
 0x4ac   : > { %v3657_v6 = vpop.permute.xlu1 %3656  ;;  %v3896_v60 = vsel %vm983_vm8, %v14685_v12, %v3689_v8 }
 0x4ad   : > { %3642 = vrot.lane.b32.xlu0 %v14867_v52, %s12662_s9  ;;  %v3779_v52 = vsel %vm983_vm8, %v14582_v28, %v3595_v54 }
 0x4ae   : > { %v3809_v43 = vsel %vm2314_vm15, %v3779_v52, %v3625_v40 }
 0x4af   : > { %v3749_v17 = vpop.permute.xlu0 %3748  ;;  %v3847_v4 = vsel %vm2345_vm0, %v3809_v43, %v3657_v6 }
 0x4b0   : > { %v3627_v20 = vpop.permute.xlu1 %3626  ;;  %v3971_v51 = vsel %vm2345_vm0, %v3935_v38, %v3749_v17 }
 0x4b1   : > { %4233 = vmatprep.mubr.bf16.mxu1 %v3971_v51 }
 0x4b2   : > { %4234 = vmatmul.mubr.bf16.gmra.mrb[104].mxu1 %v3844_v25 }
 0x4b3   : > { %v3721_v19 = vpop.permute.xlu0 %3720 }
 0x4b4   : > { %v3597_v57 = vpop.permute.xlu1 %3596  ;;  %v3937_v3 = vsel %vm2314_vm15, %v3896_v60, %v3721_v19 }
 0x4b5   : > { %v3781_v28 = vsel %vm983_vm8, %v14610_v35, %v3597_v57 }
 0x4b6   : > { %v3811_v23 = vsel %vm2314_vm15, %v3781_v28, %v3627_v20 }
 0x4b7   : > { %v3691_v41 = vpop.permute.xlu0 %3690 }
 0x4b8   : > { %v3659_v33 = vpop.permute.xlu1 %3658  ;;  %v3899_v12 = vsel %vm983_vm8, %v14729_v1, %v3691_v41 }
 0x4b9   : > { %v3850_v10 = vsel %vm2345_vm0, %v3811_v23, %v3659_v33 }
 0x4bb   : > { %v3751_v42 = vpop.permute.xlu0 %3750 }
 0x4bc   : > { %v3629_v46 = vpop.permute.xlu1 %3628  ;;  %v3974_v22 = vsel %vm2345_vm0, %v3937_v3, %v3751_v42 }
 0x4bd   : > { %4241 = vmatprep.mubr.bf16.mxu1 %v3974_v22 }
 0x4be   : > { %4242 = vmatmul.mubr.bf16.gmra.mrb[108].mxu1 %v3847_v4 }
 0x4bf   : > { %v3723_v37 = vpop.permute.xlu0 %3722 }
 0x4c0   : > { %v3599_v24 = vpop.permute.xlu1 %3598  ;;  %v3939_v56 = vsel %vm2314_vm15, %v3899_v12, %v3723_v37 }
 0x4c1   : > { %v3783_v35 = vsel %vm983_vm8, %v14642_v61, %v3599_v24 }
 0x4c2   : > { %v3813_v58 = vsel %vm2314_vm15, %v3783_v35, %v3629_v46 }
 0x4c3   : > { %v3693_v47 = vpop.permute.xlu0 %3692 }
 0x4c4   : > { %v3661_v27 = vpop.permute.xlu1 %3660  ;;  %v3902_v1 = vsel %vm983_vm8, %v14778_v63, %v3693_v47 }
 0x4c5   : > { %v3853_v21 = vsel %vm2345_vm0, %v3813_v58, %v3661_v27 }
 0x4c7   : > { %v3753_v14 = vpop.permute.xlu0 %3752 }
 0x4c8   : > { %v3631_v34 = vpop.permute.xlu1 %3630  ;;  %v3977_v30 = vsel %vm2345_vm0, %v3939_v56, %v3753_v14 }
 0x4c9   : > { %4249 = vmatprep.mubr.bf16.mxu1 %v3977_v30 }
 0x4ca   : > { %4250 = vmatmul.mubr.bf16.gmra.mrb[112].mxu1 %v3850_v10 }
 0x4cb   : > { %v3725_v39 = vpop.permute.xlu0 %3724 }
 0x4cc   : > { %v3601_v62 = vpop.permute.xlu1 %3600  ;;  %v3941_v48 = vsel %vm2314_vm15, %v3902_v1, %v3725_v39 }
 0x4cd   : > { %v3785_v17 = vsel %vm983_vm8, %v14671_v16, %v3601_v62 }
 0x4ce   : > { %v3815_v57 = vsel %vm2314_vm15, %v3785_v17, %v3631_v34 }
 0x4cf   : > { %v3695_v15 = vpop.permute.xlu0 %3694 }
 0x4d0   : > { %v3663_v36 = vpop.permute.xlu1 %3662  ;;  %v3905_v20 = vsel %vm983_vm8, %v14824_v29, %v3695_v15 }
 0x4d1   : > { %v3856_v41 = vsel %vm2345_vm0, %v3815_v57, %v3663_v36 }
 0x4d3   : > { %v3755_v40 = vpop.permute.xlu0 %3754 }
 0x4d4   : > { %v3633_v31 = vpop.permute.xlu1 %3632  ;;  %v3980_v5 = vsel %vm2345_vm0, %v3941_v48, %v3755_v40 }
 0x4d5   : > { %4257 = vmatprep.mubr.bf16.mxu1 %v3980_v5 }
 0x4d6   : > { %4258 = vmatmul.mubr.bf16.gmra.mrb[116].mxu1 %v3853_v21 }
 0x4d7   : > { %v3727_v54 = vpop.permute.xlu0 %3726 }
 0x4d8   : > { %v15056_v8 = vpop.f32.mrb[108].mxu0  ;;  %v3603_v6 = vpop.permute.xlu1 %3602  ;;  %v3943_v51 = vsel %vm2314_vm15, %v3905_v20, %v3727_v54 }
 0x4d9   : > { %v15058_v61 = vpop.f32.mrb[109].mxu0  ;;  %v3787_v16 = vsel %vm983_vm8, %v14702_v0, %v3603_v6 }
 0x4da   : > { %v15060_v18 = vpop.f32.mrb[110].mxu0  ;;  %v3817_v4 = vsel %vm2314_vm15, %v3787_v16, %v3633_v31 }
 0x4db   : > { %v15062_v63 = vpop.f32.mrb[111].mxu0  ;;  %v3697_v9 = vpop.permute.xlu0 %3696 }
 0x4dc   : > { %v3665_v38 = vpop.permute.xlu1 %3664  ;;  %v3908_v29 = vsel %vm983_vm8, %v14870_v26, %v3697_v9 }
 0x4dd   : > { %v3859_v37 = vsel %vm2345_vm0, %v3817_v4, %v3665_v38 }
 0x4df   : > { %v3757_v2 = vpop.permute.xlu0 %3756 }
 0x4e0   : > { %v3635_v25 = vpop.permute.xlu1 %3634  ;;  %v3983_v19 = vsel %vm2345_vm0, %v3943_v51, %v3757_v2 }
 0x4e1   : > { %4265 = vmatprep.mubr.bf16.mxu1 %v3983_v19 }
 0x4e2   : > { %4266 = vmatmul.mubr.bf16.gmra.mrb[120].mxu1 %v3856_v41 }
 0x4e3   : > { %v3729_v33 = vpop.permute.xlu0 %3728 }
 0x4e4   : > { %v3605_v52 = vpop.permute.xlu1 %3604  ;;  %v3945_v42 = vsel %vm2314_vm15, %v3908_v29, %v3729_v33 }
 0x4e5   : > { %v3789_v14 = vsel %vm983_vm8, %v14735_v13, %v3605_v52  ;;  %v12435_v13 = vld [vmem:[%s18221_s3 + $0x1a0] sm:$0xff]  }
 0x4e6   : > { %v3819_v62 = vsel %vm2314_vm15, %v3789_v14, %v3635_v25  ;;  %12179 = vmatprep.subr.bf16.mxu1 %v12435_v13 }
 0x4e7   : > { %v3699_v60 = vpop.permute.xlu0 %3698  ;;  %12180 = vmatpush3.bf16.msra.mxu1 %v12435_v13 }
 0x4e8   : > { %v3667_v3 = vpop.permute.xlu1 %3666  ;;  %v3911_v34 = vsel %vm983_vm8, %v14918_v49, %v3699_v60  ;;  %v12436_v49 = vld [vmem:[%s18221_s3 + $0x1a8] sm:$0xff]  }
 0x4e9   : > { %v3862_v15 = vsel %vm2345_vm0, %v3819_v62, %v3667_v3  ;;  %12181 = vmatprep.subr.bf16.mxu1 %v12436_v49 }
 0x4eb   : > { %v3759_v46 = vpop.permute.xlu0 %3758  ;;  %12182 = vmatpush3.bf16.msra.mxu1 %v12436_v49 }
 0x4ec   : > { %v3637_v22 = vpop.permute.xlu1 %3636  ;;  %v3986_v43 = vsel %vm2345_vm0, %v3945_v42, %v3759_v46 }
 0x4ed   : > { %4273 = vmatprep.mubr.bf16.mxu1 %v3986_v43 }
 0x4ee   : > { %4274 = vmatmul.mubr.bf16.gmra.mrb[124].mxu1 %v3859_v37 }
 0x4ef   : > { %v15080_v24 = vpop.f32.mrb[112].mxu0  ;;  %v3731_v47 = vpop.permute.xlu0 %3730 }
 0x4f0   : > { %v3607_v27 = vpop.permute.xlu1 %3606  ;;  %v15082_v0 = vpop.f32.mrb[113].mxu0  ;;  %v3947_v30 = vsel %vm2314_vm15, %v3911_v34, %v3731_v47 }
 0x4f1   : > { %v15084_v28 = vpop.f32.mrb[114].mxu0  ;;  %v3791_v31 = vsel %vm983_vm8, %v14764_v44, %v3607_v27 }
 0x4f2   : > { %v15086_v26 = vpop.f32.mrb[115].mxu0  ;;  %v3821_v17 = vsel %vm2314_vm15, %v3791_v31, %v3637_v22  ;;  %v12438_v31 = vld [vmem:[%s18221_s3 + $0x120] sm:$0xff]  }
 0x4f3   : > { %v3701_v12 = vpop.permute.xlu0 %3700 }
 0x4f4   : > { %v3669_v56 = vpop.permute.xlu1 %3668  ;;  %v3914_v58 = vsel %vm983_vm8, %v14941_v11, %v3701_v12 }
 0x4f5   : > { %v3865_v20 = vsel %vm2345_vm0, %v3821_v17, %v3669_v56 }
 0x4f7   : > { %v3761_v23 = vpop.permute.xlu0 %3760 }
 0x4f8   : > { %v3639_v10 = vpop.permute.xlu1 %3638  ;;  %v3989_v39 = vsel %vm2345_vm0, %v3947_v30, %v3761_v23 }
 0x4f9   : > { %4281 = vmatprep.mubr.bf16.mxu1 %v3989_v39 }
 0x4fa   : > { %4282 = vmatmul.mubr.bf16.gmra.mrb[128].mxu1 %v3862_v15 }
 0x4fb   : > { %v3733_v36 = vpop.permute.xlu0 %3732 }
 0x4fc   : > { %v3609_v35 = vpop.permute.xlu1 %3608  ;;  %v3949_v6 = vsel %vm2314_vm15, %v3914_v58, %v3733_v36  ;;  %v12439_v58 = vld [vmem:[%s18221_s3 + $0x168] sm:$0xff]  }
 0x4fd   : > { %v3793_v11 = vsel %vm983_vm8, %v14795_v50, %v3609_v35 }
 0x4fe   : > { %v3823_v3 = vsel %vm2314_vm15, %v3793_v11, %v3639_v10 }
 0x4ff   : > { %v15102_v1 = vpop.f32.mrb[116].mxu0  ;;  %v3703_v48 = vpop.permute.xlu0 %3702 }
 0x500   : > { %v15104_v40 = vpop.f32.mrb[117].mxu0  ;;  %v3671_v21 = vpop.permute.xlu1 %3670  ;;  %v3917_v25 = vsel %vm983_vm8, %v14968_v59, %v3703_v48  ;;  %v12437_v48 = vld [vmem:[%s18221_s3 + $0x160] sm:$0xff]  }
 0x501   : > { %v15108_v5 = vpop.f32.mrb[118].mxu0  ;;  %v3868_v50 = vsel %vm2345_vm0, %v3823_v3, %v3671_v21  ;;  %11545 = vmatprep.subr.bf16.mxu0 %v12437_v48  ;;  %v12440_v21 = vld [vmem:[%s18221_s3 + $0x128] sm:$0xff]  }
 0x502   : > { %v15112_v54 = vpop.f32.mrb[119].mxu0  ;;  %11546 = vmatpush3.bf16.msra.mxu0 %v12438_v31 }
 0x503   : > { %v3763_v9 = vpop.permute.xlu0 %3762  ;;  %11547 = vmatprep.subr.bf16.mxu0 %v12439_v58 }
 0x504   : > { %v3992_v38 = vsel %vm2345_vm0, %v3949_v6, %v3763_v9  ;;  %v3641_v51 = vpop.permute.xlu1 %3640 }
 0x505   : > { %4289 = vmatprep.mubr.bf16.mxu1 %v3992_v38 }
 0x506   : > { %4290 = vmatmul.mubr.bf16.gmra.mrb[132].mxu1 %v3865_v20  ;;  %11548 = vmatpush3.bf16.msra.mxu0 %v12440_v21  ;;  %v12441_v20 = vld [vmem:[%s18221_s3 + $0x170] sm:$0xff]  }
 0x507   : > { %v3735_v44 = vpop.permute.xlu0 %3734  ;;  %11549 = vmatprep.subr.bf16.mxu0 %v12441_v20 }
 0x508   : > { %v3611_v19 = vpop.permute.xlu1 %3610  ;;  %v3951_v57 = vsel %vm2314_vm15, %v3917_v25, %v3735_v44  ;;  %v12442_v44 = vld [vmem:[%s18221_s3 + $0x130] sm:$0xff]  }
 0x509   : > { %v3795_v46 = vsel %vm983_vm8, %v14830_v53, %v3611_v19  ;;  %v15201_v19 = vld [vmem:[%s18222_s4 + $0x1] ss:$0 sm:$0xff] }
 0x50a   : > { %v3825_v47 = vsel %vm2314_vm15, %v3795_v46, %v3641_v51  ;;  %11550 = vmatpush3.bf16.msra.mxu0 %v12442_v44  ;;  %v12443_v46 = vld [vmem:[%s18221_s3 + $0x178] sm:$0xff]   ;;  %v12447_v44 = vld [vmem:[%s18221_s3 + $0x188] sm:$0xff]  }
 0x50b   : > { %v3705_v2 = vpop.permute.xlu0 %3704  ;;  %11551 = vmatprep.subr.bf16.mxu0 %v12443_v46 }
 0x50c   : > { %v3673_v42 = vpop.permute.xlu1 %3672  ;;  %v3920_v22 = vsel %vm983_vm8, %v14995_v7, %v3705_v2 }
 0x50d   : > { %v3871_v27 = vsel %vm2345_vm0, %v3825_v47, %v3673_v42 }
 0x50f   : > { %v15123_v41 = vpop.f32.mrb[120].mxu0  ;;  %v3765_v33 = vpop.permute.xlu0 %3764 }
 0x510   : > { %v15125_v52 = vpop.f32.mrb[121].mxu0  ;;  %v3995_v60 = vsel %vm2345_vm0, %v3951_v57, %v3765_v33  ;;  %v3613_v12 = vpop.permute.xlu1 %3612 }
 0x511   : > { %4297 = vmatprep.mubr.bf16.mxu1 %v3995_v60  ;;  %v15129_v16 = vpop.f32.mrb[122].mxu0  ;;  %v3797_v34 = vsel %vm983_vm8, %v14858_v45, %v3613_v12 }
 0x512   : > { %4298 = vmatmul.mubr.bf16.gmra.mrb[136].mxu1 %v3868_v50  ;;  %v15132_v29 = vpop.f32.mrb[123].mxu0 }
 0x513   : > { %v3737_v59 = vpop.permute.xlu0 %3736 }
 0x514   : > { %v3953_v43 = vsel %vm2314_vm15, %v3920_v22, %v3737_v59  ;;  %v3675_v10 = vpop.permute.xlu1 %3674  ;;  %v12444_v22 = vld [vmem:[%s18221_s3 + $0x138] sm:$0xff]  }
 0x515   : > { %11552 = vmatpush3.bf16.msra.mxu0 %v12444_v22 }
 0x517   : > { %v3767_v4 = vpop.permute.xlu0 %3766 }
 0x518   : > { %v3998_v37 = vsel %vm2345_vm0, %v3953_v43, %v3767_v4 }
 0x519   : > { %4305 = vmatprep.mubr.bf16.mxu1 %v3998_v37 }
 0x51a   : > { %4306 = vmatmul.mubr.bf16.gmra.mrb[140].mxu1 %v3871_v27 }
 0x51b   : > { %v3707_v56 = vpop.permute.xlu0 %3706 }
 0x51c   : > { %v3923_v14 = vsel %vm983_vm8, %v15013_v55, %v3707_v56 }
 0x51d   : > { %v3954_v53 = vsel %vm2314_vm15, %v3923_v14, %v3737_v59 }
 0x51e   : > { %v4000_v7 = vsel %vm2345_vm0, %v3954_v53, %v3767_v4 }
 0x51f   : > { %v15148_v30 = vpop.f32.mrb[124].mxu0  ;;  %v3643_v23 = vpop.permute.xlu0 %3642  ;;  %4313 = vmatprep.mubr.bf16.mxu1 %v4000_v7 }
 0x520   : > { %v3827_v39 = vsel %vm2314_vm15, %v3797_v34, %v3643_v23  ;;  %v15151_v62 = vpop.f32.mrb[125].mxu0  ;;  %v12445_v34 = vld [vmem:[%s18221_s3 + $0x180] sm:$0xff]  }
 0x521   : > { %v15153_v15 = vpop.f32.mrb[126].mxu0  ;;  %v3874_v55 = vsel %vm2345_vm0, %v3827_v39, %v3675_v10  ;;  %11553 = vmatprep.subr.bf16.mxu0 %v12445_v34 }
 0x522   : > { %4314 = vmatmul.mubr.bf16.gmra.mrb[144].mxu1 %v3874_v55  ;;  %v15156_v36 = vpop.f32.mrb[127].mxu0 }
 0x52f   : > { %v15158_v13 = vpop.f32.mrb[128].mxu0 }
 0x530   : > { %v15160_v49 = vpop.f32.mrb[129].mxu0 }
 0x531   : > { %v15162_v45 = vpop.f32.mrb[130].mxu0 }
 0x532   : > { %v15164_v35 = vpop.f32.mrb[131].mxu0 }
 0x53f   : > { %v15178_v6 = vpop.f32.mrb[132].mxu0 }
 0x540   : > { %v15180_v9 = vpop.f32.mrb[133].mxu0 }
 0x541   : > { %v15182_v38 = vpop.f32.mrb[134].mxu0 }
 0x542   : > { %v15184_v17 = vpop.f32.mrb[135].mxu0 }
 0x548   : > { %v15192_v51 = vpop.f32.mrb[136].mxu0 }
 0x549   : > { %v15194_v2 = vpop.f32.mrb[137].mxu0 }
 0x54a   : > { %v11431_v11 = vpop.f32.mrb[84].mxu1  ;;  %v15196_v25 = vpop.f32.mrb[138].mxu0 }
 0x54b   : > { %v11432_v57 = vpop.f32.mrb[85].mxu1  ;;  %v15203_v33 = vpop.f32.mrb[139].mxu0 }
 0x54c   : > { %v11433_v60 = vadd.f32 %v11432_v57, %v11431_v11  ;;  %v11434_v3 = vpop.f32.mrb[86].mxu1  ;;  %v12448_v11 = vld [vmem:[%s18221_s3 + $0x148] sm:$0xff]  }
 0x54d   : > { %v11435_v50 = vpop.f32.mrb[87].mxu1 }
 0x54e   : > { %v4196_v59 = vadd.f32 %v11433_v60, %v15201_v19  ;;  %v11436_v42 = vadd.f32 %v11435_v50, %v11434_v3 }
 0x550   : > { %v4357_v43 = vadd.f32 %v15058_v61, %v4196_v59  ;;  %v4199_v4 = vadd.f32 %v11436_v42, %v15201_v19  ;;  %v12446_v61 = vld [vmem:[%s18221_s3 + $0x140] sm:$0xff]  }
 0x551   : > { %11554 = vmatpush3.bf16.msra.mxu0 %v12446_v61 }
 0x552   : > { %v4360_v37 = vadd.f32 %v15062_v63, %v4199_v4  ;;  %v11437_v47 = vpop.f32.mrb[88].mxu1  ;;  %v4483_v12 = vmax.f32 %v4357_v43, 0.0  ;;  %11555 = vmatprep.subr.bf16.mxu0 %v12447_v44 }
 0x553   : > { %v11438_v27 = vpop.f32.mrb[89].mxu1 }
 0x554   : > { %v4484_v56 = vmax.f32 %v4360_v37, 0.0  ;;  %v11439_v14 = vadd.f32 %v11438_v27, %v11437_v47  ;;  %v11440_v53 = vpop.f32.mrb[90].mxu1 }
 0x555   : > { %v11441_v7 = vpop.f32.mrb[91].mxu1  ;;  %11556 = vmatpush3.bf16.msra.mxu0 %v12448_v11 }
 0x556   : > { %v4515_v23 = vpack.c.bf16 %v4484_v56, %v4483_v12  ;;  %v4204_v10 = vadd.f32 %v11439_v14, %v15201_v19  ;;  %v11442_v63 = vadd.f32 %v11441_v7, %v11440_v53  ;;  %v12449_v7 = vld [vmem:[%s18221_s3 + $0x190] sm:$0xff]  }
 0x557   : > { %11557 = vmatprep.subr.bf16.mxu0 %v12449_v7 }
 0x558   : > { %v4365_v39 = vadd.f32 %v15056_v8, %v4204_v10  ;;  %v4207_v55 = vadd.f32 %v11442_v63, %v15201_v19  ;;  %v4532_v48 = vshrl.u32 %v4515_v23, 16  ;;  %v4535_v21 = vshll.u32 %v4515_v23, 16 }
 0x559   : > { %v4691_v20 = vrot.slane %v4515_v23, 7 }
 0x55a   : > { %v4368_v31 = vadd.f32 %v15060_v18, %v4207_v55  ;;  %v4534_v58 = vrot.slane %v4532_v48, 7  ;;  %v4485_v57 = vmax.f32 %v4365_v39, 0.0 }
 0x55c   : > { %v4486_v60 = vmax.f32 %v4368_v31, 0.0  ;;  %v4537_v8 = vor.u32 %v4535_v21, %v4534_v58  ;;  %v4739_v3 = vsel %vm13425_vm12, %v4534_v58, %v4691_v20 }
 0x55d   : > { %v5005_v42 = vrot.slane %v4739_v3, 1  ;;  %v4802_v22 = vshll.u32 %v4739_v3, 16  ;;  %v12450_v3 = vld [vmem:[%s18221_s3 + $0x150] sm:$0xff]  }
 0x55e   : > { %v4516_v50 = vpack.c.bf16 %v4486_v60, %v4485_v57  ;;  %v15235_v18 = vsel %vm13425_vm12, %v4515_v23, %v4537_v8  ;;  %11558 = vmatpush3.bf16.msra.mxu0 %v12450_v3 }
 0x55f   : > { %5126 = vrot.lane.b32.xlu1 %v15235_v18, %s12661_s8  ;;  %v5004_v59 = vrot.slane %v15235_v18, 1  ;;  %v4797_v46 = vshll.u32 %v15235_v18, 16  ;;  %v4795_v47 = vshrl.u32 %v15235_v18, 16  ;;  %v4804_v10 = vrot.slane %v4802_v22, 1  ;;  %v12452_v22 = vld [vmem:[%s18221_s3 + $0x158] sm:$0xff]  }
 0x560   : > { %v4539_v43 = vshrl.u32 %v4516_v50, 16  ;;  %v4542_v14 = vshll.u32 %v4516_v50, 16  ;;  %v4692_v53 = vrot.slane %v4516_v50, 7 }
 0x561   : > { %v11443_v4 = vpop.f32.mrb[92].mxu1  ;;  %v5006_v37 = vsel %vm2037_vm13, %v5004_v59, %v5005_v42  ;;  %v4799_v27 = vrot.slane %v4797_v46, 1 }
 0x562   : > { %5158 = vrot.lane.b32.xlu0 %v5006_v37, %s12660_s19  ;;  %v11444_v12 = vpop.f32.mrb[93].mxu1  ;;  %v4541_v56 = vrot.slane %v4539_v43, 7 }
 0x563   : > { %v11445_v34 = vadd.f32 %v11444_v12, %v11443_v4  ;;  %5096 = vrot.lane.b32.xlu1 %v5006_v37, %s12662_s9  ;;  %v11446_v61 = vpop.f32.mrb[94].mxu1  ;;  %v4800_v23 = vor.u32 %v4799_v27, %v4795_v47 }
 0x564   : > { %v11447_v63 = vpop.f32.mrb[95].mxu1  ;;  %v4544_v39 = vor.u32 %v4542_v14, %v4541_v56  ;;  %v4740_v55 = vsel %vm13425_vm12, %v4541_v56, %v4692_v53 }
 0x565   : > { %v4212_v48 = vadd.f32 %v11445_v34, %v15201_v19  ;;  %v11448_v31 = vadd.f32 %v11447_v63, %v11446_v61  ;;  %v15252_v58 = vsel %vm1826_vm14, %v4800_v23, %v4804_v10  ;;  %v5008_v57 = vrot.slane %v4740_v55, 1 }
 0x566   : > { %v15256_v21 = vsel %vm13425_vm12, %v4516_v50, %v4544_v39  ;;  %v4814_v8 = vshll.u32 %v4740_v55, 16 }
 0x567   : > { %v4373_v20 = vadd.f32 %v15082_v0, %v4212_v48  ;;  %v4215_v44 = vadd.f32 %v11448_v31, %v15201_v19  ;;  %5190 = vrot.lane.b32.xlu0 %v15256_v21, %s12662_s9  ;;  %5066 = vrot.lane.b32.xlu1 %v15252_v58, %s12660_s19  ;;  %v5007_v11 = vrot.slane %v15256_v21, 1  ;;  %v4809_v60 = vshll.u32 %v15256_v21, 16  ;;  %v12451_v0 = vld [vmem:[%s18221_s3 + $0x198] sm:$0xff]  }
 0x568   : > { %v4807_v42 = vshrl.u32 %v15256_v21, 16  ;;  %v4816_v37 = vrot.slane %v4814_v8, 1  ;;  %11559 = vmatprep.subr.bf16.mxu0 %v12451_v0 }
 0x569   : > { %v4376_v50 = vadd.f32 %v15086_v26, %v4215_v44  ;;  %v5009_v59 = vsel %vm2037_vm13, %v5007_v11, %v5008_v57  ;;  %v4811_v46 = vrot.slane %v4809_v60, 1  ;;  %v4487_v43 = vmax.f32 %v4373_v20, 0.0  ;;  %11560 = vmatpush3.bf16.msra.mxu0 %v12452_v22 }
 0x56a   : > { %12183 = vmatprep.mubr.msk.bf16.mxu1 %vm983_vm8, %v5009_v59 }
 0x56b   : > { %v4488_v4 = vmax.f32 %v4376_v50, 0.0  ;;  %5160 = vrot.lane.b32.xlu0 %v5009_v59, %s12660_s19  ;;  %5128 = vrot.lane.b32.xlu1 %v15256_v21, %s12661_s8  ;;  %v4812_v26 = vor.u32 %v4811_v46, %v4807_v42 }
 0x56d   : > { %v4517_v47 = vpack.c.bf16 %v4488_v4, %v4487_v43  ;;  %v11449_v27 = vpop.f32.mrb[96].mxu1  ;;  %v15283_v56 = vsel %vm1826_vm14, %v4812_v26, %v4816_v37 }
 0x56e   : > { %v11450_v12 = vpop.f32.mrb[97].mxu1 }
 0x56f   : > { %v4546_v14 = vshrl.u32 %v4517_v47, 16  ;;  %v11451_v53 = vadd.f32 %v11450_v12, %v11449_v27  ;;  %5220 = vrot.lane.b32.xlu0 %v15283_v56, %s12661_s8  ;;  %5098 = vrot.lane.b32.xlu1 %v5009_v59, %s12662_s9  ;;  %v11452_v7 = vpop.f32.mrb[98].mxu1  ;;  %v4693_v34 = vrot.slane %v4517_v47, 7  ;;  %v4549_v39 = vshll.u32 %v4517_v47, 16 }
 0x570   : > { %v11453_v61 = vpop.f32.mrb[99].mxu1 }
 0x571   : > { %v4220_v23 = vadd.f32 %v11451_v53, %v15201_v19  ;;  %v11454_v10 = vadd.f32 %v11453_v61, %v11452_v7  ;;  %v4548_v63 = vrot.slane %v4546_v14, 7 }
 0x573   : > { %v4381_v55 = vadd.f32 %v15080_v24, %v4220_v23  ;;  %v4223_v48 = vadd.f32 %v11454_v10, %v15201_v19  ;;  %5068 = vrot.lane.b32.xlu1 %v15283_v56, %s12660_s19  ;;  %v4551_v31 = vor.u32 %v4549_v39, %v4548_v63  ;;  %v4741_v20 = vsel %vm13425_vm12, %v4548_v63, %v4693_v34 }
 0x574   : > { %v5011_v60 = vrot.slane %v4741_v20, 1  ;;  %v4826_v8 = vshll.u32 %v4741_v20, 16 }
 0x575   : > { %v4384_v44 = vadd.f32 %v15084_v28, %v4223_v48  ;;  %v15298_v11 = vsel %vm13425_vm12, %v4517_v47, %v4551_v31  ;;  %v4489_v3 = vmax.f32 %v4381_v55, 0.0 }
 0x576   : > { %v5010_v57 = vrot.slane %v15298_v11, 1  ;;  %v4821_v24 = vshll.u32 %v15298_v11, 16  ;;  %v4819_v59 = vshrl.u32 %v15298_v11, 16  ;;  %v4828_v4 = vrot.slane %v4826_v8, 1 }
 0x577   : > { %v4490_v0 = vmax.f32 %v4384_v44, 0.0  ;;  %5192 = vrot.lane.b32.xlu1 %v15298_v11, %s12662_s9 }
 0x578   : > { %v5012_v50 = vsel %vm2037_vm13, %v5010_v57, %v5011_v60  ;;  %v4823_v28 = vrot.slane %v4821_v24, 1 }
 0x579   : > { %v4518_v42 = vpack.c.bf16 %v4490_v0, %v4489_v3  ;;  %v11455_v46 = vpop.f32.mrb[100].mxu1  ;;  %12184 = vmatmul.mubr.msk.bf16.vlgmr.msra.gmra.mrb[148].mxu1 %vm983_vm8, %v5012_v50  ;;  %5162 = vrot.lane.b32.xlu0 %v5012_v50, %s12660_s19 }
 0x57a   : > { %v11456_v22 = vpop.f32.mrb[101].mxu1  ;;  %v4824_v43 = vor.u32 %v4823_v28, %v4819_v59 }
 0x57b   : > { %v4553_v26 = vshrl.u32 %v4518_v42, 16  ;;  %v11457_v37 = vadd.f32 %v11456_v22, %v11455_v46  ;;  %5130 = vrot.lane.b32.xlu1 %v15298_v11, %s12661_s8  ;;  %v11458_v47 = vpop.f32.mrb[102].mxu1  ;;  %v4556_v14 = vshll.u32 %v4518_v42, 16  ;;  %v4694_v61 = vrot.slane %v4518_v42, 7 }
 0x57c   : > { %v11459_v27 = vpop.f32.mrb[103].mxu1  ;;  %v15311_v12 = vsel %vm1826_vm14, %v4824_v43, %v4828_v4 }
 0x57d   : > { %v4228_v53 = vadd.f32 %v11457_v37, %v15201_v19  ;;  %v11460_v7 = vadd.f32 %v11459_v27, %v11458_v47  ;;  %5222 = vrot.lane.b32.xlu0 %v15311_v12, %s12661_s8  ;;  %v4555_v34 = vrot.slane %v4553_v26, 7 }
 0x57f   : > { %v4389_v23 = vadd.f32 %v15104_v40, %v4228_v53  ;;  %v4231_v10 = vadd.f32 %v11460_v7, %v15201_v19  ;;  %5100 = vrot.lane.b32.xlu1 %v5012_v50, %s12662_s9  ;;  %v4558_v63 = vor.u32 %v4556_v14, %v4555_v34  ;;  %v4742_v39 = vsel %vm13425_vm12, %v4555_v34, %v4694_v61 }
 0x580   : > { %v5014_v40 = vrot.slane %v4742_v39, 1  ;;  %v4838_v44 = vshll.u32 %v4742_v39, 16 }
 0x581   : > { %v4392_v55 = vadd.f32 %v15112_v54, %v4231_v10  ;;  %v15324_v48 = vsel %vm13425_vm12, %v4518_v42, %v4558_v63  ;;  %v4491_v57 = vmax.f32 %v4389_v23, 0.0 }
 0x582   : > { %5194 = vrot.lane.b32.xlu0 %v15324_v48, %s12662_s9  ;;  %v5013_v31 = vrot.slane %v15324_v48, 1  ;;  %v4833_v20 = vshll.u32 %v15324_v48, 16  ;;  %v4831_v24 = vshrl.u32 %v15324_v48, 16  ;;  %v4840_v28 = vrot.slane %v4838_v44, 1 }
 0x583   : > { %v4492_v60 = vmax.f32 %v4392_v55, 0.0  ;;  %5070 = vrot.lane.b32.xlu1 %v15311_v12, %s12660_s19 }
 0x584   : > { %v5015_v54 = vsel %vm2037_vm13, %v5013_v31, %v5014_v40  ;;  %v4835_v8 = vrot.slane %v4833_v20, 1 }
 0x585   : > { %v4519_v3 = vpack.c.bf16 %v4492_v60, %v4491_v57  ;;  %v11461_v0 = vpop.f32.mrb[104].mxu1  ;;  %12187 = vmatprep.mubr.msk.bf16.mxu1 %vm983_vm8, %v5015_v54 }
 0x586   : > { %v11462_v50 = vpop.f32.mrb[105].mxu1  ;;  %5164 = vrot.lane.b32.xlu0 %v5015_v54, %s12660_s19  ;;  %v4836_v59 = vor.u32 %v4835_v8, %v4831_v24 }
 0x587   : > { %v4560_v42 = vshrl.u32 %v4519_v3, 16  ;;  %v11463_v46 = vadd.f32 %v11462_v50, %v11461_v0  ;;  %5132 = vrot.lane.b32.xlu1 %v15324_v48, %s12661_s8  ;;  %v11464_v22 = vpop.f32.mrb[106].mxu1  ;;  %v4563_v26 = vshll.u32 %v4519_v3, 16  ;;  %v4695_v14 = vrot.slane %v4519_v3, 7 }
 0x588   : > { %v11465_v43 = vpop.f32.mrb[107].mxu1  ;;  %v15339_v4 = vsel %vm1826_vm14, %v4836_v59, %v4840_v28 }
 0x589   : > { %v4236_v37 = vadd.f32 %v11463_v46, %v15201_v19  ;;  %v11466_v47 = vadd.f32 %v11465_v43, %v11464_v22  ;;  %v4562_v27 = vrot.slane %v4560_v42, 7 }
 0x58a   : > { %5224 = vrot.lane.b32.xlu0 %v15339_v4, %s12661_s8 }
 0x58b   : > { %v4397_v53 = vadd.f32 %v15102_v1, %v4236_v37  ;;  %v4239_v7 = vadd.f32 %v11466_v47, %v15201_v19  ;;  %5102 = vrot.lane.b32.xlu1 %v5015_v54, %s12662_s9  ;;  %v4565_v34 = vor.u32 %v4563_v26, %v4562_v27  ;;  %v4743_v61 = vsel %vm13425_vm12, %v4562_v27, %v4695_v14 }
 0x58c   : > { %v5017_v1 = vrot.slane %v4743_v61, 1  ;;  %v4850_v55 = vshll.u32 %v4743_v61, 16 }
 0x58d   : > { %v4400_v23 = vadd.f32 %v15108_v5, %v4239_v7  ;;  %v15352_v10 = vsel %vm13425_vm12, %v4519_v3, %v4565_v34  ;;  %v4493_v31 = vmax.f32 %v4397_v53, 0.0 }
 0x58e   : > { %5196 = vrot.lane.b32.xlu0 %v15352_v10, %s12662_s9  ;;  %v5016_v63 = vrot.slane %v15352_v10, 1  ;;  %v4845_v39 = vshll.u32 %v15352_v10, 16  ;;  %v4843_v20 = vshrl.u32 %v15352_v10, 16  ;;  %v4852_v8 = vrot.slane %v4850_v55, 1 }
 0x58f   : > { %v4494_v40 = vmax.f32 %v4400_v23, 0.0  ;;  %5072 = vrot.lane.b32.xlu1 %v15339_v4, %s12660_s19 }
 0x590   : > { %v5018_v5 = vsel %vm2037_vm13, %v5016_v63, %v5017_v1  ;;  %v4847_v44 = vrot.slane %v4845_v39, 1 }
 0x591   : > { %v4520_v57 = vpack.c.bf16 %v4494_v40, %v4493_v31  ;;  %v11467_v60 = vpop.f32.mrb[108].mxu1  ;;  %12188 = vmatmul.mubr.msk.bf16.gmra.mrb[152].mxu1 %vm983_vm8, %v5018_v5 }
 0x592   : > { %v11468_v54 = vpop.f32.mrb[109].mxu1  ;;  %5166 = vrot.lane.b32.xlu0 %v5018_v5, %s12660_s19  ;;  %v4848_v24 = vor.u32 %v4847_v44, %v4843_v20 }
 0x593   : > { %v4567_v3 = vshrl.u32 %v4520_v57, 16  ;;  %v11469_v0 = vadd.f32 %v11468_v54, %v11467_v60  ;;  %5134 = vrot.lane.b32.xlu1 %v15352_v10, %s12661_s8  ;;  %v11470_v50 = vpop.f32.mrb[110].mxu1  ;;  %v4570_v42 = vshll.u32 %v4520_v57, 16  ;;  %v4696_v26 = vrot.slane %v4520_v57, 7 }
 0x594   : > { %v11471_v59 = vpop.f32.mrb[111].mxu1  ;;  %v15367_v28 = vsel %vm1826_vm14, %v4848_v24, %v4852_v8 }
 0x595   : > { %v4244_v46 = vadd.f32 %v11469_v0, %v15201_v19  ;;  %v11472_v22 = vadd.f32 %v11471_v59, %v11470_v50  ;;  %v4569_v43 = vrot.slane %v4567_v3, 7 }
 0x596   : > { %5226 = vrot.lane.b32.xlu0 %v15367_v28, %s12661_s8 }
 0x597   : > { %v4405_v37 = vadd.f32 %v15125_v52, %v4244_v46  ;;  %v4247_v47 = vadd.f32 %v11472_v22, %v15201_v19  ;;  %5104 = vrot.lane.b32.xlu1 %v5018_v5, %s12662_s9  ;;  %v4572_v27 = vor.u32 %v4570_v42, %v4569_v43  ;;  %v4744_v14 = vsel %vm13425_vm12, %v4569_v43, %v4696_v26 }
 0x598   : > { %v5020_v52 = vrot.slane %v4744_v14, 1  ;;  %v4862_v23 = vshll.u32 %v4744_v14, 16 }
 0x599   : > { %v4408_v53 = vadd.f32 %v15132_v29, %v4247_v47  ;;  %v15380_v7 = vsel %vm13425_vm12, %v4520_v57, %v4572_v27  ;;  %v4495_v63 = vmax.f32 %v4405_v37, 0.0 }
 0x59a   : > { %5198 = vrot.lane.b32.xlu0 %v15380_v7, %s12662_s9  ;;  %v5019_v34 = vrot.slane %v15380_v7, 1  ;;  %v4857_v61 = vshll.u32 %v15380_v7, 16  ;;  %v4855_v39 = vshrl.u32 %v15380_v7, 16  ;;  %v4864_v44 = vrot.slane %v4862_v23, 1 }
 0x59b   : > { %v4496_v1 = vmax.f32 %v4408_v53, 0.0  ;;  %5074 = vrot.lane.b32.xlu1 %v15367_v28, %s12660_s19 }
 0x59c   : > { %v5021_v29 = vsel %vm2037_vm13, %v5019_v34, %v5020_v52  ;;  %v4859_v55 = vrot.slane %v4857_v61, 1 }
 0x59d   : > { %v4521_v31 = vpack.c.bf16 %v4496_v1, %v4495_v63  ;;  %v11473_v40 = vpop.f32.mrb[112].mxu1  ;;  %12191 = vmatprep.mubr.msk.bf16.mxu1 %vm983_vm8, %v5021_v29 }
 0x59e   : > { %v11474_v5 = vpop.f32.mrb[113].mxu1  ;;  %5168 = vrot.lane.b32.xlu0 %v5021_v29, %s12660_s19  ;;  %v4860_v20 = vor.u32 %v4859_v55, %v4855_v39 }
 0x59f   : > { %v4574_v57 = vshrl.u32 %v4521_v31, 16  ;;  %v11475_v60 = vadd.f32 %v11474_v5, %v11473_v40  ;;  %5136 = vrot.lane.b32.xlu1 %v15380_v7, %s12661_s8  ;;  %v11476_v54 = vpop.f32.mrb[114].mxu1  ;;  %v4577_v3 = vshll.u32 %v4521_v31, 16  ;;  %v4697_v42 = vrot.slane %v4521_v31, 7 }
 0x5a0   : > { %v11477_v24 = vpop.f32.mrb[115].mxu1  ;;  %v15395_v8 = vsel %vm1826_vm14, %v4860_v20, %v4864_v44 }
 0x5a1   : > { %v4252_v0 = vadd.f32 %v11475_v60, %v15201_v19  ;;  %v11478_v50 = vadd.f32 %v11477_v24, %v11476_v54  ;;  %v4576_v59 = vrot.slane %v4574_v57, 7 }
 0x5a2   : > { %5228 = vrot.lane.b32.xlu0 %v15395_v8, %s12661_s8 }
 0x5a3   : > { %v4413_v46 = vadd.f32 %v15123_v41, %v4252_v0  ;;  %v4255_v22 = vadd.f32 %v11478_v50, %v15201_v19  ;;  %5106 = vrot.lane.b32.xlu1 %v5021_v29, %s12662_s9  ;;  %v4579_v43 = vor.u32 %v4577_v3, %v4576_v59  ;;  %v4745_v26 = vsel %vm13425_vm12, %v4576_v59, %v4697_v42 }
 0x5a4   : > { %v5023_v41 = vrot.slane %v4745_v26, 1  ;;  %v4874_v53 = vshll.u32 %v4745_v26, 16 }
 0x5a5   : > { %v4416_v37 = vadd.f32 %v15129_v16, %v4255_v22  ;;  %v15408_v47 = vsel %vm13425_vm12, %v4521_v31, %v4579_v43  ;;  %v4497_v34 = vmax.f32 %v4413_v46, 0.0 }
 0x5a6   : > { %5200 = vrot.lane.b32.xlu0 %v15408_v47, %s12662_s9  ;;  %v5022_v27 = vrot.slane %v15408_v47, 1  ;;  %v4869_v14 = vshll.u32 %v15408_v47, 16  ;;  %v4867_v61 = vshrl.u32 %v15408_v47, 16  ;;  %v4876_v55 = vrot.slane %v4874_v53, 1 }
 0x5a7   : > { %v4498_v52 = vmax.f32 %v4416_v37, 0.0  ;;  %5076 = vrot.lane.b32.xlu1 %v15395_v8, %s12660_s19 }
 0x5a8   : > { %v5024_v16 = vsel %vm2037_vm13, %v5022_v27, %v5023_v41  ;;  %v4871_v23 = vrot.slane %v4869_v14, 1 }
 0x5a9   : > { %v4522_v63 = vpack.c.bf16 %v4498_v52, %v4497_v34  ;;  %v11479_v1 = vpop.f32.mrb[116].mxu1  ;;  %12192 = vmatmul.mubr.msk.bf16.gmra.mrb[156].mxu1 %vm983_vm8, %v5024_v16 }
 0x5aa   : > { %v11480_v29 = vpop.f32.mrb[117].mxu1  ;;  %5170 = vrot.lane.b32.xlu0 %v5024_v16, %s12660_s19  ;;  %v4872_v39 = vor.u32 %v4871_v23, %v4867_v61 }
 0x5ab   : > { %v4581_v31 = vshrl.u32 %v4522_v63, 16  ;;  %v11481_v40 = vadd.f32 %v11480_v29, %v11479_v1  ;;  %5138 = vrot.lane.b32.xlu1 %v15408_v47, %s12661_s8  ;;  %v11482_v5 = vpop.f32.mrb[118].mxu1  ;;  %v4584_v57 = vshll.u32 %v4522_v63, 16  ;;  %v4698_v3 = vrot.slane %v4522_v63, 7 }
 0x5ac   : > { %v11483_v20 = vpop.f32.mrb[119].mxu1  ;;  %v15423_v44 = vsel %vm1826_vm14, %v4872_v39, %v4876_v55 }
 0x5ad   : > { %v4260_v60 = vadd.f32 %v11481_v40, %v15201_v19  ;;  %v11484_v54 = vadd.f32 %v11483_v20, %v11482_v5  ;;  %v4583_v24 = vrot.slane %v4581_v31, 7 }
 0x5ae   : > { %5230 = vrot.lane.b32.xlu0 %v15423_v44, %s12661_s8 }
 0x5af   : > { %v4421_v0 = vadd.f32 %v15151_v62, %v4260_v60  ;;  %v4263_v50 = vadd.f32 %v11484_v54, %v15201_v19  ;;  %5108 = vrot.lane.b32.xlu1 %v5024_v16, %s12662_s9  ;;  %v4586_v59 = vor.u32 %v4584_v57, %v4583_v24  ;;  %v4746_v42 = vsel %vm13425_vm12, %v4583_v24, %v4698_v3 }
 0x5b0   : > { %v5026_v62 = vrot.slane %v4746_v42, 1  ;;  %v4886_v37 = vshll.u32 %v4746_v42, 16 }
 0x5b1   : > { %v4424_v46 = vadd.f32 %v15156_v36, %v4263_v50  ;;  %v15436_v22 = vsel %vm13425_vm12, %v4522_v63, %v4586_v59  ;;  %v4499_v27 = vmax.f32 %v4421_v0, 0.0 }
 0x5b2   : > { %5202 = vrot.lane.b32.xlu0 %v15436_v22, %s12662_s9  ;;  %v5025_v43 = vrot.slane %v15436_v22, 1  ;;  %v4881_v26 = vshll.u32 %v15436_v22, 16  ;;  %v4879_v14 = vshrl.u32 %v15436_v22, 16  ;;  %v4888_v23 = vrot.slane %v4886_v37, 1 }
 0x5b3   : > { %v4500_v41 = vmax.f32 %v4424_v46, 0.0  ;;  %5078 = vrot.lane.b32.xlu1 %v15423_v44, %s12660_s19 }
 0x5b4   : > { %v5027_v36 = vsel %vm2037_vm13, %v5025_v43, %v5026_v62  ;;  %v4883_v53 = vrot.slane %v4881_v26, 1 }
 0x5b5   : > { %v4523_v34 = vpack.c.bf16 %v4500_v41, %v4499_v27  ;;  %v11485_v52 = vpop.f32.mrb[120].mxu1  ;;  %12195 = vmatprep.mubr.msk.bf16.mxu1 %vm983_vm8, %v5027_v36 }
 0x5b6   : > { %v11486_v16 = vpop.f32.mrb[121].mxu1  ;;  %5172 = vrot.lane.b32.xlu0 %v5027_v36, %s12660_s19  ;;  %v4884_v61 = vor.u32 %v4883_v53, %v4879_v14 }
 0x5b7   : > { %v4588_v63 = vshrl.u32 %v4523_v34, 16  ;;  %v11487_v1 = vadd.f32 %v11486_v16, %v11485_v52  ;;  %5140 = vrot.lane.b32.xlu1 %v15436_v22, %s12661_s8  ;;  %v11488_v29 = vpop.f32.mrb[122].mxu1  ;;  %v4591_v31 = vshll.u32 %v4523_v34, 16  ;;  %v4699_v57 = vrot.slane %v4523_v34, 7 }
 0x5b8   : > { %v11489_v39 = vpop.f32.mrb[123].mxu1  ;;  %v15451_v55 = vsel %vm1826_vm14, %v4884_v61, %v4888_v23 }
 0x5b9   : > { %v4268_v40 = vadd.f32 %v11487_v1, %v15201_v19  ;;  %v11490_v5 = vadd.f32 %v11489_v39, %v11488_v29  ;;  %v4590_v20 = vrot.slane %v4588_v63, 7 }
 0x5ba   : > { %5232 = vrot.lane.b32.xlu0 %v15451_v55, %s12661_s8 }
 0x5bb   : > { %v4429_v60 = vadd.f32 %v15148_v30, %v4268_v40  ;;  %v4271_v54 = vadd.f32 %v11490_v5, %v15201_v19  ;;  %5110 = vrot.lane.b32.xlu1 %v5027_v36, %s12662_s9  ;;  %v4593_v24 = vor.u32 %v4591_v31, %v4590_v20  ;;  %v4747_v3 = vsel %vm13425_vm12, %v4590_v20, %v4699_v57 }
 0x5bc   : > { %v5029_v30 = vrot.slane %v4747_v3, 1  ;;  %v4898_v46 = vshll.u32 %v4747_v3, 16 }
 0x5bd   : > { %v4432_v0 = vadd.f32 %v15153_v15, %v4271_v54  ;;  %v15464_v50 = vsel %vm13425_vm12, %v4523_v34, %v4593_v24  ;;  %v4501_v43 = vmax.f32 %v4429_v60, 0.0 }
 0x5be   : > { %5204 = vrot.lane.b32.xlu0 %v15464_v50, %s12662_s9  ;;  %v5028_v59 = vrot.slane %v15464_v50, 1  ;;  %v4893_v42 = vshll.u32 %v15464_v50, 16  ;;  %v4891_v26 = vshrl.u32 %v15464_v50, 16  ;;  %v4900_v53 = vrot.slane %v4898_v46, 1 }
 0x5bf   : > { %v4502_v62 = vmax.f32 %v4432_v0, 0.0  ;;  %5080 = vrot.lane.b32.xlu1 %v15451_v55, %s12660_s19 }
 0x5c0   : > { %v5030_v15 = vsel %vm2037_vm13, %v5028_v59, %v5029_v30  ;;  %v4895_v37 = vrot.slane %v4893_v42, 1 }
 0x5c1   : > { %v4524_v27 = vpack.c.bf16 %v4502_v62, %v4501_v43  ;;  %v11491_v41 = vpop.f32.mrb[124].mxu1  ;;  %12196 = vmatmul.mubr.msk.bf16.gmra.mrb[160].mxu1 %vm983_vm8, %v5030_v15 }
 0x5c2   : > { %v11492_v36 = vpop.f32.mrb[125].mxu1  ;;  %5174 = vrot.lane.b32.xlu0 %v5030_v15, %s12660_s19  ;;  %v4896_v14 = vor.u32 %v4895_v37, %v4891_v26 }
 0x5c3   : > { %v4595_v34 = vshrl.u32 %v4524_v27, 16  ;;  %v11493_v52 = vadd.f32 %v11492_v36, %v11491_v41  ;;  %5142 = vrot.lane.b32.xlu1 %v15464_v50, %s12661_s8  ;;  %v11494_v16 = vpop.f32.mrb[126].mxu1  ;;  %v4598_v63 = vshll.u32 %v4524_v27, 16  ;;  %v4700_v31 = vrot.slane %v4524_v27, 7 }
 0x5c4   : > { %v11495_v61 = vpop.f32.mrb[127].mxu1  ;;  %v15479_v23 = vsel %vm1826_vm14, %v4896_v14, %v4900_v53 }
 0x5c5   : > { %v4276_v1 = vadd.f32 %v11493_v52, %v15201_v19  ;;  %v11496_v29 = vadd.f32 %v11495_v61, %v11494_v16  ;;  %v4597_v39 = vrot.slane %v4595_v34, 7 }
 0x5c6   : > { %5234 = vrot.lane.b32.xlu0 %v15479_v23, %s12661_s8 }
 0x5c7   : > { %v4437_v40 = vadd.f32 %v15160_v49, %v4276_v1  ;;  %v4279_v5 = vadd.f32 %v11496_v29, %v15201_v19  ;;  %5112 = vrot.lane.b32.xlu1 %v5030_v15, %s12662_s9  ;;  %v4600_v20 = vor.u32 %v4598_v63, %v4597_v39  ;;  %v4748_v57 = vsel %vm13425_vm12, %v4597_v39, %v4700_v31 }
 0x5c8   : > { %v5032_v49 = vrot.slane %v4748_v57, 1  ;;  %v4910_v0 = vshll.u32 %v4748_v57, 16 }
 0x5c9   : > { %v4440_v60 = vadd.f32 %v15164_v35, %v4279_v5  ;;  %v15492_v54 = vsel %vm13425_vm12, %v4524_v27, %v4600_v20  ;;  %v4503_v59 = vmax.f32 %v4437_v40, 0.0 }
 0x5ca   : > { %5206 = vrot.lane.b32.xlu0 %v15492_v54, %s12662_s9  ;;  %v5031_v24 = vrot.slane %v15492_v54, 1  ;;  %v4905_v3 = vshll.u32 %v15492_v54, 16  ;;  %v4903_v42 = vshrl.u32 %v15492_v54, 16  ;;  %v4912_v37 = vrot.slane %v4910_v0, 1 }
 0x5cb   : > { %v4504_v30 = vmax.f32 %v4440_v60, 0.0  ;;  %5082 = vrot.lane.b32.xlu1 %v15479_v23, %s12660_s19 }
 0x5cc   : > { %v5033_v35 = vsel %vm2037_vm13, %v5031_v24, %v5032_v49  ;;  %v4907_v46 = vrot.slane %v4905_v3, 1 }
 0x5cd   : > { %v4525_v43 = vpack.c.bf16 %v4504_v30, %v4503_v59  ;;  %v11497_v62 = vpop.f32.mrb[128].mxu1  ;;  %12199 = vmatprep.mubr.msk.bf16.mxu1 %vm983_vm8, %v5033_v35 }
 0x5ce   : > { %v11498_v15 = vpop.f32.mrb[129].mxu1  ;;  %5176 = vrot.lane.b32.xlu0 %v5033_v35, %s12660_s19  ;;  %v4908_v26 = vor.u32 %v4907_v46, %v4903_v42 }
 0x5cf   : > { %v4602_v27 = vshrl.u32 %v4525_v43, 16  ;;  %v11499_v41 = vadd.f32 %v11498_v15, %v11497_v62  ;;  %5144 = vrot.lane.b32.xlu1 %v15492_v54, %s12661_s8  ;;  %v11500_v36 = vpop.f32.mrb[130].mxu1  ;;  %v4605_v34 = vshll.u32 %v4525_v43, 16  ;;  %v4701_v1 = vrot.slane %v4525_v43, 7 }
 0x5d0   : > { %v11501_v14 = vpop.f32.mrb[131].mxu1  ;;  %v15507_v53 = vsel %vm1826_vm14, %v4908_v26, %v4912_v37 }
 0x5d1   : > { %v4284_v52 = vadd.f32 %v11499_v41, %v15201_v19  ;;  %v11502_v16 = vadd.f32 %v11501_v14, %v11500_v36  ;;  %v15510_v61 = vpop.permute.xlu1 %5126  ;;  %v4604_v63 = vrot.slane %v4602_v27, 7 }
 0x5d2   : > { %5236 = vrot.lane.b32.xlu0 %v15507_v53, %s12661_s8 }
 0x5d3   : > { %v4445_v29 = vadd.f32 %v15158_v13, %v4284_v52  ;;  %v4287_v39 = vadd.f32 %v11502_v16, %v15201_v19  ;;  %5114 = vrot.lane.b32.xlu1 %v5033_v35, %s12662_s9  ;;  %v4607_v31 = vor.u32 %v4605_v34, %v4604_v63  ;;  %v4749_v40 = vsel %vm13425_vm12, %v4604_v63, %v4701_v1 }
 0x5d4   : > { %v5159_v5 = vpop.permute.xlu0 %5158  ;;  %v5035_v24 = vrot.slane %v4749_v40, 1  ;;  %v4922_v3 = vshll.u32 %v4749_v40, 16 }
 0x5d5   : > { %v4448_v20 = vadd.f32 %v15162_v45, %v4287_v39  ;;  %v5097_v57 = vpop.permute.xlu1 %5096  ;;  %v15522_v60 = vsel %vm13425_vm12, %v4525_v43, %v4607_v31  ;;  %v4505_v0 = vmax.f32 %v4445_v29, 0.0 }
 0x5d6   : > { %5208 = vrot.lane.b32.xlu0 %v15522_v60, %s12662_s9  ;;  %v5034_v13 = vrot.slane %v15522_v60, 1  ;;  %v4917_v49 = vshll.u32 %v15522_v60, 16  ;;  %v4915_v30 = vshrl.u32 %v15522_v60, 16  ;;  %v4924_v26 = vrot.slane %v4922_v3, 1 }
 0x5d7   : > { %v4506_v59 = vmax.f32 %v4448_v20, 0.0  ;;  %5084 = vrot.lane.b32.xlu1 %v15507_v53, %s12660_s19 }
 0x5d8   : > { %v5036_v45 = vsel %vm2037_vm13, %v5034_v13, %v5035_v24  ;;  %v4919_v35 = vrot.slane %v4917_v49, 1  ;;  %v5360_v13 = vsel %vm983_vm8, %v15252_v58, %v5159_v5 }
 0x5d9   : > { %v4526_v42 = vpack.c.bf16 %v4506_v59, %v4505_v0  ;;  %v5191_v46 = vpop.permute.xlu0 %5190  ;;  %v5067_v43 = vpop.permute.xlu1 %5066  ;;  %12200 = vmatmul.mubr.msk.bf16.gmra.mrb[164].mxu1 %vm983_vm8, %v5036_v45 }
 0x5da   : > { %v11503_v62 = vpop.f32.mrb[132].mxu1  ;;  %5178 = vrot.lane.b32.xlu0 %v5036_v45, %s12660_s19  ;;  %v4920_v15 = vor.u32 %v4919_v35, %v4915_v30  ;;  %v5251_v34 = vsel %vm983_vm8, %v15235_v18, %v5067_v43  ;;  %v5407_v0 = vsel %vm2314_vm15, %v5360_v13, %v5191_v46 }
 0x5db   : > { %v4609_v37 = vshrl.u32 %v4526_v42, 16  ;;  %v11504_v27 = vpop.f32.mrb[133].mxu1  ;;  %5146 = vrot.lane.b32.xlu1 %v15522_v60, %s12661_s8  ;;  %v4612_v1 = vshll.u32 %v4526_v42, 16  ;;  %v4702_v29 = vrot.slane %v4526_v42, 7  ;;  %v15554_v24 = vsel %vm2314_vm15, %v5251_v34, %v5097_v57 }
 0x5dc   : > { %v11505_v41 = vadd.f32 %v11504_v27, %v11503_v62  ;;  %v11506_v36 = vpop.f32.mrb[134].mxu1  ;;  %v15537_v14 = vsel %vm1826_vm14, %v4920_v15, %v4924_v26  ;;  %v5311_v57 = vsel %vm2345_vm0, %v15554_v24, %v15510_v61 }
 0x5dd   : > { %v11507_v52 = vpop.f32.mrb[135].mxu1  ;;  %v15541_v16 = vpop.permute.xlu0 %5160  ;;  %v4611_v63 = vrot.slane %v4609_v37, 7 }
 0x5de   : > { %v4292_v39 = vadd.f32 %v11505_v41, %v15201_v19  ;;  %v11508_v31 = vadd.f32 %v11507_v52, %v11506_v36  ;;  %v15544_v40 = vpop.permute.xlu1 %5128  ;;  %5238 = vrot.lane.b32.xlu0 %v15537_v14, %s12661_s8 }
 0x5df   : > { %5116 = vrot.lane.b32.xlu1 %v5036_v45, %s12662_s9  ;;  %v4614_v20 = vor.u32 %v4612_v1, %v4611_v63  ;;  %v4750_v18 = vsel %vm13425_vm12, %v4611_v63, %v4702_v29 }
 0x5e0   : > { %v4453_v49 = vadd.f32 %v15180_v9, %v4292_v39  ;;  %v4295_v3 = vadd.f32 %v11508_v31, %v15201_v19  ;;  %v5038_v5 = vrot.slane %v4750_v18, 1 }
 0x5e1   : > { %v5221_v59 = vpop.permute.xlu0 %5220  ;;  %v15561_v45 = vsel %vm13425_vm12, %v4526_v42, %v4614_v20  ;;  %v4934_v42 = vshll.u32 %v4750_v18, 16 }
 0x5e2   : > { %v4456_v30 = vadd.f32 %v15184_v17, %v4295_v3  ;;  %v15564_v35 = vpop.permute.xlu1 %5098  ;;  %5210 = vrot.lane.b32.xlu0 %v15561_v45, %s12662_s9  ;;  %v5438_v58 = vsel %vm2345_vm0, %v5407_v0, %v5221_v59  ;;  %v5037_v9 = vrot.slane %v15561_v45, 1  ;;  %v4929_v17 = vshll.u32 %v15561_v45, 16 }
 0x5e3   : > { %5086 = vrot.lane.b32.xlu1 %v15537_v14, %s12660_s19  ;;  %5675 = vmatprep.mubr.bf16.mxu0 %v5438_v58  ;;  %v4507_v46 = vmax.f32 %v4453_v49, 0.0  ;;  %v4927_v26 = vshrl.u32 %v15561_v45, 16  ;;  %v4936_v63 = vrot.slane %v4934_v42, 1 }
 0x5e4   : > { %v4508_v43 = vmax.f32 %v4456_v30, 0.0  ;;  %5676 = vmatmul.mubr.bf16.vlgmr.msra.gmra.mrb[140].mxu0 %v5311_v57  ;;  %v5039_v62 = vsel %vm2037_vm13, %v5037_v9, %v5038_v5  ;;  %v4931_v37 = vrot.slane %v4929_v17, 1  ;;  %v5363_v5 = vsel %vm983_vm8, %v15283_v56, %v15541_v16 }
 0x5e5   : > { %v11509_v15 = vpop.f32.mrb[136].mxu1  ;;  %12203 = vmatprep.mubr.msk.bf16.mxu1 %vm983_vm8, %v5039_v62 }
 0x5e6   : > { %v4527_v27 = vpack.c.bf16 %v4508_v43, %v4507_v46  ;;  %v15579_v41 = vpop.permute.xlu1 %5068  ;;  %v11510_v36 = vpop.f32.mrb[137].mxu1  ;;  %5180 = vrot.lane.b32.xlu0 %v5039_v62, %s12660_s19  ;;  %v4932_v52 = vor.u32 %v4931_v37, %v4927_v26 }
 0x5e7   : > { %v11511_v61 = vadd.f32 %v11510_v36, %v11509_v15  ;;  %5148 = vrot.lane.b32.xlu1 %v15561_v45, %s12661_s8  ;;  %v11512_v34 = vpop.f32.mrb[138].mxu1 }
 0x5e8   : > { %v4616_v1 = vshrl.u32 %v4527_v27, 16  ;;  %v11513_v29 = vpop.f32.mrb[139].mxu1  ;;  %v15586_v20 = vsel %vm1826_vm14, %v4932_v52, %v4936_v63  ;;  %v4619_v49 = vshll.u32 %v4527_v27, 16  ;;  %v4703_v3 = vrot.slane %v4527_v27, 7  ;;  %v12641_v63 = vld [vmem:[%s18222_s4 + $0x1] ss:$0 sm:$0xff] }
 0x5e9   : > { %v4300_v39 = vadd.f32 %v11511_v61, %v15201_v19  ;;  %v11514_v31 = vadd.f32 %v11513_v29, %v11512_v34 }
 0x5ea   : > { %v5193_v18 = vpop.permute.xlu1 %5192  ;;  %5240 = vrot.lane.b32.xlu0 %v15586_v20, %s12661_s8  ;;  %v4618_v13 = vrot.slane %v4616_v1, 7 }
 0x5eb   : > { %v4461_v0 = vadd.f32 %v15178_v6, %v4300_v39  ;;  %v4303_v59 = vadd.f32 %v11514_v31, %v15201_v19  ;;  %5118 = vrot.lane.b32.xlu1 %v5039_v62, %s12662_s9  ;;  %v15593_v30 = vpop.permute.xlu0 %5162  ;;  %v5409_v6 = vsel %vm2314_vm15, %v5363_v5, %v5193_v18 }
 0x5ec   : > { %v4621_v58 = vor.u32 %v4619_v49, %v4618_v13  ;;  %v4751_v9 = vsel %vm13425_vm12, %v4618_v13, %v4703_v3 }
 0x5ed   : > { %v4464_v57 = vadd.f32 %v15182_v38, %v4303_v59  ;;  %v11515_v17 = vpop.f32.mrb[140].mxu1  ;;  %v4509_v42 = vmax.f32 %v4461_v0, 0.0  ;;  %v5041_v26 = vrot.slane %v4751_v9, 1  ;;  %v4946_v34 = vshll.u32 %v4751_v9, 16 }
 0x5ee   : > { %v15602_v46 = vpop.permute.xlu1 %5130  ;;  %v11516_v19 = vpop.f32.mrb[141].mxu1  ;;  %v15606_v43 = vsel %vm13425_vm12, %v4527_v27, %v4621_v58  ;;  %v5314_v27 = vsel %vm2345_vm0, %v15554_v24, %v15544_v40 }
 0x5ef   : > { %v4510_v62 = vmax.f32 %v4464_v57, 0.0  ;;  %v11517_v15 = vadd.f32 %v11516_v19, %v11515_v17  ;;  %5212 = vrot.lane.b32.xlu0 %v15606_v43, %s12662_s9  ;;  %5088 = vrot.lane.b32.xlu1 %v15586_v20, %s12660_s19  ;;  %v11518_v38 = vpop.f32.mrb[142].mxu1  ;;  %v5223_v56 = vpop.permute.xlu0 %5222  ;;  %v5040_v16 = vrot.slane %v15606_v43, 1  ;;  %v4941_v61 = vshll.u32 %v15606_v43, 16 }
 0x5f0   : > { %v11519_v37 = vpop.f32.mrb[143].mxu1  ;;  %v5441_v36 = vsel %vm2345_vm0, %v5409_v6, %v5223_v56  ;;  %v4939_v40 = vshrl.u32 %v15606_v43, 16  ;;  %v4948_v59 = vrot.slane %v4946_v34, 1  ;;  %v5253_v17 = vsel %vm983_vm8, %v15256_v21, %v15579_v41 }
 0x5f1   : > { %v4528_v52 = vpack.c.bf16 %v4510_v62, %v4509_v42  ;;  %v4308_v1 = vadd.f32 %v12641_v63, %v11517_v15  ;;  %v11520_v29 = vadd.f32 %v11519_v37, %v11518_v38  ;;  %5683 = vmatprep.mubr.bf16.mxu0 %v5441_v36  ;;  %v5042_v39 = vsel %vm2037_vm13, %v5040_v16, %v5041_v26 }
 0x5f2   : > { %v15622_v31 = vpop.permute.xlu1 %5100  ;;  %12204 = vmatmul.mubr.msk.bf16.gmra.mrb[168].mxu1 %vm983_vm8, %v5042_v39  ;;  %5684 = vmatmul.mubr.bf16.gmra.mrb[144].mxu0 %v5314_v27  ;;  %v4943_v24 = vrot.slane %v4941_v61, 1  ;;  %v5366_v27 = vsel %vm983_vm8, %v15311_v12, %v15593_v30 }
 0x5f3   : > { %v4623_v18 = vshrl.u32 %v4528_v52, 16  ;;  %v4469_v13 = vadd.f32 %v15194_v2, %v4308_v1  ;;  %v4311_v49 = vadd.f32 %v12641_v63, %v11520_v29  ;;  %5182 = vrot.lane.b32.xlu0 %v5042_v39, %s12660_s19  ;;  %5150 = vrot.lane.b32.xlu1 %v15606_v43, %s12661_s8  ;;  %v4626_v57 = vshll.u32 %v4528_v52, 16 }
 0x5f4   : > { %v5195_v3 = vpop.permute.xlu0 %5194  ;;  %v4944_v0 = vor.u32 %v4943_v24, %v4939_v40  ;;  %v4704_v19 = vrot.slane %v4528_v52, 7  ;;  %v5283_v1 = vsel %vm2314_vm15, %v5253_v17, %v15564_v35 }
 0x5f5   : > { %v4472_v58 = vadd.f32 %v15203_v33, %v4311_v49  ;;  %v11521_v9 = vpop.f32.mrb[144].mxu1  ;;  %v4625_v5 = vrot.slane %v4623_v18, 7  ;;  %v4511_v62 = vmax.f32 %v4469_v13, 0.0  ;;  %v5411_v40 = vsel %vm2314_vm15, %v5366_v27, %v5195_v3 }
 0x5f6   : > { %v15634_v42 = vpop.permute.xlu1 %5070  ;;  %v11522_v2 = vpop.f32.mrb[145].mxu1  ;;  %v15637_v6 = vsel %vm1826_vm14, %v4944_v0, %v4948_v59 }
 0x5f7   : > { %v4512_v15 = vmax.f32 %v4472_v58, 0.0  ;;  %v11523_v38 = vadd.f32 %v11522_v2, %v11521_v9  ;;  %5242 = vrot.lane.b32.xlu0 %v15637_v6, %s12661_s8  ;;  %5120 = vrot.lane.b32.xlu1 %v5042_v39, %s12662_s9  ;;  %v11524_v33 = vpop.f32.mrb[146].mxu1  ;;  %v4628_v56 = vor.u32 %v4626_v57, %v4625_v5  ;;  %v4752_v21 = vsel %vm13425_vm12, %v4625_v5, %v4704_v19 }
 0x5f8   : > { %v11525_v16 = vpop.f32.mrb[147].mxu1  ;;  %v5165_v26 = vpop.permute.xlu0 %5164  ;;  %v5044_v30 = vrot.slane %v4752_v21, 1  ;;  %v4958_v18 = vshll.u32 %v4752_v21, 16 }
 0x5f9   : > { %v4529_v41 = vpack.c.bf16 %v4512_v15, %v4511_v62  ;;  %v4316_v37 = vadd.f32 %v12641_v63, %v11523_v38  ;;  %v11526_v36 = vadd.f32 %v11525_v16, %v11524_v33  ;;  %v15651_v34 = vsel %vm13425_vm12, %v4528_v52, %v4628_v56 }
 0x5fa   : > { %v15647_v61 = vpop.permute.xlu1 %5132  ;;  %v5043_v12 = vrot.slane %v15651_v34, 1  ;;  %v4953_v52 = vshll.u32 %v15651_v34, 16  ;;  %v4951_v59 = vshrl.u32 %v15651_v34, 16  ;;  %v4960_v19 = vrot.slane %v4958_v18, 1 }
 0x5fb   : > { %v4477_v29 = vadd.f32 %v15192_v51, %v4316_v37  ;;  %v4319_v39 = vadd.f32 %v12641_v63, %v11526_v36  ;;  %5214 = vrot.lane.b32.xlu0 %v15651_v34, %s12662_s9  ;;  %5090 = vrot.lane.b32.xlu1 %v15637_v6, %s12660_s19  ;;  %v4630_v13 = vshrl.u32 %v4529_v41, 16  ;;  %v4633_v35 = vshll.u32 %v4529_v41, 16 }
 0x5fc   : > { %v5225_v24 = vpop.permute.xlu0 %5224  ;;  %v5045_v63 = vsel %vm2037_vm13, %v5043_v12, %v5044_v30  ;;  %v4955_v3 = vrot.slane %v4953_v52, 1  ;;  %v4705_v9 = vrot.slane %v4529_v41, 7 }
 0x5fd   : > { %v4480_v51 = vadd.f32 %v15196_v25, %v4319_v39  ;;  %v5444_v49 = vsel %vm2345_vm0, %v5411_v40, %v5225_v24  ;;  %12207 = vmatprep.mubr.msk.bf16.mxu1 %vm983_vm8, %v5045_v63  ;;  %v4632_v58 = vrot.slane %v4630_v13, 7  ;;  %v4513_v5 = vmax.f32 %v4477_v29, 0.0 }
 0x5fe   : > { %v15666_v0 = vpop.permute.xlu1 %5102  ;;  %5691 = vmatprep.mubr.bf16.mxu0 %v5444_v49  ;;  %v5317_v25 = vsel %vm2345_vm0, %v5283_v1, %v15602_v46  ;;  %v4956_v2 = vor.u32 %v4955_v3, %v4951_v59  ;;  %v5369_v24 = vsel %vm983_vm8, %v15339_v4, %v5165_v26 }
 0x5ff   : > { %v4514_v57 = vmax.f32 %v4480_v51, 0.0  ;;  %5184 = vrot.lane.b32.xlu0 %v5045_v63, %s12660_s19  ;;  %5152 = vrot.lane.b32.xlu1 %v15651_v34, %s12661_s8  ;;  %v4635_v62 = vor.u32 %v4633_v35, %v4632_v58  ;;  %v4753_v15 = vsel %vm13425_vm12, %v4632_v58, %v4705_v9 }
 0x600   : > { %5692 = vmatmul.mubr.bf16.gmra.mrb[148].mxu0 %v5317_v25  ;;  %v5197_v17 = vpop.permute.xlu0 %5196  ;;  %v15678_v56 = vsel %vm1826_vm14, %v4956_v2, %v4960_v19  ;;  %v5047_v21 = vrot.slane %v4753_v15, 1  ;;  %v4970_v35 = vshll.u32 %v4753_v15, 16 }
 0x601   : > { %v4530_v38 = vpack.c.bf16 %v4514_v57, %v4513_v5  ;;  %v15682_v16 = vsel %vm13425_vm12, %v4529_v41, %v4635_v62  ;;  %v5255_v41 = vsel %vm983_vm8, %v15298_v11, %v15634_v42  ;;  %v5413_v11 = vsel %vm2314_vm15, %v5369_v24, %v5197_v17 }
 0x602   : > { %v5073_v33 = vpop.permute.xlu1 %5072  ;;  %v5046_v46 = vrot.slane %v15682_v16, 1  ;;  %v4965_v27 = vshll.u32 %v15682_v16, 16  ;;  %v4963_v13 = vshrl.u32 %v15682_v16, 16  ;;  %v5285_v4 = vsel %vm2314_vm15, %v5255_v41, %v15622_v31 }
 0x603   : > { %5244 = vrot.lane.b32.xlu0 %v15678_v56, %s12661_s8  ;;  %5122 = vrot.lane.b32.xlu1 %v5045_v63, %s12662_s9  ;;  %v4637_v37 = vshrl.u32 %v4530_v38, 16  ;;  %v4640_v1 = vshll.u32 %v4530_v38, 16  ;;  %v4706_v12 = vrot.slane %v4530_v38, 7  ;;  %v5320_v9 = vsel %vm2345_vm0, %v5285_v4, %v15647_v61 }
 0x604   : > { %v5167_v36 = vpop.permute.xlu0 %5166  ;;  %v15690_v29 = vsel %vm2037_vm13, %v5046_v46, %v5047_v21  ;;  %v4967_v40 = vrot.slane %v4965_v27, 1  ;;  %v4972_v57 = vrot.slane %v4970_v35, 1  ;;  %v5257_v15 = vsel %vm983_vm8, %v15324_v48, %v5073_v33 }
 0x605   : > { %v4639_v39 = vrot.slane %v4637_v37, 7  ;;  %12208 = vmatmul.mubr.msk.bf16.gmra.mrb[172].mxu1 %vm983_vm8, %v15690_v29  ;;  %v5372_v21 = vsel %vm983_vm8, %v15367_v28, %v5167_v36 }
 0x606   : > { %v5135_v30 = vpop.permute.xlu1 %5134  ;;  %v4968_v3 = vor.u32 %v4967_v40, %v4963_v13 }
 0x607   : > { %5216 = vrot.lane.b32.xlu0 %v15682_v16, %s12662_s9  ;;  %5092 = vrot.lane.b32.xlu1 %v15678_v56, %s12660_s19  ;;  %v4642_v52 = vor.u32 %v4640_v1, %v4639_v39  ;;  %v4754_v18 = vsel %vm13425_vm12, %v4639_v39, %v4706_v12  ;;  %v5287_v12 = vsel %vm2314_vm15, %v5257_v15, %v15666_v0 }
 0x608   : > { %v5227_v42 = vpop.permute.xlu0 %5226  ;;  %v5064_v59 = vrot.slane %v4754_v18, 1  ;;  %v15722_v17 = vsel %vm1826_vm14, %v4968_v3, %v4972_v57  ;;  %v5057_v62 = vshll.u32 %v4754_v18, 16  ;;  %v5323_v28 = vsel %vm2345_vm0, %v5287_v12, %v5135_v30 }
 0x609   : > { %v5447_v51 = vsel %vm2345_vm0, %v5413_v11, %v5227_v42  ;;  %v4738_v26 = vsel %vm13425_vm12, %v4530_v38, %v4642_v52 }
 0x60a   : > { %v5105_v63 = vpop.permute.xlu1 %5104  ;;  %5699 = vmatprep.mubr.bf16.mxu0 %v5447_v51  ;;  %v5063_v49 = vrot.slane %v4738_v26, 1  ;;  %v5052_v58 = vshll.u32 %v4738_v26, 16  ;;  %v5050_v19 = vshrl.u32 %v4738_v26, 16  ;;  %v5059_v1 = vrot.slane %v5057_v62, 1 }
 0x60b   : > { %5186 = vrot.lane.b32.xlu0 %v15690_v29, %s12660_s19  ;;  %5154 = vrot.lane.b32.xlu1 %v15682_v16, %s12661_s8 }
 0x60c   : > { %5700 = vmatmul.mubr.bf16.gmra.mrb[152].mxu0 %v5320_v9  ;;  %v5199_v31 = vpop.permute.xlu0 %5198  ;;  %v5065_v5 = vsel %vm2037_vm13, %v5063_v49, %v5064_v59  ;;  %v5054_v2 = vrot.slane %v5052_v58, 1 }
 0x60d   : > { %12211 = vmatprep.mubr.msk.bf16.mxu1 %vm983_vm8, %v5065_v5  ;;  %v5415_v37 = vsel %vm2314_vm15, %v5372_v21, %v5199_v31 }
 0x60e   : > { %v5075_v25 = vpop.permute.xlu1 %5074  ;;  %12212 = vmatmul.mubr.msk.bf16.gmra.mrb[176].mxu1 %vm983_vm8, %v5065_v5  ;;  %v5055_v46 = vor.u32 %v5054_v2, %v5050_v19 }
 0x60f   : > { %5246 = vrot.lane.b32.xlu0 %v15722_v17, %s12661_s8  ;;  %5094 = vrot.lane.b32.xlu1 %v15722_v17, %s12660_s19  ;;  %v5259_v24 = vsel %vm983_vm8, %v15352_v10, %v5075_v25 }
 0x610   : > { %v5169_v61 = vpop.permute.xlu0 %5168  ;;  %v15739_v48 = vsel %vm1826_vm14, %v5055_v46, %v5059_v1  ;;  %v5289_v42 = vsel %vm2314_vm15, %v5259_v24, %v5105_v63 }
 0x611   : > { %v5375_v52 = vsel %vm983_vm8, %v15395_v8, %v5169_v61 }
 0x612   : > { %v5137_v38 = vpop.permute.xlu1 %5136 }
 0x613   : > { %5218 = vrot.lane.b32.xlu0 %v4738_v26, %s12662_s9  ;;  %5156 = vrot.lane.b32.xlu1 %v4738_v26, %s12661_s8  ;;  %v5326_v35 = vsel %vm2345_vm0, %v5289_v42, %v5137_v38 }
 0x614   : > { %v5229_v27 = vpop.permute.xlu0 %5228 }
 0x615   : > { %v5450_v39 = vsel %vm2345_vm0, %v5415_v37, %v5229_v27 }
 0x616   : > { %v5107_v41 = vpop.permute.xlu1 %5106  ;;  %5707 = vmatprep.mubr.bf16.mxu0 %v5450_v39 }
 0x617   : > { %5248 = vrot.lane.b32.xlu0 %v15739_v48, %s12661_s8  ;;  %5708 = vmatmul.mubr.bf16.gmra.mrb[156].mxu0 %v5323_v28 }
 0x618   : > { %v5201_v33 = vpop.permute.xlu0 %5200 }
 0x619   : > { %v5417_v30 = vsel %vm2314_vm15, %v5375_v52, %v5201_v33 }
 0x61a   : > { %v5077_v36 = vpop.permute.xlu1 %5076 }
 0x61b   : > { %5188 = vrot.lane.b32.xlu0 %v5065_v5, %s12660_s19  ;;  %v5261_v8 = vsel %vm983_vm8, %v15380_v7, %v5077_v36 }
 0x61c   : > { %v5171_v40 = vpop.permute.xlu0 %5170  ;;  %v5291_v3 = vsel %vm2314_vm15, %v5261_v8, %v5107_v41 }
 0x61e   : > { %v5139_v0 = vpop.permute.xlu1 %5138 }
 0x61f   : > { %5124 = vrot.lane.b32.xlu0 %v15690_v29, %s12662_s9  ;;  %v5378_v29 = vsel %vm983_vm8, %v15423_v44, %v5171_v40  ;;  %v5329_v9 = vsel %vm2345_vm0, %v5291_v3, %v5139_v0 }
 0x620   : > { %v5231_v18 = vpop.permute.xlu0 %5230 }
 0x621   : > { %v5453_v11 = vsel %vm2345_vm0, %v5417_v30, %v5231_v18 }
 0x622   : > { %v5109_v13 = vpop.permute.xlu1 %5108  ;;  %5715 = vmatprep.mubr.bf16.mxu0 %v5453_v11 }
 0x623   : > { %5716 = vmatmul.mubr.bf16.gmra.mrb[160].mxu0 %v5326_v35 }
 0x624   : > { %v5203_v10 = vpop.permute.xlu0 %5202 }
 0x625   : > { %v5419_v49 = vsel %vm2314_vm15, %v5378_v29, %v5203_v10 }
 0x626   : > { %v5079_v51 = vpop.permute.xlu1 %5078 }
 0x627   : > { %v5263_v7 = vsel %vm983_vm8, %v15408_v47, %v5079_v51 }
 0x628   : > { %v5173_v4 = vpop.permute.xlu0 %5172  ;;  %v5293_v62 = vsel %vm2314_vm15, %v5263_v7, %v5109_v13 }
 0x629   : > { %v5381_v44 = vsel %vm983_vm8, %v15451_v55, %v5173_v4 }
 0x62a   : > { %v5141_v26 = vpop.permute.xlu1 %5140 }
 0x62b   : > { %v5332_v38 = vsel %vm2345_vm0, %v5293_v62, %v5141_v26 }
 0x62c   : > { %v5233_v59 = vpop.permute.xlu0 %5232 }
 0x62d   : > { %v5456_v63 = vsel %vm2345_vm0, %v5419_v49, %v5233_v59 }
 0x62e   : > { %v5111_v58 = vpop.permute.xlu1 %5110  ;;  %5723 = vmatprep.mubr.bf16.mxu0 %v5456_v63 }
 0x62f   : > { %5724 = vmatmul.mubr.bf16.gmra.mrb[164].mxu0 %v5329_v9 }
 0x630   : > { %v5205_v31 = vpop.permute.xlu0 %5204 }
 0x631   : > { %v5421_v2 = vsel %vm2314_vm15, %v5381_v44, %v5205_v31 }
 0x632   : > { %v5081_v5 = vpop.permute.xlu1 %5080 }
 0x633   : > { %v5265_v47 = vsel %vm983_vm8, %v15436_v22, %v5081_v5 }
 0x634   : > { %v5175_v57 = vpop.permute.xlu0 %5174  ;;  %v5295_v41 = vsel %vm2314_vm15, %v5265_v47, %v5111_v58 }
 0x635   : > { %v5384_v55 = vsel %vm983_vm8, %v15479_v23, %v5175_v57 }
 0x636   : > { %v5143_v25 = vpop.permute.xlu1 %5142 }
 0x637   : > { %v5335_v33 = vsel %vm2345_vm0, %v5295_v41, %v5143_v25 }
 0x638   : > { %v5235_v61 = vpop.permute.xlu0 %5234 }
 0x639   : > { %v5459_v19 = vsel %vm2345_vm0, %v5421_v2, %v5235_v61 }
 0x63a   : > { %v5113_v15 = vpop.permute.xlu1 %5112  ;;  %5731 = vmatprep.mubr.bf16.mxu0 %v5459_v19 }
 0x63b   : > { %5732 = vmatmul.mubr.bf16.gmra.mrb[168].mxu0 %v5332_v38 }
 0x63c   : > { %v5207_v46 = vpop.permute.xlu0 %5206 }
 0x63d   : > { %v5423_v1 = vsel %vm2314_vm15, %v5384_v55, %v5207_v46 }
 0x63e   : > { %v5083_v21 = vpop.permute.xlu1 %5082 }
 0x63f   : > { %v5267_v23 = vsel %vm983_vm8, %v15464_v50, %v5083_v21 }
 0x640   : > { %v5177_v37 = vpop.permute.xlu0 %5176  ;;  %v5297_v10 = vsel %vm2314_vm15, %v5267_v23, %v5113_v15 }
 0x641   : > { %v5387_v18 = vsel %vm983_vm8, %v15507_v53, %v5177_v37 }
 0x642   : > { %v5145_v27 = vpop.permute.xlu1 %5144 }
 0x643   : > { %v5338_v4 = vsel %vm2345_vm0, %v5297_v10, %v5145_v27 }
 0x644   : > { %v5237_v39 = vpop.permute.xlu0 %5236 }
 0x645   : > { %v5462_v12 = vsel %vm2345_vm0, %v5423_v1, %v5237_v39 }
 0x646   : > { %v5115_v28 = vpop.permute.xlu1 %5114  ;;  %5739 = vmatprep.mubr.bf16.mxu0 %v5462_v12 }
 0x647   : > { %5740 = vmatmul.mubr.bf16.gmra.mrb[172].mxu0 %v5335_v33 }
 0x648   : > { %v5209_v36 = vpop.permute.xlu0 %5208 }
 0x649   : > { %v5425_v42 = vsel %vm2314_vm15, %v5387_v18, %v5209_v36 }
 0x64a   : > { %v5085_v40 = vpop.permute.xlu1 %5084 }
 0x64b   : > { %v5269_v53 = vsel %vm983_vm8, %v15492_v54, %v5085_v40 }
 0x64c   : > { %v15779_v24 = vpop.f32.mrb[148].mxu1  ;;  %v5179_v22 = vpop.permute.xlu0 %5178  ;;  %v5299_v58 = vsel %vm2314_vm15, %v5269_v53, %v5115_v28 }
 0x64d   : > { %v15781_v0 = vpop.f32.mrb[149].mxu1  ;;  %v5390_v49 = vsel %vm983_vm8, %v15537_v14, %v5179_v22 }
 0x64e   : > { %v5147_v52 = vpop.permute.xlu1 %5146  ;;  %v15785_v30 = vpop.f32.mrb[150].mxu1 }
 0x64f   : > { %v15789_v11 = vpop.f32.mrb[151].mxu1  ;;  %v5341_v31 = vsel %vm2345_vm0, %v5299_v58, %v5147_v52 }
 0x650   : > { %v5239_v13 = vpop.permute.xlu0 %5238 }
 0x651   : > { %v5465_v35 = vsel %vm2345_vm0, %v5425_v42, %v5239_v13 }
 0x652   : > { %v5117_v51 = vpop.permute.xlu1 %5116  ;;  %5747 = vmatprep.mubr.bf16.mxu0 %v5465_v35 }
 0x653   : > { %5748 = vmatmul.mubr.bf16.gmra.mrb[176].mxu0 %v5338_v4 }
 0x654   : > { %v5211_v50 = vpop.permute.xlu0 %5210 }
 0x655   : > { %v5427_v59 = vsel %vm2314_vm15, %v5390_v49, %v5211_v50 }
 0x656   : > { %v5087_v8 = vpop.permute.xlu1 %5086 }
 0x657   : > { %v5271_v2 = vsel %vm983_vm8, %v15522_v60, %v5087_v8  ;;  %v12453_v60 = vld [vmem:[%s18221_s3 + $0x230] sm:$0xff]  }
 0x658   : > { %v5181_v26 = vpop.permute.xlu0 %5180  ;;  %v5301_v21 = vsel %vm2314_vm15, %v5271_v2, %v5117_v51  ;;  %12215 = vmatprep.subr.bf16.mxu0 %v12453_v60 }
 0x659   : > { %v5393_v19 = vsel %vm983_vm8, %v15586_v20, %v5181_v26  ;;  %v12454_v20 = vld [vmem:[%s18221_s3 + $0x238] sm:$0xff]   ;;  %12216 = vmatpush3.bf16.msra.mxu0 %v12453_v60 }
 0x65a   : > { %v5149_v29 = vpop.permute.xlu1 %5148  ;;  %12217 = vmatprep.subr.bf16.mxu0 %v12454_v20  ;;  %v12457_v60 = vld [vmem:[%s18221_s3 + $0x1f8] sm:$0xff]  }
 0x65b   : > { %v5344_v37 = vsel %vm2345_vm0, %v5301_v21, %v5149_v29 }
 0x65c   : > { %v5241_v63 = vpop.permute.xlu0 %5240 }
 0x65d   : > { %v5468_v3 = vsel %vm2345_vm0, %v5427_v59, %v5241_v63  ;;  %12218 = vmatpush3.bf16.msra.mxu0 %v12454_v20  ;;  %v12458_v20 = vld [vmem:[%s18221_s3 + $0x1b8] sm:$0xff]  }
 0x65e   : > { %v5119_v9 = vpop.permute.xlu1 %5118  ;;  %5755 = vmatprep.mubr.bf16.mxu0 %v5468_v3 }
 0x65f   : > { %5756 = vmatmul.mubr.bf16.gmra.mrb[180].mxu0 %v5341_v31 }
 0x661   : > { %v5213_v5 = vpop.permute.xlu0 %5212 }
 0x662   : > { %v5089_v57 = vpop.permute.xlu1 %5088  ;;  %v5429_v62 = vsel %vm2314_vm15, %v5393_v19, %v5213_v5 }
 0x663   : > { %v5273_v1 = vsel %vm983_vm8, %v15561_v45, %v5089_v57 }
 0x664   : > { %v15803_v7 = vpop.f32.mrb[152].mxu1  ;;  %v5303_v36 = vsel %vm2314_vm15, %v5273_v1, %v5119_v9  ;;  %v12460_v1 = vld [vmem:[%s18221_s3 + $0x1c0] sm:$0xff]  }
 0x665   : > { %v5183_v54 = vpop.permute.xlu0 %5182  ;;  %v15805_v25 = vpop.f32.mrb[153].mxu1 }
 0x666   : > { %v5151_v14 = vpop.permute.xlu1 %5150  ;;  %v15807_v44 = vpop.f32.mrb[154].mxu1  ;;  %v5396_v39 = vsel %vm983_vm8, %v15637_v6, %v5183_v54 }
 0x667   : > { %v15811_v61 = vpop.f32.mrb[155].mxu1  ;;  %v5347_v40 = vsel %vm2345_vm0, %v5303_v36, %v5151_v14 }
 0x669   : > { %v5243_v15 = vpop.permute.xlu0 %5242 }
 0x66a   : > { %v5121_v38 = vpop.permute.xlu1 %5120  ;;  %v5471_v46 = vsel %vm2345_vm0, %v5429_v62, %v5243_v15 }
 0x66b   : > { %5763 = vmatprep.mubr.bf16.mxu0 %v5471_v46  ;;  %v12456_v46 = vld [vmem:[%s18221_s3 + $0x1b0] sm:$0xff]  }
 0x66c   : > { %5764 = vmatmul.mubr.bf16.gmra.mrb[184].mxu0 %v5344_v37 }
 0x66d   : > { %v5215_v47 = vpop.permute.xlu0 %5214 }
 0x66e   : > { %v5091_v27 = vpop.permute.xlu1 %5090  ;;  %v5431_v41 = vsel %vm2314_vm15, %v5396_v39, %v5215_v47 }
 0x66f   : > { %v5275_v42 = vsel %vm983_vm8, %v15606_v43, %v5091_v27 }
 0x670   : > { %v5305_v8 = vsel %vm2314_vm15, %v5275_v42, %v5121_v38 }
 0x671   : > { %v5185_v55 = vpop.permute.xlu0 %5184 }
 0x672   : > { %v5153_v12 = vpop.permute.xlu1 %5152  ;;  %v5399_v35 = vsel %vm983_vm8, %v15678_v56, %v5185_v55  ;;  %v12459_v55 = vld [vmem:[%s18221_s3 + $0x200] sm:$0xff]  }
 0x673   : > { %v5350_v26 = vsel %vm2345_vm0, %v5305_v8, %v5153_v12  ;;  %v15902_v12 = vld [vmem:[%s18222_s4 + $0x2] ss:$0 sm:$0xff] }
 0x675   : > { %v5245_v28 = vpop.permute.xlu0 %5244 }
 0x676   : > { %v5474_v33 = vsel %vm2345_vm0, %v5431_v41, %v5245_v28  ;;  %v5123_v23 = vpop.permute.xlu1 %5122 }
 0x677   : > { %5771 = vmatprep.mubr.bf16.mxu0 %v5474_v33 }
 0x678   : > { %5772 = vmatmul.mubr.bf16.gmra.mrb[188].mxu0 %v5347_v40 }
 0x679   : > { %v5217_v22 = vpop.permute.xlu0 %5216 }
 0x67a   : > { %v5093_v10 = vpop.permute.xlu1 %5092  ;;  %v5433_v51 = vsel %vm2314_vm15, %v5399_v35, %v5217_v22  ;;  %v12461_v35 = vld [vmem:[%s18221_s3 + $0x208] sm:$0xff]  }
 0x67b   : > { %v5277_v43 = vsel %vm983_vm8, %v15651_v34, %v5093_v10  ;;  %v12462_v10 = vld [vmem:[%s18221_s3 + $0x1c8] sm:$0xff]  }
 0x67c   : > { %v15833_v52 = vpop.f32.mrb[156].mxu1  ;;  %v5307_v3 = vsel %vm2314_vm15, %v5277_v43, %v5123_v23 }
 0x67d   : > { %v5187_v45 = vpop.permute.xlu0 %5186  ;;  %v15835_v18 = vpop.f32.mrb[157].mxu1 }
 0x67e   : > { %v15837_v6 = vpop.f32.mrb[158].mxu1  ;;  %v5155_v29 = vpop.permute.xlu1 %5154  ;;  %v5402_v56 = vsel %vm983_vm8, %v15722_v17, %v5187_v45 }
 0x67f   : > { %v15841_v13 = vpop.f32.mrb[159].mxu1  ;;  %v5353_v58 = vsel %vm2345_vm0, %v5307_v3, %v5155_v29  ;;  %v12463_v3 = vld [vmem:[%s18221_s3 + $0x210] sm:$0xff]  }
 0x681   : > { %v5247_v4 = vpop.permute.xlu0 %5246 }
 0x682   : > { %v5477_v50 = vsel %vm2345_vm0, %v5433_v51, %v5247_v4  ;;  %v5095_v9 = vpop.permute.xlu1 %5094 }
 0x683   : > { %5779 = vmatprep.mubr.bf16.mxu0 %v5477_v50  ;;  %v5279_v57 = vsel %vm983_vm8, %v15682_v16, %v5095_v9  ;;  %v12455_v16 = vld [vmem:[%s18221_s3 + $0x1f0] sm:$0xff]  }
 0x684   : > { %5780 = vmatmul.mubr.bf16.gmra.mrb[192].mxu0 %v5350_v26  ;;  %11675 = vmatprep.subr.bf16.mxu1 %v12455_v16 }
 0x685   : > { %v5219_v53 = vpop.permute.xlu0 %5218  ;;  %11676 = vmatpush3.bf16.msra.mxu1 %v12456_v46 }
 0x686   : > { %v5435_v49 = vsel %vm2314_vm15, %v5402_v56, %v5219_v53  ;;  %v5157_v14 = vpop.permute.xlu1 %5156  ;;  %11677 = vmatprep.subr.bf16.mxu1 %v12457_v60 }
 0x689   : > { %v5249_v59 = vpop.permute.xlu0 %5248  ;;  %11678 = vmatpush3.bf16.msra.mxu1 %v12458_v20 }
 0x68a   : > { %v5480_v63 = vsel %vm2345_vm0, %v5435_v49, %v5249_v59  ;;  %11679 = vmatprep.subr.bf16.mxu1 %v12459_v55  ;;  %v12466_v55 = vld [vmem:[%s18221_s3 + $0x1d8] sm:$0xff]  }
 0x68b   : > { %5787 = vmatprep.mubr.bf16.mxu0 %v5480_v63 }
 0x68c   : > { %5788 = vmatmul.mubr.bf16.gmra.mrb[196].mxu0 %v5353_v58  ;;  %v12464_v58 = vld [vmem:[%s18221_s3 + $0x1d0] sm:$0xff]  }
 0x68d   : > { %v5189_v31 = vpop.permute.xlu0 %5188  ;;  %11680 = vmatpush3.bf16.msra.mxu1 %v12460_v1 }
 0x68e   : > { %v5405_v5 = vsel %vm983_vm8, %v15739_v48, %v5189_v31  ;;  %11681 = vmatprep.subr.bf16.mxu1 %v12461_v35 }
 0x68f   : > { %v5436_v34 = vsel %vm2314_vm15, %v5405_v5, %v5219_v53 }
 0x690   : > { %v5482_v17 = vsel %vm2345_vm0, %v5436_v34, %v5249_v59 }
 0x691   : > { %v5125_v54 = vpop.permute.xlu0 %5124  ;;  %5795 = vmatprep.mubr.bf16.mxu0 %v5482_v17  ;;  %11682 = vmatpush3.bf16.msra.mxu1 %v12462_v10 }
 0x692   : > { %v5309_v2 = vsel %vm2314_vm15, %v5279_v57, %v5125_v54  ;;  %11683 = vmatprep.subr.bf16.mxu1 %v12463_v3 }
 0x693   : > { %v5356_v19 = vsel %vm2345_vm0, %v5309_v2, %v5157_v14 }
 0x694   : > { %5796 = vmatmul.mubr.bf16.gmra.mrb[200].mxu0 %v5356_v19  ;;  %v15865_v62 = vpop.f32.mrb[160].mxu1 }
 0x695   : > { %v15867_v15 = vpop.f32.mrb[161].mxu1  ;;  %11684 = vmatpush3.bf16.msra.mxu1 %v12464_v58  ;;  %v12467_v58 = vld [vmem:[%s18221_s3 + $0x220] sm:$0xff]  }
 0x696   : > { %v15869_v48 = vpop.f32.mrb[162].mxu1 }
 0x697   : > { %v15871_v38 = vpop.f32.mrb[163].mxu1 }
 0x6ac   : > { %v15879_v21 = vpop.f32.mrb[164].mxu1 }
 0x6ad   : > { %v15881_v37 = vpop.f32.mrb[165].mxu1 }
 0x6ae   : > { %v15883_v47 = vpop.f32.mrb[166].mxu1 }
 0x6af   : > { %v15891_v27 = vpop.f32.mrb[167].mxu1 }
 0x6b7   : > { %v11561_v39 = vpop.f32.mrb[140].mxu0 }
 0x6b8   : > { %v11562_v41 = vpop.f32.mrb[141].mxu0 }
 0x6b9   : > { %v11563_v28 = vadd.f32 %v11562_v41, %v11561_v39  ;;  %v11564_v33 = vpop.f32.mrb[142].mxu0 }
 0x6ba   : > { %v11565_v36 = vpop.f32.mrb[143].mxu0 }
 0x6bb   : > { %v5678_v40 = vadd.f32 %v11563_v28, %v15902_v12  ;;  %v11566_v22 = vadd.f32 %v11565_v36, %v11564_v33 }
 0x6bd   : > { %v5839_v23 = vadd.f32 %v15781_v0, %v5678_v40  ;;  %v5681_v45 = vadd.f32 %v11566_v22, %v15902_v12 }
 0x6bf   : > { %v5842_v42 = vadd.f32 %v15789_v11, %v5681_v45  ;;  %v5965_v51 = vmax.f32 %v5839_v23, 0.0 }
 0x6c1   : > { %v5966_v4 = vmax.f32 %v5842_v42, 0.0 }
 0x6c3   : > { %v5997_v50 = vpack.c.bf16 %v5966_v4, %v5965_v51 }
 0x6c5   : > { %v15914_v8 = vpop.f32.mrb[168].mxu1  ;;  %v11567_v0 = vpop.f32.mrb[144].mxu0  ;;  %v6014_v26 = vshrl.u32 %v5997_v50, 16  ;;  %v6017_v29 = vshll.u32 %v5997_v50, 16  ;;  %v6173_v63 = vrot.slane %v5997_v50, 7 }
 0x6c6   : > { %v15916_v53 = vpop.f32.mrb[169].mxu1  ;;  %v11568_v11 = vpop.f32.mrb[145].mxu0 }
 0x6c7   : > { %v11569_v43 = vadd.f32 %v11568_v11, %v11567_v0  ;;  %v15918_v56 = vpop.f32.mrb[170].mxu1  ;;  %v11570_v49 = vpop.f32.mrb[146].mxu0  ;;  %v6016_v59 = vrot.slane %v6014_v26, 7 }
 0x6c8   : > { %v15926_v9 = vpop.f32.mrb[171].mxu1  ;;  %v11571_v31 = vpop.f32.mrb[147].mxu0 }
 0x6c9   : > { %v5686_v5 = vadd.f32 %v11569_v43, %v15902_v12  ;;  %v11572_v34 = vadd.f32 %v11571_v31, %v11570_v49  ;;  %v6019_v17 = vor.u32 %v6017_v29, %v6016_v59  ;;  %v6221_v57 = vsel %vm13425_vm12, %v6016_v59, %v6173_v63  ;;  %v12468_v31 = vld [vmem:[%s18221_s3 + $0x1e0] sm:$0xff]  }
 0x6ca   : > { %v6487_v16 = vrot.slane %v6221_v57, 1  ;;  %v6284_v60 = vshll.u32 %v6221_v57, 16 }
 0x6cb   : > { %v5847_v54 = vadd.f32 %v15779_v24, %v5686_v5  ;;  %v5689_v14 = vadd.f32 %v11572_v34, %v15902_v12  ;;  %v15935_v2 = vsel %vm13425_vm12, %v5997_v50, %v6019_v17  ;;  %v12465_v24 = vld [vmem:[%s18221_s3 + $0x218] sm:$0xff]  }
 0x6cc   : > { %6608 = vrot.lane.b32.xlu1 %v15935_v2, %s12661_s8  ;;  %v6486_v19 = vrot.slane %v15935_v2, 1  ;;  %v6279_v46 = vshll.u32 %v15935_v2, 16  ;;  %v6277_v39 = vshrl.u32 %v15935_v2, 16  ;;  %11685 = vmatprep.subr.bf16.mxu1 %v12465_v24  ;;  %v6286_v36 = vrot.slane %v6284_v60, 1  ;;  %v12470_v24 = vld [vmem:[%s18221_s3 + $0x1e8] sm:$0xff]  }
 0x6cd   : > { %v5850_v20 = vadd.f32 %v15785_v30, %v5689_v14  ;;  %v5967_v28 = vmax.f32 %v5847_v54, 0.0  ;;  %11686 = vmatpush3.bf16.msra.mxu1 %v12466_v55 }
 0x6ce   : > { %v6488_v1 = vsel %vm2037_vm13, %v6486_v19, %v6487_v16  ;;  %v6281_v41 = vrot.slane %v6279_v46, 1  ;;  %11687 = vmatprep.subr.bf16.mxu1 %v12467_v58 }
 0x6cf   : > { %v5968_v33 = vmax.f32 %v5850_v20, 0.0  ;;  %6640 = vrot.lane.b32.xlu0 %v6488_v1, %s12660_s19 }
 0x6d0   : > { %6578 = vrot.lane.b32.xlu1 %v6488_v1, %s12662_s9  ;;  %v6282_v30 = vor.u32 %v6281_v41, %v6277_v39 }
 0x6d1   : > { %v5998_v40 = vpack.c.bf16 %v5968_v33, %v5967_v28  ;;  %11688 = vmatpush3.bf16.msra.mxu1 %v12468_v31 }
 0x6d2   : > { %v15953_v22 = vsel %vm1826_vm14, %v6282_v30, %v6286_v36 }
 0x6d3   : > { %v6021_v23 = vshrl.u32 %v5998_v40, 16  ;;  %v11573_v45 = vpop.f32.mrb[148].mxu0  ;;  %v6024_v4 = vshll.u32 %v5998_v40, 16  ;;  %v6174_v50 = vrot.slane %v5998_v40, 7 }
 0x6d4   : > { %v11574_v42 = vpop.f32.mrb[149].mxu0  ;;  %6548 = vrot.lane.b32.xlu1 %v15953_v22, %s12660_s19 }
 0x6d5   : > { %v11575_v35 = vadd.f32 %v11574_v42, %v11573_v45  ;;  %v11576_v10 = vpop.f32.mrb[150].mxu0  ;;  %v6023_v51 = vrot.slane %v6021_v23, 7 }
 0x6d6   : > { %v11577_v0 = vpop.f32.mrb[151].mxu0 }
 0x6d7   : > { %v5694_v26 = vadd.f32 %v11575_v35, %v15902_v12  ;;  %v11578_v11 = vadd.f32 %v11577_v0, %v11576_v10  ;;  %v6026_v29 = vor.u32 %v6024_v4, %v6023_v51  ;;  %v6222_v43 = vsel %vm13425_vm12, %v6023_v51, %v6174_v50 }
 0x6d8   : > { %v15962_v63 = vpop.f32.mrb[172].mxu1  ;;  %v6490_v17 = vrot.slane %v6222_v43, 1  ;;  %v6296_v54 = vshll.u32 %v6222_v43, 16 }
 0x6d9   : > { %v5855_v49 = vadd.f32 %v15805_v25, %v5694_v26  ;;  %v5697_v59 = vadd.f32 %v11578_v11, %v15902_v12  ;;  %v15966_v3 = vsel %vm13425_vm12, %v5998_v40, %v6026_v29  ;;  %v12469_v25 = vld [vmem:[%s18221_s3 + $0x228] sm:$0xff]   ;;  %v15977_v5 = vpop.f32.mrb[173].mxu1 }
 0x6da   : > { %6672 = vrot.lane.b32.xlu0 %v15966_v3, %s12662_s9  ;;  %6610 = vrot.lane.b32.xlu1 %v15966_v3, %s12661_s8  ;;  %v6489_v34 = vrot.slane %v15966_v3, 1  ;;  %v6291_v57 = vshll.u32 %v15966_v3, 16  ;;  %v15986_v19 = vpop.f32.mrb[174].mxu1  ;;  %v6289_v60 = vshrl.u32 %v15966_v3, 16  ;;  %v6298_v39 = vrot.slane %v6296_v54, 1 }
 0x6db   : > { %v5858_v14 = vadd.f32 %v15811_v61, %v5697_v59  ;;  %v15988_v16 = vpop.f32.mrb[175].mxu1  ;;  %v5969_v55 = vmax.f32 %v5855_v49, 0.0  ;;  %11689 = vmatprep.subr.bf16.mxu1 %v12469_v25 }
 0x6dc   : > { %v6491_v46 = vsel %vm2037_vm13, %v6489_v34, %v6490_v17  ;;  %v6293_v20 = vrot.slane %v6291_v57, 1  ;;  %11690 = vmatpush3.bf16.msra.mxu1 %v12470_v24 }
 0x6dd   : > { %v5970_v1 = vmax.f32 %v5858_v14, 0.0  ;;  %12219 = vmatprep.mubr.msk.bf16.mxu0 %vm983_vm8, %v6491_v46 }
 0x6de   : > { %6642 = vrot.lane.b32.xlu0 %v6491_v46, %s12660_s19  ;;  %6580 = vrot.lane.b32.xlu1 %v6491_v46, %s12662_s9  ;;  %v6294_v61 = vor.u32 %v6293_v20, %v6289_v60 }
 0x6df   : > { %v5999_v41 = vpack.c.bf16 %v5970_v1, %v5969_v55  ;;  %v11579_v28 = vpop.f32.mrb[152].mxu0 }
 0x6e0   : > { %v11580_v33 = vpop.f32.mrb[153].mxu0  ;;  %v15999_v30 = vsel %vm1826_vm14, %v6294_v61, %v6298_v39 }
 0x6e1   : > { %v6028_v36 = vshrl.u32 %v5999_v41, 16  ;;  %v11581_v40 = vadd.f32 %v11580_v33, %v11579_v28  ;;  %v11582_v23 = vpop.f32.mrb[154].mxu0  ;;  %v16001_v45 = vpop.f32.mrb[176].mxu1  ;;  %v6175_v42 = vrot.slane %v5999_v41, 7  ;;  %v6031_v26 = vshll.u32 %v5999_v41, 16 }
 0x6e2   : > { %v11583_v35 = vpop.f32.mrb[155].mxu0  ;;  %v16003_v10 = vpop.f32.mrb[177].mxu1  ;;  %6702 = vrot.lane.b32.xlu0 %v15999_v30, %s12661_s8  ;;  %6550 = vrot.lane.b32.xlu1 %v15999_v30, %s12660_s19 }
 0x6e3   : > { %v5702_v51 = vadd.f32 %v11581_v40, %v15902_v12  ;;  %v11584_v4 = vadd.f32 %v11583_v35, %v11582_v23  ;;  %v16010_v50 = vpop.f32.mrb[178].mxu1  ;;  %v6030_v0 = vrot.slane %v6028_v36, 7 }
 0x6e4   : > { %v16012_v11 = vpop.f32.mrb[179].mxu1 }
 0x6e5   : > { %v5863_v29 = vadd.f32 %v15803_v7, %v5702_v51  ;;  %v5705_v43 = vadd.f32 %v11584_v4, %v15902_v12  ;;  %v6033_v49 = vor.u32 %v6031_v26, %v6030_v0  ;;  %v6223_v59 = vsel %vm13425_vm12, %v6030_v0, %v6175_v42 }
 0x6e6   : > { %v6493_v34 = vrot.slane %v6223_v59, 1  ;;  %v6308_v17 = vshll.u32 %v6223_v59, 16 }
 0x6e7   : > { %v5866_v58 = vadd.f32 %v15807_v44, %v5705_v43  ;;  %v16021_v31 = vsel %vm13425_vm12, %v5999_v41, %v6033_v49  ;;  %v5971_v57 = vmax.f32 %v5863_v29, 0.0 }
 0x6e8   : > { %6674 = vrot.lane.b32.xlu1 %v16021_v31, %s12662_s9  ;;  %v6492_v25 = vrot.slane %v16021_v31, 1  ;;  %v6303_v7 = vshll.u32 %v16021_v31, 16  ;;  %v6301_v44 = vshrl.u32 %v16021_v31, 16  ;;  %v6310_v39 = vrot.slane %v6308_v17, 1 }
 0x6e9   : > { %v5972_v54 = vmax.f32 %v5866_v58, 0.0 }
 0x6ea   : > { %v11585_v14 = vpop.f32.mrb[156].mxu0  ;;  %v6494_v46 = vsel %vm2037_vm13, %v6492_v25, %v6493_v34  ;;  %v6305_v60 = vrot.slane %v6303_v7, 1 }
 0x6eb   : > { %v6000_v20 = vpack.c.bf16 %v5972_v54, %v5971_v57  ;;  %12220 = vmatmul.mubr.msk.bf16.vlgmr.msra.gmra.mrb[204].mxu0 %vm983_vm8, %v6494_v46  ;;  %6644 = vrot.lane.b32.xlu0 %v6494_v46, %s12660_s19  ;;  %v11586_v24 = vpop.f32.mrb[157].mxu0 }
 0x6ec   : > { %v11587_v55 = vadd.f32 %v11586_v24, %v11585_v14  ;;  %6612 = vrot.lane.b32.xlu1 %v16021_v31, %s12661_s8  ;;  %v11588_v1 = vpop.f32.mrb[158].mxu0  ;;  %v6306_v61 = vor.u32 %v6305_v60, %v6301_v44 }
 0x6ed   : > { %v6035_v41 = vshrl.u32 %v6000_v20, 16  ;;  %v11589_v28 = vpop.f32.mrb[159].mxu0  ;;  %v6038_v42 = vshll.u32 %v6000_v20, 16  ;;  %v6176_v35 = vrot.slane %v6000_v20, 7 }
 0x6ee   : > { %v5710_v33 = vadd.f32 %v11587_v55, %v15902_v12  ;;  %v11590_v36 = vadd.f32 %v11589_v28, %v11588_v1  ;;  %v16035_v40 = vsel %vm1826_vm14, %v6306_v61, %v6310_v39 }
 0x6ef   : > { %6704 = vrot.lane.b32.xlu0 %v16035_v40, %s12661_s8  ;;  %v6037_v23 = vrot.slane %v6035_v41, 7 }
 0x6f0   : > { %v5871_v51 = vadd.f32 %v15835_v18, %v5710_v33  ;;  %v5713_v4 = vadd.f32 %v11590_v36, %v15902_v12  ;;  %6582 = vrot.lane.b32.xlu1 %v6494_v46, %s12662_s9 }
 0x6f1   : > { %v6040_v0 = vor.u32 %v6038_v42, %v6037_v23  ;;  %v6224_v26 = vsel %vm13425_vm12, %v6037_v23, %v6176_v35 }
 0x6f2   : > { %v5874_v29 = vadd.f32 %v15841_v13, %v5713_v4  ;;  %v5973_v43 = vmax.f32 %v5871_v51, 0.0  ;;  %v6496_v59 = vrot.slane %v6224_v26, 1  ;;  %v6320_v34 = vshll.u32 %v6224_v26, 16 }
 0x6f3   : > { %v16047_v49 = vsel %vm13425_vm12, %v6000_v20, %v6040_v0 }
 0x6f4   : > { %v5974_v58 = vmax.f32 %v5874_v29, 0.0  ;;  %6676 = vrot.lane.b32.xlu0 %v16047_v49, %s12662_s9  ;;  %6552 = vrot.lane.b32.xlu1 %v16035_v40, %s12660_s19  ;;  %v6495_v18 = vrot.slane %v16047_v49, 1  ;;  %v6315_v25 = vshll.u32 %v16047_v49, 16  ;;  %v6313_v57 = vshrl.u32 %v16047_v49, 16 }
 0x6f5   : > { %v6322_v24 = vrot.slane %v6320_v34, 1 }
 0x6f6   : > { %v6001_v7 = vpack.c.bf16 %v5974_v58, %v5973_v43  ;;  %v11591_v13 = vpop.f32.mrb[160].mxu0  ;;  %v6497_v17 = vsel %vm2037_vm13, %v6495_v18, %v6496_v59  ;;  %v6317_v54 = vrot.slane %v6315_v25, 1 }
 0x6f7   : > { %12223 = vmatprep.mubr.msk.bf16.mxu0 %vm983_vm8, %v6497_v17  ;;  %v11592_v14 = vpop.f32.mrb[161].mxu0 }
 0x6f8   : > { %v6042_v46 = vshrl.u32 %v6001_v7, 16  ;;  %v11593_v44 = vadd.f32 %v11592_v14, %v11591_v13  ;;  %6646 = vrot.lane.b32.xlu0 %v6497_v17, %s12660_s19  ;;  %6614 = vrot.lane.b32.xlu1 %v16047_v49, %s12661_s8  ;;  %v11594_v60 = vpop.f32.mrb[162].mxu0  ;;  %v6318_v20 = vor.u32 %v6317_v54, %v6313_v57  ;;  %v6045_v1 = vshll.u32 %v6001_v7, 16 }
 0x6f9   : > { %v11595_v55 = vpop.f32.mrb[163].mxu0  ;;  %v6177_v33 = vrot.slane %v6001_v7, 7 }
 0x6fa   : > { %v5718_v61 = vadd.f32 %v11593_v44, %v15902_v12  ;;  %v11596_v39 = vadd.f32 %v11595_v55, %v11594_v60  ;;  %v16063_v41 = vsel %vm1826_vm14, %v6318_v20, %v6322_v24  ;;  %v6044_v28 = vrot.slane %v6042_v46, 7 }
 0x6fc   : > { %v5879_v36 = vadd.f32 %v15833_v52, %v5718_v61  ;;  %v5721_v23 = vadd.f32 %v11596_v39, %v15902_v12  ;;  %6706 = vrot.lane.b32.xlu0 %v16063_v41, %s12661_s8  ;;  %6584 = vrot.lane.b32.xlu1 %v6497_v17, %s12662_s9  ;;  %v6047_v42 = vor.u32 %v6045_v1, %v6044_v28 }
 0x6fd   : > { %v6225_v35 = vsel %vm13425_vm12, %v6044_v28, %v6177_v33 }
 0x6fe   : > { %v5882_v51 = vadd.f32 %v15837_v6, %v5721_v23  ;;  %v16075_v4 = vsel %vm13425_vm12, %v6001_v7, %v6047_v42  ;;  %v6499_v52 = vrot.slane %v6225_v35, 1  ;;  %v6332_v29 = vshll.u32 %v6225_v35, 16 }
 0x6ff   : > { %v6498_v0 = vrot.slane %v16075_v4, 1  ;;  %v6327_v26 = vshll.u32 %v16075_v4, 16  ;;  %v5975_v43 = vmax.f32 %v5879_v36, 0.0  ;;  %v6325_v58 = vshrl.u32 %v16075_v4, 16 }
 0x700   : > { %v5976_v59 = vmax.f32 %v5882_v51, 0.0  ;;  %6678 = vrot.lane.b32.xlu0 %v16075_v4, %s12662_s9  ;;  %6554 = vrot.lane.b32.xlu1 %v16063_v41, %s12660_s19  ;;  %v6334_v17 = vrot.slane %v6332_v29, 1 }
 0x701   : > { %v6500_v6 = vsel %vm2037_vm13, %v6498_v0, %v6499_v52  ;;  %v6329_v18 = vrot.slane %v6327_v26, 1 }
 0x702   : > { %v6002_v25 = vpack.c.bf16 %v5976_v59, %v5975_v43  ;;  %v11597_v34 = vpop.f32.mrb[164].mxu0  ;;  %12224 = vmatmul.mubr.msk.bf16.gmra.mrb[208].mxu0 %vm983_vm8, %v6500_v6 }
 0x703   : > { %v11598_v7 = vpop.f32.mrb[165].mxu0  ;;  %v6330_v13 = vor.u32 %v6329_v18, %v6325_v58 }
 0x704   : > { %v6049_v57 = vshrl.u32 %v6002_v25, 16  ;;  %v11599_v54 = vadd.f32 %v11598_v7, %v11597_v34  ;;  %6648 = vrot.lane.b32.xlu0 %v6500_v6, %s12660_s19  ;;  %6616 = vrot.lane.b32.xlu1 %v16075_v4, %s12661_s8  ;;  %v11600_v14 = vpop.f32.mrb[166].mxu0  ;;  %v6052_v55 = vshll.u32 %v6002_v25, 16  ;;  %v6178_v1 = vrot.slane %v6002_v25, 7 }
 0x705   : > { %v11601_v46 = vpop.f32.mrb[167].mxu0  ;;  %v16090_v44 = vsel %vm1826_vm14, %v6330_v13, %v6334_v17 }
 0x706   : > { %v5726_v60 = vadd.f32 %v11599_v54, %v15902_v12  ;;  %v11602_v20 = vadd.f32 %v11601_v46, %v11600_v14  ;;  %v6051_v24 = vrot.slane %v6049_v57, 7 }
 0x708   : > { %v5887_v61 = vadd.f32 %v15867_v15, %v5726_v60  ;;  %v5729_v39 = vadd.f32 %v11602_v20, %v15902_v12  ;;  %6708 = vrot.lane.b32.xlu0 %v16090_v44, %s12661_s8  ;;  %6586 = vrot.lane.b32.xlu1 %v6500_v6, %s12662_s9  ;;  %v6054_v28 = vor.u32 %v6052_v55, %v6051_v24 }
 0x709   : > { %v6226_v33 = vsel %vm13425_vm12, %v6051_v24, %v6178_v1 }
 0x70a   : > { %v5890_v36 = vadd.f32 %v15871_v38, %v5729_v39  ;;  %v16103_v23 = vsel %vm13425_vm12, %v6002_v25, %v6054_v28  ;;  %v6502_v15 = vrot.slane %v6226_v33, 1  ;;  %v6344_v51 = vshll.u32 %v6226_v33, 16 }
 0x70b   : > { %v6501_v42 = vrot.slane %v16103_v23, 1  ;;  %v6339_v35 = vshll.u32 %v16103_v23, 16  ;;  %v5977_v0 = vmax.f32 %v5887_v61, 0.0  ;;  %v6337_v26 = vshrl.u32 %v16103_v23, 16 }
 0x70c   : > { %v5978_v52 = vmax.f32 %v5890_v36, 0.0  ;;  %6680 = vrot.lane.b32.xlu0 %v16103_v23, %s12662_s9  ;;  %6556 = vrot.lane.b32.xlu1 %v16090_v44, %s12660_s19  ;;  %v6346_v18 = vrot.slane %v6344_v51, 1 }
 0x70d   : > { %v6503_v38 = vsel %vm2037_vm13, %v6501_v42, %v6502_v15  ;;  %v6341_v29 = vrot.slane %v6339_v35, 1 }
 0x70e   : > { %v6003_v43 = vpack.c.bf16 %v5978_v52, %v5977_v0  ;;  %v11603_v59 = vpop.f32.mrb[168].mxu0  ;;  %12227 = vmatprep.mubr.msk.bf16.mxu0 %vm983_vm8, %v6503_v38 }
 0x70f   : > { %v11604_v6 = vpop.f32.mrb[169].mxu0  ;;  %v6342_v58 = vor.u32 %v6341_v29, %v6337_v26 }
 0x710   : > { %v6056_v25 = vshrl.u32 %v6003_v43, 16  ;;  %v11605_v34 = vadd.f32 %v11604_v6, %v11603_v59  ;;  %6650 = vrot.lane.b32.xlu0 %v6503_v38, %s12660_s19  ;;  %6618 = vrot.lane.b32.xlu1 %v16103_v23, %s12661_s8  ;;  %v11606_v7 = vpop.f32.mrb[170].mxu0  ;;  %v6059_v46 = vshll.u32 %v6003_v43, 16  ;;  %v6179_v60 = vrot.slane %v6003_v43, 7 }
 0x711   : > { %v11607_v13 = vpop.f32.mrb[171].mxu0  ;;  %v16118_v17 = vsel %vm1826_vm14, %v6342_v58, %v6346_v18 }
 0x712   : > { %v5734_v57 = vadd.f32 %v11605_v34, %v15902_v12  ;;  %v11608_v54 = vadd.f32 %v11607_v13, %v11606_v7  ;;  %v6058_v14 = vrot.slane %v6056_v25, 7 }
 0x714   : > { %v5895_v20 = vadd.f32 %v15865_v62, %v5734_v57  ;;  %v5737_v24 = vadd.f32 %v11608_v54, %v15902_v12  ;;  %6710 = vrot.lane.b32.xlu0 %v16118_v17, %s12661_s8  ;;  %6588 = vrot.lane.b32.xlu1 %v6503_v38, %s12662_s9  ;;  %v6061_v55 = vor.u32 %v6059_v46, %v6058_v14 }
 0x715   : > { %v6227_v1 = vsel %vm13425_vm12, %v6058_v14, %v6179_v60 }
 0x716   : > { %v5898_v61 = vadd.f32 %v15869_v48, %v5737_v24  ;;  %v16131_v39 = vsel %vm13425_vm12, %v6003_v43, %v6061_v55  ;;  %v6505_v62 = vrot.slane %v6227_v1, 1  ;;  %v6356_v36 = vshll.u32 %v6227_v1, 16 }
 0x717   : > { %v6504_v28 = vrot.slane %v16131_v39, 1  ;;  %v6351_v33 = vshll.u32 %v16131_v39, 16  ;;  %v5979_v42 = vmax.f32 %v5895_v20, 0.0  ;;  %v6349_v35 = vshrl.u32 %v16131_v39, 16 }
 0x718   : > { %v5980_v15 = vmax.f32 %v5898_v61, 0.0  ;;  %6682 = vrot.lane.b32.xlu0 %v16131_v39, %s12662_s9  ;;  %6558 = vrot.lane.b32.xlu1 %v16118_v17, %s12660_s19  ;;  %v6358_v29 = vrot.slane %v6356_v36, 1 }
 0x719   : > { %v6506_v48 = vsel %vm2037_vm13, %v6504_v28, %v6505_v62  ;;  %v6353_v51 = vrot.slane %v6351_v33, 1 }
 0x71a   : > { %v6004_v0 = vpack.c.bf16 %v5980_v15, %v5979_v42  ;;  %v11609_v52 = vpop.f32.mrb[172].mxu0  ;;  %12228 = vmatmul.mubr.msk.bf16.gmra.mrb[212].mxu0 %vm983_vm8, %v6506_v48 }
 0x71b   : > { %v11610_v38 = vpop.f32.mrb[173].mxu0  ;;  %v6354_v26 = vor.u32 %v6353_v51, %v6349_v35 }
 0x71c   : > { %v6063_v43 = vshrl.u32 %v6004_v0, 16  ;;  %v11611_v59 = vadd.f32 %v11610_v38, %v11609_v52  ;;  %6652 = vrot.lane.b32.xlu0 %v6506_v48, %s12660_s19  ;;  %6620 = vrot.lane.b32.xlu1 %v16131_v39, %s12661_s8  ;;  %v11612_v6 = vpop.f32.mrb[174].mxu0  ;;  %v6066_v13 = vshll.u32 %v6004_v0, 16  ;;  %v6180_v57 = vrot.slane %v6004_v0, 7 }
 0x71d   : > { %v11613_v58 = vpop.f32.mrb[175].mxu0  ;;  %v16146_v18 = vsel %vm1826_vm14, %v6354_v26, %v6358_v29 }
 0x71e   : > { %v5742_v25 = vadd.f32 %v11611_v59, %v15902_v12  ;;  %v11614_v34 = vadd.f32 %v11613_v58, %v11612_v6  ;;  %v6065_v7 = vrot.slane %v6063_v43, 7 }
 0x720   : > { %v5903_v54 = vadd.f32 %v15881_v37, %v5742_v25  ;;  %v5745_v14 = vadd.f32 %v11614_v34, %v15902_v12  ;;  %6712 = vrot.lane.b32.xlu0 %v16146_v18, %s12661_s8  ;;  %6590 = vrot.lane.b32.xlu1 %v6506_v48, %s12662_s9  ;;  %v6068_v46 = vor.u32 %v6066_v13, %v6065_v7 }
 0x721   : > { %v6228_v60 = vsel %vm13425_vm12, %v6065_v7, %v6180_v57 }
 0x722   : > { %v5906_v20 = vadd.f32 %v15891_v27, %v5745_v14  ;;  %v16159_v24 = vsel %vm13425_vm12, %v6004_v0, %v6068_v46  ;;  %v6508_v37 = vrot.slane %v6228_v60, 1  ;;  %v6368_v61 = vshll.u32 %v6228_v60, 16 }
 0x723   : > { %v6507_v55 = vrot.slane %v16159_v24, 1  ;;  %v6363_v1 = vshll.u32 %v16159_v24, 16  ;;  %v5981_v28 = vmax.f32 %v5903_v54, 0.0  ;;  %v6361_v33 = vshrl.u32 %v16159_v24, 16 }
 0x724   : > { %v5982_v62 = vmax.f32 %v5906_v20, 0.0  ;;  %6684 = vrot.lane.b32.xlu0 %v16159_v24, %s12662_s9  ;;  %6560 = vrot.lane.b32.xlu1 %v16146_v18, %s12660_s19  ;;  %v6370_v51 = vrot.slane %v6368_v61, 1 }
 0x725   : > { %v6509_v27 = vsel %vm2037_vm13, %v6507_v55, %v6508_v37  ;;  %v6365_v36 = vrot.slane %v6363_v1, 1 }
 0x726   : > { %v6005_v42 = vpack.c.bf16 %v5982_v62, %v5981_v28  ;;  %v11615_v15 = vpop.f32.mrb[176].mxu0  ;;  %12231 = vmatprep.mubr.msk.bf16.mxu0 %vm983_vm8, %v6509_v27 }
 0x727   : > { %v11616_v48 = vpop.f32.mrb[177].mxu0  ;;  %v6366_v35 = vor.u32 %v6365_v36, %v6361_v33 }
 0x728   : > { %v6070_v0 = vshrl.u32 %v6005_v42, 16  ;;  %v11617_v52 = vadd.f32 %v11616_v48, %v11615_v15  ;;  %6654 = vrot.lane.b32.xlu0 %v6509_v27, %s12660_s19  ;;  %6622 = vrot.lane.b32.xlu1 %v16159_v24, %s12661_s8  ;;  %v11618_v38 = vpop.f32.mrb[178].mxu0  ;;  %v6073_v58 = vshll.u32 %v6005_v42, 16  ;;  %v6181_v25 = vrot.slane %v6005_v42, 7 }
 0x729   : > { %v11619_v26 = vpop.f32.mrb[179].mxu0  ;;  %v16174_v29 = vsel %vm1826_vm14, %v6366_v35, %v6370_v51 }
 0x72a   : > { %v5750_v43 = vadd.f32 %v11617_v52, %v15902_v12  ;;  %v11620_v59 = vadd.f32 %v11619_v26, %v11618_v38  ;;  %v6072_v6 = vrot.slane %v6070_v0, 7 }
 0x72c   : > { %v5911_v34 = vadd.f32 %v15879_v21, %v5750_v43  ;;  %v5753_v7 = vadd.f32 %v11620_v59, %v15902_v12  ;;  %6714 = vrot.lane.b32.xlu0 %v16174_v29, %s12661_s8  ;;  %6592 = vrot.lane.b32.xlu1 %v6509_v27, %s12662_s9  ;;  %v6075_v13 = vor.u32 %v6073_v58, %v6072_v6 }
 0x72d   : > { %v6229_v57 = vsel %vm13425_vm12, %v6072_v6, %v6181_v25 }
 0x72e   : > { %v5914_v54 = vadd.f32 %v15883_v47, %v5753_v7  ;;  %v16187_v14 = vsel %vm13425_vm12, %v6005_v42, %v6075_v13  ;;  %v6511_v21 = vrot.slane %v6229_v57, 1  ;;  %v6380_v20 = vshll.u32 %v6229_v57, 16 }
 0x72f   : > { %v6510_v46 = vrot.slane %v16187_v14, 1  ;;  %v6375_v60 = vshll.u32 %v16187_v14, 16  ;;  %v5983_v55 = vmax.f32 %v5911_v34, 0.0  ;;  %v6373_v1 = vshrl.u32 %v16187_v14, 16 }
 0x730   : > { %v5984_v37 = vmax.f32 %v5914_v54, 0.0  ;;  %6686 = vrot.lane.b32.xlu0 %v16187_v14, %s12662_s9  ;;  %6562 = vrot.lane.b32.xlu1 %v16174_v29, %s12660_s19  ;;  %v6382_v36 = vrot.slane %v6380_v20, 1 }
 0x731   : > { %v6512_v47 = vsel %vm2037_vm13, %v6510_v46, %v6511_v21  ;;  %v6377_v61 = vrot.slane %v6375_v60, 1 }
 0x732   : > { %v6006_v28 = vpack.c.bf16 %v5984_v37, %v5983_v55  ;;  %v11621_v62 = vpop.f32.mrb[180].mxu0  ;;  %12232 = vmatmul.mubr.msk.bf16.gmra.mrb[216].mxu0 %vm983_vm8, %v6512_v47 }
 0x733   : > { %v11622_v27 = vpop.f32.mrb[181].mxu0  ;;  %v6378_v33 = vor.u32 %v6377_v61, %v6373_v1 }
 0x734   : > { %v6077_v42 = vshrl.u32 %v6006_v28, 16  ;;  %v11623_v15 = vadd.f32 %v11622_v27, %v11621_v62  ;;  %6656 = vrot.lane.b32.xlu0 %v6512_v47, %s12660_s19  ;;  %6624 = vrot.lane.b32.xlu1 %v16187_v14, %s12661_s8  ;;  %v11624_v48 = vpop.f32.mrb[182].mxu0  ;;  %v6080_v26 = vshll.u32 %v6006_v28, 16  ;;  %v6182_v43 = vrot.slane %v6006_v28, 7 }
 0x735   : > { %v11625_v35 = vpop.f32.mrb[183].mxu0  ;;  %v16202_v51 = vsel %vm1826_vm14, %v6378_v33, %v6382_v36 }
 0x736   : > { %v5758_v0 = vadd.f32 %v11623_v15, %v15902_v12  ;;  %v11626_v52 = vadd.f32 %v11625_v35, %v11624_v48  ;;  %v6079_v38 = vrot.slane %v6077_v42, 7 }
 0x738   : > { %v5919_v59 = vadd.f32 %v15916_v53, %v5758_v0  ;;  %v5761_v6 = vadd.f32 %v11626_v52, %v15902_v12  ;;  %6716 = vrot.lane.b32.xlu0 %v16202_v51, %s12661_s8  ;;  %6594 = vrot.lane.b32.xlu1 %v6512_v47, %s12662_s9  ;;  %v6082_v58 = vor.u32 %v6080_v26, %v6079_v38 }
 0x739   : > { %v6230_v25 = vsel %vm13425_vm12, %v6079_v38, %v6182_v43 }
 0x73a   : > { %v5922_v34 = vadd.f32 %v15926_v9, %v5761_v6  ;;  %v16215_v7 = vsel %vm13425_vm12, %v6006_v28, %v6082_v58  ;;  %v6514_v53 = vrot.slane %v6230_v25, 1  ;;  %v6392_v54 = vshll.u32 %v6230_v25, 16 }
 0x73b   : > { %v6513_v13 = vrot.slane %v16215_v7, 1  ;;  %v6387_v57 = vshll.u32 %v16215_v7, 16  ;;  %v5985_v46 = vmax.f32 %v5919_v59, 0.0  ;;  %v6385_v60 = vshrl.u32 %v16215_v7, 16 }
 0x73c   : > { %v5986_v21 = vmax.f32 %v5922_v34, 0.0  ;;  %6688 = vrot.lane.b32.xlu0 %v16215_v7, %s12662_s9  ;;  %6564 = vrot.lane.b32.xlu1 %v16202_v51, %s12660_s19  ;;  %v6394_v61 = vrot.slane %v6392_v54, 1 }
 0x73d   : > { %v6515_v9 = vsel %vm2037_vm13, %v6513_v13, %v6514_v53  ;;  %v6389_v20 = vrot.slane %v6387_v57, 1 }
 0x73e   : > { %v6007_v55 = vpack.c.bf16 %v5986_v21, %v5985_v46  ;;  %v16225_v37 = vpop.permute.xlu1 %6608  ;;  %12235 = vmatprep.mubr.msk.bf16.mxu0 %vm983_vm8, %v6515_v9 }
 0x73f   : > { %v11627_v47 = vpop.f32.mrb[184].mxu0  ;;  %v6390_v1 = vor.u32 %v6389_v20, %v6385_v60 }
 0x740   : > { %v6084_v28 = vshrl.u32 %v6007_v55, 16  ;;  %v11628_v62 = vpop.f32.mrb[185].mxu0  ;;  %6658 = vrot.lane.b32.xlu0 %v6515_v9, %s12660_s19  ;;  %6626 = vrot.lane.b32.xlu1 %v16215_v7, %s12661_s8  ;;  %v6087_v48 = vshll.u32 %v6007_v55, 16  ;;  %v6183_v35 = vrot.slane %v6007_v55, 7 }
 0x741   : > { %v11629_v27 = vadd.f32 %v11628_v62, %v11627_v47  ;;  %v11630_v33 = vpop.f32.mrb[186].mxu0  ;;  %v16232_v36 = vsel %vm1826_vm14, %v6390_v1, %v6394_v61  ;;  %v6641_v53 = vpop.permute.xlu0 %6640 }
 0x742   : > { %v11631_v42 = vpop.f32.mrb[187].mxu0  ;;  %v6086_v15 = vrot.slane %v6084_v28, 7  ;;  %v6579_v38 = vpop.permute.xlu1 %6578 }
 0x743   : > { %v5766_v0 = vadd.f32 %v11629_v27, %v15902_v12  ;;  %v11632_v52 = vadd.f32 %v11631_v42, %v11630_v33 }
 0x744   : > { %6718 = vrot.lane.b32.xlu0 %v16232_v36, %s12661_s8  ;;  %6596 = vrot.lane.b32.xlu1 %v6515_v9, %s12662_s9  ;;  %v6089_v26 = vor.u32 %v6087_v48, %v6086_v15  ;;  %v6231_v43 = vsel %vm13425_vm12, %v6086_v15, %v6183_v35 }
 0x745   : > { %v5927_v59 = vadd.f32 %v15914_v8, %v5766_v0  ;;  %v5769_v6 = vadd.f32 %v11632_v52, %v15902_v12  ;;  %v6517_v13 = vrot.slane %v6231_v43, 1  ;;  %v6404_v57 = vshll.u32 %v6231_v43, 16 }
 0x746   : > { %v16244_v58 = vsel %vm13425_vm12, %v6007_v55, %v6089_v26  ;;  %v6549_v21 = vpop.permute.xlu1 %6548 }
 0x747   : > { %v5930_v25 = vadd.f32 %v15918_v56, %v5769_v6  ;;  %v6516_v34 = vrot.slane %v16244_v58, 1  ;;  %v6399_v8 = vshll.u32 %v16244_v58, 16  ;;  %v5987_v54 = vmax.f32 %v5927_v59, 0.0 }
 0x748   : > { %6690 = vrot.lane.b32.xlu0 %v16244_v58, %s12662_s9  ;;  %6566 = vrot.lane.b32.xlu1 %v16232_v36, %s12660_s19  ;;  %v6397_v56 = vshrl.u32 %v16244_v58, 16  ;;  %v6406_v28 = vrot.slane %v6404_v57, 1  ;;  %v6733_v43 = vsel %vm983_vm8, %v15935_v2, %v6549_v21  ;;  %v6842_v57 = vsel %vm983_vm8, %v15953_v22, %v6641_v53 }
 0x749   : > { %v5988_v46 = vmax.f32 %v5930_v25, 0.0  ;;  %v6518_v9 = vsel %vm2037_vm13, %v6516_v34, %v6517_v13  ;;  %v6401_v60 = vrot.slane %v6399_v8, 1 }
 0x74a   : > { %12236 = vmatmul.mubr.msk.bf16.gmra.mrb[220].mxu0 %vm983_vm8, %v6518_v9 }
 0x74b   : > { %v6008_v20 = vpack.c.bf16 %v5988_v46, %v5987_v54  ;;  %v11633_v55 = vpop.f32.mrb[188].mxu0  ;;  %v6402_v61 = vor.u32 %v6401_v60, %v6397_v56  ;;  %v16279_v54 = vsel %vm2314_vm15, %v6733_v43, %v6579_v38 }
 0x74c   : > { %v11634_v47 = vpop.f32.mrb[189].mxu0  ;;  %6660 = vrot.lane.b32.xlu0 %v6518_v9, %s12660_s19  ;;  %6628 = vrot.lane.b32.xlu1 %v16244_v58, %s12661_s8  ;;  %v6673_v1 = vpop.permute.xlu0 %6672 }
 0x74d   : > { %v6091_v62 = vshrl.u32 %v6008_v20, 16  ;;  %v11635_v27 = vadd.f32 %v11634_v47, %v11633_v55  ;;  %v11636_v33 = vpop.f32.mrb[190].mxu0  ;;  %v16259_v42 = vpop.permute.xlu1 %6610  ;;  %v16262_v48 = vsel %vm1826_vm14, %v6402_v61, %v6406_v28  ;;  %v6094_v26 = vshll.u32 %v6008_v20, 16 }
 0x74e   : > { %v11637_v15 = vpop.f32.mrb[191].mxu0  ;;  %v6184_v6 = vrot.slane %v6008_v20, 7  ;;  %v6889_v46 = vsel %vm2314_vm15, %v6842_v57, %v6673_v1  ;;  %v6793_v1 = vsel %vm2345_vm0, %v16279_v54, %v16225_v37 }
 0x74f   : > { %v5774_v35 = vadd.f32 %v11635_v27, %v15902_v12  ;;  %v11638_v0 = vadd.f32 %v11637_v15, %v11636_v33  ;;  %v6093_v52 = vrot.slane %v6091_v62, 7 }
 0x750   : > { %6720 = vrot.lane.b32.xlu0 %v16262_v48, %s12661_s8  ;;  %6598 = vrot.lane.b32.xlu1 %v6518_v9, %s12662_s9  ;;  %v6643_v59 = vpop.permute.xlu0 %6642 }
 0x751   : > { %v5935_v25 = vadd.f32 %v15977_v5, %v5774_v35  ;;  %v5777_v34 = vadd.f32 %v11638_v0, %v15902_v12  ;;  %v16272_v13 = vpop.permute.xlu1 %6580  ;;  %v6096_v8 = vor.u32 %v6094_v26, %v6093_v52  ;;  %v6232_v2 = vsel %vm13425_vm12, %v6093_v52, %v6184_v6 }
 0x752   : > { %v6520_v9 = vrot.slane %v6232_v2, 1  ;;  %v6416_v56 = vshll.u32 %v6232_v2, 16 }
 0x753   : > { %v5938_v21 = vadd.f32 %v15988_v16, %v5777_v34  ;;  %v16285_v5 = vsel %vm13425_vm12, %v6008_v20, %v6096_v8  ;;  %v5989_v60 = vmax.f32 %v5935_v25, 0.0 }
 0x754   : > { %6692 = vrot.lane.b32.xlu0 %v16285_v5, %s12662_s9  ;;  %6568 = vrot.lane.b32.xlu1 %v16262_v48, %s12660_s19  ;;  %v6703_v22 = vpop.permute.xlu0 %6702  ;;  %v6519_v53 = vrot.slane %v16285_v5, 1  ;;  %v6411_v38 = vshll.u32 %v16285_v5, 16  ;;  %v6409_v61 = vshrl.u32 %v16285_v5, 16  ;;  %v6418_v35 = vrot.slane %v6416_v56, 1 }
 0x755   : > { %v5990_v55 = vmax.f32 %v5938_v21, 0.0  ;;  %v16293_v16 = vpop.permute.xlu1 %6550  ;;  %v6920_v20 = vsel %vm2345_vm0, %v6889_v46, %v6703_v22  ;;  %v16316_v21 = vld [vmem:[%s18222_s4 + $0x2] ss:$0 sm:$0xff]  ;;  %v6845_v56 = vsel %vm983_vm8, %v15999_v30, %v6643_v59 }
 0x756   : > { %7157 = vmatprep.mubr.bf16.mxu1 %v6920_v20  ;;  %v6521_v47 = vsel %vm2037_vm13, %v6519_v53, %v6520_v9  ;;  %v6413_v28 = vrot.slane %v6411_v38, 1 }
 0x757   : > { %v6009_v62 = vpack.c.bf16 %v5990_v55, %v5989_v60  ;;  %v11639_v27 = vpop.f32.mrb[192].mxu0  ;;  %12239 = vmatprep.mubr.msk.bf16.mxu0 %vm983_vm8, %v6521_v47  ;;  %7158 = vmatmul.mubr.bf16.vlgmr.msra.gmra.mrb[180].mxu1 %v6793_v1 }
 0x758   : > { %v11640_v33 = vpop.f32.mrb[193].mxu0  ;;  %6662 = vrot.lane.b32.xlu0 %v6521_v47, %s12660_s19  ;;  %6630 = vrot.lane.b32.xlu1 %v16285_v5, %s12661_s8  ;;  %v6414_v15 = vor.u32 %v6413_v28, %v6409_v61 }
 0x759   : > { %v6098_v0 = vshrl.u32 %v6009_v62, 16  ;;  %v11641_v52 = vadd.f32 %v11640_v33, %v11639_v27  ;;  %v11642_v26 = vpop.f32.mrb[194].mxu0  ;;  %v6101_v25 = vshll.u32 %v6009_v62, 16  ;;  %v6185_v2 = vrot.slane %v6009_v62, 7 }
 0x75a   : > { %v11643_v37 = vpop.f32.mrb[195].mxu0  ;;  %v6675_v43 = vpop.permute.xlu1 %6674  ;;  %v16306_v6 = vsel %vm1826_vm14, %v6414_v15, %v6418_v35 }
 0x75b   : > { %v5782_v34 = vadd.f32 %v11641_v52, %v15902_v12  ;;  %v11644_v8 = vadd.f32 %v11643_v37, %v11642_v26  ;;  %v6100_v57 = vrot.slane %v6098_v0, 7  ;;  %v6891_v28 = vsel %vm2314_vm15, %v6845_v56, %v6675_v43 }
 0x75c   : > { %6722 = vrot.lane.b32.xlu0 %v16306_v6, %s12661_s8  ;;  %6600 = vrot.lane.b32.xlu1 %v6521_v47, %s12662_s9  ;;  %v6796_v43 = vsel %vm2345_vm0, %v16279_v54, %v16259_v42 }
 0x75d   : > { %v5943_v46 = vadd.f32 %v15962_v63, %v5782_v34  ;;  %v5785_v22 = vadd.f32 %v16316_v21, %v11644_v8  ;;  %v16319_v53 = vpop.permute.xlu0 %6644  ;;  %v6103_v12 = vor.u32 %v6101_v25, %v6100_v57  ;;  %v6233_v9 = vsel %vm13425_vm12, %v6100_v57, %v6185_v2 }
 0x75e   : > { %v16323_v38 = vpop.permute.xlu1 %6612  ;;  %v6523_v1 = vrot.slane %v6233_v9, 1  ;;  %v6428_v30 = vshll.u32 %v6233_v9, 16 }
 0x75f   : > { %v5946_v63 = vadd.f32 %v15986_v19, %v5785_v22  ;;  %v11645_v60 = vpop.f32.mrb[196].mxu0  ;;  %v16330_v55 = vsel %vm13425_vm12, %v6009_v62, %v6103_v12  ;;  %v5991_v59 = vmax.f32 %v5943_v46, 0.0 }
 0x760   : > { %v11646_v20 = vpop.f32.mrb[197].mxu0  ;;  %6694 = vrot.lane.b32.xlu0 %v16330_v55, %s12662_s9  ;;  %6570 = vrot.lane.b32.xlu1 %v16306_v6, %s12660_s19  ;;  %v6522_v47 = vrot.slane %v16330_v55, 1  ;;  %v6423_v61 = vshll.u32 %v16330_v55, 16  ;;  %v6421_v26 = vshrl.u32 %v16330_v55, 16  ;;  %v6430_v2 = vrot.slane %v6428_v30, 1 }
 0x761   : > { %v5992_v19 = vmax.f32 %v5946_v63, 0.0  ;;  %v11647_v27 = vadd.f32 %v11646_v20, %v11645_v60  ;;  %v11648_v62 = vpop.f32.mrb[198].mxu0  ;;  %v6705_v33 = vpop.permute.xlu0 %6704 }
 0x762   : > { %v11649_v15 = vpop.f32.mrb[199].mxu0  ;;  %v16339_v35 = vpop.permute.xlu1 %6582  ;;  %v6923_v0 = vsel %vm2345_vm0, %v6891_v28, %v6705_v33  ;;  %v6524_v52 = vsel %vm2037_vm13, %v6522_v47, %v6523_v1  ;;  %v6425_v37 = vrot.slane %v6423_v61, 1  ;;  %v6735_v1 = vsel %vm983_vm8, %v15966_v3, %v16293_v16 }
 0x763   : > { %v6010_v25 = vpack.c.bf16 %v5992_v19, %v5991_v59  ;;  %v5790_v34 = vadd.f32 %v16316_v21, %v11647_v27  ;;  %v11650_v8 = vadd.f32 %v11649_v15, %v11648_v62  ;;  %7165 = vmatprep.mubr.bf16.mxu1 %v6923_v0  ;;  %12240 = vmatmul.mubr.msk.bf16.gmra.mrb[224].mxu0 %vm983_vm8, %v6524_v52 }
 0x764   : > { %6664 = vrot.lane.b32.xlu0 %v6524_v52, %s12660_s19  ;;  %6632 = vrot.lane.b32.xlu1 %v16330_v55, %s12661_s8  ;;  %v6426_v57 = vor.u32 %v6425_v37, %v6421_v26  ;;  %v6848_v3 = vsel %vm983_vm8, %v16035_v40, %v16319_v53  ;;  %v6765_v26 = vsel %vm2314_vm15, %v6735_v1, %v16272_v13 }
 0x765   : > { %v6105_v46 = vshrl.u32 %v6010_v25, 16  ;;  %v5951_v22 = vadd.f32 %v16003_v10, %v5790_v34  ;;  %v5793_v12 = vadd.f32 %v16316_v21, %v11650_v8  ;;  %7166 = vmatmul.mubr.bf16.gmra.mrb[184].mxu1 %v6796_v43  ;;  %v6108_v10 = vshll.u32 %v6010_v25, 16 }
 0x766   : > { %v6677_v9 = vpop.permute.xlu0 %6676  ;;  %v16354_v56 = vpop.permute.xlu1 %6552  ;;  %v16357_v63 = vsel %vm1826_vm14, %v6426_v57, %v6430_v2  ;;  %v6186_v54 = vrot.slane %v6010_v25, 7 }
 0x767   : > { %v5954_v60 = vadd.f32 %v16012_v11, %v5793_v12  ;;  %v11651_v20 = vpop.f32.mrb[200].mxu0  ;;  %v6107_v42 = vrot.slane %v6105_v46, 7  ;;  %v5993_v61 = vmax.f32 %v5951_v22, 0.0  ;;  %v6893_v53 = vsel %vm2314_vm15, %v6848_v3, %v6677_v9 }
 0x768   : > { %v11652_v47 = vpop.f32.mrb[201].mxu0  ;;  %6724 = vrot.lane.b32.xlu0 %v16357_v63, %s12661_s8  ;;  %6602 = vrot.lane.b32.xlu1 %v6524_v52, %s12662_s9 }
 0x769   : > { %v5994_v30 = vmax.f32 %v5954_v60, 0.0  ;;  %v11653_v59 = vadd.f32 %v11652_v47, %v11651_v20  ;;  %v11654_v19 = vpop.f32.mrb[202].mxu0  ;;  %v6110_v27 = vor.u32 %v6108_v10, %v6107_v42  ;;  %v6234_v62 = vsel %vm13425_vm12, %v6107_v42, %v6186_v54 }
 0x76a   : > { %v11655_v28 = vpop.f32.mrb[203].mxu0  ;;  %v6647_v11 = vpop.permute.xlu0 %6646  ;;  %v6526_v40 = vrot.slane %v6234_v62, 1  ;;  %v6440_v57 = vshll.u32 %v6234_v62, 16 }
 0x76b   : > { %v6011_v33 = vpack.c.bf16 %v5994_v30, %v5993_v61  ;;  %v5798_v15 = vadd.f32 %v16316_v21, %v11653_v59  ;;  %v11656_v0 = vadd.f32 %v11655_v28, %v11654_v19  ;;  %v16369_v52 = vpop.permute.xlu1 %6614  ;;  %v16376_v16 = vsel %vm13425_vm12, %v6010_v25, %v6110_v27 }
 0x76c   : > { %6572 = vrot.lane.b32.xlu1 %v16357_v63, %s12660_s19  ;;  %6696 = vrot.lane.b32.xlu0 %v16376_v16, %s12662_s9  ;;  %v6525_v8 = vrot.slane %v16376_v16, 1  ;;  %v6435_v43 = vshll.u32 %v16376_v16, 16  ;;  %v6433_v12 = vshrl.u32 %v16376_v16, 16  ;;  %v6442_v1 = vrot.slane %v6440_v57, 1 }
 0x76d   : > { %v5959_v37 = vadd.f32 %v16001_v45, %v5798_v15  ;;  %v5801_v34 = vadd.f32 %v16316_v21, %v11656_v0  ;;  %v6112_v2 = vshrl.u32 %v6011_v33, 16  ;;  %v6115_v46 = vshll.u32 %v6011_v33, 16 }
 0x76e   : > { %v6707_v25 = vpop.permute.xlu0 %6706  ;;  %v6527_v45 = vsel %vm2037_vm13, %v6525_v8, %v6526_v40  ;;  %v6437_v9 = vrot.slane %v6435_v43, 1  ;;  %v6187_v20 = vrot.slane %v6011_v33, 7 }
 0x76f   : > { %v5962_v13 = vadd.f32 %v16010_v50, %v5801_v34  ;;  %v16390_v22 = vpop.permute.xlu1 %6584  ;;  %v6926_v21 = vsel %vm2345_vm0, %v6893_v53, %v6707_v25  ;;  %12243 = vmatprep.mubr.msk.bf16.mxu0 %vm983_vm8, %v6527_v45  ;;  %v6114_v60 = vrot.slane %v6112_v2, 7  ;;  %v5995_v47 = vmax.f32 %v5959_v37, 0.0 }
 0x770   : > { %6634 = vrot.lane.b32.xlu1 %v16376_v16, %s12661_s8  ;;  %6666 = vrot.lane.b32.xlu0 %v6527_v45, %s12660_s19  ;;  %v6799_v50 = vsel %vm2345_vm0, %v6765_v26, %v16323_v38  ;;  %v6438_v54 = vor.u32 %v6437_v9, %v6433_v12  ;;  %v6851_v53 = vsel %vm983_vm8, %v16063_v41, %v6647_v11 }
 0x771   : > { %v5996_v42 = vmax.f32 %v5962_v13, 0.0  ;;  %7173 = vmatprep.mubr.bf16.mxu1 %v6926_v21  ;;  %v6117_v61 = vor.u32 %v6115_v46, %v6114_v60  ;;  %v6235_v30 = vsel %vm13425_vm12, %v6114_v60, %v6187_v20 }
 0x772   : > { %7174 = vmatmul.mubr.bf16.gmra.mrb[188].mxu1 %v6799_v50  ;;  %v6679_v10 = vpop.permute.xlu0 %6678  ;;  %v16404_v28 = vsel %vm1826_vm14, %v6438_v54, %v6442_v1  ;;  %v6529_v62 = vrot.slane %v6235_v30, 1 }
 0x773   : > { %v6012_v59 = vpack.c.bf16 %v5996_v42, %v5995_v47  ;;  %v6555_v19 = vpop.permute.xlu1 %6554  ;;  %v16409_v27 = vsel %vm13425_vm12, %v6011_v33, %v6117_v61  ;;  %v6737_v33 = vsel %vm983_vm8, %v16021_v31, %v16354_v56  ;;  %v6452_v31 = vshll.u32 %v6235_v30, 16 }
 0x774   : > { %6604 = vrot.lane.b32.xlu1 %v6527_v45, %s12662_s9  ;;  %6726 = vrot.lane.b32.xlu0 %v16404_v28, %s12661_s8  ;;  %v6528_v38 = vrot.slane %v16409_v27, 1  ;;  %v6447_v3 = vshll.u32 %v16409_v27, 16  ;;  %v6445_v2 = vshrl.u32 %v16409_v27, 16  ;;  %v6895_v56 = vsel %vm2314_vm15, %v6851_v53, %v6679_v10 }
 0x775   : > { %v6119_v15 = vshrl.u32 %v6012_v59, 16  ;;  %v6122_v26 = vshll.u32 %v6012_v59, 16  ;;  %v6188_v40 = vrot.slane %v6012_v59, 7  ;;  %v6767_v13 = vsel %vm2314_vm15, %v6737_v33, %v16339_v35 }
 0x776   : > { %v6649_v0 = vpop.permute.xlu0 %6648  ;;  %v16416_v34 = vsel %vm2037_vm13, %v6528_v38, %v6529_v62  ;;  %v6449_v25 = vrot.slane %v6447_v3, 1  ;;  %v6802_v12 = vsel %vm2345_vm0, %v6767_v13, %v16369_v52  ;;  %v6454_v47 = vrot.slane %v6452_v31, 1 }
 0x777   : > { %v6617_v37 = vpop.permute.xlu1 %6616  ;;  %v6121_v8 = vrot.slane %v6119_v15, 7  ;;  %12244 = vmatmul.mubr.msk.bf16.gmra.mrb[228].mxu0 %vm983_vm8, %v16416_v34  ;;  %v6854_v62 = vsel %vm983_vm8, %v16090_v44, %v6649_v0 }
 0x778   : > { %6574 = vrot.lane.b32.xlu1 %v16404_v28, %s12660_s19  ;;  %6698 = vrot.lane.b32.xlu0 %v16409_v27, %s12662_s9  ;;  %v6450_v21 = vor.u32 %v6449_v25, %v6445_v2 }
 0x779   : > { %v6124_v43 = vor.u32 %v6122_v26, %v6121_v8  ;;  %v6236_v57 = vsel %vm13425_vm12, %v6121_v8, %v6188_v40 }
 0x77a   : > { %v6709_v41 = vpop.permute.xlu0 %6708  ;;  %v6546_v60 = vrot.slane %v6236_v57, 1  ;;  %v16447_v10 = vsel %vm1826_vm14, %v6450_v21, %v6454_v47  ;;  %v6539_v61 = vshll.u32 %v6236_v57, 16 }
 0x77b   : > { %v6587_v11 = vpop.permute.xlu1 %6586  ;;  %v6929_v46 = vsel %vm2345_vm0, %v6895_v56, %v6709_v41  ;;  %v6220_v45 = vsel %vm13425_vm12, %v6012_v59, %v6124_v43  ;;  %v6739_v59 = vsel %vm983_vm8, %v16047_v49, %v6555_v19 }
 0x77c   : > { %6636 = vrot.lane.b32.xlu1 %v16409_v27, %s12661_s8  ;;  %7181 = vmatprep.mubr.bf16.mxu1 %v6929_v46  ;;  %v6545_v9 = vrot.slane %v6220_v45, 1  ;;  %v6534_v20 = vshll.u32 %v6220_v45, 16  ;;  %v6532_v1 = vshrl.u32 %v6220_v45, 16  ;;  %v6541_v26 = vrot.slane %v6539_v61, 1 }
 0x77d   : > { %6668 = vrot.lane.b32.xlu0 %v16416_v34, %s12660_s19  ;;  %7182 = vmatmul.mubr.bf16.gmra.mrb[192].mxu1 %v6802_v12  ;;  %v6769_v33 = vsel %vm2314_vm15, %v6739_v59, %v16390_v22 }
 0x77e   : > { %v6681_v35 = vpop.permute.xlu0 %6680  ;;  %v6547_v42 = vsel %vm2037_vm13, %v6545_v9, %v6546_v60  ;;  %v6536_v52 = vrot.slane %v6534_v20, 1  ;;  %v6805_v19 = vsel %vm2345_vm0, %v6769_v33, %v6617_v37 }
 0x77f   : > { %v6557_v50 = vpop.permute.xlu1 %6556  ;;  %12247 = vmatprep.mubr.msk.bf16.mxu0 %vm983_vm8, %v6547_v42  ;;  %v6897_v15 = vsel %vm2314_vm15, %v6854_v62, %v6681_v35 }
 0x780   : > { %12248 = vmatmul.mubr.msk.bf16.gmra.mrb[232].mxu0 %vm983_vm8, %v6547_v42  ;;  %6576 = vrot.lane.b32.xlu1 %v16447_v10, %s12660_s19  ;;  %v6537_v38 = vor.u32 %v6536_v52, %v6532_v1  ;;  %v6741_v43 = vsel %vm983_vm8, %v16075_v4, %v6557_v50 }
 0x781   : > { %6728 = vrot.lane.b32.xlu0 %v16447_v10, %s12661_s8  ;;  %v6771_v56 = vsel %vm2314_vm15, %v6741_v43, %v6587_v11 }
 0x782   : > { %v6651_v54 = vpop.permute.xlu0 %6650  ;;  %v16465_v49 = vsel %vm1826_vm14, %v6537_v38, %v6541_v26 }
 0x783   : > { %v6619_v30 = vpop.permute.xlu1 %6618  ;;  %v6857_v22 = vsel %vm983_vm8, %v16118_v17, %v6651_v54 }
 0x784   : > { %6638 = vrot.lane.b32.xlu1 %v6220_v45, %s12661_s8  ;;  %v6808_v41 = vsel %vm2345_vm0, %v6771_v56, %v6619_v30 }
 0x785   : > { %6700 = vrot.lane.b32.xlu0 %v6220_v45, %s12662_s9 }
 0x786   : > { %v6711_v3 = vpop.permute.xlu0 %6710 }
 0x787   : > { %v6589_v8 = vpop.permute.xlu1 %6588  ;;  %v6932_v40 = vsel %vm2345_vm0, %v6897_v15, %v6711_v3 }
 0x788   : > { %7189 = vmatprep.mubr.bf16.mxu1 %v6932_v40 }
 0x789   : > { %6730 = vrot.lane.b32.xlu0 %v16465_v49, %s12661_s8  ;;  %7190 = vmatmul.mubr.bf16.gmra.mrb[196].mxu1 %v6805_v19 }
 0x78a   : > { %v6683_v44 = vpop.permute.xlu0 %6682 }
 0x78b   : > { %v6559_v0 = vpop.permute.xlu1 %6558  ;;  %v6899_v37 = vsel %vm2314_vm15, %v6857_v22, %v6683_v44 }
 0x78c   : > { %v6743_v17 = vsel %vm983_vm8, %v16103_v23, %v6559_v0 }
 0x78d   : > { %6670 = vrot.lane.b32.xlu0 %v6547_v42, %s12660_s19  ;;  %v6773_v60 = vsel %vm2314_vm15, %v6743_v17, %v6589_v8 }
 0x78e   : > { %v6653_v53 = vpop.permute.xlu0 %6652 }
 0x78f   : > { %v6621_v25 = vpop.permute.xlu1 %6620 }
 0x790   : > { %v6811_v20 = vsel %vm2345_vm0, %v6773_v60, %v6621_v25 }
 0x791   : > { %6606 = vrot.lane.b32.xlu0 %v16416_v34, %s12662_s9  ;;  %v6860_v34 = vsel %vm983_vm8, %v16146_v18, %v6653_v53 }
 0x792   : > { %v6713_v57 = vpop.permute.xlu0 %6712 }
 0x793   : > { %v6591_v2 = vpop.permute.xlu1 %6590  ;;  %v6935_v31 = vsel %vm2345_vm0, %v6899_v37, %v6713_v57 }
 0x794   : > { %7197 = vmatprep.mubr.bf16.mxu1 %v6935_v31 }
 0x795   : > { %7198 = vmatmul.mubr.bf16.gmra.mrb[200].mxu1 %v6808_v41 }
 0x796   : > { %v6685_v46 = vpop.permute.xlu0 %6684 }
 0x797   : > { %v6561_v4 = vpop.permute.xlu1 %6560  ;;  %v6901_v21 = vsel %vm2314_vm15, %v6860_v34, %v6685_v46 }
 0x798   : > { %v6745_v23 = vsel %vm983_vm8, %v16131_v39, %v6561_v4 }
 0x799   : > { %v6775_v30 = vsel %vm2314_vm15, %v6745_v23, %v6591_v2 }
 0x79a   : > { %v6655_v13 = vpop.permute.xlu0 %6654 }
 0x79b   : > { %v6623_v45 = vpop.permute.xlu1 %6622  ;;  %v6863_v18 = vsel %vm983_vm8, %v16174_v29, %v6655_v13 }
 0x79c   : > { %v6814_v59 = vsel %vm2345_vm0, %v6775_v30, %v6623_v45 }
 0x79e   : > { %v6715_v12 = vpop.permute.xlu0 %6714 }
 0x79f   : > { %v6593_v9 = vpop.permute.xlu1 %6592  ;;  %v6938_v11 = vsel %vm2345_vm0, %v6901_v21, %v6715_v12 }
 0x7a0   : > { %7205 = vmatprep.mubr.bf16.mxu1 %v6938_v11 }
 0x7a1   : > { %7206 = vmatmul.mubr.bf16.gmra.mrb[204].mxu1 %v6811_v20 }
 0x7a2   : > { %v6687_v47 = vpop.permute.xlu0 %6686 }
 0x7a3   : > { %v6563_v35 = vpop.permute.xlu1 %6562  ;;  %v6903_v52 = vsel %vm2314_vm15, %v6863_v18, %v6687_v47 }
 0x7a4   : > { %v6747_v39 = vsel %vm983_vm8, %v16159_v24, %v6563_v35 }
 0x7a5   : > { %v6777_v19 = vsel %vm2314_vm15, %v6747_v39, %v6593_v9 }
 0x7a6   : > { %v6657_v42 = vpop.permute.xlu0 %6656 }
 0x7a7   : > { %v6625_v50 = vpop.permute.xlu1 %6624  ;;  %v6866_v29 = vsel %vm983_vm8, %v16202_v51, %v6657_v42 }
 0x7a8   : > { %v6817_v44 = vsel %vm2345_vm0, %v6777_v19, %v6625_v50 }
 0x7aa   : > { %v6717_v54 = vpop.permute.xlu0 %6716 }
 0x7ab   : > { %v6595_v1 = vpop.permute.xlu1 %6594  ;;  %v6941_v61 = vsel %vm2345_vm0, %v6903_v52, %v6717_v54 }
 0x7ac   : > { %7213 = vmatprep.mubr.bf16.mxu1 %v6941_v61 }
 0x7ad   : > { %7214 = vmatmul.mubr.bf16.gmra.mrb[208].mxu1 %v6814_v59 }
 0x7ae   : > { %v6689_v38 = vpop.permute.xlu0 %6688 }
 0x7af   : > { %v6565_v62 = vpop.permute.xlu1 %6564  ;;  %v6905_v26 = vsel %vm2314_vm15, %v6866_v29, %v6689_v38 }
 0x7b0   : > { %v6749_v51 = vsel %vm983_vm8, %v16187_v14, %v6565_v62 }
 0x7b1   : > { %v6779_v4 = vsel %vm2314_vm15, %v6749_v51, %v6595_v1 }
 0x7b2   : > { %v6659_v15 = vpop.permute.xlu0 %6658 }
 0x7b3   : > { %v6627_v3 = vpop.permute.xlu1 %6626  ;;  %v6869_v57 = vsel %vm983_vm8, %v16232_v36, %v6659_v15 }
 0x7b4   : > { %v6820_v13 = vsel %vm2345_vm0, %v6779_v4, %v6627_v3 }
 0x7b6   : > { %v6719_v8 = vpop.permute.xlu0 %6718 }
 0x7b7   : > { %v6597_v40 = vpop.permute.xlu1 %6596  ;;  %v6944_v33 = vsel %vm2345_vm0, %v6905_v26, %v6719_v8 }
 0x7b8   : > { %7221 = vmatprep.mubr.bf16.mxu1 %v6944_v33 }
 0x7b9   : > { %7222 = vmatmul.mubr.bf16.gmra.mrb[212].mxu1 %v6817_v44 }
 0x7ba   : > { %v6691_v0 = vpop.permute.xlu0 %6690 }
 0x7bb   : > { %v6567_v53 = vpop.permute.xlu1 %6566  ;;  %v6907_v31 = vsel %vm2314_vm15, %v6869_v57, %v6691_v0 }
 0x7bc   : > { %v6751_v36 = vsel %vm983_vm8, %v16215_v7, %v6567_v53 }
 0x7bd   : > { %v6781_v20 = vsel %vm2314_vm15, %v6751_v36, %v6597_v40 }
 0x7be   : > { %v16505_v25 = vpop.f32.mrb[204].mxu0  ;;  %v6661_v24 = vpop.permute.xlu0 %6660 }
 0x7bf   : > { %v6629_v43 = vpop.permute.xlu1 %6628  ;;  %v16507_v22 = vpop.f32.mrb[205].mxu0  ;;  %v6872_v21 = vsel %vm983_vm8, %v16262_v48, %v6661_v24 }
 0x7c0   : > { %v16511_v37 = vpop.f32.mrb[206].mxu0  ;;  %v6823_v47 = vsel %vm2345_vm0, %v6781_v20, %v6629_v43 }
 0x7c1   : > { %v16515_v2 = vpop.f32.mrb[207].mxu0 }
 0x7c2   : > { %v6721_v56 = vpop.permute.xlu0 %6720 }
 0x7c3   : > { %v6599_v41 = vpop.permute.xlu1 %6598  ;;  %v6947_v46 = vsel %vm2345_vm0, %v6907_v31, %v6721_v56 }
 0x7c4   : > { %7229 = vmatprep.mubr.bf16.mxu1 %v6947_v46 }
 0x7c5   : > { %7230 = vmatmul.mubr.bf16.gmra.mrb[216].mxu1 %v6820_v13 }
 0x7c6   : > { %v6693_v14 = vpop.permute.xlu0 %6692 }
 0x7c7   : > { %v6569_v45 = vpop.permute.xlu1 %6568  ;;  %v6909_v12 = vsel %vm2314_vm15, %v6872_v21, %v6693_v14 }
 0x7c8   : > { %v6753_v52 = vsel %vm983_vm8, %v16244_v58, %v6569_v45  ;;  %v12471_v58 = vld [vmem:[%s18221_s3 + $0x2c0] sm:$0xff]  }
 0x7c9   : > { %v6783_v62 = vsel %vm2314_vm15, %v6753_v52, %v6599_v41  ;;  %12251 = vmatprep.subr.bf16.mxu1 %v12471_v58 }
 0x7ca   : > { %v6663_v17 = vpop.permute.xlu0 %6662  ;;  %12252 = vmatpush3.bf16.msra.mxu1 %v12471_v58 }
 0x7cb   : > { %v6631_v34 = vpop.permute.xlu1 %6630  ;;  %v6875_v1 = vsel %vm983_vm8, %v16306_v6, %v6663_v17  ;;  %v12472_v6 = vld [vmem:[%s18221_s3 + $0x2c8] sm:$0xff]  }
 0x7cc   : > { %v6826_v15 = vsel %vm2345_vm0, %v6783_v62, %v6631_v34  ;;  %12253 = vmatprep.subr.bf16.mxu1 %v12472_v6 }
 0x7ce   : > { %v6723_v9 = vpop.permute.xlu0 %6722  ;;  %12254 = vmatpush3.bf16.msra.mxu1 %v12472_v6 }
 0x7cf   : > { %v6601_v11 = vpop.permute.xlu1 %6600  ;;  %v6950_v60 = vsel %vm2345_vm0, %v6909_v12, %v6723_v9 }
 0x7d0   : > { %7237 = vmatprep.mubr.bf16.mxu1 %v6950_v60 }
 0x7d1   : > { %7238 = vmatmul.mubr.bf16.gmra.mrb[220].mxu1 %v6823_v47 }
 0x7d2   : > { %v6695_v35 = vpop.permute.xlu0 %6694 }
 0x7d3   : > { %v6571_v42 = vpop.permute.xlu1 %6570  ;;  %v6911_v61 = vsel %vm2314_vm15, %v6875_v1, %v6695_v35 }
 0x7d4   : > { %v6755_v26 = vsel %vm983_vm8, %v16285_v5, %v6571_v42 }
 0x7d5   : > { %v16529_v50 = vpop.f32.mrb[208].mxu0  ;;  %v6785_v0 = vsel %vm2314_vm15, %v6755_v26, %v6601_v11  ;;  %v12478_v26 = vld [vmem:[%s18221_s3 + $0x250] sm:$0xff]  }
 0x7d6   : > { %v6665_v7 = vpop.permute.xlu0 %6664  ;;  %v16531_v23 = vpop.f32.mrb[209].mxu0 }
 0x7d7   : > { %v6633_v48 = vpop.permute.xlu1 %6632  ;;  %v16533_v18 = vpop.f32.mrb[210].mxu0  ;;  %v6878_v8 = vsel %vm983_vm8, %v16357_v63, %v6665_v7 }
 0x7d8   : > { %v16537_v54 = vpop.f32.mrb[211].mxu0  ;;  %v6829_v53 = vsel %vm2345_vm0, %v6785_v0, %v6633_v48 }
 0x7da   : > { %v6725_v30 = vpop.permute.xlu0 %6724 }
 0x7db   : > { %v6603_v59 = vpop.permute.xlu1 %6602  ;;  %v6953_v38 = vsel %vm2345_vm0, %v6911_v61, %v6725_v30 }
 0x7dc   : > { %7245 = vmatprep.mubr.bf16.mxu1 %v6953_v38  ;;  %v12474_v38 = vld [vmem:[%s18221_s3 + $0x240] sm:$0xff]  }
 0x7dd   : > { %7246 = vmatmul.mubr.bf16.gmra.mrb[224].mxu1 %v6826_v15 }
 0x7de   : > { %v6697_v3 = vpop.permute.xlu0 %6696 }
 0x7df   : > { %v6573_v39 = vpop.permute.xlu1 %6572  ;;  %v6913_v33 = vsel %vm2314_vm15, %v6878_v8, %v6697_v3  ;;  %v12475_v3 = vld [vmem:[%s18221_s3 + $0x288] sm:$0xff]  }
 0x7e0   : > { %v6757_v31 = vsel %vm983_vm8, %v16330_v55, %v6573_v39  ;;  %v12476_v39 = vld [vmem:[%s18221_s3 + $0x248] sm:$0xff]  }
 0x7e1   : > { %v6787_v45 = vsel %vm2314_vm15, %v6757_v31, %v6603_v59 }
 0x7e2   : > { %v6667_v29 = vpop.permute.xlu0 %6666 }
 0x7e3   : > { %v6635_v40 = vpop.permute.xlu1 %6634  ;;  %v6881_v41 = vsel %vm983_vm8, %v16404_v28, %v6667_v29  ;;  %v12477_v29 = vld [vmem:[%s18221_s3 + $0x290] sm:$0xff]  }
 0x7e4   : > { %v6832_v17 = vsel %vm2345_vm0, %v6787_v45, %v6635_v40  ;;  %v16628_v40 = vld [vmem:[%s18222_s4 + $0x3] ss:$0 sm:$0xff] }
 0x7e6   : > { %v6727_v19 = vpop.permute.xlu0 %6726 }
 0x7e7   : > { %v6956_v44 = vsel %vm2345_vm0, %v6913_v33, %v6727_v19  ;;  %v6605_v43 = vpop.permute.xlu1 %6604 }
 0x7e8   : > { %7253 = vmatprep.mubr.bf16.mxu1 %v6956_v44 }
 0x7e9   : > { %7254 = vmatmul.mubr.bf16.gmra.mrb[228].mxu1 %v6829_v53 }
 0x7ea   : > { %v6699_v24 = vpop.permute.xlu0 %6698 }
 0x7eb   : > { %v6575_v46 = vpop.permute.xlu1 %6574  ;;  %v6915_v4 = vsel %vm2314_vm15, %v6881_v41, %v6699_v24  ;;  %v12479_v41 = vld [vmem:[%s18221_s3 + $0x298] sm:$0xff]  }
 0x7ec   : > { %v6759_v55 = vsel %vm983_vm8, %v16376_v16, %v6575_v46  ;;  %v12480_v46 = vld [vmem:[%s18221_s3 + $0x258] sm:$0xff]  }
 0x7ed   : > { %v16559_v51 = vpop.f32.mrb[212].mxu0  ;;  %v6789_v11 = vsel %vm2314_vm15, %v6759_v55, %v6605_v43 }
 0x7ee   : > { %v16561_v5 = vpop.f32.mrb[213].mxu0 }
 0x7ef   : > { %v6669_v57 = vpop.permute.xlu0 %6668  ;;  %v16563_v63 = vpop.f32.mrb[214].mxu0 }
 0x7f0   : > { %v16567_v56 = vpop.f32.mrb[215].mxu0  ;;  %v6637_v36 = vpop.permute.xlu1 %6636  ;;  %v6884_v28 = vsel %vm983_vm8, %v16447_v10, %v6669_v57 }
 0x7f1   : > { %v6835_v60 = vsel %vm2345_vm0, %v6789_v11, %v6637_v36  ;;  %v12481_v36 = vld [vmem:[%s18221_s3 + $0x2a0] sm:$0xff]  }
 0x7f3   : > { %v6729_v13 = vpop.permute.xlu0 %6728 }
 0x7f4   : > { %v6959_v14 = vsel %vm2345_vm0, %v6915_v4, %v6729_v13  ;;  %v6577_v20 = vpop.permute.xlu1 %6576 }
 0x7f5   : > { %7261 = vmatprep.mubr.bf16.mxu1 %v6959_v14  ;;  %v6761_v42 = vsel %vm983_vm8, %v16409_v27, %v6577_v20  ;;  %v12473_v27 = vld [vmem:[%s18221_s3 + $0x280] sm:$0xff]  }
 0x7f6   : > { %7262 = vmatmul.mubr.bf16.gmra.mrb[232].mxu1 %v6832_v17  ;;  %11805 = vmatprep.subr.bf16.mxu0 %v12473_v27  ;;  %v12484_v27 = vld [vmem:[%s18221_s3 + $0x268] sm:$0xff]  }
 0x7f7   : > { %v6701_v34 = vpop.permute.xlu0 %6700  ;;  %11806 = vmatpush3.bf16.msra.mxu0 %v12474_v38 }
 0x7f8   : > { %v6917_v21 = vsel %vm2314_vm15, %v6884_v28, %v6701_v34  ;;  %v6639_v48 = vpop.permute.xlu1 %6638  ;;  %11807 = vmatprep.subr.bf16.mxu0 %v12475_v3 }
 0x7fb   : > { %v6731_v12 = vpop.permute.xlu0 %6730  ;;  %11808 = vmatpush3.bf16.msra.mxu0 %v12476_v39 }
 0x7fc   : > { %v6962_v9 = vsel %vm2345_vm0, %v6917_v21, %v6731_v12  ;;  %11809 = vmatprep.subr.bf16.mxu0 %v12477_v29  ;;  %v12482_v21 = vld [vmem:[%s18221_s3 + $0x260] sm:$0xff]  }
 0x7fd   : > { %7269 = vmatprep.mubr.bf16.mxu1 %v6962_v9 }
 0x7fe   : > { %7270 = vmatmul.mubr.bf16.gmra.mrb[236].mxu1 %v6835_v60 }
 0x7ff   : > { %v6671_v47 = vpop.permute.xlu0 %6670  ;;  %11810 = vmatpush3.bf16.msra.mxu0 %v12478_v26 }
 0x800   : > { %v6887_v35 = vsel %vm983_vm8, %v16465_v49, %v6671_v47  ;;  %11811 = vmatprep.subr.bf16.mxu0 %v12479_v41 }
 0x801   : > { %v6918_v16 = vsel %vm2314_vm15, %v6887_v35, %v6701_v34 }
 0x802   : > { %v6964_v10 = vsel %vm2345_vm0, %v6918_v16, %v6731_v12 }
 0x803   : > { %v6607_v7 = vpop.permute.xlu0 %6606  ;;  %7277 = vmatprep.mubr.bf16.mxu1 %v6964_v10  ;;  %11812 = vmatpush3.bf16.msra.mxu0 %v12480_v46 }
 0x804   : > { %v6791_v52 = vsel %vm2314_vm15, %v6761_v42, %v6607_v7  ;;  %11813 = vmatprep.subr.bf16.mxu0 %v12481_v36 }
 0x805   : > { %v6838_v1 = vsel %vm2345_vm0, %v6791_v52, %v6639_v48  ;;  %v16591_v61 = vpop.f32.mrb[216].mxu0 }
 0x806   : > { %7278 = vmatmul.mubr.bf16.gmra.mrb[240].mxu1 %v6838_v1  ;;  %v16593_v30 = vpop.f32.mrb[217].mxu0  ;;  %v12483_v1 = vld [vmem:[%s18221_s3 + $0x2a8] sm:$0xff]  }
 0x807   : > { %v16595_v49 = vpop.f32.mrb[218].mxu0  ;;  %11814 = vmatpush3.bf16.msra.mxu0 %v12482_v21 }
 0x808   : > { %v16597_v59 = vpop.f32.mrb[219].mxu0  ;;  %11815 = vmatprep.subr.bf16.mxu0 %v12483_v1 }
 0x80b   : > { %11816 = vmatpush3.bf16.msra.mxu0 %v12484_v27 }
 0x81d   : > { %v16605_v62 = vpop.f32.mrb[220].mxu0 }
 0x81e   : > { %v16607_v15 = vpop.f32.mrb[221].mxu0 }
 0x81f   : > { %v16609_v58 = vpop.f32.mrb[222].mxu0 }
 0x820   : > { %v16611_v6 = vpop.f32.mrb[223].mxu0 }
 0x82a   : > { %v11691_v8 = vpop.f32.mrb[180].mxu1 }
 0x82b   : > { %v11692_v33 = vpop.f32.mrb[181].mxu1 }
 0x82c   : > { %v11693_v19 = vadd.f32 %v11692_v33, %v11691_v8  ;;  %v11694_v44 = vpop.f32.mrb[182].mxu1 }
 0x82d   : > { %v11695_v0 = vpop.f32.mrb[183].mxu1 }
 0x82e   : > { %v7160_v53 = vadd.f32 %v11693_v19, %v16628_v40  ;;  %v11696_v24 = vadd.f32 %v11695_v0, %v11694_v44 }
 0x830   : > { %v7321_v43 = vadd.f32 %v16507_v22, %v7160_v53  ;;  %v7163_v57 = vadd.f32 %v11696_v24, %v16628_v40 }
 0x832   : > { %v7324_v31 = vadd.f32 %v16515_v2, %v7163_v57  ;;  %v7447_v4 = vmax.f32 %v7321_v43, 0.0 }
 0x834   : > { %v7448_v13 = vmax.f32 %v7324_v31, 0.0 }
 0x836   : > { %v7479_v14 = vpack.c.bf16 %v7448_v13, %v7447_v4  ;;  %v16640_v45 = vpop.f32.mrb[224].mxu0 }
 0x837   : > { %v16642_v22 = vpop.f32.mrb[225].mxu0 }
 0x838   : > { %v11697_v17 = vpop.f32.mrb[184].mxu1  ;;  %v16644_v34 = vpop.f32.mrb[226].mxu0  ;;  %v7496_v2 = vshrl.u32 %v7479_v14, 16  ;;  %v7499_v60 = vshll.u32 %v7479_v14, 16  ;;  %v7655_v20 = vrot.slane %v7479_v14, 7 }
 0x839   : > { %v11698_v55 = vpop.f32.mrb[185].mxu1  ;;  %v16649_v28 = vpop.f32.mrb[227].mxu0 }
 0x83a   : > { %v11699_v12 = vadd.f32 %v11698_v55, %v11697_v17  ;;  %v11700_v9 = vpop.f32.mrb[186].mxu1  ;;  %v7498_v11 = vrot.slane %v7496_v2, 7 }
 0x83b   : > { %v11701_v47 = vpop.f32.mrb[187].mxu1 }
 0x83c   : > { %v7168_v35 = vadd.f32 %v11699_v12, %v16628_v40  ;;  %v11702_v16 = vadd.f32 %v11701_v47, %v11700_v9  ;;  %v7501_v10 = vor.u32 %v7499_v60, %v7498_v11  ;;  %v7703_v42 = vsel %vm13425_vm12, %v7498_v11, %v7655_v20  ;;  %v12485_v60 = vld [vmem:[%s18221_s3 + $0x2b0] sm:$0xff]  }
 0x83d   : > { %v7766_v39 = vshll.u32 %v7703_v42, 16  ;;  %v12486_v20 = vld [vmem:[%s18221_s3 + $0x270] sm:$0xff]   ;;  %11817 = vmatprep.subr.bf16.mxu0 %v12485_v60 }
 0x83e   : > { %v7329_v7 = vadd.f32 %v16505_v25, %v7168_v35  ;;  %v7171_v48 = vadd.f32 %v11702_v16, %v16628_v40  ;;  %v16661_v52 = vsel %vm13425_vm12, %v7479_v14, %v7501_v10  ;;  %v7969_v25 = vrot.slane %v7703_v42, 1  ;;  %11818 = vmatpush3.bf16.msra.mxu0 %v12486_v20 }
 0x83f   : > { %8090 = vrot.lane.b32.xlu1 %v16661_v52, %s12661_s8  ;;  %v7968_v38 = vrot.slane %v16661_v52, 1  ;;  %v7761_v3 = vshll.u32 %v16661_v52, 16  ;;  %v7759_v8 = vshrl.u32 %v16661_v52, 16  ;;  %v7768_v53 = vrot.slane %v7766_v39, 1 }
 0x840   : > { %v7332_v29 = vadd.f32 %v16511_v37, %v7171_v48  ;;  %v7449_v19 = vmax.f32 %v7329_v7, 0.0 }
 0x841   : > { %v7970_v26 = vsel %vm2037_vm13, %v7968_v38, %v7969_v25  ;;  %v7763_v33 = vrot.slane %v7761_v3, 1  ;;  %v12488_v3 = vld [vmem:[%s18221_s3 + $0x278] sm:$0xff]  }
 0x842   : > { %v7450_v44 = vmax.f32 %v7332_v29, 0.0  ;;  %8122 = vrot.lane.b32.xlu0 %v7970_v26, %s12660_s19 }
 0x843   : > { %8060 = vrot.lane.b32.xlu1 %v7970_v26, %s12662_s9  ;;  %v7764_v0 = vor.u32 %v7763_v33, %v7759_v8 }
 0x844   : > { %v7480_v24 = vpack.c.bf16 %v7450_v44, %v7449_v19 }
 0x845   : > { %v11703_v43 = vpop.f32.mrb[188].mxu1  ;;  %v16679_v57 = vsel %vm1826_vm14, %v7764_v0, %v7768_v53 }
 0x846   : > { %v7503_v37 = vshrl.u32 %v7480_v24, 16  ;;  %v11704_v31 = vpop.f32.mrb[189].mxu1  ;;  %v7506_v14 = vshll.u32 %v7480_v24, 16  ;;  %v7656_v17 = vrot.slane %v7480_v24, 7 }
 0x847   : > { %v11705_v41 = vadd.f32 %v11704_v31, %v11703_v43  ;;  %v11706_v46 = vpop.f32.mrb[190].mxu1  ;;  %8030 = vrot.lane.b32.xlu1 %v16679_v57, %s12660_s19 }
 0x848   : > { %v11707_v4 = vpop.f32.mrb[191].mxu1  ;;  %v7505_v13 = vrot.slane %v7503_v37, 7 }
 0x849   : > { %v7176_v2 = vadd.f32 %v11705_v41, %v16628_v40  ;;  %v11708_v36 = vadd.f32 %v11707_v4, %v11706_v46 }
 0x84a   : > { %v7508_v55 = vor.u32 %v7506_v14, %v7505_v13  ;;  %v7704_v21 = vsel %vm13425_vm12, %v7505_v13, %v7656_v17  ;;  %v16688_v11 = vpop.f32.mrb[228].mxu0 }
 0x84b   : > { %v7337_v12 = vadd.f32 %v16531_v23, %v7176_v2  ;;  %v7179_v9 = vadd.f32 %v11708_v36, %v16628_v40  ;;  %v16696_v47 = vpop.f32.mrb[229].mxu0  ;;  %v12487_v23 = vld [vmem:[%s18221_s3 + $0x2b8] sm:$0xff]   ;;  %v7972_v7 = vrot.slane %v7704_v21, 1  ;;  %v7778_v27 = vshll.u32 %v7704_v21, 16 }
 0x84c   : > { %v16700_v35 = vsel %vm13425_vm12, %v7480_v24, %v7508_v55  ;;  %v16706_v10 = vpop.f32.mrb[230].mxu0  ;;  %11819 = vmatprep.subr.bf16.mxu0 %v12487_v23 }
 0x84d   : > { %v7340_v16 = vadd.f32 %v16537_v54, %v7179_v9  ;;  %8154 = vrot.lane.b32.xlu0 %v16700_v35, %s12662_s9  ;;  %8092 = vrot.lane.b32.xlu1 %v16700_v35, %s12661_s8  ;;  %v7971_v42 = vrot.slane %v16700_v35, 1  ;;  %v16713_v48 = vpop.f32.mrb[231].mxu0  ;;  %v7773_v1 = vshll.u32 %v16700_v35, 16  ;;  %v7451_v38 = vmax.f32 %v7337_v12, 0.0 }
 0x84e   : > { %v7771_v29 = vshrl.u32 %v16700_v35, 16  ;;  %v7780_v53 = vrot.slane %v7778_v27, 1  ;;  %11820 = vmatpush3.bf16.msra.mxu0 %v12488_v3 }
 0x84f   : > { %v7452_v25 = vmax.f32 %v7340_v16, 0.0  ;;  %v7973_v54 = vsel %vm2037_vm13, %v7971_v42, %v7972_v7  ;;  %v7775_v26 = vrot.slane %v7773_v1, 1 }
 0x850   : > { %12255 = vmatprep.mubr.msk.bf16.mxu1 %vm983_vm8, %v7973_v54  ;;  %v11709_v39 = vpop.f32.mrb[192].mxu1 }
 0x851   : > { %v7481_v8 = vpack.c.bf16 %v7452_v25, %v7451_v38  ;;  %8124 = vrot.lane.b32.xlu0 %v7973_v54, %s12660_s19  ;;  %8062 = vrot.lane.b32.xlu1 %v7973_v54, %s12662_s9  ;;  %v11710_v33 = vpop.f32.mrb[193].mxu1  ;;  %v7776_v0 = vor.u32 %v7775_v26, %v7771_v29 }
 0x852   : > { %v11711_v19 = vadd.f32 %v11710_v33, %v11709_v39  ;;  %v11712_v44 = vpop.f32.mrb[194].mxu1 }
 0x853   : > { %v7510_v24 = vshrl.u32 %v7481_v8, 16  ;;  %v11713_v43 = vpop.f32.mrb[195].mxu1  ;;  %v16724_v37 = vpop.f32.mrb[232].mxu0  ;;  %v16730_v4 = vsel %vm1826_vm14, %v7776_v0, %v7780_v53  ;;  %v7657_v13 = vrot.slane %v7481_v8, 7  ;;  %v7513_v2 = vshll.u32 %v7481_v8, 16 }
 0x854   : > { %v7184_v31 = vadd.f32 %v11711_v19, %v16628_v40  ;;  %v11714_v41 = vadd.f32 %v11713_v43, %v11712_v44  ;;  %v16727_v46 = vpop.f32.mrb[233].mxu0 }
 0x855   : > { %8184 = vrot.lane.b32.xlu0 %v16730_v4, %s12661_s8  ;;  %8032 = vrot.lane.b32.xlu1 %v16730_v4, %s12660_s19  ;;  %v16736_v14 = vpop.f32.mrb[234].mxu0  ;;  %v7512_v17 = vrot.slane %v7510_v24, 7 }
 0x856   : > { %v7345_v36 = vadd.f32 %v16529_v50, %v7184_v31  ;;  %v7187_v55 = vadd.f32 %v11714_v41, %v16628_v40  ;;  %v16740_v21 = vpop.f32.mrb[235].mxu0 }
 0x857   : > { %v7515_v12 = vor.u32 %v7513_v2, %v7512_v17  ;;  %v7705_v9 = vsel %vm13425_vm12, %v7512_v17, %v7657_v13 }
 0x858   : > { %v7348_v60 = vadd.f32 %v16533_v18, %v7187_v55  ;;  %v7453_v20 = vmax.f32 %v7345_v36, 0.0  ;;  %v7975_v16 = vrot.slane %v7705_v9, 1  ;;  %v7790_v1 = vshll.u32 %v7705_v9, 16 }
 0x859   : > { %v16747_v23 = vsel %vm13425_vm12, %v7481_v8, %v7515_v12 }
 0x85a   : > { %v7454_v42 = vmax.f32 %v7348_v60, 0.0  ;;  %8156 = vrot.lane.b32.xlu1 %v16747_v23, %s12662_s9  ;;  %v7974_v50 = vrot.slane %v16747_v23, 1  ;;  %v7785_v7 = vshll.u32 %v16747_v23, 16  ;;  %v7783_v18 = vshrl.u32 %v16747_v23, 16 }
 0x85b   : > { %v7792_v33 = vrot.slane %v7790_v1, 1 }
 0x85c   : > { %v7482_v27 = vpack.c.bf16 %v7454_v42, %v7453_v20  ;;  %v11715_v38 = vpop.f32.mrb[196].mxu1  ;;  %v7976_v25 = vsel %vm2037_vm13, %v7974_v50, %v7975_v16  ;;  %v7787_v54 = vrot.slane %v7785_v7, 1 }
 0x85d   : > { %12256 = vmatmul.mubr.msk.bf16.vlgmr.msra.gmra.mrb[244].mxu1 %vm983_vm8, %v7976_v25  ;;  %8126 = vrot.lane.b32.xlu0 %v7976_v25, %s12660_s19  ;;  %v11716_v3 = vpop.f32.mrb[197].mxu1 }
 0x85e   : > { %v7517_v39 = vshrl.u32 %v7482_v27, 16  ;;  %v11717_v29 = vadd.f32 %v11716_v3, %v11715_v38  ;;  %8094 = vrot.lane.b32.xlu1 %v16747_v23, %s12661_s8  ;;  %v11718_v26 = vpop.f32.mrb[198].mxu1  ;;  %v7788_v8 = vor.u32 %v7787_v54, %v7783_v18  ;;  %v7520_v44 = vshll.u32 %v7482_v27, 16 }
 0x85f   : > { %v11719_v19 = vpop.f32.mrb[199].mxu1  ;;  %v7658_v0 = vrot.slane %v7482_v27, 7 }
 0x860   : > { %v7192_v53 = vadd.f32 %v11717_v29, %v16628_v40  ;;  %v11720_v24 = vadd.f32 %v11719_v19, %v11718_v26  ;;  %v16761_v43 = vsel %vm1826_vm14, %v7788_v8, %v7792_v33  ;;  %v7519_v31 = vrot.slane %v7517_v39, 7 }
 0x861   : > { %8186 = vrot.lane.b32.xlu0 %v16761_v43, %s12661_s8 }
 0x862   : > { %v7353_v41 = vadd.f32 %v16561_v5, %v7192_v53  ;;  %v7195_v13 = vadd.f32 %v11720_v24, %v16628_v40  ;;  %8064 = vrot.lane.b32.xlu1 %v7976_v25, %s12662_s9  ;;  %v7522_v17 = vor.u32 %v7520_v44, %v7519_v31  ;;  %v7706_v2 = vsel %vm13425_vm12, %v7519_v31, %v7658_v0 }
 0x863   : > { %v7978_v5 = vrot.slane %v7706_v2, 1  ;;  %v7802_v60 = vshll.u32 %v7706_v2, 16 }
 0x864   : > { %v7356_v36 = vadd.f32 %v16567_v56, %v7195_v13  ;;  %v16773_v55 = vsel %vm13425_vm12, %v7482_v27, %v7522_v17  ;;  %v7455_v20 = vmax.f32 %v7353_v41, 0.0 }
 0x865   : > { %8158 = vrot.lane.b32.xlu0 %v16773_v55, %s12662_s9  ;;  %v7977_v12 = vrot.slane %v16773_v55, 1  ;;  %v7797_v9 = vshll.u32 %v16773_v55, 16  ;;  %v7795_v42 = vshrl.u32 %v16773_v55, 16  ;;  %v7804_v25 = vrot.slane %v7802_v60, 1 }
 0x866   : > { %v7456_v16 = vmax.f32 %v7356_v36, 0.0  ;;  %8034 = vrot.lane.b32.xlu1 %v16761_v43, %s12660_s19 }
 0x867   : > { %v7979_v56 = vsel %vm2037_vm13, %v7977_v12, %v7978_v5  ;;  %v7799_v50 = vrot.slane %v7797_v9, 1 }
 0x868   : > { %v7483_v7 = vpack.c.bf16 %v7456_v16, %v7455_v20  ;;  %v11721_v1 = vpop.f32.mrb[200].mxu1  ;;  %12259 = vmatprep.mubr.msk.bf16.mxu1 %vm983_vm8, %v7979_v56 }
 0x869   : > { %v11722_v27 = vpop.f32.mrb[201].mxu1  ;;  %8128 = vrot.lane.b32.xlu0 %v7979_v56, %s12660_s19  ;;  %v7800_v38 = vor.u32 %v7799_v50, %v7795_v42 }
 0x86a   : > { %v7524_v18 = vshrl.u32 %v7483_v7, 16  ;;  %v11723_v54 = vadd.f32 %v11722_v27, %v11721_v1  ;;  %8096 = vrot.lane.b32.xlu1 %v16773_v55, %s12661_s8  ;;  %v11724_v3 = vpop.f32.mrb[202].mxu1  ;;  %v7527_v26 = vshll.u32 %v7483_v7, 16  ;;  %v7659_v44 = vrot.slane %v7483_v7, 7 }
 0x86b   : > { %v11725_v39 = vpop.f32.mrb[203].mxu1  ;;  %v16788_v29 = vsel %vm1826_vm14, %v7800_v38, %v7804_v25 }
 0x86c   : > { %v7200_v8 = vadd.f32 %v11723_v54, %v16628_v40  ;;  %v11726_v33 = vadd.f32 %v11725_v39, %v11724_v3  ;;  %v7526_v19 = vrot.slane %v7524_v18, 7 }
 0x86d   : > { %8188 = vrot.lane.b32.xlu0 %v16788_v29, %s12661_s8 }
 0x86e   : > { %v7361_v0 = vadd.f32 %v16559_v51, %v7200_v8  ;;  %v7203_v53 = vadd.f32 %v11726_v33, %v16628_v40  ;;  %8066 = vrot.lane.b32.xlu1 %v7979_v56, %s12662_s9  ;;  %v7529_v24 = vor.u32 %v7527_v26, %v7526_v19  ;;  %v7707_v31 = vsel %vm13425_vm12, %v7526_v19, %v7659_v44 }
 0x86f   : > { %v7981_v51 = vrot.slane %v7707_v31, 1  ;;  %v7814_v36 = vshll.u32 %v7707_v31, 16 }
 0x870   : > { %v7364_v41 = vadd.f32 %v16563_v63, %v7203_v53  ;;  %v16801_v13 = vsel %vm13425_vm12, %v7483_v7, %v7529_v24  ;;  %v7457_v12 = vmax.f32 %v7361_v0, 0.0 }
 0x871   : > { %8160 = vrot.lane.b32.xlu0 %v16801_v13, %s12662_s9  ;;  %v7980_v17 = vrot.slane %v16801_v13, 1  ;;  %v7809_v2 = vshll.u32 %v16801_v13, 16  ;;  %v7807_v9 = vshrl.u32 %v16801_v13, 16  ;;  %v7816_v50 = vrot.slane %v7814_v36, 1 }
 0x872   : > { %v7458_v5 = vmax.f32 %v7364_v41, 0.0  ;;  %8036 = vrot.lane.b32.xlu1 %v16788_v29, %s12660_s19 }
 0x873   : > { %v7982_v63 = vsel %vm2037_vm13, %v7980_v17, %v7981_v51  ;;  %v7811_v60 = vrot.slane %v7809_v2, 1 }
 0x874   : > { %v7484_v20 = vpack.c.bf16 %v7458_v5, %v7457_v12  ;;  %v11727_v16 = vpop.f32.mrb[204].mxu1  ;;  %12260 = vmatmul.mubr.msk.bf16.gmra.mrb[248].mxu1 %vm983_vm8, %v7982_v63 }
 0x875   : > { %v11728_v56 = vpop.f32.mrb[205].mxu1  ;;  %8130 = vrot.lane.b32.xlu0 %v7982_v63, %s12660_s19  ;;  %v7812_v42 = vor.u32 %v7811_v60, %v7807_v9 }
 0x876   : > { %v7531_v7 = vshrl.u32 %v7484_v20, 16  ;;  %v11729_v1 = vadd.f32 %v11728_v56, %v11727_v16  ;;  %8098 = vrot.lane.b32.xlu1 %v16801_v13, %s12661_s8  ;;  %v11730_v27 = vpop.f32.mrb[206].mxu1  ;;  %v7534_v18 = vshll.u32 %v7484_v20, 16  ;;  %v7660_v26 = vrot.slane %v7484_v20, 7 }
 0x877   : > { %v11731_v38 = vpop.f32.mrb[207].mxu1  ;;  %v16816_v25 = vsel %vm1826_vm14, %v7812_v42, %v7816_v50 }
 0x878   : > { %v7208_v54 = vadd.f32 %v11729_v1, %v16628_v40  ;;  %v11732_v3 = vadd.f32 %v11731_v38, %v11730_v27  ;;  %v7533_v39 = vrot.slane %v7531_v7, 7 }
 0x879   : > { %8190 = vrot.lane.b32.xlu0 %v16816_v25, %s12661_s8 }
 0x87a   : > { %v7369_v8 = vadd.f32 %v16593_v30, %v7208_v54  ;;  %v7211_v33 = vadd.f32 %v11732_v3, %v16628_v40  ;;  %8068 = vrot.lane.b32.xlu1 %v7982_v63, %s12662_s9  ;;  %v7536_v19 = vor.u32 %v7534_v18, %v7533_v39  ;;  %v7708_v44 = vsel %vm13425_vm12, %v7533_v39, %v7660_v26 }
 0x87b   : > { %v7984_v30 = vrot.slane %v7708_v44, 1  ;;  %v7826_v41 = vshll.u32 %v7708_v44, 16 }
 0x87c   : > { %v7372_v0 = vadd.f32 %v16597_v59, %v7211_v33  ;;  %v16829_v53 = vsel %vm13425_vm12, %v7484_v20, %v7536_v19  ;;  %v7459_v17 = vmax.f32 %v7369_v8, 0.0 }
 0x87d   : > { %8162 = vrot.lane.b32.xlu0 %v16829_v53, %s12662_s9  ;;  %v7983_v24 = vrot.slane %v16829_v53, 1  ;;  %v7821_v31 = vshll.u32 %v16829_v53, 16  ;;  %v7819_v2 = vshrl.u32 %v16829_v53, 16  ;;  %v7828_v60 = vrot.slane %v7826_v41, 1 }
 0x87e   : > { %v7460_v51 = vmax.f32 %v7372_v0, 0.0  ;;  %8038 = vrot.lane.b32.xlu1 %v16816_v25, %s12660_s19 }
 0x87f   : > { %v7985_v59 = vsel %vm2037_vm13, %v7983_v24, %v7984_v30  ;;  %v7823_v36 = vrot.slane %v7821_v31, 1 }
 0x880   : > { %v7485_v12 = vpack.c.bf16 %v7460_v51, %v7459_v17  ;;  %v11733_v5 = vpop.f32.mrb[208].mxu1  ;;  %12263 = vmatprep.mubr.msk.bf16.mxu1 %vm983_vm8, %v7985_v59 }
 0x881   : > { %v11734_v63 = vpop.f32.mrb[209].mxu1  ;;  %8132 = vrot.lane.b32.xlu0 %v7985_v59, %s12660_s19  ;;  %v7824_v9 = vor.u32 %v7823_v36, %v7819_v2 }
 0x882   : > { %v7538_v20 = vshrl.u32 %v7485_v12, 16  ;;  %v11735_v16 = vadd.f32 %v11734_v63, %v11733_v5  ;;  %8100 = vrot.lane.b32.xlu1 %v16829_v53, %s12661_s8  ;;  %v11736_v56 = vpop.f32.mrb[210].mxu1  ;;  %v7541_v7 = vshll.u32 %v7485_v12, 16  ;;  %v7661_v18 = vrot.slane %v7485_v12, 7 }
 0x883   : > { %v11737_v42 = vpop.f32.mrb[211].mxu1  ;;  %v16844_v50 = vsel %vm1826_vm14, %v7824_v9, %v7828_v60 }
 0x884   : > { %v7216_v1 = vadd.f32 %v11735_v16, %v16628_v40  ;;  %v11738_v27 = vadd.f32 %v11737_v42, %v11736_v56  ;;  %v7540_v38 = vrot.slane %v7538_v20, 7 }
 0x885   : > { %8192 = vrot.lane.b32.xlu0 %v16844_v50, %s12661_s8 }
 0x886   : > { %v7377_v54 = vadd.f32 %v16591_v61, %v7216_v1  ;;  %v7219_v3 = vadd.f32 %v11738_v27, %v16628_v40  ;;  %8070 = vrot.lane.b32.xlu1 %v7985_v59, %s12662_s9  ;;  %v7543_v39 = vor.u32 %v7541_v7, %v7540_v38  ;;  %v7709_v26 = vsel %vm13425_vm12, %v7540_v38, %v7661_v18 }
 0x887   : > { %v7987_v61 = vrot.slane %v7709_v26, 1  ;;  %v7838_v0 = vshll.u32 %v7709_v26, 16 }
 0x888   : > { %v7380_v8 = vadd.f32 %v16595_v49, %v7219_v3  ;;  %v16857_v33 = vsel %vm13425_vm12, %v7485_v12, %v7543_v39  ;;  %v7461_v24 = vmax.f32 %v7377_v54, 0.0 }
 0x889   : > { %8164 = vrot.lane.b32.xlu0 %v16857_v33, %s12662_s9  ;;  %v7986_v19 = vrot.slane %v16857_v33, 1  ;;  %v7833_v44 = vshll.u32 %v16857_v33, 16  ;;  %v7831_v31 = vshrl.u32 %v16857_v33, 16  ;;  %v7840_v36 = vrot.slane %v7838_v0, 1 }
 0x88a   : > { %v7462_v30 = vmax.f32 %v7380_v8, 0.0  ;;  %8040 = vrot.lane.b32.xlu1 %v16844_v50, %s12660_s19 }
 0x88b   : > { %v7988_v49 = vsel %vm2037_vm13, %v7986_v19, %v7987_v61  ;;  %v7835_v41 = vrot.slane %v7833_v44, 1 }
 0x88c   : > { %v7486_v17 = vpack.c.bf16 %v7462_v30, %v7461_v24  ;;  %v11739_v51 = vpop.f32.mrb[212].mxu1  ;;  %12264 = vmatmul.mubr.msk.bf16.gmra.mrb[252].mxu1 %vm983_vm8, %v7988_v49 }
 0x88d   : > { %v11740_v59 = vpop.f32.mrb[213].mxu1  ;;  %8134 = vrot.lane.b32.xlu0 %v7988_v49, %s12660_s19  ;;  %v7836_v2 = vor.u32 %v7835_v41, %v7831_v31 }
 0x88e   : > { %v7545_v12 = vshrl.u32 %v7486_v17, 16  ;;  %v11741_v5 = vadd.f32 %v11740_v59, %v11739_v51  ;;  %8102 = vrot.lane.b32.xlu1 %v16857_v33, %s12661_s8  ;;  %v11742_v63 = vpop.f32.mrb[214].mxu1  ;;  %v7548_v20 = vshll.u32 %v7486_v17, 16  ;;  %v7662_v7 = vrot.slane %v7486_v17, 7 }
 0x88f   : > { %v11743_v9 = vpop.f32.mrb[215].mxu1  ;;  %v16872_v60 = vsel %vm1826_vm14, %v7836_v2, %v7840_v36 }
 0x890   : > { %v7224_v16 = vadd.f32 %v11741_v5, %v16628_v40  ;;  %v11744_v56 = vadd.f32 %v11743_v9, %v11742_v63  ;;  %v7547_v42 = vrot.slane %v7545_v12, 7 }
 0x891   : > { %8194 = vrot.lane.b32.xlu0 %v16872_v60, %s12661_s8 }
 0x892   : > { %v7385_v1 = vadd.f32 %v16607_v15, %v7224_v16  ;;  %v7227_v27 = vadd.f32 %v11744_v56, %v16628_v40  ;;  %8072 = vrot.lane.b32.xlu1 %v7988_v49, %s12662_s9  ;;  %v7550_v38 = vor.u32 %v7548_v20, %v7547_v42  ;;  %v7710_v18 = vsel %vm13425_vm12, %v7547_v42, %v7662_v7 }
 0x893   : > { %v7990_v15 = vrot.slane %v7710_v18, 1  ;;  %v7850_v8 = vshll.u32 %v7710_v18, 16 }
 0x894   : > { %v7388_v54 = vadd.f32 %v16611_v6, %v7227_v27  ;;  %v16885_v3 = vsel %vm13425_vm12, %v7486_v17, %v7550_v38  ;;  %v7463_v19 = vmax.f32 %v7385_v1, 0.0 }
 0x895   : > { %8166 = vrot.lane.b32.xlu0 %v16885_v3, %s12662_s9  ;;  %v7989_v39 = vrot.slane %v16885_v3, 1  ;;  %v7845_v26 = vshll.u32 %v16885_v3, 16  ;;  %v7843_v44 = vshrl.u32 %v16885_v3, 16  ;;  %v7852_v41 = vrot.slane %v7850_v8, 1 }
 0x896   : > { %v7464_v61 = vmax.f32 %v7388_v54, 0.0  ;;  %8042 = vrot.lane.b32.xlu1 %v16872_v60, %s12660_s19 }
 0x897   : > { %v7991_v6 = vsel %vm2037_vm13, %v7989_v39, %v7990_v15  ;;  %v7847_v0 = vrot.slane %v7845_v26, 1 }
 0x898   : > { %v7487_v24 = vpack.c.bf16 %v7464_v61, %v7463_v19  ;;  %v11745_v30 = vpop.f32.mrb[216].mxu1  ;;  %12267 = vmatprep.mubr.msk.bf16.mxu1 %vm983_vm8, %v7991_v6 }
 0x899   : > { %v11746_v49 = vpop.f32.mrb[217].mxu1  ;;  %8136 = vrot.lane.b32.xlu0 %v7991_v6, %s12660_s19  ;;  %v7848_v31 = vor.u32 %v7847_v0, %v7843_v44 }
 0x89a   : > { %v7552_v17 = vshrl.u32 %v7487_v24, 16  ;;  %v11747_v51 = vadd.f32 %v11746_v49, %v11745_v30  ;;  %8104 = vrot.lane.b32.xlu1 %v16885_v3, %s12661_s8  ;;  %v11748_v59 = vpop.f32.mrb[218].mxu1  ;;  %v7663_v2 = vrot.slane %v7487_v24, 7  ;;  %v7555_v20 = vshll.u32 %v7487_v24, 16 }
 0x89b   : > { %v11749_v36 = vpop.f32.mrb[219].mxu1  ;;  %v16900_v12 = vsel %vm1826_vm14, %v7848_v31, %v7852_v41 }
 0x89c   : > { %v7232_v5 = vadd.f32 %v11747_v51, %v16628_v40  ;;  %v11750_v63 = vadd.f32 %v11749_v36, %v11748_v59  ;;  %v7554_v9 = vrot.slane %v7552_v17, 7 }
 0x89d   : > { %8196 = vrot.lane.b32.xlu0 %v16900_v12, %s12661_s8 }
 0x89e   : > { %v7393_v16 = vadd.f32 %v16605_v62, %v7232_v5  ;;  %v7235_v56 = vadd.f32 %v11750_v63, %v16628_v40  ;;  %8074 = vrot.lane.b32.xlu1 %v7991_v6, %s12662_s9  ;;  %v7557_v42 = vor.u32 %v7555_v20, %v7554_v9  ;;  %v7711_v7 = vsel %vm13425_vm12, %v7554_v9, %v7663_v2 }
 0x89f   : > { %v7993_v62 = vrot.slane %v7711_v7, 1  ;;  %v7862_v54 = vshll.u32 %v7711_v7, 16 }
 0x8a0   : > { %v7396_v1 = vadd.f32 %v16609_v58, %v7235_v56  ;;  %v16913_v27 = vsel %vm13425_vm12, %v7487_v24, %v7557_v42  ;;  %v7465_v39 = vmax.f32 %v7393_v16, 0.0 }
 0x8a1   : > { %v7992_v38 = vrot.slane %v16913_v27, 1  ;;  %8168 = vrot.lane.b32.xlu0 %v16913_v27, %s12662_s9  ;;  %v7857_v18 = vshll.u32 %v16913_v27, 16  ;;  %v7855_v26 = vshrl.u32 %v16913_v27, 16  ;;  %v7864_v0 = vrot.slane %v7862_v54, 1 }
 0x8a2   : > { %v7466_v15 = vmax.f32 %v7396_v1, 0.0  ;;  %8044 = vrot.lane.b32.xlu1 %v16900_v12, %s12660_s19 }
 0x8a3   : > { %v7994_v58 = vsel %vm2037_vm13, %v7992_v38, %v7993_v62  ;;  %v7859_v8 = vrot.slane %v7857_v18, 1 }
 0x8a4   : > { %v7488_v19 = vpack.c.bf16 %v7466_v15, %v7465_v39  ;;  %v11751_v61 = vpop.f32.mrb[220].mxu1  ;;  %12268 = vmatmul.mubr.msk.bf16.gmra.mrb[0].mxu1 %vm983_vm8, %v7994_v58 }
 0x8a5   : > { %v11752_v6 = vpop.f32.mrb[221].mxu1  ;;  %8138 = vrot.lane.b32.xlu0 %v7994_v58, %s12660_s19  ;;  %v7860_v44 = vor.u32 %v7859_v8, %v7855_v26 }
 0x8a6   : > { %v7559_v24 = vshrl.u32 %v7488_v19, 16  ;;  %v11753_v30 = vadd.f32 %v11752_v6, %v11751_v61  ;;  %8106 = vrot.lane.b32.xlu1 %v16913_v27, %s12661_s8  ;;  %v11754_v49 = vpop.f32.mrb[222].mxu1  ;;  %v7562_v17 = vshll.u32 %v7488_v19, 16  ;;  %v7664_v36 = vrot.slane %v7488_v19, 7 }
 0x8a7   : > { %v11755_v31 = vpop.f32.mrb[223].mxu1  ;;  %v16928_v41 = vsel %vm1826_vm14, %v7860_v44, %v7864_v0 }
 0x8a8   : > { %v7240_v51 = vadd.f32 %v11753_v30, %v16628_v40  ;;  %v11756_v59 = vadd.f32 %v11755_v31, %v11754_v49  ;;  %v7561_v2 = vrot.slane %v7559_v24, 7 }
 0x8a9   : > { %8198 = vrot.lane.b32.xlu0 %v16928_v41, %s12661_s8 }
 0x8aa   : > { %v7401_v5 = vadd.f32 %v16642_v22, %v7240_v51  ;;  %v7243_v63 = vadd.f32 %v11756_v59, %v16628_v40  ;;  %8076 = vrot.lane.b32.xlu1 %v7994_v58, %s12662_s9  ;;  %v7564_v9 = vor.u32 %v7562_v17, %v7561_v2  ;;  %v7712_v20 = vsel %vm13425_vm12, %v7561_v2, %v7664_v36 }
 0x8ab   : > { %v7996_v22 = vrot.slane %v7712_v20, 1  ;;  %v7874_v1 = vshll.u32 %v7712_v20, 16 }
 0x8ac   : > { %v7404_v16 = vadd.f32 %v16649_v28, %v7243_v63  ;;  %v16941_v56 = vsel %vm13425_vm12, %v7488_v19, %v7564_v9  ;;  %v7467_v38 = vmax.f32 %v7401_v5, 0.0 }
 0x8ad   : > { %8170 = vrot.lane.b32.xlu0 %v16941_v56, %s12662_s9  ;;  %v7995_v42 = vrot.slane %v16941_v56, 1  ;;  %v7869_v7 = vshll.u32 %v16941_v56, 16  ;;  %v7867_v18 = vshrl.u32 %v16941_v56, 16  ;;  %v7876_v19 = vrot.slane %v7874_v1, 1 }
 0x8ae   : > { %v7468_v62 = vmax.f32 %v7404_v16, 0.0  ;;  %8046 = vrot.lane.b32.xlu1 %v16928_v41, %s12660_s19 }
 0x8af   : > { %v7997_v28 = vsel %vm2037_vm13, %v7995_v42, %v7996_v22  ;;  %v7871_v54 = vrot.slane %v7869_v7, 1 }
 0x8b0   : > { %v7489_v39 = vpack.c.bf16 %v7468_v62, %v7467_v38  ;;  %v11757_v15 = vpop.f32.mrb[224].mxu1  ;;  %12271 = vmatprep.mubr.msk.bf16.mxu1 %vm983_vm8, %v7997_v28 }
 0x8b1   : > { %v11758_v58 = vpop.f32.mrb[225].mxu1  ;;  %8140 = vrot.lane.b32.xlu0 %v7997_v28, %s12660_s19  ;;  %v16953_v26 = vpop.permute.xlu1 %8090  ;;  %v7872_v8 = vor.u32 %v7871_v54, %v7867_v18 }
 0x8b2   : > { %v7566_v61 = vshrl.u32 %v7489_v39, 16  ;;  %v11759_v6 = vadd.f32 %v11758_v58, %v11757_v15  ;;  %8108 = vrot.lane.b32.xlu1 %v16941_v56, %s12661_s8  ;;  %v11760_v44 = vpop.f32.mrb[226].mxu1  ;;  %v7665_v0 = vrot.slane %v7489_v39, 7  ;;  %v7569_v51 = vshll.u32 %v7489_v39, 16 }
 0x8b3   : > { %v11761_v24 = vpop.f32.mrb[227].mxu1  ;;  %v16958_v30 = vsel %vm1826_vm14, %v7872_v8, %v7876_v19 }
 0x8b4   : > { %v7248_v49 = vadd.f32 %v11759_v6, %v16628_v40  ;;  %v11762_v31 = vadd.f32 %v11761_v24, %v11760_v44  ;;  %v7568_v17 = vrot.slane %v7566_v61, 7 }
 0x8b5   : > { %8200 = vrot.lane.b32.xlu0 %v16958_v30, %s12661_s8  ;;  %v8061_v59 = vpop.permute.xlu1 %8060 }
 0x8b6   : > { %v7409_v2 = vadd.f32 %v16640_v45, %v7248_v49  ;;  %v7251_v36 = vadd.f32 %v11762_v31, %v16628_v40  ;;  %8078 = vrot.lane.b32.xlu1 %v7997_v28, %s12662_s9  ;;  %v7571_v5 = vor.u32 %v7569_v51, %v7568_v17  ;;  %v7713_v63 = vsel %vm13425_vm12, %v7568_v17, %v7665_v0 }
 0x8b7   : > { %v7999_v45 = vrot.slane %v7713_v63, 1  ;;  %v7886_v22 = vshll.u32 %v7713_v63, 16 }
 0x8b8   : > { %v7412_v9 = vadd.f32 %v16644_v34, %v7251_v36  ;;  %v16971_v20 = vsel %vm13425_vm12, %v7489_v39, %v7571_v5  ;;  %v7469_v7 = vmax.f32 %v7409_v2, 0.0  ;;  %v8123_v34 = vpop.permute.xlu0 %8122 }
 0x8b9   : > { %v7998_v16 = vrot.slane %v16971_v20, 1  ;;  %8172 = vrot.lane.b32.xlu0 %v16971_v20, %s12662_s9  ;;  %v7881_v42 = vshll.u32 %v16971_v20, 16  ;;  %v8031_v38 = vpop.permute.xlu1 %8030  ;;  %v7879_v28 = vshrl.u32 %v16971_v20, 16  ;;  %v7888_v58 = vrot.slane %v7886_v22, 1 }
 0x8ba   : > { %v7470_v1 = vmax.f32 %v7412_v9, 0.0  ;;  %8048 = vrot.lane.b32.xlu1 %v16958_v30, %s12660_s19  ;;  %v8215_v9 = vsel %vm983_vm8, %v16661_v52, %v8031_v38  ;;  %v8324_v52 = vsel %vm983_vm8, %v16679_v57, %v8123_v34 }
 0x8bb   : > { %v8000_v62 = vsel %vm2037_vm13, %v7998_v16, %v7999_v45  ;;  %v7883_v18 = vrot.slane %v7881_v42, 1 }
 0x8bc   : > { %v7490_v54 = vpack.c.bf16 %v7470_v1, %v7469_v7  ;;  %12272 = vmatmul.mubr.msk.bf16.gmra.mrb[4].mxu1 %vm983_vm8, %v8000_v62  ;;  %v11763_v39 = vpop.f32.mrb[228].mxu1 }
 0x8bd   : > { %8142 = vrot.lane.b32.xlu0 %v8000_v62, %s12660_s19  ;;  %v7884_v15 = vor.u32 %v7883_v18, %v7879_v28  ;;  %v11764_v19 = vpop.f32.mrb[229].mxu1 }
 0x8be   : > { %v7573_v8 = vshrl.u32 %v7490_v54, 16  ;;  %8110 = vrot.lane.b32.xlu1 %v16971_v20, %s12661_s8  ;;  %v11765_v61 = vadd.f32 %v11764_v19, %v11763_v39  ;;  %v11766_v6 = vpop.f32.mrb[230].mxu1  ;;  %v7576_v17 = vshll.u32 %v7490_v54, 16  ;;  %v7666_v51 = vrot.slane %v7490_v54, 7 }
 0x8bf   : > { %v8155_v44 = vpop.permute.xlu0 %8154  ;;  %v16986_v0 = vsel %vm1826_vm14, %v7884_v15, %v7888_v58  ;;  %v16988_v24 = vpop.permute.xlu1 %8092 }
 0x8c0   : > { %v11767_v49 = vpop.f32.mrb[231].mxu1  ;;  %v7575_v31 = vrot.slane %v7573_v8, 7  ;;  %v7256_v2 = vadd.f32 %v11765_v61, %v16628_v40 }
 0x8c1   : > { %v11768_v36 = vadd.f32 %v11767_v49, %v11766_v6  ;;  %8202 = vrot.lane.b32.xlu0 %v16986_v0, %s12661_s8 }
 0x8c2   : > { %8080 = vrot.lane.b32.xlu1 %v8000_v62, %s12662_s9  ;;  %v7578_v5 = vor.u32 %v7576_v17, %v7575_v31  ;;  %v7714_v63 = vsel %vm13425_vm12, %v7575_v31, %v7666_v51  ;;  %v7417_v16 = vadd.f32 %v16696_v47, %v7256_v2  ;;  %v17013_v47 = vsel %vm2314_vm15, %v8215_v9, %v8061_v59 }
 0x8c3   : > { %v7259_v45 = vadd.f32 %v11768_v36, %v16628_v40  ;;  %v8125_v42 = vpop.permute.xlu0 %8124  ;;  %v17000_v22 = vpop.permute.xlu1 %8062  ;;  %v8002_v28 = vrot.slane %v7714_v63, 1  ;;  %v7898_v18 = vshll.u32 %v7714_v63, 16  ;;  %v8275_v6 = vsel %vm2345_vm0, %v17013_v47, %v16953_v26 }
 0x8c4   : > { %v17004_v7 = vsel %vm13425_vm12, %v7490_v54, %v7578_v5  ;;  %v7471_v54 = vmax.f32 %v7417_v16, 0.0 }
 0x8c5   : > { %v7420_v1 = vadd.f32 %v16713_v48, %v7259_v45  ;;  %8174 = vrot.lane.b32.xlu0 %v17004_v7, %s12662_s9  ;;  %v8001_v62 = vrot.slane %v17004_v7, 1  ;;  %v7893_v38 = vshll.u32 %v17004_v7, 16  ;;  %v8371_v48 = vsel %vm2314_vm15, %v8324_v52, %v8155_v44 }
 0x8c6   : > { %8050 = vrot.lane.b32.xlu1 %v16986_v0, %s12660_s19  ;;  %v7891_v59 = vshrl.u32 %v17004_v7, 16  ;;  %v7900_v31 = vrot.slane %v7898_v18, 1 }
 0x8c7   : > { %v7472_v39 = vmax.f32 %v7420_v1, 0.0  ;;  %v8185_v15 = vpop.permute.xlu0 %8184  ;;  %v8003_v58 = vsel %vm2037_vm13, %v8001_v62, %v8002_v28  ;;  %v17020_v8 = vpop.permute.xlu1 %8032  ;;  %v7895_v34 = vrot.slane %v7893_v38, 1  ;;  %v17042_v28 = vld [vmem:[%s18222_s4 + $0x3] ss:$0 sm:$0xff] }
 0x8c8   : > { %v8402_v57 = vsel %vm2345_vm0, %v8371_v48, %v8185_v15  ;;  %12275 = vmatprep.mubr.msk.bf16.mxu1 %vm983_vm8, %v8003_v58  ;;  %v8327_v48 = vsel %vm983_vm8, %v16730_v4, %v8125_v42 }
 0x8c9   : > { %v7491_v19 = vpack.c.bf16 %v7472_v39, %v7471_v54  ;;  %v11769_v61 = vpop.f32.mrb[232].mxu1  ;;  %8639 = vmatprep.mubr.bf16.mxu0 %v8402_v57  ;;  %8144 = vrot.lane.b32.xlu0 %v8003_v58, %s12660_s19  ;;  %v7896_v49 = vor.u32 %v7895_v34, %v7891_v59 }
 0x8ca   : > { %v11770_v44 = vpop.f32.mrb[233].mxu1  ;;  %8112 = vrot.lane.b32.xlu1 %v17004_v7, %s12661_s8  ;;  %8640 = vmatmul.mubr.bf16.vlgmr.msra.gmra.mrb[236].mxu0 %v8275_v6 }
 0x8cb   : > { %v7580_v17 = vshrl.u32 %v7491_v19, 16  ;;  %v11771_v51 = vadd.f32 %v11770_v44, %v11769_v61  ;;  %v11772_v2 = vpop.f32.mrb[234].mxu1  ;;  %v7667_v36 = vrot.slane %v7491_v19, 7  ;;  %v17032_v9 = vsel %vm1826_vm14, %v7896_v49, %v7900_v31 }
 0x8cc   : > { %v11773_v5 = vpop.f32.mrb[235].mxu1  ;;  %v8157_v63 = vpop.permute.xlu1 %8156  ;;  %v7583_v1 = vshll.u32 %v7491_v19, 16 }
 0x8cd   : > { %v7264_v16 = vadd.f32 %v11771_v51, %v16628_v40  ;;  %v11774_v45 = vadd.f32 %v11773_v5, %v11772_v2  ;;  %8204 = vrot.lane.b32.xlu0 %v17032_v9, %s12661_s8  ;;  %v7582_v26 = vrot.slane %v7580_v17, 7  ;;  %v8373_v61 = vsel %vm2314_vm15, %v8327_v48, %v8157_v63 }
 0x8ce   : > { %8082 = vrot.lane.b32.xlu1 %v8003_v58, %s12662_s9  ;;  %v8278_v63 = vsel %vm2345_vm0, %v17013_v47, %v16988_v24 }
 0x8cf   : > { %v7425_v62 = vadd.f32 %v16688_v11, %v7264_v16  ;;  %v7267_v52 = vadd.f32 %v17042_v28, %v11774_v45  ;;  %v8127_v38 = vpop.permute.xlu0 %8126  ;;  %v7585_v18 = vor.u32 %v7583_v1, %v7582_v26  ;;  %v7715_v40 = vsel %vm13425_vm12, %v7582_v26, %v7667_v36 }
 0x8d0   : > { %v17047_v54 = vpop.permute.xlu1 %8094  ;;  %v8005_v59 = vrot.slane %v7715_v40, 1  ;;  %v7910_v4 = vshll.u32 %v7715_v40, 16 }
 0x8d1   : > { %v7428_v39 = vadd.f32 %v16706_v10, %v7267_v52  ;;  %v11775_v11 = vpop.f32.mrb[236].mxu1  ;;  %v17054_v15 = vsel %vm13425_vm12, %v7491_v19, %v7585_v18  ;;  %v7473_v42 = vmax.f32 %v7425_v62, 0.0 }
 0x8d2   : > { %v11776_v58 = vpop.f32.mrb[237].mxu1  ;;  %v8004_v57 = vrot.slane %v17054_v15, 1  ;;  %8176 = vrot.lane.b32.xlu0 %v17054_v15, %s12662_s9  ;;  %8052 = vrot.lane.b32.xlu1 %v17032_v9, %s12660_s19  ;;  %v7905_v34 = vshll.u32 %v17054_v15, 16  ;;  %v7903_v2 = vshrl.u32 %v17054_v15, 16  ;;  %v7912_v1 = vrot.slane %v7910_v4, 1 }
 0x8d3   : > { %v7474_v10 = vmax.f32 %v7428_v39, 0.0  ;;  %v11777_v6 = vadd.f32 %v11776_v58, %v11775_v11  ;;  %v11778_v19 = vpop.f32.mrb[238].mxu1  ;;  %v8187_v44 = vpop.permute.xlu0 %8186 }
 0x8d4   : > { %v11779_v49 = vpop.f32.mrb[239].mxu1  ;;  %v17063_v31 = vpop.permute.xlu1 %8064  ;;  %v8405_v17 = vsel %vm2345_vm0, %v8373_v61, %v8187_v44  ;;  %v8006_v51 = vsel %vm2037_vm13, %v8004_v57, %v8005_v59  ;;  %v7907_v36 = vrot.slane %v7905_v34, 1 }
 0x8d5   : > { %v7492_v5 = vpack.c.bf16 %v7474_v10, %v7473_v42  ;;  %v7272_v16 = vadd.f32 %v17042_v28, %v11777_v6  ;;  %v11780_v45 = vadd.f32 %v11779_v49, %v11778_v19  ;;  %8647 = vmatprep.mubr.bf16.mxu0 %v8405_v17  ;;  %12276 = vmatmul.mubr.msk.bf16.gmra.mrb[8].mxu1 %vm983_vm8, %v8006_v51 }
 0x8d6   : > { %8146 = vrot.lane.b32.xlu0 %v8006_v51, %s12660_s19  ;;  %8114 = vrot.lane.b32.xlu1 %v17054_v15, %s12661_s8  ;;  %v7908_v26 = vor.u32 %v7907_v36, %v7903_v2  ;;  %v8217_v6 = vsel %vm983_vm8, %v16700_v35, %v17020_v8  ;;  %v8330_v19 = vsel %vm983_vm8, %v16761_v43, %v8127_v38 }
 0x8d7   : > { %v7587_v62 = vshrl.u32 %v7492_v5, 16  ;;  %v7433_v52 = vadd.f32 %v16727_v46, %v7272_v16  ;;  %v7275_v18 = vadd.f32 %v17042_v28, %v11780_v45  ;;  %8648 = vmatmul.mubr.bf16.gmra.mrb[240].mxu0 %v8278_v63  ;;  %v8159_v40 = vpop.permute.xlu0 %8158  ;;  %v7590_v59 = vshll.u32 %v7492_v5, 16 }
 0x8d8   : > { %v17078_v48 = vpop.permute.xlu1 %8034  ;;  %v17081_v39 = vsel %vm1826_vm14, %v7908_v26, %v7912_v1  ;;  %v7668_v24 = vrot.slane %v7492_v5, 7  ;;  %v8375_v45 = vsel %vm2314_vm15, %v8330_v19, %v8159_v40 }
 0x8d9   : > { %v7436_v11 = vadd.f32 %v16740_v21, %v7275_v18  ;;  %v11781_v58 = vpop.f32.mrb[240].mxu1  ;;  %v7589_v57 = vrot.slane %v7587_v62, 7  ;;  %v7475_v47 = vmax.f32 %v7433_v52, 0.0 }
 0x8da   : > { %v11782_v34 = vpop.f32.mrb[241].mxu1  ;;  %8206 = vrot.lane.b32.xlu0 %v17081_v39, %s12661_s8  ;;  %8084 = vrot.lane.b32.xlu1 %v8006_v51, %s12662_s9 }
 0x8db   : > { %v7476_v46 = vmax.f32 %v7436_v11, 0.0  ;;  %v11783_v4 = vadd.f32 %v11782_v34, %v11781_v58  ;;  %v11784_v42 = vpop.f32.mrb[242].mxu1  ;;  %v17087_v10 = vpop.permute.xlu0 %8128  ;;  %v7592_v61 = vor.u32 %v7590_v59, %v7589_v57  ;;  %v7716_v21 = vsel %vm13425_vm12, %v7589_v57, %v7668_v24 }
 0x8dc   : > { %v11785_v44 = vpop.f32.mrb[243].mxu1  ;;  %v17096_v49 = vpop.permute.xlu1 %8096  ;;  %v8008_v43 = vrot.slane %v7716_v21, 1  ;;  %v7922_v38 = vshll.u32 %v7716_v21, 16 }
 0x8dd   : > { %v7493_v17 = vpack.c.bf16 %v7476_v46, %v7475_v47  ;;  %v7280_v51 = vadd.f32 %v17042_v28, %v11783_v4  ;;  %v11786_v2 = vadd.f32 %v11785_v44, %v11784_v42  ;;  %v17101_v36 = vsel %vm13425_vm12, %v7492_v5, %v7592_v61 }
 0x8de   : > { %8178 = vrot.lane.b32.xlu0 %v17101_v36, %s12662_s9  ;;  %8054 = vrot.lane.b32.xlu1 %v17081_v39, %s12660_s19  ;;  %v8007_v35 = vrot.slane %v17101_v36, 1  ;;  %v7917_v8 = vshll.u32 %v17101_v36, 16  ;;  %v7915_v5 = vshrl.u32 %v17101_v36, 16  ;;  %v7924_v47 = vrot.slane %v7922_v38, 1 }
 0x8df   : > { %v7594_v16 = vshrl.u32 %v7493_v17, 16  ;;  %v7441_v63 = vadd.f32 %v16724_v37, %v7280_v51  ;;  %v8189_v26 = vpop.permute.xlu0 %8188  ;;  %v7283_v1 = vadd.f32 %v17042_v28, %v11786_v2  ;;  %v7597_v57 = vshll.u32 %v7493_v17, 16 }
 0x8e0   : > { %v17113_v62 = vpop.permute.xlu1 %8066  ;;  %v8009_v52 = vsel %vm2037_vm13, %v8007_v35, %v8008_v43  ;;  %v8408_v18 = vsel %vm2345_vm0, %v8375_v45, %v8189_v26  ;;  %v7919_v11 = vrot.slane %v7917_v8, 1  ;;  %v7669_v59 = vrot.slane %v7493_v17, 7 }
 0x8e1   : > { %v7596_v58 = vrot.slane %v7594_v16, 7  ;;  %12279 = vmatprep.mubr.msk.bf16.mxu1 %vm983_vm8, %v8009_v52  ;;  %8655 = vmatprep.mubr.bf16.mxu0 %v8408_v18  ;;  %v8247_v37 = vsel %vm2314_vm15, %v8217_v6, %v17000_v22  ;;  %v7444_v40 = vadd.f32 %v16736_v14, %v7283_v1  ;;  %v7477_v42 = vmax.f32 %v7441_v63, 0.0 }
 0x8e2   : > { %8148 = vrot.lane.b32.xlu0 %v8009_v52, %s12660_s19  ;;  %8116 = vrot.lane.b32.xlu1 %v17101_v36, %s12661_s8  ;;  %v8281_v28 = vsel %vm2345_vm0, %v8247_v37, %v17047_v54  ;;  %v7920_v24 = vor.u32 %v7919_v11, %v7915_v5  ;;  %v8333_v16 = vsel %vm983_vm8, %v16788_v29, %v17087_v10 }
 0x8e3   : > { %v7599_v34 = vor.u32 %v7597_v57, %v7596_v58  ;;  %v7717_v46 = vsel %vm13425_vm12, %v7596_v58, %v7669_v59  ;;  %8656 = vmatmul.mubr.bf16.gmra.mrb[244].mxu0 %v8281_v28  ;;  %v8161_v4 = vpop.permute.xlu0 %8160  ;;  %v7478_v22 = vmax.f32 %v7444_v40, 0.0 }
 0x8e4   : > { %v8037_v61 = vpop.permute.xlu1 %8036  ;;  %v17129_v14 = vsel %vm1826_vm14, %v7920_v24, %v7924_v47  ;;  %v8011_v19 = vrot.slane %v7717_v46, 1  ;;  %v8377_v26 = vsel %vm2314_vm15, %v8333_v16, %v8161_v4  ;;  %v7934_v5 = vshll.u32 %v7717_v46, 16 }
 0x8e5   : > { %v17133_v21 = vsel %vm13425_vm12, %v7493_v17, %v7599_v34  ;;  %v7494_v6 = vpack.c.bf16 %v7478_v22, %v7477_v42  ;;  %v8219_v17 = vsel %vm983_vm8, %v16747_v23, %v17078_v48 }
 0x8e6   : > { %8208 = vrot.lane.b32.xlu0 %v17129_v14, %s12661_s8  ;;  %8086 = vrot.lane.b32.xlu1 %v8009_v52, %s12662_s9  ;;  %v8010_v54 = vrot.slane %v17133_v21, 1  ;;  %v7929_v44 = vshll.u32 %v17133_v21, 16  ;;  %v7927_v48 = vshrl.u32 %v17133_v21, 16  ;;  %v8249_v10 = vsel %vm2314_vm15, %v8219_v17, %v17063_v31 }
 0x8e7   : > { %v8131_v51 = vpop.permute.xlu0 %8130  ;;  %v7601_v43 = vshrl.u32 %v7494_v6, 16  ;;  %v7604_v38 = vshll.u32 %v7494_v6, 16  ;;  %v7670_v63 = vrot.slane %v7494_v6, 7  ;;  %v8284_v58 = vsel %vm2345_vm0, %v8249_v10, %v17096_v49 }
 0x8e8   : > { %v8099_v2 = vpop.permute.xlu1 %8098  ;;  %v17141_v35 = vsel %vm2037_vm13, %v8010_v54, %v8011_v19  ;;  %v7931_v8 = vrot.slane %v7929_v44, 1  ;;  %v7936_v28 = vrot.slane %v7934_v5, 1  ;;  %v8336_v19 = vsel %vm983_vm8, %v16816_v25, %v8131_v51 }
 0x8e9   : > { %12280 = vmatmul.mubr.msk.bf16.gmra.mrb[12].mxu1 %vm983_vm8, %v17141_v35  ;;  %v7603_v45 = vrot.slane %v7601_v43, 7 }
 0x8ea   : > { %8180 = vrot.lane.b32.xlu0 %v17133_v21, %s12662_s9  ;;  %8056 = vrot.lane.b32.xlu1 %v17129_v14, %s12660_s19  ;;  %v7932_v11 = vor.u32 %v7931_v8, %v7927_v48 }
 0x8eb   : > { %v8191_v23 = vpop.permute.xlu0 %8190  ;;  %v7606_v18 = vor.u32 %v7604_v38, %v7603_v45  ;;  %v7718_v29 = vsel %vm13425_vm12, %v7603_v45, %v7670_v63 }
 0x8ec   : > { %v8069_v1 = vpop.permute.xlu1 %8068  ;;  %v8411_v52 = vsel %vm2345_vm0, %v8377_v26, %v8191_v23  ;;  %v8028_v40 = vrot.slane %v7718_v29, 1  ;;  %v17172_v34 = vsel %vm1826_vm14, %v7932_v11, %v7936_v28  ;;  %v8021_v42 = vshll.u32 %v7718_v29, 16 }
 0x8ed   : > { %8663 = vmatprep.mubr.bf16.mxu0 %v8411_v52  ;;  %v7702_v57 = vsel %vm13425_vm12, %v7494_v6, %v7606_v18  ;;  %v8221_v6 = vsel %vm983_vm8, %v16773_v55, %v8037_v61 }
 0x8ee   : > { %8150 = vrot.lane.b32.xlu0 %v17141_v35, %s12660_s19  ;;  %8118 = vrot.lane.b32.xlu1 %v17133_v21, %s12661_s8  ;;  %v8027_v37 = vrot.slane %v7702_v57, 1  ;;  %v8016_v24 = vshll.u32 %v7702_v57, 16  ;;  %v8014_v4 = vshrl.u32 %v7702_v57, 16  ;;  %v8023_v17 = vrot.slane %v8021_v42, 1 }
 0x8ef   : > { %8664 = vmatmul.mubr.bf16.gmra.mrb[248].mxu0 %v8284_v58  ;;  %v8163_v59 = vpop.permute.xlu0 %8162  ;;  %v8251_v16 = vsel %vm2314_vm15, %v8221_v6, %v17113_v62 }
 0x8f0   : > { %v8039_v31 = vpop.permute.xlu1 %8038  ;;  %v8029_v47 = vsel %vm2037_vm13, %v8027_v37, %v8028_v40  ;;  %v8018_v46 = vrot.slane %v8016_v24, 1  ;;  %v8379_v44 = vsel %vm2314_vm15, %v8336_v19, %v8163_v59  ;;  %v8287_v25 = vsel %vm2345_vm0, %v8251_v16, %v8099_v2 }
 0x8f1   : > { %12283 = vmatprep.mubr.msk.bf16.mxu1 %vm983_vm8, %v8029_v47  ;;  %v8223_v26 = vsel %vm983_vm8, %v16801_v13, %v8039_v31 }
 0x8f2   : > { %8210 = vrot.lane.b32.xlu0 %v17172_v34, %s12661_s8  ;;  %12284 = vmatmul.mubr.msk.bf16.gmra.mrb[16].mxu1 %vm983_vm8, %v8029_v47  ;;  %v8019_v54 = vor.u32 %v8018_v46, %v8014_v4  ;;  %v8253_v48 = vsel %vm2314_vm15, %v8223_v26, %v8069_v1 }
 0x8f3   : > { %8058 = vrot.lane.b32.xlu1 %v17172_v34, %s12660_s19  ;;  %v8133_v49 = vpop.permute.xlu0 %8132 }
 0x8f4   : > { %v8101_v22 = vpop.permute.xlu1 %8100  ;;  %v17191_v55 = vsel %vm1826_vm14, %v8019_v54, %v8023_v17  ;;  %v8339_v62 = vsel %vm983_vm8, %v16844_v50, %v8133_v49 }
 0x8f5   : > { %v8290_v18 = vsel %vm2345_vm0, %v8253_v48, %v8101_v22 }
 0x8f6   : > { %8182 = vrot.lane.b32.xlu0 %v7702_v57, %s12662_s9 }
 0x8f7   : > { %8120 = vrot.lane.b32.xlu1 %v7702_v57, %s12661_s8  ;;  %v8193_v43 = vpop.permute.xlu0 %8192 }
 0x8f8   : > { %v8071_v8 = vpop.permute.xlu1 %8070  ;;  %v8414_v38 = vsel %vm2345_vm0, %v8379_v44, %v8193_v43 }
 0x8f9   : > { %8671 = vmatprep.mubr.bf16.mxu0 %v8414_v38 }
 0x8fa   : > { %8212 = vrot.lane.b32.xlu0 %v17191_v55, %s12661_s8  ;;  %8672 = vmatmul.mubr.bf16.gmra.mrb[252].mxu0 %v8287_v25 }
 0x8fb   : > { %v8165_v61 = vpop.permute.xlu0 %8164 }
 0x8fc   : > { %v8041_v51 = vpop.permute.xlu1 %8040  ;;  %v8381_v2 = vsel %vm2314_vm15, %v8339_v62, %v8165_v61 }
 0x8fd   : > { %v8225_v50 = vsel %vm983_vm8, %v16829_v53, %v8041_v51 }
 0x8fe   : > { %8152 = vrot.lane.b32.xlu0 %v8029_v47, %s12660_s19  ;;  %v8255_v57 = vsel %vm2314_vm15, %v8225_v50, %v8071_v8 }
 0x8ff   : > { %v8135_v45 = vpop.permute.xlu0 %8134 }
 0x900   : > { %v8103_v63 = vpop.permute.xlu1 %8102 }
 0x901   : > { %v8293_v40 = vsel %vm2345_vm0, %v8255_v57, %v8103_v63 }
 0x902   : > { %8088 = vrot.lane.b32.xlu0 %v17141_v35, %s12662_s9  ;;  %v8342_v35 = vsel %vm983_vm8, %v16872_v60, %v8135_v45 }
 0x903   : > { %v8195_v23 = vpop.permute.xlu0 %8194 }
 0x904   : > { %v8073_v5 = vpop.permute.xlu1 %8072  ;;  %v8417_v52 = vsel %vm2345_vm0, %v8381_v2, %v8195_v23 }
 0x905   : > { %8679 = vmatprep.mubr.bf16.mxu0 %v8417_v52 }
 0x906   : > { %8680 = vmatmul.mubr.bf16.gmra.mrb[0].mxu0 %v8290_v18 }
 0x907   : > { %v8167_v29 = vpop.permute.xlu0 %8166 }
 0x908   : > { %v8043_v13 = vpop.permute.xlu1 %8042  ;;  %v8383_v58 = vsel %vm2314_vm15, %v8342_v35, %v8167_v29 }
 0x909   : > { %v8227_v53 = vsel %vm983_vm8, %v16857_v33, %v8043_v13 }
 0x90a   : > { %v8257_v4 = vsel %vm2314_vm15, %v8227_v53, %v8073_v5 }
 0x90b   : > { %v8137_v10 = vpop.permute.xlu0 %8136 }
 0x90c   : > { %v8105_v11 = vpop.permute.xlu1 %8104  ;;  %v8345_v60 = vsel %vm983_vm8, %v16900_v12, %v8137_v10 }
 0x90d   : > { %v8296_v6 = vsel %vm2345_vm0, %v8257_v4, %v8105_v11 }
 0x90f   : > { %v8197_v1 = vpop.permute.xlu0 %8196 }
 0x910   : > { %v8075_v59 = vpop.permute.xlu1 %8074  ;;  %v8420_v37 = vsel %vm2345_vm0, %v8383_v58, %v8197_v1 }
 0x911   : > { %8687 = vmatprep.mubr.bf16.mxu0 %v8420_v37 }
 0x912   : > { %8688 = vmatmul.mubr.bf16.gmra.mrb[4].mxu0 %v8293_v40 }
 0x913   : > { %v8169_v28 = vpop.permute.xlu0 %8168 }
 0x914   : > { %v8045_v24 = vpop.permute.xlu1 %8044  ;;  %v8385_v46 = vsel %vm2314_vm15, %v8345_v60, %v8169_v28 }
 0x915   : > { %v8229_v33 = vsel %vm983_vm8, %v16885_v3, %v8045_v24 }
 0x916   : > { %v8259_v38 = vsel %vm2314_vm15, %v8229_v33, %v8075_v59 }
 0x917   : > { %v8139_v31 = vpop.permute.xlu0 %8138 }
 0x918   : > { %v8107_v47 = vpop.permute.xlu1 %8106  ;;  %v8348_v12 = vsel %vm983_vm8, %v16928_v41, %v8139_v31 }
 0x919   : > { %v8299_v61 = vsel %vm2345_vm0, %v8259_v38, %v8107_v47 }
 0x91b   : > { %v8199_v49 = vpop.permute.xlu0 %8198 }
 0x91c   : > { %v8077_v42 = vpop.permute.xlu1 %8076  ;;  %v8423_v22 = vsel %vm2345_vm0, %v8385_v46, %v8199_v49 }
 0x91d   : > { %8695 = vmatprep.mubr.bf16.mxu0 %v8423_v22 }
 0x91e   : > { %8696 = vmatmul.mubr.bf16.gmra.mrb[8].mxu0 %v8296_v6 }
 0x91f   : > { %v8171_v54 = vpop.permute.xlu0 %8170 }
 0x920   : > { %v8047_v19 = vpop.permute.xlu1 %8046  ;;  %v8387_v17 = vsel %vm2314_vm15, %v8348_v12, %v8171_v54 }
 0x921   : > { %v8231_v41 = vsel %vm983_vm8, %v16913_v27, %v8047_v19 }
 0x922   : > { %v8261_v18 = vsel %vm2314_vm15, %v8231_v41, %v8077_v42 }
 0x923   : > { %v8141_v44 = vpop.permute.xlu0 %8140 }
 0x924   : > { %v8109_v43 = vpop.permute.xlu1 %8108  ;;  %v8351_v2 = vsel %vm983_vm8, %v16958_v30, %v8141_v44 }
 0x925   : > { %v8302_v10 = vsel %vm2345_vm0, %v8261_v18, %v8109_v43  ;;  %v12489_v43 = vld [vmem:[%s18223_s5 + $0x80] sm:$0xff]  }
 0x926   : > { %12287 = vmatprep.subr.bf16.mxu0 %v12489_v43 }
 0x927   : > { %v8201_v8 = vpop.permute.xlu0 %8200  ;;  %12288 = vmatpush3.bf16.msra.mxu0 %v12489_v43  ;;  %v17336_v43 = vld [vmem:[%s18222_s4 + $0x4] ss:$0 sm:$0xff] }
 0x928   : > { %v8079_v16 = vpop.permute.xlu1 %8078  ;;  %v8426_v25 = vsel %vm2345_vm0, %v8387_v17, %v8201_v8 }
 0x929   : > { %8703 = vmatprep.mubr.bf16.mxu0 %v8426_v25 }
 0x92a   : > { %8704 = vmatmul.mubr.bf16.gmra.mrb[12].mxu0 %v8299_v61 }
 0x92b   : > { %v8173_v51 = vpop.permute.xlu0 %8172 }
 0x92c   : > { %v8049_v45 = vpop.permute.xlu1 %8048  ;;  %v8389_v48 = vsel %vm2314_vm15, %v8351_v2, %v8173_v51 }
 0x92d   : > { %v8233_v35 = vsel %vm983_vm8, %v16941_v56, %v8049_v45 }
 0x92e   : > { %v8263_v59 = vsel %vm2314_vm15, %v8233_v35, %v8079_v16 }
 0x92f   : > { %v8143_v63 = vpop.permute.xlu0 %8142 }
 0x930   : > { %v17231_v26 = vpop.f32.mrb[244].mxu1  ;;  %v8111_v3 = vpop.permute.xlu1 %8110  ;;  %v8354_v58 = vsel %vm983_vm8, %v16986_v0, %v8143_v63 }
 0x931   : > { %v17235_v62 = vpop.f32.mrb[245].mxu1  ;;  %v8305_v28 = vsel %vm2345_vm0, %v8263_v59, %v8111_v3 }
 0x932   : > { %v17239_v23 = vpop.f32.mrb[246].mxu1 }
 0x933   : > { %v17242_v5 = vpop.f32.mrb[247].mxu1  ;;  %v8203_v52 = vpop.permute.xlu0 %8202 }
 0x934   : > { %v8081_v29 = vpop.permute.xlu1 %8080  ;;  %v8429_v13 = vsel %vm2345_vm0, %v8389_v48, %v8203_v52 }
 0x935   : > { %8711 = vmatprep.mubr.bf16.mxu0 %v8429_v13 }
 0x936   : > { %8712 = vmatmul.mubr.bf16.gmra.mrb[16].mxu0 %v8302_v10 }
 0x937   : > { %v8175_v27 = vpop.permute.xlu0 %8174 }
 0x938   : > { %v8051_v11 = vpop.permute.xlu1 %8050  ;;  %v8391_v1 = vsel %vm2314_vm15, %v8354_v58, %v8175_v27 }
 0x939   : > { %v8235_v0 = vsel %vm983_vm8, %v16971_v20, %v8051_v11 }
 0x93a   : > { %v8265_v54 = vsel %vm2314_vm15, %v8235_v0, %v8081_v29 }
 0x93b   : > { %v8145_v50 = vpop.permute.xlu0 %8144 }
 0x93c   : > { %v8113_v30 = vpop.permute.xlu1 %8112  ;;  %v8357_v49 = vsel %vm983_vm8, %v17032_v9, %v8145_v50  ;;  %v12490_v9 = vld [vmem:[%s18223_s5 + $0x88] sm:$0xff]  }
 0x93d   : > { %v8308_v44 = vsel %vm2345_vm0, %v8265_v54, %v8113_v30  ;;  %12289 = vmatprep.subr.bf16.mxu0 %v12490_v9 }
 0x93e   : > { %12290 = vmatpush3.bf16.msra.mxu0 %v12490_v9 }
 0x93f   : > { %v8205_v57 = vpop.permute.xlu0 %8204 }
 0x940   : > { %v8083_v37 = vpop.permute.xlu1 %8082  ;;  %v8432_v40 = vsel %vm2345_vm0, %v8391_v1, %v8205_v57 }
 0x941   : > { %8719 = vmatprep.mubr.bf16.mxu0 %v8432_v40 }
 0x942   : > { %8720 = vmatmul.mubr.bf16.gmra.mrb[20].mxu0 %v8305_v28 }
 0x944   : > { %v8177_v24 = vpop.permute.xlu0 %8176  ;;  %v8053_v31 = vpop.permute.xlu1 %8052 }
 0x945   : > { %v8393_v42 = vsel %vm2314_vm15, %v8357_v49, %v8177_v24  ;;  %v8237_v17 = vsel %vm983_vm8, %v17004_v7, %v8053_v31 }
 0x946   : > { %v8267_v61 = vsel %vm2314_vm15, %v8237_v17, %v8083_v37 }
 0x947   : > { %v17255_v47 = vpop.f32.mrb[248].mxu1 }
 0x948   : > { %v8147_v56 = vpop.permute.xlu0 %8146  ;;  %v8115_v53 = vpop.permute.xlu1 %8114 }
 0x949   : > { %v17257_v60 = vpop.f32.mrb[249].mxu1  ;;  %v8360_v8 = vsel %vm983_vm8, %v17081_v39, %v8147_v56  ;;  %v8311_v45 = vsel %vm2345_vm0, %v8267_v61, %v8115_v53  ;;  %v12491_v61 = vld [vmem:[%s18223_s5 + $0x40] sm:$0xff]  }
 0x94a   : > { %v17261_v46 = vpop.f32.mrb[250].mxu1  ;;  %11935 = vmatprep.subr.bf16.mxu1 %v12491_v61  ;;  %v12501_v61 = vld [vmem:[%s18223_s5 + $0x68] sm:$0xff]  }
 0x94b   : > { %v17265_v4 = vpop.f32.mrb[251].mxu1 }
 0x94c   : > { %v8207_v22 = vpop.permute.xlu0 %8206  ;;  %v8085_v6 = vpop.permute.xlu1 %8084 }
 0x94d   : > { %v8435_v19 = vsel %vm2345_vm0, %v8393_v42, %v8207_v22 }
 0x94e   : > { %8727 = vmatprep.mubr.bf16.mxu0 %v8435_v19 }
 0x94f   : > { %8728 = vmatmul.mubr.bf16.gmra.mrb[24].mxu0 %v8308_v44 }
 0x950   : > { %v8179_v20 = vpop.permute.xlu0 %8178  ;;  %v8055_v33 = vpop.permute.xlu1 %8054 }
 0x951   : > { %v8395_v16 = vsel %vm2314_vm15, %v8360_v8, %v8179_v20  ;;  %v8239_v39 = vsel %vm983_vm8, %v17054_v15, %v8055_v33 }
 0x952   : > { %v8269_v27 = vsel %vm2314_vm15, %v8239_v39, %v8085_v6 }
 0x954   : > { %v8149_v12 = vpop.permute.xlu0 %8148  ;;  %v8117_v38 = vpop.permute.xlu1 %8116 }
 0x955   : > { %v8363_v52 = vsel %vm983_vm8, %v17129_v14, %v8149_v12  ;;  %v8314_v50 = vsel %vm2345_vm0, %v8269_v27, %v8117_v38  ;;  %v12496_v27 = vld [vmem:[%s18223_s5 + $0x10] sm:$0xff]  }
 0x958   : > { %v8209_v25 = vpop.permute.xlu0 %8208  ;;  %v8087_v3 = vpop.permute.xlu1 %8086 }
 0x959   : > { %v8438_v51 = vsel %vm2345_vm0, %v8395_v16, %v8209_v25 }
 0x95a   : > { %8735 = vmatprep.mubr.bf16.mxu0 %v8438_v51  ;;  %v12492_v51 = vld [vmem:[%s18223_s5] sm:$0xff]  }
 0x95b   : > { %8736 = vmatmul.mubr.bf16.gmra.mrb[28].mxu0 %v8311_v45  ;;  %v12493_v45 = vld [vmem:[%s18223_s5 + $0x48] sm:$0xff]   ;;  %11936 = vmatpush3.bf16.msra.mxu1 %v12492_v51 }
 0x95c   : > { %v8181_v63 = vpop.permute.xlu0 %8180  ;;  %v8057_v18 = vpop.permute.xlu1 %8056  ;;  %11937 = vmatprep.subr.bf16.mxu1 %v12493_v45 }
 0x95d   : > { %v8397_v13 = vsel %vm2314_vm15, %v8363_v52, %v8181_v63  ;;  %v8241_v35 = vsel %vm983_vm8, %v17101_v36, %v8057_v18 }
 0x95e   : > { %v8271_v57 = vsel %vm2314_vm15, %v8241_v35, %v8087_v3 }
 0x95f   : > { %v17285_v41 = vpop.f32.mrb[252].mxu1 }
 0x960   : > { %v8151_v7 = vpop.permute.xlu0 %8150  ;;  %v17287_v2 = vpop.f32.mrb[253].mxu1 }
 0x961   : > { %v17291_v48 = vpop.f32.mrb[254].mxu1  ;;  %v8119_v30 = vpop.permute.xlu1 %8118  ;;  %v8366_v14 = vsel %vm983_vm8, %v17172_v34, %v8151_v7 }
 0x962   : > { %v17295_v29 = vpop.f32.mrb[255].mxu1  ;;  %v8317_v37 = vsel %vm2345_vm0, %v8271_v57, %v8119_v30 }
 0x964   : > { %v8211_v10 = vpop.permute.xlu0 %8210 }
 0x965   : > { %v8441_v11 = vsel %vm2345_vm0, %v8397_v13, %v8211_v10  ;;  %v8059_v40 = vpop.permute.xlu1 %8058 }
 0x966   : > { %8743 = vmatprep.mubr.bf16.mxu0 %v8441_v11  ;;  %v8243_v31 = vsel %vm983_vm8, %v17133_v21, %v8059_v40 }
 0x967   : > { %8744 = vmatmul.mubr.bf16.gmra.mrb[32].mxu0 %v8314_v50 }
 0x968   : > { %v8183_v15 = vpop.permute.xlu0 %8182 }
 0x969   : > { %v8399_v58 = vsel %vm2314_vm15, %v8366_v14, %v8183_v15  ;;  %v8121_v53 = vpop.permute.xlu1 %8120 }
 0x96c   : > { %v8213_v1 = vpop.permute.xlu0 %8212 }
 0x96d   : > { %v8444_v59 = vsel %vm2345_vm0, %v8399_v58, %v8213_v1 }
 0x96e   : > { %8751 = vmatprep.mubr.bf16.mxu0 %v8444_v59 }
 0x96f   : > { %8752 = vmatmul.mubr.bf16.gmra.mrb[36].mxu0 %v8317_v37 }
 0x970   : > { %v8153_v28 = vpop.permute.xlu0 %8152 }
 0x971   : > { %v8369_v24 = vsel %vm983_vm8, %v17191_v55, %v8153_v28 }
 0x972   : > { %v8400_v36 = vsel %vm2314_vm15, %v8369_v24, %v8183_v15 }
 0x973   : > { %v8446_v34 = vsel %vm2345_vm0, %v8400_v36, %v8213_v1 }
 0x974   : > { %v8089_v56 = vpop.permute.xlu0 %8088  ;;  %8759 = vmatprep.mubr.bf16.mxu0 %v8446_v34  ;;  %v12497_v34 = vld [vmem:[%s18223_s5 + $0x58] sm:$0xff]  }
 0x975   : > { %v8273_v0 = vsel %vm2314_vm15, %v8243_v31, %v8089_v56  ;;  %v12498_v31 = vld [vmem:[%s18223_s5 + $0x18] sm:$0xff]   ;;  %v12499_v56 = vld [vmem:[%s18223_s5 + $0x60] sm:$0xff]  }
 0x976   : > { %v8320_v49 = vsel %vm2345_vm0, %v8273_v0, %v8121_v53 }
 0x977   : > { %8760 = vmatmul.mubr.bf16.gmra.mrb[40].mxu0 %v8320_v49  ;;  %v17317_v42 = vpop.f32.mrb[0].mxu1 }
 0x978   : > { %v17319_v22 = vpop.f32.mrb[1].mxu1 }
 0x979   : > { %v17321_v55 = vpop.f32.mrb[2].mxu1 }
 0x97a   : > { %v17323_v6 = vpop.f32.mrb[3].mxu1 }
 0x98f   : > { %v17325_v54 = vpop.f32.mrb[4].mxu1 }
 0x990   : > { %v17327_v19 = vpop.f32.mrb[5].mxu1 }
 0x991   : > { %v17329_v21 = vpop.f32.mrb[6].mxu1 }
 0x992   : > { %v17331_v44 = vpop.f32.mrb[7].mxu1 }
 0x99d   : > { %v11821_v20 = vpop.f32.mrb[236].mxu0 }
 0x99e   : > { %v11822_v9 = vpop.f32.mrb[237].mxu0 }
 0x99f   : > { %v11823_v33 = vadd.f32 %v11822_v9, %v11821_v20  ;;  %v11824_v12 = vpop.f32.mrb[238].mxu0 }
 0x9a0   : > { %v11825_v17 = vpop.f32.mrb[239].mxu0 }
 0x9a1   : > { %v8642_v8 = vadd.f32 %v11823_v33, %v17336_v43  ;;  %v11826_v38 = vadd.f32 %v11825_v17, %v11824_v12  ;;  %v12500_v33 = vld [vmem:[%s18223_s5 + $0x20] sm:$0xff]  }
 0x9a3   : > { %v8803_v16 = vadd.f32 %v17235_v62, %v8642_v8  ;;  %v8645_v25 = vadd.f32 %v11826_v38, %v17336_v43  ;;  %v12494_v62 = vld [vmem:[%s18223_s5 + $0x8] sm:$0xff]  }
 0x9a4   : > { %11938 = vmatpush3.bf16.msra.mxu1 %v12494_v62  ;;  %v12502_v62 = vld [vmem:[%s18223_s5 + $0x28] sm:$0xff]  }
 0x9a5   : > { %v8806_v63 = vadd.f32 %v17242_v5, %v8645_v25  ;;  %v8929_v3 = vmax.f32 %v8803_v16, 0.0  ;;  %v12495_v5 = vld [vmem:[%s18223_s5 + $0x50] sm:$0xff]  }
 0x9a6   : > { %11939 = vmatprep.subr.bf16.mxu1 %v12495_v5 }
 0x9a7   : > { %v8930_v7 = vmax.f32 %v8806_v63, 0.0 }
 0x9a8   : > { %v17354_v39 = vpop.f32.mrb[8].mxu1  ;;  %11940 = vmatpush3.bf16.msra.mxu1 %v12496_v27 }
 0x9a9   : > { %v8961_v52 = vpack.c.bf16 %v8930_v7, %v8929_v3  ;;  %v17356_v18 = vpop.f32.mrb[9].mxu1  ;;  %11941 = vmatprep.subr.bf16.mxu1 %v12497_v34  ;;  %v12505_v34 = vld [vmem:[%s18223_s5 + $0x78] sm:$0xff]  }
 0x9aa   : > { %v11827_v13 = vpop.f32.mrb[240].mxu0  ;;  %v17358_v10 = vpop.f32.mrb[10].mxu1 }
 0x9ab   : > { %v11828_v11 = vpop.f32.mrb[241].mxu0  ;;  %v17366_v50 = vpop.f32.mrb[11].mxu1  ;;  %v8978_v15 = vshrl.u32 %v8961_v52, 16  ;;  %v8981_v1 = vshll.u32 %v8961_v52, 16  ;;  %v9137_v57 = vrot.slane %v8961_v52, 7 }
 0x9ac   : > { %v11829_v30 = vadd.f32 %v11828_v11, %v11827_v13  ;;  %v11830_v35 = vpop.f32.mrb[242].mxu0  ;;  %11942 = vmatpush3.bf16.msra.mxu1 %v12498_v31 }
 0x9ad   : > { %v11831_v14 = vpop.f32.mrb[243].mxu0  ;;  %v8980_v58 = vrot.slane %v8978_v15, 7  ;;  %11943 = vmatprep.subr.bf16.mxu1 %v12499_v56 }
 0x9ae   : > { %v8650_v59 = vadd.f32 %v11829_v30, %v17336_v43  ;;  %v11832_v37 = vadd.f32 %v11831_v14, %v11830_v35 }
 0x9af   : > { %v8983_v40 = vor.u32 %v8981_v1, %v8980_v58  ;;  %v9185_v28 = vsel %vm13425_vm12, %v8980_v58, %v9137_v57 }
 0x9b0   : > { %v8811_v24 = vadd.f32 %v17231_v26, %v8650_v59  ;;  %v8653_v36 = vadd.f32 %v11832_v37, %v17336_v43  ;;  %v9449_v49 = vrot.slane %v9185_v28, 1  ;;  %v9246_v9 = vshll.u32 %v9185_v28, 16  ;;  %11944 = vmatpush3.bf16.msra.mxu1 %v12500_v33  ;;  %v12504_v28 = vld [vmem:[%s18223_s5 + $0x30] sm:$0xff]  }
 0x9b1   : > { %v17384_v53 = vsel %vm13425_vm12, %v8961_v52, %v8983_v40  ;;  %11945 = vmatprep.subr.bf16.mxu1 %v12501_v61  ;;  %v12503_v40 = vld [vmem:[%s18223_s5 + $0x70] sm:$0xff]  }
 0x9b2   : > { %v8814_v26 = vadd.f32 %v17239_v23, %v8653_v36  ;;  %9570 = vrot.lane.b32.xlu1 %v17384_v53, %s12661_s8  ;;  %v9448_v0 = vrot.slane %v17384_v53, 1  ;;  %v9241_v20 = vshll.u32 %v17384_v53, 16  ;;  %v8931_v12 = vmax.f32 %v8811_v24, 0.0 }
 0x9b3   : > { %v9239_v23 = vshrl.u32 %v17384_v53, 16  ;;  %v9248_v63 = vrot.slane %v9246_v9, 1 }
 0x9b4   : > { %v8932_v17 = vmax.f32 %v8814_v26, 0.0  ;;  %v9450_v8 = vsel %vm2037_vm13, %v9448_v0, %v9449_v49  ;;  %v9243_v38 = vrot.slane %v9241_v20, 1  ;;  %11946 = vmatpush3.bf16.msra.mxu1 %v12502_v62 }
 0x9b5   : > { %9602 = vrot.lane.b32.xlu0 %v9450_v8, %s12660_s19  ;;  %11947 = vmatprep.subr.bf16.mxu1 %v12503_v40 }
 0x9b6   : > { %v8962_v16 = vpack.c.bf16 %v8932_v17, %v8931_v12  ;;  %v11833_v25 = vpop.f32.mrb[244].mxu0  ;;  %9540 = vrot.lane.b32.xlu1 %v9450_v8, %s12662_s9  ;;  %v9244_v45 = vor.u32 %v9243_v38, %v9239_v23  ;;  %v12506_v17 = vld [vmem:[%s18223_s5 + $0x38] sm:$0xff]  }
 0x9b7   : > { %v11834_v51 = vpop.f32.mrb[245].mxu0 }
 0x9b8   : > { %v8985_v3 = vshrl.u32 %v8962_v16, 16  ;;  %v11835_v7 = vadd.f32 %v11834_v51, %v11833_v25  ;;  %v11836_v52 = vpop.f32.mrb[246].mxu0  ;;  %v17405_v5 = vsel %vm1826_vm14, %v9244_v45, %v9248_v63  ;;  %v8988_v27 = vshll.u32 %v8962_v16, 16  ;;  %11948 = vmatpush3.bf16.msra.mxu1 %v12504_v28 }
 0x9b9   : > { %v11837_v13 = vpop.f32.mrb[247].mxu0  ;;  %v9138_v35 = vrot.slane %v8962_v16, 7  ;;  %11949 = vmatprep.subr.bf16.mxu1 %v12505_v34 }
 0x9ba   : > { %v8658_v11 = vadd.f32 %v11835_v7, %v17336_v43  ;;  %v11838_v15 = vadd.f32 %v11837_v13, %v11836_v52  ;;  %9510 = vrot.lane.b32.xlu1 %v17405_v5, %s12660_s19  ;;  %v8987_v30 = vrot.slane %v8985_v3, 7 }
 0x9bc   : > { %v8819_v14 = vadd.f32 %v17257_v60, %v8658_v11  ;;  %v8661_v58 = vadd.f32 %v11838_v15, %v17336_v43  ;;  %v17412_v1 = vpop.f32.mrb[12].mxu1  ;;  %v8990_v57 = vor.u32 %v8988_v27, %v8987_v30  ;;  %v9186_v59 = vsel %vm13425_vm12, %v8987_v30, %v9138_v35  ;;  %11950 = vmatpush3.bf16.msra.mxu1 %v12506_v17 }
 0x9bd   : > { %v17416_v37 = vpop.f32.mrb[13].mxu1  ;;  %v9452_v56 = vrot.slane %v9186_v59, 1  ;;  %v9258_v0 = vshll.u32 %v9186_v59, 16 }
 0x9be   : > { %v8822_v60 = vadd.f32 %v17265_v4, %v8661_v58  ;;  %v17425_v24 = vpop.f32.mrb[14].mxu1  ;;  %v17429_v36 = vsel %vm13425_vm12, %v8962_v16, %v8990_v57  ;;  %v8933_v49 = vmax.f32 %v8819_v14, 0.0 }
 0x9bf   : > { %9634 = vrot.lane.b32.xlu0 %v17429_v36, %s12662_s9  ;;  %9572 = vrot.lane.b32.xlu1 %v17429_v36, %s12661_s8  ;;  %v17438_v31 = vpop.f32.mrb[15].mxu1  ;;  %v9451_v4 = vrot.slane %v17429_v36, 1  ;;  %v9253_v26 = vshll.u32 %v17429_v36, 16  ;;  %v9251_v33 = vshrl.u32 %v17429_v36, 16  ;;  %v9260_v25 = vrot.slane %v9258_v0, 1 }
 0x9c0   : > { %v8934_v20 = vmax.f32 %v8822_v60, 0.0 }
 0x9c1   : > { %v9453_v9 = vsel %vm2037_vm13, %v9451_v4, %v9452_v56  ;;  %v9255_v12 = vrot.slane %v9253_v26, 1 }
 0x9c2   : > { %v8963_v8 = vpack.c.bf16 %v8934_v20, %v8933_v49  ;;  %12291 = vmatprep.mubr.msk.bf16.mxu0 %vm983_vm8, %v9453_v9  ;;  %v11839_v23 = vpop.f32.mrb[248].mxu0 }
 0x9c3   : > { %9604 = vrot.lane.b32.xlu0 %v9453_v9, %s12660_s19  ;;  %9542 = vrot.lane.b32.xlu1 %v9453_v9, %s12662_s9  ;;  %v11840_v38 = vpop.f32.mrb[249].mxu0  ;;  %v9256_v16 = vor.u32 %v9255_v12, %v9251_v33 }
 0x9c4   : > { %v8992_v61 = vshrl.u32 %v8963_v8, 16  ;;  %v11841_v51 = vadd.f32 %v11840_v38, %v11839_v23  ;;  %v11842_v45 = vpop.f32.mrb[250].mxu0  ;;  %v9139_v63 = vrot.slane %v8963_v8, 7  ;;  %v8995_v11 = vshll.u32 %v8963_v8, 16 }
 0x9c5   : > { %v11843_v62 = vpop.f32.mrb[251].mxu0  ;;  %v17451_v3 = vsel %vm1826_vm14, %v9256_v16, %v9260_v25  ;;  %v17454_v13 = vpop.f32.mrb[16].mxu1 }
 0x9c6   : > { %v8666_v7 = vadd.f32 %v11841_v51, %v17336_v43  ;;  %v11844_v52 = vadd.f32 %v11843_v62, %v11842_v45  ;;  %v8994_v27 = vrot.slane %v8992_v61, 7  ;;  %v17456_v15 = vpop.f32.mrb[17].mxu1 }
 0x9c7   : > { %9664 = vrot.lane.b32.xlu0 %v17451_v3, %s12661_s8  ;;  %9512 = vrot.lane.b32.xlu1 %v17451_v3, %s12660_s19  ;;  %v17464_v14 = vpop.f32.mrb[18].mxu1 }
 0x9c8   : > { %v8827_v30 = vadd.f32 %v17255_v47, %v8666_v7  ;;  %v8669_v35 = vadd.f32 %v11844_v52, %v17336_v43  ;;  %v8997_v58 = vor.u32 %v8995_v11, %v8994_v27  ;;  %v9187_v57 = vsel %vm13425_vm12, %v8994_v27, %v9139_v63  ;;  %v17468_v59 = vpop.f32.mrb[19].mxu1 }
 0x9c9   : > { %v9455_v34 = vrot.slane %v9187_v57, 1  ;;  %v9270_v4 = vshll.u32 %v9187_v57, 16 }
 0x9ca   : > { %v8830_v40 = vadd.f32 %v17261_v46, %v8669_v35  ;;  %v17473_v28 = vsel %vm13425_vm12, %v8963_v8, %v8997_v58  ;;  %v8935_v56 = vmax.f32 %v8827_v30, 0.0 }
 0x9cb   : > { %v9454_v60 = vrot.slane %v17473_v28, 1  ;;  %9636 = vrot.lane.b32.xlu1 %v17473_v28, %s12662_s9  ;;  %v9265_v47 = vshll.u32 %v17473_v28, 16  ;;  %v9263_v46 = vshrl.u32 %v17473_v28, 16  ;;  %v9272_v23 = vrot.slane %v9270_v4, 1 }
 0x9cc   : > { %v8936_v26 = vmax.f32 %v8830_v40, 0.0 }
 0x9cd   : > { %v9456_v0 = vsel %vm2037_vm13, %v9454_v60, %v9455_v34  ;;  %v11845_v49 = vpop.f32.mrb[252].mxu0  ;;  %v9267_v20 = vrot.slane %v9265_v47, 1 }
 0x9ce   : > { %v8964_v9 = vpack.c.bf16 %v8936_v26, %v8935_v56  ;;  %12292 = vmatmul.mubr.msk.bf16.vlgmr.msra.gmra.mrb[44].mxu0 %vm983_vm8, %v9456_v0  ;;  %9606 = vrot.lane.b32.xlu0 %v9456_v0, %s12660_s19  ;;  %v11846_v33 = vpop.f32.mrb[253].mxu0 }
 0x9cf   : > { %v11847_v12 = vadd.f32 %v11846_v33, %v11845_v49  ;;  %9574 = vrot.lane.b32.xlu1 %v17473_v28, %s12661_s8  ;;  %v11848_v17 = vpop.f32.mrb[254].mxu0  ;;  %v9268_v8 = vor.u32 %v9267_v20, %v9263_v46 }
 0x9d0   : > { %v8999_v38 = vshrl.u32 %v8964_v9, 16  ;;  %v11849_v16 = vpop.f32.mrb[255].mxu0  ;;  %v9002_v63 = vshll.u32 %v8964_v9, 16  ;;  %v9140_v62 = vrot.slane %v8964_v9, 7 }
 0x9d1   : > { %v8674_v25 = vadd.f32 %v11847_v12, %v17336_v43  ;;  %v11850_v61 = vadd.f32 %v11849_v16, %v11848_v17  ;;  %v17487_v51 = vsel %vm1826_vm14, %v9268_v8, %v9272_v23 }
 0x9d2   : > { %9666 = vrot.lane.b32.xlu0 %v17487_v51, %s12661_s8  ;;  %v9001_v45 = vrot.slane %v8999_v38, 7 }
 0x9d3   : > { %v8835_v7 = vadd.f32 %v17287_v2, %v8674_v25  ;;  %v8677_v52 = vadd.f32 %v11850_v61, %v17336_v43  ;;  %9544 = vrot.lane.b32.xlu1 %v9456_v0, %s12662_s9 }
 0x9d4   : > { %v9004_v27 = vor.u32 %v9002_v63, %v9001_v45  ;;  %v9188_v11 = vsel %vm13425_vm12, %v9001_v45, %v9140_v62 }
 0x9d5   : > { %v8838_v30 = vadd.f32 %v17295_v29, %v8677_v52  ;;  %v8937_v35 = vmax.f32 %v8835_v7, 0.0  ;;  %v9458_v57 = vrot.slane %v9188_v11, 1  ;;  %v9282_v34 = vshll.u32 %v9188_v11, 16 }
 0x9d6   : > { %v17499_v58 = vsel %vm13425_vm12, %v8964_v9, %v9004_v27 }
 0x9d7   : > { %v8938_v40 = vmax.f32 %v8838_v30, 0.0  ;;  %9638 = vrot.lane.b32.xlu0 %v17499_v58, %s12662_s9  ;;  %9514 = vrot.lane.b32.xlu1 %v17487_v51, %s12660_s19  ;;  %v9457_v2 = vrot.slane %v17499_v58, 1  ;;  %v9277_v60 = vshll.u32 %v17499_v58, 16  ;;  %v9275_v56 = vshrl.u32 %v17499_v58, 16 }
 0x9d8   : > { %v9284_v33 = vrot.slane %v9282_v34, 1 }
 0x9d9   : > { %v8965_v47 = vpack.c.bf16 %v8938_v40, %v8937_v35  ;;  %v11851_v29 = vpop.f32.mrb[0].mxu0  ;;  %v9459_v4 = vsel %vm2037_vm13, %v9457_v2, %v9458_v57  ;;  %v9279_v26 = vrot.slane %v9277_v60, 1 }
 0x9da   : > { %12295 = vmatprep.mubr.msk.bf16.mxu0 %vm983_vm8, %v9459_v4  ;;  %v11852_v0 = vpop.f32.mrb[1].mxu0 }
 0x9db   : > { %v9006_v49 = vshrl.u32 %v8965_v47, 16  ;;  %v11853_v46 = vadd.f32 %v11852_v0, %v11851_v29  ;;  %9608 = vrot.lane.b32.xlu0 %v9459_v4, %s12660_s19  ;;  %9576 = vrot.lane.b32.xlu1 %v17499_v58, %s12661_s8  ;;  %v11854_v20 = vpop.f32.mrb[2].mxu0  ;;  %v9280_v9 = vor.u32 %v9279_v26, %v9275_v56  ;;  %v9009_v17 = vshll.u32 %v8965_v47, 16 }
 0x9dc   : > { %v11855_v12 = vpop.f32.mrb[3].mxu0  ;;  %v9141_v25 = vrot.slane %v8965_v47, 7 }
 0x9dd   : > { %v8682_v8 = vadd.f32 %v11853_v46, %v17336_v43  ;;  %v11856_v23 = vadd.f32 %v11855_v12, %v11854_v20  ;;  %v17515_v38 = vsel %vm1826_vm14, %v9280_v9, %v9284_v33  ;;  %v9008_v16 = vrot.slane %v9006_v49, 7 }
 0x9df   : > { %v8843_v61 = vadd.f32 %v17285_v41, %v8682_v8  ;;  %v8685_v45 = vadd.f32 %v11856_v23, %v17336_v43  ;;  %9668 = vrot.lane.b32.xlu0 %v17515_v38, %s12661_s8  ;;  %9546 = vrot.lane.b32.xlu1 %v9459_v4, %s12662_s9  ;;  %v9011_v63 = vor.u32 %v9009_v17, %v9008_v16 }
 0x9e0   : > { %v9189_v62 = vsel %vm13425_vm12, %v9008_v16, %v9141_v25 }
 0x9e1   : > { %v8846_v7 = vadd.f32 %v17291_v48, %v8685_v45  ;;  %v17527_v52 = vsel %vm13425_vm12, %v8965_v47, %v9011_v63  ;;  %v9461_v41 = vrot.slane %v9189_v62, 1  ;;  %v9294_v30 = vshll.u32 %v9189_v62, 16 }
 0x9e2   : > { %v9460_v27 = vrot.slane %v17527_v52, 1  ;;  %v9289_v11 = vshll.u32 %v17527_v52, 16  ;;  %v8939_v35 = vmax.f32 %v8843_v61, 0.0  ;;  %v9287_v40 = vshrl.u32 %v17527_v52, 16 }
 0x9e3   : > { %v8940_v57 = vmax.f32 %v8846_v7, 0.0  ;;  %9640 = vrot.lane.b32.xlu0 %v17527_v52, %s12662_s9  ;;  %9516 = vrot.lane.b32.xlu1 %v17515_v38, %s12660_s19  ;;  %v9296_v4 = vrot.slane %v9294_v30, 1 }
 0x9e4   : > { %v9462_v48 = vsel %vm2037_vm13, %v9460_v27, %v9461_v41  ;;  %v9291_v2 = vrot.slane %v9289_v11, 1 }
 0x9e5   : > { %v8966_v60 = vpack.c.bf16 %v8940_v57, %v8939_v35  ;;  %v11857_v34 = vpop.f32.mrb[4].mxu0  ;;  %12296 = vmatmul.mubr.msk.bf16.gmra.mrb[48].mxu0 %vm983_vm8, %v9462_v48 }
 0x9e6   : > { %v11858_v47 = vpop.f32.mrb[5].mxu0  ;;  %v9292_v29 = vor.u32 %v9291_v2, %v9287_v40 }
 0x9e7   : > { %v9013_v56 = vshrl.u32 %v8966_v60, 16  ;;  %v11859_v26 = vadd.f32 %v11858_v47, %v11857_v34  ;;  %9610 = vrot.lane.b32.xlu0 %v9462_v48, %s12660_s19  ;;  %9578 = vrot.lane.b32.xlu1 %v17527_v52, %s12661_s8  ;;  %v11860_v0 = vpop.f32.mrb[6].mxu0  ;;  %v9016_v12 = vshll.u32 %v8966_v60, 16  ;;  %v9142_v17 = vrot.slane %v8966_v60, 7 }
 0x9e8   : > { %v11861_v49 = vpop.f32.mrb[7].mxu0  ;;  %v17542_v46 = vsel %vm1826_vm14, %v9292_v29, %v9296_v4 }
 0x9e9   : > { %v8690_v20 = vadd.f32 %v11859_v26, %v17336_v43  ;;  %v11862_v9 = vadd.f32 %v11861_v49, %v11860_v0  ;;  %v9015_v33 = vrot.slane %v9013_v56, 7 }
 0x9eb   : > { %v8851_v8 = vadd.f32 %v17319_v22, %v8690_v20  ;;  %v8693_v23 = vadd.f32 %v11862_v9, %v17336_v43  ;;  %9670 = vrot.lane.b32.xlu0 %v17542_v46, %s12661_s8  ;;  %9548 = vrot.lane.b32.xlu1 %v9462_v48, %s12662_s9  ;;  %v9018_v16 = vor.u32 %v9016_v12, %v9015_v33 }
 0x9ec   : > { %v9190_v25 = vsel %vm13425_vm12, %v9015_v33, %v9142_v17 }
 0x9ed   : > { %v8854_v61 = vadd.f32 %v17323_v6, %v8693_v23  ;;  %v17555_v45 = vsel %vm13425_vm12, %v8966_v60, %v9018_v16  ;;  %v9464_v22 = vrot.slane %v9190_v25, 1  ;;  %v9306_v7 = vshll.u32 %v9190_v25, 16 }
 0x9ee   : > { %v9463_v63 = vrot.slane %v17555_v45, 1  ;;  %v9301_v62 = vshll.u32 %v17555_v45, 16  ;;  %v8941_v27 = vmax.f32 %v8851_v8, 0.0  ;;  %v9299_v11 = vshrl.u32 %v17555_v45, 16 }
 0x9ef   : > { %v8942_v41 = vmax.f32 %v8854_v61, 0.0  ;;  %9642 = vrot.lane.b32.xlu0 %v17555_v45, %s12662_s9  ;;  %9518 = vrot.lane.b32.xlu1 %v17542_v46, %s12660_s19  ;;  %v9308_v2 = vrot.slane %v9306_v7, 1 }
 0x9f0   : > { %v9465_v6 = vsel %vm2037_vm13, %v9463_v63, %v9464_v22  ;;  %v9303_v30 = vrot.slane %v9301_v62, 1 }
 0x9f1   : > { %v8967_v35 = vpack.c.bf16 %v8942_v41, %v8941_v27  ;;  %v11863_v57 = vpop.f32.mrb[8].mxu0  ;;  %12299 = vmatprep.mubr.msk.bf16.mxu0 %vm983_vm8, %v9465_v6 }
 0x9f2   : > { %v11864_v48 = vpop.f32.mrb[9].mxu0  ;;  %v9304_v40 = vor.u32 %v9303_v30, %v9299_v11 }
 0x9f3   : > { %v9020_v60 = vshrl.u32 %v8967_v35, 16  ;;  %v11865_v34 = vadd.f32 %v11864_v48, %v11863_v57  ;;  %9612 = vrot.lane.b32.xlu0 %v9465_v6, %s12660_s19  ;;  %9580 = vrot.lane.b32.xlu1 %v17555_v45, %s12661_s8  ;;  %v11866_v47 = vpop.f32.mrb[10].mxu0  ;;  %v9023_v49 = vshll.u32 %v8967_v35, 16  ;;  %v9143_v20 = vrot.slane %v8967_v35, 7 }
 0x9f4   : > { %v11867_v29 = vpop.f32.mrb[11].mxu0  ;;  %v17570_v4 = vsel %vm1826_vm14, %v9304_v40, %v9308_v2 }
 0x9f5   : > { %v8698_v56 = vadd.f32 %v11865_v34, %v17336_v43  ;;  %v11868_v26 = vadd.f32 %v11867_v29, %v11866_v47  ;;  %v9022_v0 = vrot.slane %v9020_v60, 7 }
 0x9f7   : > { %v8859_v9 = vadd.f32 %v17317_v42, %v8698_v56  ;;  %v8701_v33 = vadd.f32 %v11868_v26, %v17336_v43  ;;  %9672 = vrot.lane.b32.xlu0 %v17570_v4, %s12661_s8  ;;  %9550 = vrot.lane.b32.xlu1 %v9465_v6, %s12662_s9  ;;  %v9025_v12 = vor.u32 %v9023_v49, %v9022_v0 }
 0x9f8   : > { %v9191_v17 = vsel %vm13425_vm12, %v9022_v0, %v9143_v20 }
 0x9f9   : > { %v8862_v8 = vadd.f32 %v17321_v55, %v8701_v33  ;;  %v17583_v23 = vsel %vm13425_vm12, %v8967_v35, %v9025_v12  ;;  %v9467_v42 = vrot.slane %v9191_v17, 1  ;;  %v9318_v61 = vshll.u32 %v9191_v17, 16 }
 0x9fa   : > { %v9466_v16 = vrot.slane %v17583_v23, 1  ;;  %v9313_v25 = vshll.u32 %v17583_v23, 16  ;;  %v8943_v63 = vmax.f32 %v8859_v9, 0.0  ;;  %v9311_v62 = vshrl.u32 %v17583_v23, 16 }
 0x9fb   : > { %v8944_v22 = vmax.f32 %v8862_v8, 0.0  ;;  %9644 = vrot.lane.b32.xlu0 %v17583_v23, %s12662_s9  ;;  %9520 = vrot.lane.b32.xlu1 %v17570_v4, %s12660_s19  ;;  %v9320_v30 = vrot.slane %v9318_v61, 1 }
 0x9fc   : > { %v9468_v55 = vsel %vm2037_vm13, %v9466_v16, %v9467_v42  ;;  %v9315_v7 = vrot.slane %v9313_v25, 1 }
 0x9fd   : > { %v8968_v27 = vpack.c.bf16 %v8944_v22, %v8943_v63  ;;  %v11869_v41 = vpop.f32.mrb[12].mxu0  ;;  %12300 = vmatmul.mubr.msk.bf16.gmra.mrb[52].mxu0 %vm983_vm8, %v9468_v55 }
 0x9fe   : > { %v11870_v6 = vpop.f32.mrb[13].mxu0  ;;  %v9316_v11 = vor.u32 %v9315_v7, %v9311_v62 }
 0x9ff   : > { %v9027_v35 = vshrl.u32 %v8968_v27, 16  ;;  %v11871_v57 = vadd.f32 %v11870_v6, %v11869_v41  ;;  %9614 = vrot.lane.b32.xlu0 %v9468_v55, %s12660_s19  ;;  %9582 = vrot.lane.b32.xlu1 %v17583_v23, %s12661_s8  ;;  %v11872_v48 = vpop.f32.mrb[14].mxu0  ;;  %v9030_v29 = vshll.u32 %v8968_v27, 16  ;;  %v9144_v56 = vrot.slane %v8968_v27, 7 }
 0xa00   : > { %v11873_v40 = vpop.f32.mrb[15].mxu0  ;;  %v17598_v2 = vsel %vm1826_vm14, %v9316_v11, %v9320_v30 }
 0xa01   : > { %v8706_v60 = vadd.f32 %v11871_v57, %v17336_v43  ;;  %v11874_v34 = vadd.f32 %v11873_v40, %v11872_v48  ;;  %v9029_v47 = vrot.slane %v9027_v35, 7 }
 0xa03   : > { %v8867_v26 = vadd.f32 %v17327_v19, %v8706_v60  ;;  %v8709_v0 = vadd.f32 %v11874_v34, %v17336_v43  ;;  %9674 = vrot.lane.b32.xlu0 %v17598_v2, %s12661_s8  ;;  %9552 = vrot.lane.b32.xlu1 %v9468_v55, %s12662_s9  ;;  %v9032_v49 = vor.u32 %v9030_v29, %v9029_v47 }
 0xa04   : > { %v9192_v20 = vsel %vm13425_vm12, %v9029_v47, %v9144_v56 }
 0xa05   : > { %v8870_v9 = vadd.f32 %v17331_v44, %v8709_v0  ;;  %v17611_v33 = vsel %vm13425_vm12, %v8968_v27, %v9032_v49  ;;  %v9470_v19 = vrot.slane %v9192_v20, 1  ;;  %v9330_v8 = vshll.u32 %v9192_v20, 16 }
 0xa06   : > { %v9469_v12 = vrot.slane %v17611_v33, 1  ;;  %v9325_v17 = vshll.u32 %v17611_v33, 16  ;;  %v8945_v16 = vmax.f32 %v8867_v26, 0.0  ;;  %v9323_v25 = vshrl.u32 %v17611_v33, 16 }
 0xa07   : > { %v8946_v42 = vmax.f32 %v8870_v9, 0.0  ;;  %9646 = vrot.lane.b32.xlu0 %v17611_v33, %s12662_s9  ;;  %9522 = vrot.lane.b32.xlu1 %v17598_v2, %s12660_s19  ;;  %v9332_v7 = vrot.slane %v9330_v8, 1 }
 0xa08   : > { %v9471_v44 = vsel %vm2037_vm13, %v9469_v12, %v9470_v19  ;;  %v9327_v61 = vrot.slane %v9325_v17, 1 }
 0xa09   : > { %v8969_v63 = vpack.c.bf16 %v8946_v42, %v8945_v16  ;;  %v11875_v22 = vpop.f32.mrb[16].mxu0  ;;  %12303 = vmatprep.mubr.msk.bf16.mxu0 %vm983_vm8, %v9471_v44 }
 0xa0a   : > { %v11876_v55 = vpop.f32.mrb[17].mxu0  ;;  %v9328_v62 = vor.u32 %v9327_v61, %v9323_v25 }
 0xa0b   : > { %v9034_v27 = vshrl.u32 %v8969_v63, 16  ;;  %v11877_v41 = vadd.f32 %v11876_v55, %v11875_v22  ;;  %9616 = vrot.lane.b32.xlu0 %v9471_v44, %s12660_s19  ;;  %9584 = vrot.lane.b32.xlu1 %v17611_v33, %s12661_s8  ;;  %v11878_v6 = vpop.f32.mrb[18].mxu0  ;;  %v9037_v40 = vshll.u32 %v8969_v63, 16  ;;  %v9145_v60 = vrot.slane %v8969_v63, 7 }
 0xa0c   : > { %v11879_v11 = vpop.f32.mrb[19].mxu0  ;;  %v17626_v30 = vsel %vm1826_vm14, %v9328_v62, %v9332_v7 }
 0xa0d   : > { %v8714_v35 = vadd.f32 %v11877_v41, %v17336_v43  ;;  %v11880_v57 = vadd.f32 %v11879_v11, %v11878_v6  ;;  %v9036_v48 = vrot.slane %v9034_v27, 7 }
 0xa0f   : > { %v8875_v34 = vadd.f32 %v17325_v54, %v8714_v35  ;;  %v8717_v47 = vadd.f32 %v11880_v57, %v17336_v43  ;;  %9676 = vrot.lane.b32.xlu0 %v17626_v30, %s12661_s8  ;;  %9554 = vrot.lane.b32.xlu1 %v9471_v44, %s12662_s9  ;;  %v9039_v29 = vor.u32 %v9037_v40, %v9036_v48 }
 0xa10   : > { %v9193_v56 = vsel %vm13425_vm12, %v9036_v48, %v9145_v60 }
 0xa11   : > { %v8878_v26 = vadd.f32 %v17329_v21, %v8717_v47  ;;  %v17639_v0 = vsel %vm13425_vm12, %v8969_v63, %v9039_v29  ;;  %v9473_v54 = vrot.slane %v9193_v56, 1  ;;  %v9342_v9 = vshll.u32 %v9193_v56, 16 }
 0xa12   : > { %v9472_v49 = vrot.slane %v17639_v0, 1  ;;  %v9337_v20 = vshll.u32 %v17639_v0, 16  ;;  %v8947_v12 = vmax.f32 %v8875_v34, 0.0  ;;  %v9335_v17 = vshrl.u32 %v17639_v0, 16 }
 0xa13   : > { %v8948_v19 = vmax.f32 %v8878_v26, 0.0  ;;  %9648 = vrot.lane.b32.xlu0 %v17639_v0, %s12662_s9  ;;  %9524 = vrot.lane.b32.xlu1 %v17626_v30, %s12660_s19  ;;  %v9344_v61 = vrot.slane %v9342_v9, 1 }
 0xa14   : > { %v9474_v21 = vsel %vm2037_vm13, %v9472_v49, %v9473_v54  ;;  %v9339_v8 = vrot.slane %v9337_v20, 1 }
 0xa15   : > { %v8970_v16 = vpack.c.bf16 %v8948_v19, %v8947_v12  ;;  %v11881_v42 = vpop.f32.mrb[20].mxu0  ;;  %12304 = vmatmul.mubr.msk.bf16.gmra.mrb[56].mxu0 %vm983_vm8, %v9474_v21 }
 0xa16   : > { %v11882_v44 = vpop.f32.mrb[21].mxu0  ;;  %v9340_v25 = vor.u32 %v9339_v8, %v9335_v17 }
 0xa17   : > { %v9041_v63 = vshrl.u32 %v8970_v16, 16  ;;  %v11883_v22 = vadd.f32 %v11882_v44, %v11881_v42  ;;  %9618 = vrot.lane.b32.xlu0 %v9474_v21, %s12660_s19  ;;  %9586 = vrot.lane.b32.xlu1 %v17639_v0, %s12661_s8  ;;  %v11884_v55 = vpop.f32.mrb[22].mxu0  ;;  %v9044_v11 = vshll.u32 %v8970_v16, 16  ;;  %v9146_v35 = vrot.slane %v8970_v16, 7 }
 0xa18   : > { %v11885_v62 = vpop.f32.mrb[23].mxu0  ;;  %v17654_v7 = vsel %vm1826_vm14, %v9340_v25, %v9344_v61 }
 0xa19   : > { %v8722_v27 = vadd.f32 %v11883_v22, %v17336_v43  ;;  %v11886_v41 = vadd.f32 %v11885_v62, %v11884_v55  ;;  %v9043_v6 = vrot.slane %v9041_v63, 7 }
 0xa1b   : > { %v8883_v57 = vadd.f32 %v17356_v18, %v8722_v27  ;;  %v8725_v48 = vadd.f32 %v11886_v41, %v17336_v43  ;;  %9678 = vrot.lane.b32.xlu0 %v17654_v7, %s12661_s8  ;;  %9556 = vrot.lane.b32.xlu1 %v9474_v21, %s12662_s9  ;;  %v9046_v40 = vor.u32 %v9044_v11, %v9043_v6 }
 0xa1c   : > { %v9194_v60 = vsel %vm13425_vm12, %v9043_v6, %v9146_v35 }
 0xa1d   : > { %v8886_v34 = vadd.f32 %v17366_v50, %v8725_v48  ;;  %v17667_v47 = vsel %vm13425_vm12, %v8970_v16, %v9046_v40  ;;  %v9476_v18 = vrot.slane %v9194_v60, 1  ;;  %v9354_v26 = vshll.u32 %v9194_v60, 16 }
 0xa1e   : > { %v9475_v29 = vrot.slane %v17667_v47, 1  ;;  %v9349_v56 = vshll.u32 %v17667_v47, 16  ;;  %v8949_v49 = vmax.f32 %v8883_v57, 0.0  ;;  %v9347_v20 = vshrl.u32 %v17667_v47, 16 }
 0xa1f   : > { %v8950_v54 = vmax.f32 %v8886_v34, 0.0  ;;  %9650 = vrot.lane.b32.xlu0 %v17667_v47, %s12662_s9  ;;  %9526 = vrot.lane.b32.xlu1 %v17654_v7, %s12660_s19  ;;  %v9356_v17 = vrot.slane %v9354_v26, 1 }
 0xa20   : > { %v9477_v50 = vsel %vm2037_vm13, %v9475_v29, %v9476_v18  ;;  %v9351_v9 = vrot.slane %v9349_v56, 1 }
 0xa21   : > { %v8971_v12 = vpack.c.bf16 %v8950_v54, %v8949_v49  ;;  %12307 = vmatprep.mubr.msk.bf16.mxu0 %vm983_vm8, %v9477_v50 }
 0xa22   : > { %v11887_v19 = vpop.f32.mrb[24].mxu0  ;;  %v9352_v21 = vor.u32 %v9351_v9, %v9347_v20 }
 0xa23   : > { %v9048_v8 = vshrl.u32 %v8971_v12, 16  ;;  %v11888_v16 = vpop.f32.mrb[25].mxu0  ;;  %9620 = vrot.lane.b32.xlu0 %v9477_v50, %s12660_s19  ;;  %9588 = vrot.lane.b32.xlu1 %v17667_v47, %s12661_s8  ;;  %v9147_v63 = vrot.slane %v8971_v12, 7  ;;  %v9051_v62 = vshll.u32 %v8971_v12, 16 }
 0xa24   : > { %v11889_v42 = vadd.f32 %v11888_v16, %v11887_v19  ;;  %v11890_v44 = vpop.f32.mrb[26].mxu0  ;;  %v17681_v25 = vpop.permute.xlu1 %9570  ;;  %v17684_v61 = vsel %vm1826_vm14, %v9352_v21, %v9356_v17 }
 0xa25   : > { %v11891_v22 = vpop.f32.mrb[27].mxu0  ;;  %v9050_v55 = vrot.slane %v9048_v8, 7 }
 0xa26   : > { %v8730_v27 = vadd.f32 %v11889_v42, %v17336_v43  ;;  %v11892_v41 = vadd.f32 %v11891_v22, %v11890_v44 }
 0xa27   : > { %9680 = vrot.lane.b32.xlu0 %v17684_v61, %s12661_s8  ;;  %9558 = vrot.lane.b32.xlu1 %v9477_v50, %s12662_s9  ;;  %v9053_v6 = vor.u32 %v9051_v62, %v9050_v55  ;;  %v9195_v11 = vsel %vm13425_vm12, %v9050_v55, %v9147_v63  ;;  %v9603_v50 = vpop.permute.xlu0 %9602 }
 0xa28   : > { %v8891_v35 = vadd.f32 %v17354_v39, %v8730_v27  ;;  %v8733_v57 = vadd.f32 %v11892_v41, %v17336_v43  ;;  %v9541_v48 = vpop.permute.xlu1 %9540  ;;  %v9479_v29 = vrot.slane %v9195_v11, 1  ;;  %v9366_v18 = vshll.u32 %v9195_v11, 16 }
 0xa29   : > { %v17696_v40 = vsel %vm13425_vm12, %v8971_v12, %v9053_v6 }
 0xa2a   : > { %v8894_v60 = vadd.f32 %v17358_v10, %v8733_v57  ;;  %v9478_v34 = vrot.slane %v17696_v40, 1  ;;  %v9361_v39 = vshll.u32 %v17696_v40, 16  ;;  %v8951_v56 = vmax.f32 %v8891_v35, 0.0 }
 0xa2b   : > { %9652 = vrot.lane.b32.xlu0 %v17696_v40, %s12662_s9  ;;  %9528 = vrot.lane.b32.xlu1 %v17684_v61, %s12660_s19  ;;  %v9359_v10 = vshrl.u32 %v17696_v40, 16  ;;  %v9368_v17 = vrot.slane %v9366_v18, 1 }
 0xa2c   : > { %v8952_v26 = vmax.f32 %v8894_v60, 0.0  ;;  %v9511_v49 = vpop.permute.xlu1 %9510  ;;  %v9480_v54 = vsel %vm2037_vm13, %v9478_v34, %v9479_v29  ;;  %v9363_v20 = vrot.slane %v9361_v39, 1 }
 0xa2d   : > { %12308 = vmatmul.mubr.msk.bf16.gmra.mrb[60].mxu0 %vm983_vm8, %v9480_v54  ;;  %v9695_v34 = vsel %vm983_vm8, %v17384_v53, %v9511_v49 }
 0xa2e   : > { %v8972_v9 = vpack.c.bf16 %v8952_v26, %v8951_v56  ;;  %v11893_v12 = vpop.f32.mrb[28].mxu0  ;;  %v9364_v21 = vor.u32 %v9363_v20, %v9359_v10  ;;  %v9804_v56 = vsel %vm983_vm8, %v17405_v5, %v9603_v50  ;;  %v9725_v50 = vsel %vm2314_vm15, %v9695_v34, %v9541_v48 }
 0xa2f   : > { %v11894_v19 = vpop.f32.mrb[29].mxu0  ;;  %9622 = vrot.lane.b32.xlu0 %v9480_v54, %s12660_s19  ;;  %9590 = vrot.lane.b32.xlu1 %v17696_v40, %s12661_s8 }
 0xa30   : > { %v9055_v8 = vshrl.u32 %v8972_v9, 16  ;;  %v11895_v16 = vadd.f32 %v11894_v19, %v11893_v12  ;;  %v11896_v42 = vpop.f32.mrb[30].mxu0  ;;  %v17714_v22 = vsel %vm1826_vm14, %v9364_v21, %v9368_v17  ;;  %v9058_v41 = vshll.u32 %v8972_v9, 16 }
 0xa31   : > { %v9635_v44 = vpop.permute.xlu0 %9634  ;;  %v17711_v63 = vpop.permute.xlu1 %9572  ;;  %v9148_v6 = vrot.slane %v8972_v9, 7 }
 0xa32   : > { %v8738_v55 = vadd.f32 %v11895_v16, %v17336_v43  ;;  %v11897_v62 = vpop.f32.mrb[31].mxu0  ;;  %v9057_v27 = vrot.slane %v9055_v8, 7  ;;  %v9851_v5 = vsel %vm2314_vm15, %v9804_v56, %v9635_v44  ;;  %v9755_v16 = vsel %vm2345_vm0, %v9725_v50, %v17681_v25  ;;  %v17760_v25 = vld [vmem:[%s18222_s4 + $0x4] ss:$0 sm:$0xff] }
 0xa33   : > { %v11898_v11 = vadd.f32 %v11897_v62, %v11896_v42  ;;  %9682 = vrot.lane.b32.xlu0 %v17714_v22, %s12661_s8  ;;  %9560 = vrot.lane.b32.xlu1 %v9480_v54, %s12662_s9 }
 0xa34   : > { %v8899_v35 = vadd.f32 %v17416_v37, %v8738_v55  ;;  %v9060_v57 = vor.u32 %v9058_v41, %v9057_v27  ;;  %v9196_v60 = vsel %vm13425_vm12, %v9057_v27, %v9148_v6 }
 0xa35   : > { %v8741_v29 = vadd.f32 %v11898_v11, %v17336_v43  ;;  %v9605_v39 = vpop.permute.xlu0 %9604  ;;  %v17726_v18 = vpop.permute.xlu1 %9542  ;;  %v9482_v37 = vrot.slane %v9196_v60, 1  ;;  %v9378_v49 = vshll.u32 %v9196_v60, 16 }
 0xa36   : > { %v17732_v26 = vsel %vm13425_vm12, %v8972_v9, %v9060_v57  ;;  %v8953_v10 = vmax.f32 %v8899_v35, 0.0 }
 0xa37   : > { %v8902_v54 = vadd.f32 %v17438_v31, %v8741_v29  ;;  %9654 = vrot.lane.b32.xlu0 %v17732_v26, %s12662_s9  ;;  %9530 = vrot.lane.b32.xlu1 %v17714_v22, %s12660_s19  ;;  %v9481_v43 = vrot.slane %v17732_v26, 1  ;;  %v9373_v53 = vshll.u32 %v17732_v26, 16  ;;  %v9371_v19 = vshrl.u32 %v17732_v26, 16 }
 0xa38   : > { %v9380_v55 = vrot.slane %v9378_v49, 1 }
 0xa39   : > { %v8954_v20 = vmax.f32 %v8902_v54, 0.0  ;;  %v9665_v9 = vpop.permute.xlu0 %9664  ;;  %v17743_v12 = vpop.permute.xlu1 %9512  ;;  %v9483_v31 = vsel %vm2037_vm13, %v9481_v43, %v9482_v37  ;;  %v9375_v21 = vrot.slane %v9373_v53, 1 }
 0xa3a   : > { %v11899_v17 = vpop.f32.mrb[32].mxu0  ;;  %v9882_v8 = vsel %vm2345_vm0, %v9851_v5, %v9665_v9  ;;  %12311 = vmatprep.mubr.msk.bf16.mxu0 %vm983_vm8, %v9483_v31  ;;  %v9807_v5 = vsel %vm983_vm8, %v17451_v3, %v9605_v39 }
 0xa3b   : > { %v8973_v42 = vpack.c.bf16 %v8954_v20, %v8953_v10  ;;  %10119 = vmatprep.mubr.bf16.mxu1 %v9882_v8  ;;  %v11900_v48 = vpop.f32.mrb[33].mxu0  ;;  %9624 = vrot.lane.b32.xlu0 %v9483_v31, %s12660_s19  ;;  %v9376_v44 = vor.u32 %v9375_v21, %v9371_v19 }
 0xa3c   : > { %v11901_v62 = vadd.f32 %v11900_v48, %v11899_v17  ;;  %9592 = vrot.lane.b32.xlu1 %v17732_v26, %s12661_s8  ;;  %10120 = vmatmul.mubr.bf16.vlgmr.msra.gmra.mrb[20].mxu1 %v9755_v16  ;;  %v11902_v27 = vpop.f32.mrb[34].mxu0  ;;  %v9758_v48 = vsel %vm2345_vm0, %v9725_v50, %v17711_v63 }
 0xa3d   : > { %v9062_v41 = vshrl.u32 %v8973_v42, 16  ;;  %v11903_v6 = vpop.f32.mrb[35].mxu0  ;;  %v9637_v11 = vpop.permute.xlu1 %9636  ;;  %v17755_v35 = vsel %vm1826_vm14, %v9376_v44, %v9380_v55  ;;  %v9149_v34 = vrot.slane %v8973_v42, 7  ;;  %v9065_v56 = vshll.u32 %v8973_v42, 16 }
 0xa3e   : > { %v8746_v57 = vadd.f32 %v17760_v25, %v11901_v62  ;;  %v11904_v60 = vadd.f32 %v11903_v6, %v11902_v27 }
 0xa3f   : > { %9684 = vrot.lane.b32.xlu0 %v17755_v35, %s12661_s8  ;;  %v9064_v29 = vrot.slane %v9062_v41, 7 }
 0xa40   : > { %v8907_v37 = vadd.f32 %v17412_v1, %v8746_v57  ;;  %v8749_v54 = vadd.f32 %v17760_v25, %v11904_v60  ;;  %9562 = vrot.lane.b32.xlu1 %v9483_v31, %s12662_s9  ;;  %v17768_v43 = vpop.permute.xlu0 %9606  ;;  %v9853_v1 = vsel %vm2314_vm15, %v9807_v5, %v9637_v11 }
 0xa41   : > { %v17770_v53 = vpop.permute.xlu1 %9574  ;;  %v9067_v49 = vor.u32 %v9065_v56, %v9064_v29  ;;  %v9197_v10 = vsel %vm13425_vm12, %v9064_v29, %v9149_v34 }
 0xa42   : > { %v8910_v20 = vadd.f32 %v17425_v24, %v8749_v54  ;;  %v11905_v9 = vpop.f32.mrb[36].mxu0  ;;  %v8955_v19 = vmax.f32 %v8907_v37, 0.0  ;;  %v9485_v39 = vrot.slane %v9197_v10, 1  ;;  %v9390_v27 = vshll.u32 %v9197_v10, 16 }
 0xa43   : > { %v11906_v21 = vpop.f32.mrb[37].mxu0  ;;  %v17780_v31 = vsel %vm13425_vm12, %v8973_v42, %v9067_v49 }
 0xa44   : > { %v8956_v17 = vmax.f32 %v8910_v20, 0.0  ;;  %v11907_v8 = vadd.f32 %v11906_v21, %v11905_v9  ;;  %v9484_v16 = vrot.slane %v17780_v31, 1  ;;  %9656 = vrot.lane.b32.xlu0 %v17780_v31, %s12662_s9  ;;  %9532 = vrot.lane.b32.xlu1 %v17755_v35, %s12660_s19  ;;  %v11908_v24 = vpop.f32.mrb[38].mxu0  ;;  %v9667_v3 = vpop.permute.xlu0 %9666  ;;  %v9385_v62 = vshll.u32 %v17780_v31, 16 }
 0xa45   : > { %v11909_v44 = vpop.f32.mrb[39].mxu0  ;;  %v17789_v55 = vpop.permute.xlu1 %9544  ;;  %v9885_v42 = vsel %vm2345_vm0, %v9853_v1, %v9667_v3  ;;  %v9383_v63 = vshrl.u32 %v17780_v31, 16  ;;  %v9392_v49 = vrot.slane %v9390_v27, 1  ;;  %v9697_v21 = vsel %vm983_vm8, %v17429_v36, %v17743_v12 }
 0xa46   : > { %v8974_v41 = vpack.c.bf16 %v8956_v17, %v8955_v19  ;;  %v8754_v6 = vadd.f32 %v17760_v25, %v11907_v8  ;;  %v11910_v11 = vadd.f32 %v11909_v44, %v11908_v24  ;;  %10127 = vmatprep.mubr.bf16.mxu1 %v9885_v42  ;;  %v9486_v57 = vsel %vm2037_vm13, %v9484_v16, %v9485_v39 }
 0xa47   : > { %12312 = vmatmul.mubr.msk.bf16.gmra.mrb[64].mxu0 %vm983_vm8, %v9486_v57  ;;  %10128 = vmatmul.mubr.bf16.gmra.mrb[24].mxu1 %v9758_v48  ;;  %v9387_v50 = vrot.slane %v9385_v62, 1  ;;  %v9810_v62 = vsel %vm983_vm8, %v17487_v51, %v17768_v43  ;;  %v9727_v27 = vsel %vm2314_vm15, %v9697_v21, %v17726_v18 }
 0xa48   : > { %v9069_v60 = vshrl.u32 %v8974_v41, 16  ;;  %v8915_v34 = vadd.f32 %v17456_v15, %v8754_v6  ;;  %v8757_v29 = vadd.f32 %v17760_v25, %v11910_v11  ;;  %9626 = vrot.lane.b32.xlu0 %v9486_v57, %s12660_s19  ;;  %9594 = vrot.lane.b32.xlu1 %v17780_v31, %s12661_s8  ;;  %v9072_v19 = vshll.u32 %v8974_v41, 16 }
 0xa49   : > { %v9639_v56 = vpop.permute.xlu0 %9638  ;;  %v17802_v37 = vpop.permute.xlu1 %9514  ;;  %v9388_v54 = vor.u32 %v9387_v50, %v9383_v63  ;;  %v9150_v1 = vrot.slane %v8974_v41, 7 }
 0xa4a   : > { %v8918_v10 = vadd.f32 %v17468_v59, %v8757_v29  ;;  %v11911_v5 = vpop.f32.mrb[40].mxu0  ;;  %v9071_v15 = vrot.slane %v9069_v60, 7  ;;  %v8957_v17 = vmax.f32 %v8915_v34, 0.0 }
 0xa4b   : > { %v11912_v20 = vpop.f32.mrb[41].mxu0  ;;  %v17806_v9 = vsel %vm1826_vm14, %v9388_v54, %v9392_v49 }
 0xa4c   : > { %v8958_v8 = vmax.f32 %v8918_v10, 0.0  ;;  %v11913_v16 = vadd.f32 %v11912_v20, %v11911_v5  ;;  %9686 = vrot.lane.b32.xlu0 %v17806_v9, %s12661_s8  ;;  %9564 = vrot.lane.b32.xlu1 %v9486_v57, %s12662_s9  ;;  %v11914_v59 = vpop.f32.mrb[42].mxu0  ;;  %v9074_v39 = vor.u32 %v9072_v19, %v9071_v15  ;;  %v9198_v48 = vsel %vm13425_vm12, %v9071_v15, %v9150_v1 }
 0xa4d   : > { %v11915_v24 = vpop.f32.mrb[43].mxu0  ;;  %v17814_v3 = vpop.permute.xlu0 %9608  ;;  %v9855_v57 = vsel %vm2314_vm15, %v9810_v62, %v9639_v56  ;;  %v9488_v50 = vrot.slane %v9198_v48, 1  ;;  %v9402_v60 = vshll.u32 %v9198_v48, 16  ;;  %v9761_v20 = vsel %vm2345_vm0, %v9727_v27, %v17770_v53 }
 0xa4e   : > { %v8975_v44 = vpack.c.bf16 %v8958_v8, %v8957_v17  ;;  %v8762_v42 = vadd.f32 %v17760_v25, %v11913_v16  ;;  %v11916_v36 = vadd.f32 %v11915_v24, %v11914_v59  ;;  %v17819_v12 = vpop.permute.xlu1 %9576  ;;  %v17828_v6 = vsel %vm13425_vm12, %v8974_v41, %v9074_v39 }
 0xa4f   : > { %v9487_v18 = vrot.slane %v17828_v6, 1  ;;  %v9397_v41 = vshll.u32 %v17828_v6, 16  ;;  %v9404_v8 = vrot.slane %v9402_v60, 1  ;;  %v9699_v27 = vsel %vm983_vm8, %v17473_v28, %v17802_v37 }
 0xa50   : > { %v9076_v11 = vshrl.u32 %v8975_v44, 16  ;;  %v8923_v63 = vadd.f32 %v17454_v13, %v8762_v42  ;;  %9658 = vrot.lane.b32.xlu0 %v17828_v6, %s12662_s9  ;;  %9534 = vrot.lane.b32.xlu1 %v17806_v9, %s12660_s19  ;;  %v8765_v51 = vadd.f32 %v17760_v25, %v11916_v36  ;;  %v9079_v29 = vshll.u32 %v8975_v44, 16 }
 0xa51   : > { %v9669_v43 = vpop.permute.xlu0 %9668  ;;  %v9151_v56 = vrot.slane %v8975_v44, 7  ;;  %v9489_v10 = vsel %vm2037_vm13, %v9487_v18, %v9488_v50  ;;  %v9395_v25 = vshrl.u32 %v17828_v6, 16  ;;  %v9399_v5 = vrot.slane %v9397_v41, 1 }
 0xa52   : > { %v9078_v34 = vrot.slane %v9076_v11, 7  ;;  %v17839_v54 = vpop.permute.xlu1 %9546  ;;  %v9888_v13 = vsel %vm2345_vm0, %v9855_v57, %v9669_v43  ;;  %v8926_v49 = vadd.f32 %v17464_v14, %v8765_v51  ;;  %12315 = vmatprep.mubr.msk.bf16.mxu0 %vm983_vm8, %v9489_v10  ;;  %v8959_v1 = vmax.f32 %v8923_v63, 0.0 }
 0xa53   : > { %10135 = vmatprep.mubr.bf16.mxu1 %v9888_v13  ;;  %v9400_v17 = vor.u32 %v9399_v5, %v9395_v25  ;;  %v9813_v43 = vsel %vm983_vm8, %v17515_v38, %v17814_v3 }
 0xa54   : > { %v9081_v15 = vor.u32 %v9079_v29, %v9078_v34  ;;  %v9199_v19 = vsel %vm13425_vm12, %v9078_v34, %v9151_v56  ;;  %9628 = vrot.lane.b32.xlu0 %v9489_v10, %s12660_s19  ;;  %v8960_v21 = vmax.f32 %v8926_v49, 0.0  ;;  %9596 = vrot.lane.b32.xlu1 %v17828_v6, %s12661_s8  ;;  %v9729_v29 = vsel %vm2314_vm15, %v9699_v27, %v17789_v55 }
 0xa55   : > { %10136 = vmatmul.mubr.bf16.gmra.mrb[28].mxu1 %v9761_v20  ;;  %v9641_v14 = vpop.permute.xlu0 %9640  ;;  %v17858_v24 = vsel %vm1826_vm14, %v9400_v17, %v9404_v8  ;;  %v9491_v48 = vrot.slane %v9199_v19, 1  ;;  %v9414_v18 = vshll.u32 %v9199_v19, 16  ;;  %v9764_v56 = vsel %vm2345_vm0, %v9729_v29, %v17819_v12 }
 0xa56   : > { %v17855_v53 = vsel %vm13425_vm12, %v8975_v44, %v9081_v15  ;;  %v9517_v16 = vpop.permute.xlu1 %9516  ;;  %v8976_v59 = vpack.c.bf16 %v8960_v21, %v8959_v1  ;;  %v9857_v41 = vsel %vm2314_vm15, %v9813_v43, %v9641_v14 }
 0xa57   : > { %v9490_v39 = vrot.slane %v17855_v53, 1  ;;  %v9409_v42 = vshll.u32 %v17855_v53, 16  ;;  %v9407_v34 = vshrl.u32 %v17855_v53, 16  ;;  %v9416_v20 = vrot.slane %v9414_v18, 1 }
 0xa58   : > { %9688 = vrot.lane.b32.xlu0 %v17858_v24, %s12661_s8  ;;  %9566 = vrot.lane.b32.xlu1 %v9489_v10, %s12662_s9  ;;  %v9083_v44 = vshrl.u32 %v8976_v59, 16  ;;  %v9086_v57 = vshll.u32 %v8976_v59, 16  ;;  %v9152_v50 = vrot.slane %v8976_v59, 7  ;;  %v9701_v8 = vsel %vm983_vm8, %v17499_v58, %v9517_v16 }
 0xa59   : > { %v9611_v36 = vpop.permute.xlu0 %9610  ;;  %v17866_v62 = vsel %vm2037_vm13, %v9490_v39, %v9491_v48  ;;  %v9411_v51 = vrot.slane %v9409_v42, 1  ;;  %v9731_v27 = vsel %vm2314_vm15, %v9701_v8, %v17839_v54 }
 0xa5a   : > { %v9579_v11 = vpop.permute.xlu1 %9578  ;;  %12316 = vmatmul.mubr.msk.bf16.gmra.mrb[68].mxu0 %vm983_vm8, %v17866_v62  ;;  %v9085_v63 = vrot.slane %v9083_v44, 7  ;;  %v9816_v39 = vsel %vm983_vm8, %v17542_v46, %v9611_v36 }
 0xa5b   : > { %v9412_v49 = vor.u32 %v9411_v51, %v9407_v34  ;;  %v9767_v58 = vsel %vm2345_vm0, %v9731_v27, %v9579_v11 }
 0xa5c   : > { %9660 = vrot.lane.b32.xlu0 %v17855_v53, %s12662_s9  ;;  %9536 = vrot.lane.b32.xlu1 %v17858_v24, %s12660_s19  ;;  %v9088_v37 = vor.u32 %v9086_v57, %v9085_v63  ;;  %v9200_v60 = vsel %vm13425_vm12, %v9085_v63, %v9152_v50 }
 0xa5d   : > { %v9671_v28 = vpop.permute.xlu0 %9670  ;;  %v9508_v25 = vrot.slane %v9200_v60, 1  ;;  %v17898_v32 = vsel %vm1826_vm14, %v9412_v49, %v9416_v20  ;;  %v9501_v14 = vshll.u32 %v9200_v60, 16 }
 0xa5e   : > { %v9549_v38 = vpop.permute.xlu1 %9548  ;;  %v9891_v3 = vsel %vm2345_vm0, %v9857_v41, %v9671_v28  ;;  %v9184_v13 = vsel %vm13425_vm12, %v8976_v59, %v9088_v37 }
 0xa5f   : > { %10143 = vmatprep.mubr.bf16.mxu1 %v9891_v3  ;;  %v9507_v10 = vrot.slane %v9184_v13, 1  ;;  %v9496_v5 = vshll.u32 %v9184_v13, 16  ;;  %v9494_v21 = vshrl.u32 %v9184_v13, 16  ;;  %v9503_v44 = vrot.slane %v9501_v14, 1 }
 0xa60   : > { %9630 = vrot.lane.b32.xlu0 %v17866_v62, %s12660_s19  ;;  %10144 = vmatmul.mubr.bf16.gmra.mrb[32].mxu1 %v9764_v56 }
 0xa61   : > { %9598 = vrot.lane.b32.xlu1 %v17855_v53, %s12661_s8  ;;  %v9643_v55 = vpop.permute.xlu0 %9642  ;;  %v9509_v12 = vsel %vm2037_vm13, %v9507_v10, %v9508_v25  ;;  %v9498_v19 = vrot.slane %v9496_v5, 1 }
 0xa62   : > { %v9519_v15 = vpop.permute.xlu1 %9518  ;;  %12319 = vmatprep.mubr.msk.bf16.mxu0 %vm983_vm8, %v9509_v12  ;;  %v9859_v48 = vsel %vm2314_vm15, %v9816_v39, %v9643_v55 }
 0xa63   : > { %12320 = vmatmul.mubr.msk.bf16.gmra.mrb[72].mxu0 %vm983_vm8, %v9509_v12  ;;  %v9499_v59 = vor.u32 %v9498_v19, %v9494_v21  ;;  %v9703_v54 = vsel %vm983_vm8, %v17527_v52, %v9519_v15 }
 0xa64   : > { %9690 = vrot.lane.b32.xlu0 %v17898_v32, %s12661_s8  ;;  %v9733_v41 = vsel %vm2314_vm15, %v9703_v54, %v9549_v38 }
 0xa65   : > { %9538 = vrot.lane.b32.xlu1 %v17898_v32, %s12660_s19  ;;  %v9613_v1 = vpop.permute.xlu0 %9612  ;;  %v17917_v16 = vsel %vm1826_vm14, %v9499_v59, %v9503_v44 }
 0xa66   : > { %v9581_v17 = vpop.permute.xlu1 %9580  ;;  %v9819_v11 = vsel %vm983_vm8, %v17570_v4, %v9613_v1 }
 0xa67   : > { %v9770_v60 = vsel %vm2345_vm0, %v9733_v41, %v9581_v17 }
 0xa68   : > { %9662 = vrot.lane.b32.xlu0 %v9184_v13, %s12662_s9 }
 0xa69   : > { %9600 = vrot.lane.b32.xlu1 %v9184_v13, %s12661_s8  ;;  %v9673_v42 = vpop.permute.xlu0 %9672 }
 0xa6a   : > { %v9551_v57 = vpop.permute.xlu1 %9550  ;;  %v9894_v63 = vsel %vm2345_vm0, %v9859_v48, %v9673_v42 }
 0xa6b   : > { %10151 = vmatprep.mubr.bf16.mxu1 %v9894_v63 }
 0xa6c   : > { %9692 = vrot.lane.b32.xlu0 %v17917_v16, %s12661_s8  ;;  %10152 = vmatmul.mubr.bf16.gmra.mrb[36].mxu1 %v9767_v58 }
 0xa6d   : > { %v9645_v46 = vpop.permute.xlu0 %9644 }
 0xa6e   : > { %v9521_v36 = vpop.permute.xlu1 %9520  ;;  %v9861_v43 = vsel %vm2314_vm15, %v9819_v11, %v9645_v46 }
 0xa6f   : > { %v9705_v4 = vsel %vm983_vm8, %v17555_v45, %v9521_v36 }
 0xa70   : > { %9632 = vrot.lane.b32.xlu0 %v9509_v12, %s12660_s19  ;;  %v9735_v13 = vsel %vm2314_vm15, %v9705_v4, %v9551_v57 }
 0xa71   : > { %v9615_v50 = vpop.permute.xlu0 %9614 }
 0xa72   : > { %v9583_v51 = vpop.permute.xlu1 %9582 }
 0xa73   : > { %v9773_v25 = vsel %vm2345_vm0, %v9735_v13, %v9583_v51 }
 0xa74   : > { %9568 = vrot.lane.b32.xlu0 %v17866_v62, %s12662_s9  ;;  %v9822_v62 = vsel %vm983_vm8, %v17598_v2, %v9615_v50  ;;  %s11151_s9 = sshll.u32 %s18236_s25, 8 }
 0xa75   : > { %v9675_v18 = vpop.permute.xlu0 %9674  ;;  %s18080_s26 = scalar_lea.vmem %s18225_s7, %s11151_s9 }
 0xa76   : > { %v9553_v28 = vpop.permute.xlu1 %9552  ;;  %v9897_v37 = vsel %vm2345_vm0, %v9861_v43, %v9675_v18 }
 0xa77   : > { %10159 = vmatprep.mubr.bf16.mxu1 %v9897_v37 }
 0xa78   : > { %10160 = vmatmul.mubr.bf16.gmra.mrb[40].mxu1 %v9770_v60 }
 0xa79   : > { %v9647_v34 = vpop.permute.xlu0 %9646 }
 0xa7a   : > { %v9523_v52 = vpop.permute.xlu1 %9522  ;;  %v9863_v56 = vsel %vm2314_vm15, %v9822_v62, %v9647_v34 }
 0xa7b   : > { %v9707_v45 = vsel %vm983_vm8, %v17583_v23, %v9523_v52 }
 0xa7c   : > { %v9737_v1 = vsel %vm2314_vm15, %v9707_v45, %v9553_v28 }
 0xa7d   : > { %v9617_v29 = vpop.permute.xlu0 %9616 }
 0xa7e   : > { %v9585_v3 = vpop.permute.xlu1 %9584  ;;  %v9825_v2 = vsel %vm983_vm8, %v17626_v30, %v9617_v29 }
 0xa7f   : > { %v9776_v17 = vsel %vm2345_vm0, %v9737_v1, %v9585_v3 }
 0xa81   : > { %v9677_v38 = vpop.permute.xlu0 %9676 }
 0xa82   : > { %v9555_v49 = vpop.permute.xlu1 %9554  ;;  %v9900_v10 = vsel %vm2345_vm0, %v9863_v56, %v9677_v38 }
 0xa83   : > { %10167 = vmatprep.mubr.bf16.mxu1 %v9900_v10 }
 0xa84   : > { %10168 = vmatmul.mubr.bf16.gmra.mrb[44].mxu1 %v9773_v25 }
 0xa85   : > { %v9649_v5 = vpop.permute.xlu0 %9648 }
 0xa86   : > { %v9525_v55 = vpop.permute.xlu1 %9524  ;;  %v9865_v12 = vsel %vm2314_vm15, %v9825_v2, %v9649_v5 }
 0xa87   : > { %v9709_v23 = vsel %vm983_vm8, %v17611_v33, %v9525_v55 }
 0xa88   : > { %v9739_v27 = vsel %vm2314_vm15, %v9709_v23, %v9555_v49 }
 0xa89   : > { %v9619_v20 = vpop.permute.xlu0 %9618 }
 0xa8a   : > { %v9587_v15 = vpop.permute.xlu1 %9586  ;;  %v9828_v30 = vsel %vm983_vm8, %v17654_v7, %v9619_v20 }
 0xa8b   : > { %v9779_v58 = vsel %vm2345_vm0, %v9739_v27, %v9587_v15 }
 0xa8d   : > { %v9679_v19 = vpop.permute.xlu0 %9678 }
 0xa8e   : > { %v9557_v21 = vpop.permute.xlu1 %9556  ;;  %v9903_v14 = vsel %vm2345_vm0, %v9865_v12, %v9679_v19 }
 0xa8f   : > { %10175 = vmatprep.mubr.bf16.mxu1 %v9903_v14 }
 0xa90   : > { %10176 = vmatmul.mubr.bf16.gmra.mrb[48].mxu1 %v9776_v17 }
 0xa91   : > { %v9651_v8 = vpop.permute.xlu0 %9650 }
 0xa92   : > { %v9527_v59 = vpop.permute.xlu1 %9526  ;;  %v9867_v42 = vsel %vm2314_vm15, %v9828_v30, %v9651_v8 }
 0xa93   : > { %v9711_v7 = vsel %vm983_vm8, %v17639_v0, %v9527_v59 }
 0xa94   : > { %v9741_v37 = vsel %vm2314_vm15, %v9711_v7, %v9557_v21 }
 0xa95   : > { %v9621_v39 = vpop.permute.xlu0 %9620 }
 0xa96   : > { %v9589_v48 = vpop.permute.xlu1 %9588  ;;  %v9831_v43 = vsel %vm983_vm8, %v17684_v61, %v9621_v39 }
 0xa97   : > { %v9782_v52 = vsel %vm2345_vm0, %v9741_v37, %v9589_v48 }
 0xa99   : > { %v9681_v44 = vpop.permute.xlu0 %9680 }
 0xa9a   : > { %v9559_v57 = vpop.permute.xlu1 %9558  ;;  %v9906_v63 = vsel %vm2345_vm0, %v9867_v42, %v9681_v44 }
 0xa9b   : > { %10183 = vmatprep.mubr.bf16.mxu1 %v9906_v63 }
 0xa9c   : > { %10184 = vmatmul.mubr.bf16.gmra.mrb[52].mxu1 %v9779_v58 }
 0xa9d   : > { %v9653_v46 = vpop.permute.xlu0 %9652 }
 0xa9e   : > { %v9529_v36 = vpop.permute.xlu1 %9528  ;;  %v9869_v41 = vsel %vm2314_vm15, %v9831_v43, %v9653_v46 }
 0xa9f   : > { %v9713_v61 = vsel %vm983_vm8, %v17667_v47, %v9529_v36 }
 0xaa0   : > { %v9743_v13 = vsel %vm2314_vm15, %v9713_v61, %v9559_v57 }
 0xaa1   : > { %v17956_v50 = vpop.f32.mrb[44].mxu0  ;;  %v9623_v33 = vpop.permute.xlu0 %9622 }
 0xaa2   : > { %v9591_v51 = vpop.permute.xlu1 %9590  ;;  %v17958_v54 = vpop.f32.mrb[45].mxu0  ;;  %v9834_v62 = vsel %vm983_vm8, %v17714_v22, %v9623_v33 }
 0xaa3   : > { %v17962_v11 = vpop.f32.mrb[46].mxu0  ;;  %v9785_v25 = vsel %vm2345_vm0, %v9743_v13, %v9591_v51 }
 0xaa4   : > { %v17966_v18 = vpop.f32.mrb[47].mxu0 }
 0xaa5   : > { %v9683_v28 = vpop.permute.xlu0 %9682 }
 0xaa6   : > { %v9561_v60 = vpop.permute.xlu1 %9560  ;;  %v9909_v34 = vsel %vm2345_vm0, %v9869_v41, %v9683_v28 }
 0xaa7   : > { %10191 = vmatprep.mubr.bf16.mxu1 %v9909_v34 }
 0xaa8   : > { %10192 = vmatmul.mubr.bf16.gmra.mrb[56].mxu1 %v9782_v52 }
 0xaa9   : > { %v9655_v0 = vpop.permute.xlu0 %9654 }
 0xaaa   : > { %v9531_v29 = vpop.permute.xlu1 %9530  ;;  %v9871_v56 = vsel %vm2314_vm15, %v9834_v62, %v9655_v0 }
 0xaab   : > { %v9715_v2 = vsel %vm983_vm8, %v17696_v40, %v9531_v29 }
 0xaac   : > { %v9745_v17 = vsel %vm2314_vm15, %v9715_v2, %v9561_v60 }
 0xaad   : > { %v9625_v3 = vpop.permute.xlu0 %9624 }
 0xaae   : > { %v9593_v4 = vpop.permute.xlu1 %9592  ;;  %v9837_v19 = vsel %vm983_vm8, %v17755_v35, %v9625_v3 }
 0xaaf   : > { %v9788_v59 = vsel %vm2345_vm0, %v9745_v17, %v9593_v4 }
 0xab1   : > { %v9685_v38 = vpop.permute.xlu0 %9684 }
 0xab2   : > { %v9563_v49 = vpop.permute.xlu1 %9562  ;;  %v9912_v10 = vsel %vm2345_vm0, %v9871_v56, %v9685_v38 }
 0xab3   : > { %10199 = vmatprep.mubr.bf16.mxu1 %v9912_v10 }
 0xab4   : > { %10200 = vmatmul.mubr.bf16.gmra.mrb[60].mxu1 %v9785_v25 }
 0xab6   : > { %v9657_v5 = vpop.permute.xlu0 %9656  ;;  %v9533_v55 = vpop.permute.xlu1 %9532 }
 0xab7   : > { %v9873_v1 = vsel %vm2314_vm15, %v9837_v19, %v9657_v5  ;;  %v9717_v23 = vsel %vm983_vm8, %v17732_v26, %v9533_v55 }
 0xab8   : > { %v17980_v20 = vpop.f32.mrb[48].mxu0  ;;  %v9747_v27 = vsel %vm2314_vm15, %v9717_v23, %v9563_v49 }
 0xab9   : > { %v17982_v47 = vpop.f32.mrb[49].mxu0 }
 0xaba   : > { %v9627_v15 = vpop.permute.xlu0 %9626  ;;  %v9595_v22 = vpop.permute.xlu1 %9594 }
 0xabb   : > { %v17984_v45 = vpop.f32.mrb[50].mxu0  ;;  %v9840_v35 = vsel %vm983_vm8, %v17806_v9, %v9627_v15  ;;  %v9791_v63 = vsel %vm2345_vm0, %v9747_v27, %v9595_v22 }
 0xabc   : > { %v17988_v12 = vpop.f32.mrb[51].mxu0 }
 0xabe   : > { %v9687_v21 = vpop.permute.xlu0 %9686  ;;  %v9565_v14 = vpop.permute.xlu1 %9564 }
 0xabf   : > { %v9915_v8 = vsel %vm2345_vm0, %v9873_v1, %v9687_v21 }
 0xac0   : > { %10207 = vmatprep.mubr.bf16.mxu1 %v9915_v8  ;;  %v18055_v8 = vld [vmem:[%s18224_s6] ss:$0 sm:$0xff] }
 0xac1   : > { %10208 = vmatmul.mubr.bf16.gmra.mrb[64].mxu1 %v9788_v59 }
 0xac2   : > { %v9659_v39 = vpop.permute.xlu0 %9658  ;;  %v9535_v48 = vpop.permute.xlu1 %9534 }
 0xac3   : > { %v9875_v42 = vsel %vm2314_vm15, %v9840_v35, %v9659_v39  ;;  %v9719_v7 = vsel %vm983_vm8, %v17780_v31, %v9535_v48 }
 0xac4   : > { %v9749_v60 = vsel %vm2314_vm15, %v9719_v7, %v9565_v14 }
 0xac6   : > { %v9629_v40 = vpop.permute.xlu0 %9628  ;;  %v9597_v30 = vpop.permute.xlu1 %9596 }
 0xac7   : > { %v9843_v43 = vsel %vm983_vm8, %v17858_v24, %v9629_v40  ;;  %v9794_v52 = vsel %vm2345_vm0, %v9749_v60, %v9597_v30 }
 0xaca   : > { %v9689_v44 = vpop.permute.xlu0 %9688  ;;  %v9567_v46 = vpop.permute.xlu1 %9566 }
 0xacb   : > { %v9918_v57 = vsel %vm2345_vm0, %v9875_v42, %v9689_v44 }
 0xacc   : > { %10215 = vmatprep.mubr.bf16.mxu1 %v9918_v57 }
 0xacd   : > { %10216 = vmatmul.mubr.bf16.gmra.mrb[68].mxu1 %v9791_v63 }
 0xace   : > { %v9661_v58 = vpop.permute.xlu0 %9660  ;;  %v9537_v41 = vpop.permute.xlu1 %9536 }
 0xacf   : > { %v9877_v28 = vsel %vm2314_vm15, %v9843_v43, %v9661_v58  ;;  %v9721_v31 = vsel %vm983_vm8, %v17828_v6, %v9537_v41 }
 0xad0   : > { %v18004_v36 = vpop.f32.mrb[52].mxu0  ;;  %v9751_v61 = vsel %vm2314_vm15, %v9721_v31, %v9567_v46 }
 0xad1   : > { %v18006_v26 = vpop.f32.mrb[53].mxu0 }
 0xad2   : > { %v9631_v33 = vpop.permute.xlu0 %9630  ;;  %v18008_v9 = vpop.f32.mrb[54].mxu0 }
 0xad3   : > { %v18010_v51 = vpop.f32.mrb[55].mxu0  ;;  %v9599_v29 = vpop.permute.xlu1 %9598  ;;  %v9846_v24 = vsel %vm983_vm8, %v17898_v32, %v9631_v33 }
 0xad4   : > { %v9797_v56 = vsel %vm2345_vm0, %v9751_v61, %v9599_v29 }
 0xad6   : > { %v9691_v37 = vpop.permute.xlu0 %9690 }
 0xad7   : > { %v9921_v34 = vsel %vm2345_vm0, %v9877_v28, %v9691_v37  ;;  %v9539_v38 = vpop.permute.xlu1 %9538 }
 0xad8   : > { %10223 = vmatprep.mubr.bf16.mxu1 %v9921_v34  ;;  %v9723_v10 = vsel %vm983_vm8, %v17855_v53, %v9539_v38 }
 0xad9   : > { %10224 = vmatmul.mubr.bf16.gmra.mrb[72].mxu1 %v9794_v52 }
 0xada   : > { %v9663_v0 = vpop.permute.xlu0 %9662 }
 0xadb   : > { %v9879_v3 = vsel %vm2314_vm15, %v9846_v24, %v9663_v0  ;;  %v9601_v5 = vpop.permute.xlu1 %9600 }
 0xade   : > { %v9693_v4 = vpop.permute.xlu0 %9692 }
 0xadf   : > { %v9924_v62 = vsel %vm2345_vm0, %v9879_v3, %v9693_v4 }
 0xae0   : > { %10231 = vmatprep.mubr.bf16.mxu1 %v9924_v62 }
 0xae1   : > { %10232 = vmatmul.mubr.bf16.gmra.mrb[76].mxu1 %v9797_v56 }
 0xae2   : > { %v9633_v13 = vpop.permute.xlu0 %9632 }
 0xae3   : > { %v9849_v49 = vsel %vm983_vm8, %v17917_v16, %v9633_v13 }
 0xae4   : > { %v9880_v6 = vsel %vm2314_vm15, %v9849_v49, %v9663_v0 }
 0xae5   : > { %v9926_v32 = vsel %vm2345_vm0, %v9880_v6, %v9693_v4 }
 0xae6   : > { %v9569_v25 = vpop.permute.xlu0 %9568  ;;  %10239 = vmatprep.mubr.bf16.mxu1 %v9926_v32 }
 0xae7   : > { %v9753_v55 = vsel %vm2314_vm15, %v9723_v10, %v9569_v25 }
 0xae8   : > { %v9800_v15 = vsel %vm2345_vm0, %v9753_v55, %v9601_v5  ;;  %v18036_v22 = vpop.f32.mrb[56].mxu0 }
 0xae9   : > { %10240 = vmatmul.mubr.bf16.gmra.mrb[80].mxu1 %v9800_v15  ;;  %v18038_v2 = vpop.f32.mrb[57].mxu0 }
 0xaea   : > { %v18040_v16 = vpop.f32.mrb[58].mxu0 }
 0xaeb   : > { %v18042_v19 = vpop.f32.mrb[59].mxu0 }
 0xb00   : > { %v18044_v1 = vpop.f32.mrb[60].mxu0 }
 0xb01   : > { %v18046_v21 = vpop.f32.mrb[61].mxu0 }
 0xb02   : > { %v18048_v53 = vpop.f32.mrb[62].mxu0 }
 0xb03   : > { %v18050_v14 = vpop.f32.mrb[63].mxu0 }
 0xb0f   : > { %v11951_v17 = vpop.f32.mrb[20].mxu1 }
 0xb10   : > { %v11952_v59 = vpop.f32.mrb[21].mxu1 }
 0xb11   : > { %v11953_v39 = vadd.f32 %v11952_v59, %v11951_v17  ;;  %v11954_v48 = vpop.f32.mrb[22].mxu1 }
 0xb12   : > { %v11955_v40 = vpop.f32.mrb[23].mxu1 }
 0xb13   : > { %v10122_v23 = vadd.f32 %v11953_v39, %v18055_v8  ;;  %v11956_v35 = vadd.f32 %v11955_v40, %v11954_v48 }
 0xb15   : > { %v10283_v30 = vadd.f32 %v17958_v54, %v10122_v23  ;;  %v10125_v42 = vadd.f32 %v11956_v35, %v18055_v8 }
 0xb17   : > { %v11117_v44 = vmul.f32 -1.442695, %v10283_v30  ;;  %v10286_v27 = vadd.f32 %v17966_v18, %v10125_v42 }
 0xb19   : > { %12507 = vpow2.f32 %v11117_v44  ;;  %v11118_v57 = vmul.f32 -1.442695, %v10286_v27 }
 0xb1a   : > { %v18061_v63 = vpop.f32.mrb[64].mxu0  ;;  %v11957_v58 = vpop.f32.mrb[24].mxu1 }
 0xb1b   : > { %12509 = vpow2.f32 %v11118_v57  ;;  %v18063_v46 = vpop.f32.mrb[65].mxu0  ;;  %v11958_v33 = vpop.f32.mrb[25].mxu1 }
 0xb1c   : > { %v11959_v7 = vadd.f32 %v11958_v33, %v11957_v58  ;;  %v18065_v43 = vpop.f32.mrb[66].mxu0  ;;  %v11960_v41 = vpop.f32.mrb[26].mxu1 }
 0xb1d   : > { %v18067_v28 = vpop.f32.mrb[67].mxu0  ;;  %v11961_v54 = vpop.f32.mrb[27].mxu1 }
 0xb1e   : > { %v10130_v37 = vadd.f32 %v11959_v7, %v18055_v8  ;;  %v11962_v60 = vadd.f32 %v11961_v54, %v11960_v41 }
 0xb20   : > { %v10291_v18 = vadd.f32 %v17956_v50, %v10130_v37  ;;  %v10133_v34 = vadd.f32 %v11962_v60, %v18055_v8 }
 0xb22   : > { %v11119_v52 = vmul.f32 -1.442695, %v10291_v18  ;;  %v10294_v0 = vadd.f32 %v17962_v11, %v10133_v34 }
 0xb23   : > { %v12508_v29 = vpop.eup %12507 }
 0xb24   : > { %v10505_v31 = vadd.f32 1.0, %v12508_v29  ;;  %12511 = vpow2.f32 %v11119_v52  ;;  %v11120_v24 = vmul.f32 -1.442695, %v10294_v0 }
 0xb25   : > { %v12510_v3 = vpop.eup %12509 }
 0xb26   : > { %12513 = vrcp.f32 %v10505_v31  ;;  %v10506_v4 = vadd.f32 1.0, %v12510_v3 }
 0xb27   : > { %12515 = vpow2.f32 %v11120_v24 }
 0xb28   : > { %12517 = vrcp.f32 %v10506_v4  ;;  %v11963_v61 = vpop.f32.mrb[28].mxu1 }
 0xb29   : > { %v11964_v62 = vpop.f32.mrb[29].mxu1 }
 0xb2a   : > { %v11965_v56 = vadd.f32 %v11964_v62, %v11963_v61  ;;  %v11966_v38 = vpop.f32.mrb[30].mxu1 }
 0xb2b   : > { %v11967_v50 = vpop.f32.mrb[31].mxu1 }
 0xb2c   : > { %v10138_v13 = vadd.f32 %v11965_v56, %v18055_v8  ;;  %v11968_v49 = vadd.f32 %v11967_v50, %v11966_v38 }
 0xb2d   : > { %v18075_v6 = vpop.f32.mrb[68].mxu0 }
 0xb2e   : > { %v12512_v11 = vpop.eup %12511  ;;  %v10299_v32 = vadd.f32 %v17982_v47, %v10138_v13  ;;  %v10141_v10 = vadd.f32 %v11968_v49, %v18055_v8  ;;  %v18084_v25 = vpop.f32.mrb[69].mxu0 }
 0xb2f   : > { %v10507_v5 = vadd.f32 1.0, %v12512_v11  ;;  %v18086_v55 = vpop.f32.mrb[70].mxu0 }
 0xb30   : > { %v12514_v15 = vpop.eup %12513  ;;  %v11121_v17 = vmul.f32 -1.442695, %v10299_v32  ;;  %v10302_v59 = vadd.f32 %v17988_v12, %v10141_v10  ;;  %v18089_v39 = vpop.f32.mrb[71].mxu0 }
 0xb31   : > { %v12516_v48 = vpop.eup %12515  ;;  %10602 = vst.msk [vmem:[%s18080_s26] sm:$0xff] %vm10601_vm1, %v12514_v15  ;;  %12519 = vrcp.f32 %v10507_v5 }
 0xb32   : > { %v12518_v40 = vpop.eup %12517  ;;  %v10508_v47 = vadd.f32 1.0, %v12516_v48  ;;  %12521 = vpow2.f32 %v11121_v17  ;;  %v11122_v23 = vmul.f32 -1.442695, %v10302_v59 }
 0xb33   : > { %10603 = vst.msk [vmem:[%s18080_s26 + $0x8] sm:$0xff] %vm10601_vm1, %v12518_v40  ;;  %v11969_v35 = vpop.f32.mrb[32].mxu1 }
 0xb34   : > { %12523 = vrcp.f32 %v10508_v47  ;;  %v11970_v30 = vpop.f32.mrb[33].mxu1 }
 0xb35   : > { %12525 = vpow2.f32 %v11122_v23  ;;  %v11971_v42 = vadd.f32 %v11970_v30, %v11969_v35  ;;  %v11972_v44 = vpop.f32.mrb[34].mxu1 }
 0xb36   : > { %v11973_v12 = vpop.f32.mrb[35].mxu1  ;;  %v18096_v58 = vpop.f32.mrb[72].mxu0 }
 0xb37   : > { %v10146_v27 = vadd.f32 %v11971_v42, %v18055_v8  ;;  %v11974_v57 = vadd.f32 %v11973_v12, %v11972_v44  ;;  %v18098_v33 = vpop.f32.mrb[73].mxu0 }
 0xb38   : > { %v18102_v54 = vpop.f32.mrb[74].mxu0 }
 0xb39   : > { %v10307_v7 = vadd.f32 %v17980_v20, %v10146_v27  ;;  %v10149_v41 = vadd.f32 %v11974_v57, %v18055_v8  ;;  %v18104_v37 = vpop.f32.mrb[75].mxu0 }
 0xb3b   : > { %v12520_v60 = vpop.eup %12519  ;;  %v11123_v18 = vmul.f32 -1.442695, %v10307_v7  ;;  %v10310_v34 = vadd.f32 %v17984_v45, %v10149_v41 }
 0xb3c   : > { %v12522_v52 = vpop.eup %12521  ;;  %10604 = vst.msk [vmem:[%s18080_s26 + $0x10] sm:$0xff] %vm10601_vm1, %v12520_v60 }
 0xb3d   : > { %v10509_v0 = vadd.f32 1.0, %v12522_v52  ;;  %12527 = vpow2.f32 %v11123_v18  ;;  %v11124_v29 = vmul.f32 -1.442695, %v10310_v34 }
 0xb3e   : > { %v12524_v31 = vpop.eup %12523 }
 0xb3f   : > { %v12526_v24 = vpop.eup %12525  ;;  %10605 = vst.msk [vmem:[%s18080_s26 + $0x18] sm:$0xff] %vm10601_vm1, %v12524_v31  ;;  %12529 = vrcp.f32 %v10509_v0  ;;  %v11975_v20 = vpop.f32.mrb[36].mxu1 }
 0xb40   : > { %v10510_v3 = vadd.f32 1.0, %v12526_v24  ;;  %12531 = vpow2.f32 %v11124_v29  ;;  %v11976_v4 = vpop.f32.mrb[37].mxu1 }
 0xb41   : > { %v11977_v61 = vadd.f32 %v11976_v4, %v11975_v20  ;;  %v11978_v62 = vpop.f32.mrb[38].mxu1 }
 0xb42   : > { %12533 = vrcp.f32 %v10510_v3  ;;  %v11979_v45 = vpop.f32.mrb[39].mxu1 }
 0xb43   : > { %v10154_v56 = vadd.f32 %v11977_v61, %v18055_v8  ;;  %v11980_v38 = vadd.f32 %v11979_v45, %v11978_v62 }
 0xb45   : > { %v10315_v50 = vadd.f32 %v18006_v26, %v10154_v56  ;;  %v10157_v13 = vadd.f32 %v11980_v38, %v18055_v8 }
 0xb47   : > { %v12528_v49 = vpop.eup %12527  ;;  %v11125_v11 = vmul.f32 -1.442695, %v10315_v50  ;;  %v10318_v32 = vadd.f32 %v18010_v51, %v10157_v13 }
 0xb48   : > { %v10511_v10 = vadd.f32 1.0, %v12528_v49 }
 0xb49   : > { %v12530_v5 = vpop.eup %12529  ;;  %12535 = vpow2.f32 %v11125_v11  ;;  %v11126_v15 = vmul.f32 -1.442695, %v10318_v32 }
 0xb4a   : > { %v12532_v17 = vpop.eup %12531  ;;  %10606 = vst.msk [vmem:[%s18080_s26 + $0x20] sm:$0xff] %vm10601_vm1, %v12530_v5  ;;  %12537 = vrcp.f32 %v10511_v10 }
 0xb4b   : > { %v10512_v59 = vadd.f32 1.0, %v12532_v17  ;;  %12539 = vpow2.f32 %v11126_v15  ;;  %v11981_v48 = vpop.f32.mrb[40].mxu1 }
 0xb4c   : > { %v12534_v40 = vpop.eup %12533  ;;  %v11982_v26 = vpop.f32.mrb[41].mxu1 }
 0xb4d   : > { %10607 = vst.msk [vmem:[%s18080_s26 + $0x28] sm:$0xff] %vm10601_vm1, %v12534_v40  ;;  %12541 = vrcp.f32 %v10512_v59  ;;  %v11983_v47 = vadd.f32 %v11982_v26, %v11981_v48  ;;  %v11984_v23 = vpop.f32.mrb[42].mxu1 }
 0xb4e   : > { %v11985_v51 = vpop.f32.mrb[43].mxu1 }
 0xb4f   : > { %v10162_v35 = vadd.f32 %v11983_v47, %v18055_v8  ;;  %v11986_v30 = vadd.f32 %v11985_v51, %v11984_v23 }
 0xb51   : > { %v10323_v42 = vadd.f32 %v18004_v36, %v10162_v35  ;;  %v10165_v44 = vadd.f32 %v11986_v30, %v18055_v8 }
 0xb53   : > { %v12536_v12 = vpop.eup %12535  ;;  %v11127_v27 = vmul.f32 -1.442695, %v10323_v42  ;;  %v10326_v57 = vadd.f32 %v18008_v9, %v10165_v44 }
 0xb54   : > { %v12538_v7 = vpop.eup %12537  ;;  %v10513_v41 = vadd.f32 1.0, %v12536_v12 }
 0xb55   : > { %v12540_v60 = vpop.eup %12539  ;;  %10608 = vst.msk [vmem:[%s18080_s26 + $0x30] sm:$0xff] %vm10601_vm1, %v12538_v7  ;;  %12543 = vpow2.f32 %v11127_v27  ;;  %v11128_v18 = vmul.f32 -1.442695, %v10326_v57 }
 0xb56   : > { %12545 = vrcp.f32 %v10513_v41  ;;  %v10514_v34 = vadd.f32 1.0, %v12540_v60 }
 0xb57   : > { %v12542_v52 = vpop.eup %12541  ;;  %12547 = vpow2.f32 %v11128_v18  ;;  %v11987_v0 = vpop.f32.mrb[44].mxu1 }
 0xb58   : > { %10609 = vst.msk [vmem:[%s18080_s26 + $0x38] sm:$0xff] %vm10601_vm1, %v12542_v52  ;;  %12549 = vrcp.f32 %v10514_v34  ;;  %v11988_v36 = vpop.f32.mrb[45].mxu1 }
 0xb59   : > { %v11989_v29 = vadd.f32 %v11988_v36, %v11987_v0  ;;  %v11990_v31 = vpop.f32.mrb[46].mxu1 }
 0xb5a   : > { %v11991_v9 = vpop.f32.mrb[47].mxu1 }
 0xb5b   : > { %v10170_v24 = vadd.f32 %v11989_v29, %v18055_v8  ;;  %v11992_v20 = vadd.f32 %v11991_v9, %v11990_v31 }
 0xb5d   : > { %v10331_v3 = vadd.f32 %v18038_v2, %v10170_v24  ;;  %v10173_v4 = vadd.f32 %v11992_v20, %v18055_v8 }
 0xb5f   : > { %v12544_v61 = vpop.eup %12543  ;;  %v11129_v62 = vmul.f32 -1.442695, %v10331_v3  ;;  %v10334_v45 = vadd.f32 %v18042_v19, %v10173_v4 }
 0xb60   : > { %v12546_v56 = vpop.eup %12545  ;;  %v10515_v38 = vadd.f32 1.0, %v12544_v61 }
 0xb61   : > { %v12548_v50 = vpop.eup %12547  ;;  %10610 = vst.msk [vmem:[%s18080_s26 + $0x40] sm:$0xff] %vm10601_vm1, %v12546_v56  ;;  %12551 = vpow2.f32 %v11129_v62  ;;  %v11130_v13 = vmul.f32 -1.442695, %v10334_v45 }
 0xb62   : > { %v12550_v49 = vpop.eup %12549  ;;  %12553 = vrcp.f32 %v10515_v38  ;;  %v10516_v11 = vadd.f32 1.0, %v12548_v50 }
 0xb63   : > { %10611 = vst.msk [vmem:[%s18080_s26 + $0x48] sm:$0xff] %vm10601_vm1, %v12550_v49  ;;  %12555 = vpow2.f32 %v11130_v13  ;;  %v11993_v2 = vpop.f32.mrb[48].mxu1 }
 0xb64   : > { %12557 = vrcp.f32 %v10516_v11  ;;  %v11994_v32 = vpop.f32.mrb[49].mxu1 }
 0xb65   : > { %v11995_v10 = vadd.f32 %v11994_v32, %v11993_v2  ;;  %v11996_v5 = vpop.f32.mrb[50].mxu1 }
 0xb66   : > { %v11997_v19 = vpop.f32.mrb[51].mxu1 }
 0xb67   : > { %v10178_v15 = vadd.f32 %v11995_v10, %v18055_v8  ;;  %v11998_v17 = vadd.f32 %v11997_v19, %v11996_v5 }
 0xb69   : > { %v10339_v59 = vadd.f32 %v18036_v22, %v10178_v15  ;;  %v10181_v48 = vadd.f32 %v11998_v17, %v18055_v8 }
 0xb6b   : > { %v12552_v40 = vpop.eup %12551  ;;  %v11131_v26 = vmul.f32 -1.442695, %v10339_v59  ;;  %v10342_v47 = vadd.f32 %v18040_v16, %v10181_v48 }
 0xb6c   : > { %v12554_v23 = vpop.eup %12553  ;;  %v10517_v51 = vadd.f32 1.0, %v12552_v40 }
 0xb6d   : > { %v12556_v35 = vpop.eup %12555  ;;  %10612 = vst.msk [vmem:[%s18080_s26 + $0x50] sm:$0xff] %vm10601_vm1, %v12554_v23  ;;  %12559 = vpow2.f32 %v11131_v26  ;;  %v11132_v30 = vmul.f32 -1.442695, %v10342_v47 }
 0xb6e   : > { %v12558_v42 = vpop.eup %12557  ;;  %12561 = vrcp.f32 %v10517_v51  ;;  %v10518_v44 = vadd.f32 1.0, %v12556_v35 }
 0xb6f   : > { %10613 = vst.msk [vmem:[%s18080_s26 + $0x58] sm:$0xff] %vm10601_vm1, %v12558_v42  ;;  %12563 = vpow2.f32 %v11132_v30  ;;  %v11999_v22 = vpop.f32.mrb[52].mxu1 }
 0xb70   : > { %12565 = vrcp.f32 %v10518_v44  ;;  %v12000_v12 = vpop.f32.mrb[53].mxu1 }
 0xb71   : > { %v12001_v27 = vadd.f32 %v12000_v12, %v11999_v22  ;;  %v12002_v57 = vpop.f32.mrb[54].mxu1 }
 0xb72   : > { %v12003_v16 = vpop.f32.mrb[55].mxu1 }
 0xb73   : > { %v10186_v7 = vadd.f32 %v12001_v27, %v18055_v8  ;;  %v12004_v41 = vadd.f32 %v12003_v16, %v12002_v57 }
 0xb75   : > { %v10347_v60 = vadd.f32 %v18046_v21, %v10186_v7  ;;  %v10189_v18 = vadd.f32 %v12004_v41, %v18055_v8 }
 0xb77   : > { %v12560_v34 = vpop.eup %12559  ;;  %v11133_v52 = vmul.f32 -1.442695, %v10347_v60  ;;  %v10350_v0 = vadd.f32 %v18050_v14, %v10189_v18 }
 0xb78   : > { %v12562_v36 = vpop.eup %12561  ;;  %v10519_v29 = vadd.f32 1.0, %v12560_v34 }
 0xb79   : > { %v12564_v31 = vpop.eup %12563  ;;  %10614 = vst.msk [vmem:[%s18080_s26 + $0x60] sm:$0xff] %vm10601_vm1, %v12562_v36  ;;  %12567 = vpow2.f32 %v11133_v52  ;;  %v11134_v9 = vmul.f32 -1.442695, %v10350_v0 }
 0xb7a   : > { %v12566_v24 = vpop.eup %12565  ;;  %12569 = vrcp.f32 %v10519_v29  ;;  %v10520_v20 = vadd.f32 1.0, %v12564_v31 }
 0xb7b   : > { %10615 = vst.msk [vmem:[%s18080_s26 + $0x68] sm:$0xff] %vm10601_vm1, %v12566_v24  ;;  %12571 = vpow2.f32 %v11134_v9  ;;  %v12005_v21 = vpop.f32.mrb[56].mxu1 }
 0xb7c   : > { %12573 = vrcp.f32 %v10520_v20  ;;  %v12006_v3 = vpop.f32.mrb[57].mxu1 }
 0xb7d   : > { %v12007_v4 = vadd.f32 %v12006_v3, %v12005_v21  ;;  %v12008_v61 = vpop.f32.mrb[58].mxu1 }
 0xb7e   : > { %v12009_v14 = vpop.f32.mrb[59].mxu1 }
 0xb7f   : > { %v10194_v62 = vadd.f32 %v12007_v4, %v18055_v8  ;;  %v12010_v45 = vadd.f32 %v12009_v14, %v12008_v61 }
 0xb81   : > { %v10355_v56 = vadd.f32 %v18044_v1, %v10194_v62  ;;  %v10197_v38 = vadd.f32 %v12010_v45, %v18055_v8 }
 0xb83   : > { %v12568_v50 = vpop.eup %12567  ;;  %v11135_v13 = vmul.f32 -1.442695, %v10355_v56  ;;  %v10358_v49 = vadd.f32 %v18048_v53, %v10197_v38 }
 0xb84   : > { %v12570_v11 = vpop.eup %12569  ;;  %v10521_v2 = vadd.f32 1.0, %v12568_v50 }
 0xb85   : > { %v12572_v32 = vpop.eup %12571  ;;  %10616 = vst.msk [vmem:[%s18080_s26 + $0x70] sm:$0xff] %vm10601_vm1, %v12570_v11  ;;  %12575 = vpow2.f32 %v11135_v13  ;;  %v11136_v10 = vmul.f32 -1.442695, %v10358_v49 }
 0xb86   : > { %v12574_v5 = vpop.eup %12573  ;;  %12577 = vrcp.f32 %v10521_v2  ;;  %v10522_v19 = vadd.f32 1.0, %v12572_v32 }
 0xb87   : > { %10617 = vst.msk [vmem:[%s18080_s26 + $0x78] sm:$0xff] %vm10601_vm1, %v12574_v5  ;;  %12579 = vpow2.f32 %v11136_v10  ;;  %v12011_v1 = vpop.f32.mrb[60].mxu1 }
 0xb88   : > { %12581 = vrcp.f32 %v10522_v19  ;;  %v12012_v15 = vpop.f32.mrb[61].mxu1 }
 0xb89   : > { %v12013_v17 = vadd.f32 %v12012_v15, %v12011_v1  ;;  %v12014_v59 = vpop.f32.mrb[62].mxu1 }
 0xb8a   : > { %v12015_v53 = vpop.f32.mrb[63].mxu1 }
 0xb8b   : > { %v10202_v48 = vadd.f32 %v12013_v17, %v18055_v8  ;;  %v12016_v40 = vadd.f32 %v12015_v53, %v12014_v59 }
 0xb8d   : > { %v10363_v26 = vadd.f32 %v18063_v46, %v10202_v48  ;;  %v10205_v47 = vadd.f32 %v12016_v40, %v18055_v8 }
 0xb8f   : > { %v12576_v23 = vpop.eup %12575  ;;  %v11137_v51 = vmul.f32 -1.442695, %v10363_v26  ;;  %v10366_v35 = vadd.f32 %v18067_v28, %v10205_v47 }
 0xb90   : > { %v12578_v30 = vpop.eup %12577  ;;  %v10523_v42 = vadd.f32 1.0, %v12576_v23 }
 0xb91   : > { %v12580_v44 = vpop.eup %12579  ;;  %10618 = vst.msk [vmem:[%s18080_s26 + $0x80] sm:$0xff] %vm10601_vm1, %v12578_v30  ;;  %12583 = vpow2.f32 %v11137_v51  ;;  %v11138_v22 = vmul.f32 -1.442695, %v10366_v35 }
 0xb92   : > { %v12582_v12 = vpop.eup %12581  ;;  %12585 = vrcp.f32 %v10523_v42  ;;  %v10524_v27 = vadd.f32 1.0, %v12580_v44 }
 0xb93   : > { %10619 = vst.msk [vmem:[%s18080_s26 + $0x88] sm:$0xff] %vm10601_vm1, %v12582_v12  ;;  %12587 = vpow2.f32 %v11138_v22 }
 0xb94   : > { %12589 = vrcp.f32 %v10524_v27  ;;  %v12017_v46 = vpop.f32.mrb[64].mxu1 }
 0xb95   : > { %v12018_v57 = vpop.f32.mrb[65].mxu1 }
 0xb96   : > { %v12019_v16 = vadd.f32 %v12018_v57, %v12017_v46  ;;  %v12020_v7 = vpop.f32.mrb[66].mxu1 }
 0xb97   : > { %v12021_v28 = vpop.f32.mrb[67].mxu1 }
 0xb98   : > { %v10210_v41 = vadd.f32 %v12019_v16, %v18055_v8  ;;  %v12022_v60 = vadd.f32 %v12021_v28, %v12020_v7 }
 0xb9a   : > { %v10371_v18 = vadd.f32 %v18061_v63, %v10210_v41  ;;  %v10213_v34 = vadd.f32 %v12022_v60, %v18055_v8 }
 0xb9b   : > { %v12584_v52 = vpop.eup %12583 }
 0xb9c   : > { %v12586_v0 = vpop.eup %12585  ;;  %v10525_v36 = vadd.f32 1.0, %v12584_v52  ;;  %v11139_v29 = vmul.f32 -1.442695, %v10371_v18  ;;  %v10374_v31 = vadd.f32 %v18065_v43, %v10213_v34 }
 0xb9d   : > { %v12588_v9 = vpop.eup %12587  ;;  %10620 = vst.msk [vmem:[%s18080_s26 + $0x90] sm:$0xff] %vm10601_vm1, %v12586_v0 }
 0xb9e   : > { %v12590_v24 = vpop.eup %12589  ;;  %12591 = vrcp.f32 %v10525_v36  ;;  %v10526_v20 = vadd.f32 1.0, %v12588_v9  ;;  %v11140_v21 = vmul.f32 -1.442695, %v10374_v31 }
 0xb9f   : > { %10621 = vst.msk [vmem:[%s18080_s26 + $0x98] sm:$0xff] %vm10601_vm1, %v12590_v24  ;;  %12593 = vpow2.f32 %v11139_v29 }
 0xba0   : > { %12595 = vrcp.f32 %v10526_v20  ;;  %v12023_v63 = vpop.f32.mrb[68].mxu1 }
 0xba1   : > { %12597 = vpow2.f32 %v11140_v21  ;;  %v12024_v3 = vpop.f32.mrb[69].mxu1 }
 0xba2   : > { %v12025_v4 = vadd.f32 %v12024_v3, %v12023_v63  ;;  %v12026_v61 = vpop.f32.mrb[70].mxu1 }
 0xba3   : > { %v12027_v14 = vpop.f32.mrb[71].mxu1 }
 0xba4   : > { %v10218_v43 = vadd.f32 %v12025_v4, %v18055_v8  ;;  %v12028_v62 = vadd.f32 %v12027_v14, %v12026_v61 }
 0xba6   : > { %v10379_v45 = vadd.f32 %v18084_v25, %v10218_v43  ;;  %v10221_v56 = vadd.f32 %v12028_v62, %v18055_v8 }
 0xba8   : > { %v12592_v38 = vpop.eup %12591  ;;  %v11141_v50 = vmul.f32 -1.442695, %v10379_v45  ;;  %v10382_v13 = vadd.f32 %v18089_v39, %v10221_v56 }
 0xba9   : > { %v12594_v49 = vpop.eup %12593  ;;  %10622 = vst.msk [vmem:[%s18080_s26 + $0xa0] sm:$0xff] %vm10601_vm1, %v12592_v38 }
 0xbaa   : > { %v12596_v11 = vpop.eup %12595  ;;  %v10527_v2 = vadd.f32 1.0, %v12594_v49  ;;  %12599 = vpow2.f32 %v11141_v50  ;;  %v11142_v32 = vmul.f32 -1.442695, %v10382_v13 }
 0xbab   : > { %v12598_v10 = vpop.eup %12597  ;;  %10623 = vst.msk [vmem:[%s18080_s26 + $0xa8] sm:$0xff] %vm10601_vm1, %v12596_v11 }
 0xbac   : > { %12601 = vrcp.f32 %v10527_v2  ;;  %v10528_v5 = vadd.f32 1.0, %v12598_v10  ;;  %v12029_v19 = vpop.f32.mrb[72].mxu1 }
 0xbad   : > { %12603 = vpow2.f32 %v11142_v32  ;;  %v12030_v25 = vpop.f32.mrb[73].mxu1 }
 0xbae   : > { %12605 = vrcp.f32 %v10528_v5  ;;  %v12031_v1 = vadd.f32 %v12030_v25, %v12029_v19  ;;  %v12032_v15 = vpop.f32.mrb[74].mxu1 }
 0xbaf   : > { %v12033_v17 = vpop.f32.mrb[75].mxu1 }
 0xbb0   : > { %v10226_v39 = vadd.f32 %v12031_v1, %v18055_v8  ;;  %v12034_v59 = vadd.f32 %v12033_v17, %v12032_v15 }
 0xbb2   : > { %v10387_v53 = vadd.f32 %v18075_v6, %v10226_v39  ;;  %v10229_v48 = vadd.f32 %v12034_v59, %v18055_v8 }
 0xbb4   : > { %v12600_v40 = vpop.eup %12599  ;;  %v11143_v26 = vmul.f32 -1.442695, %v10387_v53  ;;  %v10390_v47 = vadd.f32 %v18086_v55, %v10229_v48  ;;  %v12035_v23 = vpop.f32.mrb[76].mxu1 }
 0xbb5   : > { %v10529_v51 = vadd.f32 1.0, %v12600_v40  ;;  %v12036_v35 = vpop.f32.mrb[77].mxu1 }
 0xbb6   : > { %v12602_v30 = vpop.eup %12601  ;;  %12607 = vpow2.f32 %v11143_v26  ;;  %v11144_v42 = vmul.f32 -1.442695, %v10390_v47  ;;  %v12037_v44 = vadd.f32 %v12036_v35, %v12035_v23  ;;  %v12038_v22 = vpop.f32.mrb[78].mxu1 }
 0xbb7   : > { %v12604_v12 = vpop.eup %12603  ;;  %10624 = vst.msk [vmem:[%s18080_s26 + $0xb0] sm:$0xff] %vm10601_vm1, %v12602_v30  ;;  %12609 = vrcp.f32 %v10529_v51  ;;  %v12039_v6 = vpop.f32.mrb[79].mxu1 }
 0xbb8   : > { %v12606_v27 = vpop.eup %12605  ;;  %v10530_v46 = vadd.f32 1.0, %v12604_v12  ;;  %12611 = vpow2.f32 %v11144_v42  ;;  %v10234_v57 = vadd.f32 %v12037_v44, %v18055_v8  ;;  %v12040_v55 = vadd.f32 %v12039_v6, %v12038_v22 }
 0xbb9   : > { %10625 = vst.msk [vmem:[%s18080_s26 + $0xb8] sm:$0xff] %vm10601_vm1, %v12606_v27 }
 0xbba   : > { %12613 = vrcp.f32 %v10530_v46  ;;  %v10395_v16 = vadd.f32 %v18098_v33, %v10234_v57  ;;  %v10237_v7 = vadd.f32 %v12040_v55, %v18055_v8 }
 0xbbc   : > { %v11145_v28 = vmul.f32 -1.442695, %v10395_v16  ;;  %v10398_v41 = vadd.f32 %v18104_v37, %v10237_v7  ;;  %v12041_v60 = vpop.f32.mrb[80].mxu1 }
 0xbbd   : > { %v12042_v18 = vpop.f32.mrb[81].mxu1 }
 0xbbe   : > { %12615 = vpow2.f32 %v11145_v28  ;;  %v11146_v34 = vmul.f32 -1.442695, %v10398_v41  ;;  %v12043_v52 = vadd.f32 %v12042_v18, %v12041_v60  ;;  %v12044_v0 = vpop.f32.mrb[82].mxu1 }
 0xbbf   : > { %v12045_v36 = vpop.f32.mrb[83].mxu1 }
 0xbc0   : > { %v12608_v29 = vpop.eup %12607  ;;  %12617 = vpow2.f32 %v11146_v34  ;;  %v10242_v31 = vadd.f32 %v12043_v52, %v18055_v8  ;;  %v12046_v9 = vadd.f32 %v12045_v36, %v12044_v0 }
 0xbc1   : > { %v12610_v33 = vpop.eup %12609  ;;  %v10531_v24 = vadd.f32 1.0, %v12608_v29 }
 0xbc2   : > { %v12612_v20 = vpop.eup %12611  ;;  %10626 = vst.msk [vmem:[%s18080_s26 + $0xc0] sm:$0xff] %vm10601_vm1, %v12610_v33  ;;  %v10403_v37 = vadd.f32 %v18096_v58, %v10242_v31  ;;  %v10245_v21 = vadd.f32 %v12046_v9, %v18055_v8 }
 0xbc3   : > { %12619 = vrcp.f32 %v10531_v24  ;;  %v10532_v63 = vadd.f32 1.0, %v12612_v20 }
 0xbc4   : > { %v12614_v3 = vpop.eup %12613  ;;  %v11147_v4 = vmul.f32 -1.442695, %v10403_v37  ;;  %v10406_v61 = vadd.f32 %v18102_v54, %v10245_v21 }
 0xbc5   : > { %10627 = vst.msk [vmem:[%s18080_s26 + $0xc8] sm:$0xff] %vm10601_vm1, %v12614_v3  ;;  %12621 = vrcp.f32 %v10532_v63 }
 0xbc6   : > { %12623 = vpow2.f32 %v11147_v4  ;;  %v11148_v14 = vmul.f32 -1.442695, %v10406_v61 }
 0xbc8   : > { %v12616_v43 = vpop.eup %12615  ;;  %12625 = vpow2.f32 %v11148_v14 }
 0xbc9   : > { %v10533_v62 = vadd.f32 1.0, %v12616_v43 }
 0xbca   : > { %v12618_v58 = vpop.eup %12617 }
 0xbcb   : > { %12627 = vrcp.f32 %v10533_v62  ;;  %v10534_v8 = vadd.f32 1.0, %v12618_v58 }
 0xbcd   : > { %v12620_v45 = vpop.eup %12619  ;;  %12629 = vrcp.f32 %v10534_v8 }
 0xbce   : > { %10628 = vst.msk [vmem:[%s18080_s26 + $0xd0] sm:$0xff] %vm10601_vm1, %v12620_v45 }
 0xbcf   : > { %v12622_v54 = vpop.eup %12621 }
 0xbd0   : > { %v12624_v56 = vpop.eup %12623  ;;  %10629 = vst.msk [vmem:[%s18080_s26 + $0xd8] sm:$0xff] %vm10601_vm1, %v12622_v54 }
 0xbd1   : > { %v10535_v38 = vadd.f32 1.0, %v12624_v56 }
 0xbd2   : > { %v12626_v50 = vpop.eup %12625 }
 0xbd3   : > { %12631 = vrcp.f32 %v10535_v38  ;;  %v10536_v13 = vadd.f32 1.0, %v12626_v50 }
 0xbd5   : > { %v12628_v49 = vpop.eup %12627  ;;  %12633 = vrcp.f32 %v10536_v13 }
 0xbd6   : > { %10630 = vst.msk [vmem:[%s18080_s26 + $0xe0] sm:$0xff] %vm10601_vm1, %v12628_v49 }
 0xbd7   : > { %v12630_v11 = vpop.eup %12629 }
 0xbd8   : > { %10631 = vst.msk [vmem:[%s18080_s26 + $0xe8] sm:$0xff] %vm10601_vm1, %v12630_v11 }
 0xbdd   : > { %v12632_v2 = vpop.eup %12631 }
 0xbde   : > { %10632 = vst.msk [vmem:[%s18080_s26 + $0xf0] sm:$0xff] %vm10601_vm1, %v12632_v2 }
 0xbdf   : > { %v12634_v32 = vpop.eup %12633 }
 0xbe0   : > { %10633 = vst.msk [vmem:[%s18080_s26 + $0xf8] sm:$0xff] %vm10601_vm1, %v12634_v32 }
 0xbe1 PF: > { %s17_s24 = sadd.s32 1, %s12651_s24  }
 0xbe2   : > { %p14_p4 = scmp.ge.s32.totalorder %s17_s24, 4  }
 0xbe4   :  { %16 = sbr.rel (!%p14_p4) target bundleno = 1 (0x1), region = 86 }

</bundles_post_ra>
